<compile_context>
chip_gen: v7x
topology: tpu7x:2x2x1
jax: 0.10.0
libtpu: 0.0.40
codegen_flags: <defaults>
</compile_context>

<pallas_src>
import functools

import jax
import jax.numpy as jnp
from jax.experimental import pallas as pl
from jax.experimental.pallas import tpu as pltpu

# ---- small synthetic model config (TPU-friendly lane-dense sizes) -------------------
PATCH = 8
HIDDEN = 128                    # ViT hidden == decoder embed == decoder hidden
HEADS = 4
HEAD_DIM = HIDDEN // HEADS      # 32
LAYERS = 2                      # ViT encoder layers
MLP = 256
EPS = 1e-12                     # HF ViT layer_norm_eps

VOCAB = 256                     # decoder vocab (multiple of 128 lanes)
DEC_LAYERS = 2                  # LSTM num_layers

_VMEM = pl.BlockSpec(memory_space=pltpu.MemorySpace.VMEM)
_NEG_INF = -1e30


# ---- small in-kernel helpers ---------------------------------------------------------
def _bf16(x):
    return x.astype(jnp.bfloat16)


def _sigmoid(x):
    return 1.0 / (1.0 + jnp.exp(-x))


def _layernorm(x, g, b):
    mu = jnp.mean(x, axis=-1, keepdims=True)
    xc = x - mu
    var = jnp.mean(xc * xc, axis=-1, keepdims=True)
    return xc * jax.lax.rsqrt(var + EPS) * g + b


# ---- fused encoder kernel (one image per grid step, "parallel" over batch) -----------
def _encoder_kernel(xp_ref, pw_ref, pb_ref, pos_ref,
                    ln1g_ref, ln1b_ref, wqkv_ref, bqkv_ref, wo_ref, bo_ref,
                    ln2g_ref, ln2b_ref, w1_ref, b1_ref, w2_ref, b2_ref,
                    lnfg_ref, lnfb_ref, o_ref, *, seq_len):
    _, nP, PD = xp_ref.shape
    S = pos_ref.shape[1]
    D = pw_ref.shape[1]
    scale = 1.0 / float(HEAD_DIM) ** 0.5

    # --- preprocess (emulate .type(torch.uint8) + feature-extractor renorm) + patch embed ---
    x = xp_ref[...].reshape(nP, PD)
    u = jnp.floor(jnp.clip((x * 0.5 + 0.5) * 255.0, 0.0, 255.0))
    xn = (u * (1.0 / 255.0) - 0.5) / 0.5
    emb = jnp.dot(_bf16(xn), pw_ref[...], preferred_element_type=jnp.float32) + pb_ref[...]

    # Token buffer built ONCE as a value (no partial/redundant stores):
    # rows [0, nP) = patches, row nP = CLS (folded into pos_ref), rows [seq_len, S) = pad.
    emb_pad = jnp.concatenate([emb, jnp.zeros((S - nP, D), jnp.float32)], axis=0)
    h = emb_pad + pos_ref[0]

    # additive mask for pad keys
    key_pos = jax.lax.broadcasted_iota(jnp.int32, (1, 1, S), 2)
    bias = jnp.where(key_pos < seq_len, 0.0, _NEG_INF).astype(jnp.float32)

    for l in range(LAYERS):
        # --- LN1 + fused QKV projection (one 384-wide matmul) ---
        xn1 = _layernorm(h, ln1g_ref[l], ln1b_ref[l])
        qkv = jnp.dot(_bf16(xn1), wqkv_ref[l], preferred_element_type=jnp.float32) + bqkv_ref[l]

        # --- head-batched attention (single contraction per stage, no per-head loop) ---
        q = jnp.transpose(qkv[:, 0:D].reshape(S, HEADS, HEAD_DIM), (1, 0, 2))
        k = jnp.transpose(qkv[:, D:2 * D].reshape(S, HEADS, HEAD_DIM), (1, 0, 2))
        v = jnp.transpose(qkv[:, 2 * D:3 * D].reshape(S, HEADS, HEAD_DIM), (1, 0, 2))
        s = jnp.einsum("hqd,hkd->hqk", _bf16(q), _bf16(k),
                       preferred_element_type=jnp.float32) * scale + bias
        m = jnp.max(s, axis=-1, keepdims=True)
        p = jnp.exp(s - m)
        p = p * pl.reciprocal(jnp.sum(p, axis=-1, keepdims=True), approx=True)
        ctx = jnp.einsum("hqk,hkd->hqd", _bf16(p), _bf16(v),
                         preferred_element_type=jnp.float32)
        attn = jnp.transpose(ctx, (1, 0, 2)).reshape(S, D)

        # --- output projection + residual ---
        h = h + jnp.dot(_bf16(attn), wo_ref[l], preferred_element_type=jnp.float32) + bo_ref[l]

        # --- LN2 + MLP + residual ---
        xn2 = _layernorm(h, ln2g_ref[l], ln2b_ref[l])
        m1 = jnp.dot(_bf16(xn2), w1_ref[l], preferred_element_type=jnp.float32) + b1_ref[l]
        # TODO(synk): HF ViT's default is the exact erf-GELU; tanh approximation kept here.
        m1 = jax.nn.gelu(m1, approximate=True)
        h = h + jnp.dot(_bf16(m1), w2_ref[l], preferred_element_type=jnp.float32) + b2_ref[l]

    # --- final LayerNorm + features.mean(dim=1) over the real (unpadded) tokens ---
    hn = _layernorm(h, lnfg_ref[...], lnfb_ref[...])
    tok = jax.lax.broadcasted_iota(jnp.int32, (S, 1), 0)
    w = jnp.where(tok < seq_len, 1.0 / seq_len, 0.0).astype(jnp.float32)
    o_ref[...] = jnp.sum(hn * w, axis=0, keepdims=True).reshape(1, 1, D)


# ---- fused decoder kernel (embedding + stacked LSTM + vocab head, single call) --------
def _decoder_kernel(cap_ref, feat_ref, table_ref, wih_ref, whh_ref, b_ref,
                    wout_ref, bout_ref, o_ref, *, t_cap, batch):
    V, E = table_ref.shape
    H = whh_ref.shape[1]
    T = t_cap + 1

    # embedding lookup as a one-hot matmul (MXU-friendly, no gather); time-major ids
    ids = cap_ref[...]                                              # (t_cap*batch, 1)
    iota_v = jax.lax.broadcasted_iota(jnp.int32, (t_cap * batch, V), 1)
    onehot = jnp.where(ids == iota_v, 1.0, 0.0).astype(jnp.bfloat16)
    emb = jnp.dot(onehot, table_ref[...], preferred_element_type=jnp.float32)
    # x_seq (time-major, flattened): step 0 = features.unsqueeze(1), steps 1..T = captions
    hs = jnp.concatenate([feat_ref[...], emb], axis=0)              # (T*batch, E)

    # stacked LSTM: input projection hoisted out of the recurrence; T statically unrolled.
    # NOTE: single combined bias b == PyTorch's (b_ih + b_hh) when porting real weights.
    for l in range(DEC_LAYERS):
        gates_x = jnp.dot(_bf16(hs), wih_ref[l], preferred_element_type=jnp.float32) + b_ref[l]
        whh = whh_ref[l]
        h = jnp.zeros((batch, H), jnp.float32)
        c = jnp.zeros((batch, H), jnp.float32)
        outs = []
        for t in range(T):                                          # static unroll (T small)
            g = gates_x[t * batch:(t + 1) * batch, :] + jnp.dot(
                _bf16(h), whh, preferred_element_type=jnp.float32)
            i = _sigmoid(g[:, 0:H])
            f = _sigmoid(g[:, H:2 * H])
            gg = jnp.tanh(g[:, 2 * H:3 * H])
            o = _sigmoid(g[:, 3 * H:4 * H])
            c = f * c + i * gg
            h = o * jnp.tanh(c)
            outs.append(h)
        hs = jnp.concatenate(outs, axis=0)                          # (T*batch, H)

    # vocab projection fused into the same kernel (no HBM round-trip of hiddens)
    logits = jnp.dot(_bf16(hs), wout_ref[...], preferred_element_type=jnp.float32) + bout_ref[...]
    o_ref[...] = logits.reshape(T, batch, V)


# ---- forward passes --------------------------------------------------------------------
def _const_map(nd):
    return lambda b: (0,) * nd


def encoder_forward(images, p):
    B, C, H, W = images.shape
    nH, nW = H // PATCH, W // PATCH
    nP = nH * nW
    seq_len = nP + 1
    s_pad = p["pos"].shape[1]
    patch_dim = C * PATCH * PATCH

    # TODO(synk): the PIL-based 224x224 resize inside ViTFeatureExtractor has no clean
    #             Pallas equivalent; the native resolution is patchified directly.
    patches = images.reshape(B, C, nH, PATCH, nW, PATCH)
    patches = patches.transpose(0, 2, 4, 3, 5, 1).reshape(B, nP, patch_dim)

    args = (patches, p["patch_w"], p["patch_b"], p["pos"],
            p["ln1_g"], p["ln1_b"], p["wqkv"], p["bqkv"], p["wo"], p["bo"],
            p["ln2_g"], p["ln2_b"], p["w1"], p["b1"], p["w2"], p["b2"],
            p["lnf_g"], p["lnf_b"])

    flops = 2 * B * (nP * patch_dim * HIDDEN
                     + LAYERS * (s_pad * HIDDEN * 3 * HIDDEN
                                 + 2 * HEADS * s_pad * s_pad * HEAD_DIM
                                 + s_pad * HIDDEN * HIDDEN
                                 + 2 * s_pad * HIDDEN * MLP))
    transc = B * LAYERS * (HEADS * s_pad * s_pad + s_pad * MLP)
    bytes_accessed = (int(patches.size) * 4 + B * HIDDEN * 4
                      + B * sum(int(a.size) * a.dtype.itemsize for a in args[1:]))

    out = pl.pallas_call(
        functools.partial(_encoder_kernel, seq_len=seq_len),
        out_shape=jax.ShapeDtypeStruct((B, 1, HIDDEN), jnp.float32),
        grid=(B,),
        in_specs=[
            pl.BlockSpec((1, nP, patch_dim), lambda b: (b, 0, 0)),
            pl.BlockSpec((patch_dim, HIDDEN), _const_map(2)),
            pl.BlockSpec((1, HIDDEN), _const_map(2)),
            pl.BlockSpec((1, s_pad, HIDDEN), _const_map(3)),
            pl.BlockSpec((LAYERS, 1, HIDDEN), _const_map(3)),
            pl.BlockSpec((LAYERS, 1, HIDDEN), _const_map(3)),
            pl.BlockSpec((LAYERS, HIDDEN, 3 * HIDDEN), _const_map(3)),
            pl.BlockSpec((LAYERS, 1, 3 * HIDDEN), _const_map(3)),
            pl.BlockSpec((LAYERS, HIDDEN, HIDDEN), _const_map(3)),
            pl.BlockSpec((LAYERS, 1, HIDDEN), _const_map(3)),
            pl.BlockSpec((LAYERS, 1, HIDDEN), _const_map(3)),
            pl.BlockSpec((LAYERS, 1, HIDDEN), _const_map(3)),
            pl.BlockSpec((LAYERS, HIDDEN, MLP), _const_map(3)),
            pl.BlockSpec((LAYERS, 1, MLP), _const_map(3)),
            pl.BlockSpec((LAYERS, MLP, HIDDEN), _const_map(3)),
            pl.BlockSpec((LAYERS, 1, HIDDEN), _const_map(3)),
            pl.BlockSpec((1, HIDDEN), _const_map(2)),
            pl.BlockSpec((1, HIDDEN), _const_map(2)),
        ],
        out_specs=pl.BlockSpec((1, 1, HIDDEN), lambda b: (b, 0, 0)),
        compiler_params=pltpu.CompilerParams(dimension_semantics=("parallel",)),
        cost_estimate=pl.CostEstimate(flops=int(flops), transcendentals=int(transc),
                                      bytes_accessed=int(bytes_accessed)),
    )(*args)
    return out.reshape(B, HIDDEN)


def decoder_forward(features, captions, p):
    B, T_cap = captions.shape
    T = T_cap + 1
    cap_flat = captions.T.reshape(T_cap * B, 1).astype(jnp.int32)   # time-major ids (XLA glue)

    args = (cap_flat, features, p["embed"], p["wih"], p["whh"], p["b"],
            p["w_out"], p["b_out"])
    flops = 2 * B * (T_cap * VOCAB * HIDDEN
                     + DEC_LAYERS * 2 * T * HIDDEN * 4 * HIDDEN
                     + T * HIDDEN * VOCAB)
    transc = B * DEC_LAYERS * T * 5 * HIDDEN
    bytes_accessed = (sum(int(a.size) * a.dtype.itemsize for a in args)
                      + T * B * VOCAB * 4)

    logits = pl.pallas_call(
        functools.partial(_decoder_kernel, t_cap=T_cap, batch=B),
        out_shape=jax.ShapeDtypeStruct((T, B, VOCAB), jnp.float32),
        in_specs=[_VMEM] * len(args),
        out_specs=_VMEM,
        cost_estimate=pl.CostEstimate(flops=int(flops), transcendentals=int(transc),
                                      bytes_accessed=int(bytes_accessed)),
    )(*args)
    return jnp.transpose(logits, (1, 0, 2))        # (B, T, vocab), batch_first like PyTorch


def caption_rl_forward(images, captions, params):
    features = encoder_forward(images, params["encoder"])
    return decoder_forward(features, captions, params["decoder"])


# ---- parameter construction (deterministic, synthetic; per-layer weights stacked) ------
def init_params(key, in_ch, img_hw):
    H, W = img_hw
    nP = (H // PATCH) * (W // PATCH)
    seq_len = nP + 1
    s_pad = ((seq_len + 7) // 8) * 8
    patch_dim = in_ch * PATCH * PATCH

    def nrm(k, shape, dtype=jnp.float32, scale=0.02):
        return (scale * jax.random.normal(k, shape, dtype=jnp.float32)).astype(dtype)

    keys = jax.random.split(key, 16)
    enc = {
        "patch_w": nrm(keys[0], (patch_dim, HIDDEN), jnp.bfloat16),
        "patch_b": jnp.zeros((1, HIDDEN), jnp.float32),
        "lnf_g": jnp.ones((1, HIDDEN), jnp.float32),
        "lnf_b": jnp.zeros((1, HIDDEN), jnp.float32),
        "ln1_g": jnp.ones((LAYERS, 1, HIDDEN), jnp.float32),
        "ln1_b": jnp.zeros((LAYERS, 1, HIDDEN), jnp.float32),
        "ln2_g": jnp.ones((LAYERS, 1, HIDDEN), jnp.float32),
        "ln2_b": jnp.zeros((LAYERS, 1, HIDDEN), jnp.float32),
        "wqkv": nrm(keys[1], (LAYERS, HIDDEN, 3 * HIDDEN), jnp.bfloat16),
        "bqkv": jnp.zeros((LAYERS, 1, 3 * HIDDEN), jnp.float32),
        "wo": nrm(keys[2], (LAYERS, HIDDEN, HIDDEN), jnp.bfloat16),
        "bo": jnp.zeros((LAYERS, 1, HIDDEN), jnp.float32),
        "w1": nrm(keys[3], (LAYERS, HIDDEN, MLP), jnp.bfloat16),
        "b1": jnp.zeros((LAYERS, 1, MLP), jnp.float32),
        "w2": nrm(keys[4], (LAYERS, MLP, HIDDEN), jnp.bfloat16),
        "b2": jnp.zeros((LAYERS, 1, HIDDEN), jnp.float32),
    }
    # positional embedding: rows [0, nP) = patch positions, row nP = CLS token (+ its pos),
    # rows [seq_len, s_pad) = 0 (padding).  CLS is folded in so the kernel needs no concat.
    pos_patch = nrm(keys[5], (1, nP, HIDDEN))
    pos_cls = nrm(keys[6], (1, 1, HIDDEN)) + nrm(keys[7], (1, 1, HIDDEN))
    pad = jnp.zeros((1, s_pad - seq_len, HIDDEN), jnp.float32)
    enc["pos"] = jnp.concatenate([pos_patch, pos_cls, pad], axis=1)

    dec = {
        "embed": nrm(keys[8], (VOCAB, HIDDEN), jnp.bfloat16),
        "w_out": nrm(keys[9], (HIDDEN, VOCAB), jnp.bfloat16),
        "b_out": jnp.zeros((1, VOCAB), jnp.float32),
        "wih": nrm(keys[10], (DEC_LAYERS, HIDDEN, 4 * HIDDEN), jnp.bfloat16),
        "whh": nrm(keys[11], (DEC_LAYERS, HIDDEN, 4 * HIDDEN), jnp.bfloat16),
        "b": jnp.zeros((DEC_LAYERS, 1, 4 * HIDDEN), jnp.float32),
    }
    return {"encoder": enc, "decoder": dec}


if __name__ == "__main__":
    key = jax.random.PRNGKey(0)
    k_img, k_cap, k_par = jax.random.split(key, 3)

    B, C, H, W = 2, 3, 32, 32          # spatial multiple of PATCH
    T_CAP = 8
    # "normalized" input images roughly in [-1, 1], like the PyTorch module receives
    images = jnp.tanh(jax.random.normal(k_img, (B, C, H, W), dtype=jnp.float32))
    captions = jax.random.randint(k_cap, (B, T_CAP), 0, VOCAB, dtype=jnp.int32)

    params = init_params(k_par, C, (H, W))

    fwd = jax.jit(caption_rl_forward)
    out = jax.block_until_ready(fwd(images, captions, params))

    assert out.shape == (B, T_CAP + 1, VOCAB), out.shape
    assert bool(jnp.all(jnp.isfinite(out)))
    print("KERNEL_OK")
</pallas_src>

<mosaic_0001>
module attributes {stable_mosaic.version = 11 : i64} {
  func.func @_encoder_kernel(%arg0: i32, %arg1: memref<1x16x192xf32, #tpu.memory_space<vmem>>, %arg2: memref<192x128xbf16, #tpu.memory_space<vmem>>, %arg3: memref<1x128xf32, #tpu.memory_space<vmem>>, %arg4: memref<1x24x128xf32, #tpu.memory_space<vmem>>, %arg5: memref<2x1x128xf32, #tpu.memory_space<vmem>>, %arg6: memref<2x1x128xf32, #tpu.memory_space<vmem>>, %arg7: memref<2x128x384xbf16, #tpu.memory_space<vmem>>, %arg8: memref<2x1x384xf32, #tpu.memory_space<vmem>>, %arg9: memref<2x128x128xbf16, #tpu.memory_space<vmem>>, %arg10: memref<2x1x128xf32, #tpu.memory_space<vmem>>, %arg11: memref<2x1x128xf32, #tpu.memory_space<vmem>>, %arg12: memref<2x1x128xf32, #tpu.memory_space<vmem>>, %arg13: memref<2x128x256xbf16, #tpu.memory_space<vmem>>, %arg14: memref<2x1x256xf32, #tpu.memory_space<vmem>>, %arg15: memref<2x256x128xbf16, #tpu.memory_space<vmem>>, %arg16: memref<2x1x128xf32, #tpu.memory_space<vmem>>, %arg17: memref<1x128xf32, #tpu.memory_space<vmem>>, %arg18: memref<1x128xf32, #tpu.memory_space<vmem>>, %arg19: memref<1x1x128xf32, #tpu.memory_space<vmem>>) attributes {dimension_semantics = [#tpu.dimension_semantics<parallel>], iteration_bounds = array<i64: 2>, scalar_prefetch = 0 : i64, scratch_operands = 0 : i64, tpu.core_type = #tpu.core_type<tc>, window_params = [{transform_indices = @transform_0, window_bounds = array<i64: 1, 16, 192>}, {pipeline_mode = #tpu.pipeline_mode<synchronous>, transform_indices = @transform_1, window_bounds = array<i64: 192, 128>}, {pipeline_mode = #tpu.pipeline_mode<synchronous>, transform_indices = @transform_2, window_bounds = array<i64: 1, 128>}, {pipeline_mode = #tpu.pipeline_mode<synchronous>, transform_indices = @transform_3, window_bounds = array<i64: 1, 24, 128>}, {pipeline_mode = #tpu.pipeline_mode<synchronous>, transform_indices = @transform_4, window_bounds = array<i64: 2, 1, 128>}, {pipeline_mode = #tpu.pipeline_mode<synchronous>, transform_indices = @transform_5, window_bounds = array<i64: 2, 1, 128>}, {pipeline_mode = #tpu.pipeline_mode<synchronous>, transform_indices = @transform_6, window_bounds = array<i64: 2, 128, 384>}, {pipeline_mode = #tpu.pipeline_mode<synchronous>, transform_indices = @transform_7, window_bounds = array<i64: 2, 1, 384>}, {pipeline_mode = #tpu.pipeline_mode<synchronous>, transform_indices = @transform_8, window_bounds = array<i64: 2, 128, 128>}, {pipeline_mode = #tpu.pipeline_mode<synchronous>, transform_indices = @transform_9, window_bounds = array<i64: 2, 1, 128>}, {pipeline_mode = #tpu.pipeline_mode<synchronous>, transform_indices = @transform_10, window_bounds = array<i64: 2, 1, 128>}, {pipeline_mode = #tpu.pipeline_mode<synchronous>, transform_indices = @transform_11, window_bounds = array<i64: 2, 1, 128>}, {pipeline_mode = #tpu.pipeline_mode<synchronous>, transform_indices = @transform_12, window_bounds = array<i64: 2, 128, 256>}, {pipeline_mode = #tpu.pipeline_mode<synchronous>, transform_indices = @transform_13, window_bounds = array<i64: 2, 1, 256>}, {pipeline_mode = #tpu.pipeline_mode<synchronous>, transform_indices = @transform_14, window_bounds = array<i64: 2, 256, 128>}, {pipeline_mode = #tpu.pipeline_mode<synchronous>, transform_indices = @transform_15, window_bounds = array<i64: 2, 1, 128>}, {pipeline_mode = #tpu.pipeline_mode<synchronous>, transform_indices = @transform_16, window_bounds = array<i64: 1, 128>}, {pipeline_mode = #tpu.pipeline_mode<synchronous>, transform_indices = @transform_17, window_bounds = array<i64: 1, 128>}, {transform_indices = @transform_18, window_bounds = array<i64: 1, 1, 128>}]} {
    %c0 = arith.constant 0 : index
    %c0_0 = arith.constant 0 : index
    %c0_1 = arith.constant 0 : index
    %0 = vector.load %arg1[%c0, %c0_0, %c0_1] : memref<1x16x192xf32, #tpu.memory_space<vmem>>, vector<1x16x192xf32>
    %1 = vector.shape_cast %0 : vector<1x16x192xf32> to vector<16x192xf32>
    %cst = arith.constant 5.000000e-01 : f32
    %2 = vector.broadcast %cst : f32 to vector<16x192xf32>
    %3 = arith.mulf %1, %2 : vector<16x192xf32>
    %cst_2 = arith.constant 5.000000e-01 : f32
    %4 = vector.broadcast %cst_2 : f32 to vector<16x192xf32>
    %5 = arith.addf %3, %4 : vector<16x192xf32>
    %cst_3 = arith.constant 2.550000e+02 : f32
    %6 = vector.broadcast %cst_3 : f32 to vector<16x192xf32>
    %7 = arith.mulf %5, %6 : vector<16x192xf32>
    %cst_4 = arith.constant 0.000000e+00 : f32
    %cst_5 = arith.constant 2.550000e+02 : f32
    %8 = vector.broadcast %cst_4 : f32 to vector<16x192xf32>
    %9 = arith.maximumf %8, %7 : vector<16x192xf32>
    %10 = vector.broadcast %cst_5 : f32 to vector<16x192xf32>
    %11 = arith.minimumf %10, %9 : vector<16x192xf32>
    %12 = math.floor %11 : vector<16x192xf32>
    %cst_6 = arith.constant 0.00392156886 : f32
    %13 = vector.broadcast %cst_6 : f32 to vector<16x192xf32>
    %14 = arith.mulf %12, %13 : vector<16x192xf32>
    %cst_7 = arith.constant 5.000000e-01 : f32
    %15 = vector.broadcast %cst_7 : f32 to vector<16x192xf32>
    %16 = arith.subf %14, %15 : vector<16x192xf32>
    %cst_8 = arith.constant 5.000000e-01 : f32
    %17 = vector.broadcast %cst_8 : f32 to vector<16x192xf32>
    %18 = arith.divf %16, %17 : vector<16x192xf32>
    %19 = arith.truncf %18 : vector<16x192xf32> to vector<16x192xbf16>
    %c0_9 = arith.constant 0 : index
    %c0_10 = arith.constant 0 : index
    %20 = vector.load %arg2[%c0_9, %c0_10] : memref<192x128xbf16, #tpu.memory_space<vmem>>, vector<192x128xbf16>
    %cst_11 = arith.constant dense<0.000000e+00> : vector<16x128xf32>
    %21 = tpu.matmul %19, %20, %cst_11 {dimension_numbers = #tpu.dot_dimension_numbers<[1], [0], [0], [1], [0, 0, 1, 1], [], []>} : vector<16x192xbf16>, vector<192x128xbf16>, vector<16x128xf32> -> vector<16x128xf32>
    %c0_12 = arith.constant 0 : index
    %c0_13 = arith.constant 0 : index
    %22 = vector.load %arg3[%c0_12, %c0_13] : memref<1x128xf32, #tpu.memory_space<vmem>>, vector<1x128xf32>
    %23 = vector.broadcast %22 : vector<1x128xf32> to vector<16x128xf32>
    %24 = arith.addf %21, %23 : vector<16x128xf32>
    %cst_14 = arith.constant 0.000000e+00 : f32
    %25 = vector.broadcast %cst_14 : f32 to vector<8x128xf32>
    %26 = tpu.concatenate %24, %25 in 0 : vector<16x128xf32>, vector<8x128xf32> -> vector<24x128xf32>
    %c0_15 = arith.constant 0 : index
    %c0_16 = arith.constant 0 : index
    %c0_17 = arith.constant 0 : index
    %27 = vector.load %arg4[%c0_15, %c0_16, %c0_17] : memref<1x24x128xf32, #tpu.memory_space<vmem>>, vector<1x24x128xf32>
    %28 = vector.shape_cast %27 : vector<1x24x128xf32> to vector<24x128xf32>
    %29 = arith.addf %26, %28 : vector<24x128xf32>
    %30 = tpu.iota {dimensions = array<i32: 2>} : vector<1x1x24xi32>
    %c17_i32 = arith.constant 17 : i32
    %31 = vector.broadcast %c17_i32 : i32 to vector<1x1x24xi32>
    %32 = arith.cmpi slt, %30, %31 : vector<1x1x24xi32>
    %cst_18 = arith.constant 0.000000e+00 : f32
    %cst_19 = arith.constant -1.000000e+30 : f32
    %33 = vector.broadcast %cst_18 : f32 to vector<1x1x24xf32>
    %34 = vector.broadcast %cst_19 : f32 to vector<1x1x24xf32>
    %35 = arith.select %32, %33, %34 : vector<1x1x24xi1>, vector<1x1x24xf32>
    %c0_20 = arith.constant 0 : index
    %c0_21 = arith.constant 0 : index
    %c0_22 = arith.constant 0 : index
    %36 = vector.load %arg5[%c0_20, %c0_21, %c0_22] : memref<2x1x128xf32, #tpu.memory_space<vmem>>, vector<1x1x128xf32>
    %37 = vector.shape_cast %36 : vector<1x1x128xf32> to vector<1x128xf32>
    %c0_23 = arith.constant 0 : index
    %c0_24 = arith.constant 0 : index
    %c0_25 = arith.constant 0 : index
    %38 = vector.load %arg6[%c0_23, %c0_24, %c0_25] : memref<2x1x128xf32, #tpu.memory_space<vmem>>, vector<1x1x128xf32>
    %39 = vector.shape_cast %38 : vector<1x1x128xf32> to vector<1x128xf32>
    %cst_26 = arith.constant dense<0.000000e+00> : vector<24xf32>
    %40 = vector.multi_reduction <add>, %29, %cst_26 [1] : vector<24x128xf32> to vector<24xf32>
    %41 = vector.shape_cast %40 : vector<24xf32> to vector<24x1xf32>
    %cst_27 = arith.constant 1.280000e+02 : f32
    %42 = vector.broadcast %cst_27 : f32 to vector<24x1xf32>
    %43 = arith.divf %41, %42 : vector<24x1xf32>
    %44 = vector.broadcast %43 : vector<24x1xf32> to vector<24x128xf32>
    %45 = arith.subf %29, %44 : vector<24x128xf32>
    %46 = arith.mulf %45, %45 : vector<24x128xf32>
    %cst_28 = arith.constant dense<0.000000e+00> : vector<24xf32>
    %47 = vector.multi_reduction <add>, %46, %cst_28 [1] : vector<24x128xf32> to vector<24xf32>
    %48 = vector.shape_cast %47 : vector<24xf32> to vector<24x1xf32>
    %cst_29 = arith.constant 1.280000e+02 : f32
    %49 = vector.broadcast %cst_29 : f32 to vector<24x1xf32>
    %50 = arith.divf %48, %49 : vector<24x1xf32>
    %cst_30 = arith.constant 9.99999996E-13 : f32
    %51 = vector.broadcast %cst_30 : f32 to vector<24x1xf32>
    %52 = arith.addf %50, %51 : vector<24x1xf32>
    %53 = math.rsqrt %52 : vector<24x1xf32>
    %54 = vector.broadcast %53 : vector<24x1xf32> to vector<24x128xf32>
    %55 = arith.mulf %45, %54 : vector<24x128xf32>
    %56 = vector.broadcast %37 : vector<1x128xf32> to vector<24x128xf32>
    %57 = arith.mulf %55, %56 : vector<24x128xf32>
    %58 = vector.broadcast %39 : vector<1x128xf32> to vector<24x128xf32>
    %59 = arith.addf %57, %58 : vector<24x128xf32>
    %60 = arith.truncf %59 : vector<24x128xf32> to vector<24x128xbf16>
    %c0_31 = arith.constant 0 : index
    %c0_32 = arith.constant 0 : index
    %c0_33 = arith.constant 0 : index
    %61 = vector.load %arg7[%c0_31, %c0_32, %c0_33] : memref<2x128x384xbf16, #tpu.memory_space<vmem>>, vector<1x128x384xbf16>
    %62 = vector.shape_cast %61 : vector<1x128x384xbf16> to vector<128x384xbf16>
    %cst_34 = arith.constant dense<0.000000e+00> : vector<24x384xf32>
    %63 = tpu.matmul %60, %62, %cst_34 {dimension_numbers = #tpu.dot_dimension_numbers<[1], [0], [0], [1], [0, 0, 1, 1], [], []>} : vector<24x128xbf16>, vector<128x384xbf16>, vector<24x384xf32> -> vector<24x384xf32>
    %c0_35 = arith.constant 0 : index
    %c0_36 = arith.constant 0 : index
    %c0_37 = arith.constant 0 : index
    %64 = vector.load %arg8[%c0_35, %c0_36, %c0_37] : memref<2x1x384xf32, #tpu.memory_space<vmem>>, vector<1x1x384xf32>
    %65 = vector.shape_cast %64 : vector<1x1x384xf32> to vector<1x384xf32>
    %66 = vector.broadcast %65 : vector<1x384xf32> to vector<24x384xf32>
    %67 = arith.addf %63, %66 : vector<24x384xf32>
    %68 = vector.extract_strided_slice %67 {offsets = [0, 0], sizes = [24, 128], strides = [1, 1]} : vector<24x384xf32> to vector<24x128xf32>
    %69 = vector.shape_cast %68 : vector<24x128xf32> to vector<24x4x32xf32>
    %70 = tpu.transpose %69, [1, 0, 2] : vector<24x4x32xf32> -> vector<4x24x32xf32>
    %71 = vector.extract_strided_slice %67 {offsets = [0, 128], sizes = [24, 128], strides = [1, 1]} : vector<24x384xf32> to vector<24x128xf32>
    %72 = vector.shape_cast %71 : vector<24x128xf32> to vector<24x4x32xf32>
    %73 = tpu.transpose %72, [1, 0, 2] : vector<24x4x32xf32> -> vector<4x24x32xf32>
    %74 = vector.extract_strided_slice %67 {offsets = [0, 256], sizes = [24, 128], strides = [1, 1]} : vector<24x384xf32> to vector<24x128xf32>
    %75 = vector.shape_cast %74 : vector<24x128xf32> to vector<24x4x32xf32>
    %76 = tpu.transpose %75, [1, 0, 2] : vector<24x4x32xf32> -> vector<4x24x32xf32>
    %77 = arith.truncf %70 : vector<4x24x32xf32> to vector<4x24x32xbf16>
    %78 = arith.truncf %73 : vector<4x24x32xf32> to vector<4x24x32xbf16>
    "tpu.trace_start"() <{level = 10 : i32, message = "hqd,hkd->hqk"}> : () -> ()
    %cst_38 = arith.constant dense<0.000000e+00> : vector<4x24x24xf32>
    %79 = tpu.matmul %77, %78, %cst_38 {dimension_numbers = #tpu.dot_dimension_numbers<[2], [2], [1], [1], [0, 0, 0, 1, 1, 1], [0], [0]>} : vector<4x24x32xbf16>, vector<4x24x32xbf16>, vector<4x24x24xf32> -> vector<4x24x24xf32>
    "tpu.trace_stop"() : () -> ()
    %cst_39 = arith.constant 0.176776692 : f32
    %80 = vector.broadcast %cst_39 : f32 to vector<4x24x24xf32>
    %81 = arith.mulf %79, %80 : vector<4x24x24xf32>
    %82 = vector.broadcast %35 : vector<1x1x24xf32> to vector<4x24x24xf32>
    %83 = arith.addf %81, %82 : vector<4x24x24xf32>
    %cst_40 = arith.constant dense<0xFF800000> : vector<4x24xf32>
    %84 = vector.multi_reduction <maximumf>, %83, %cst_40 [2] : vector<4x24x24xf32> to vector<4x24xf32>
    %85 = vector.shape_cast %84 : vector<4x24xf32> to vector<4x24x1xf32>
    %86 = vector.broadcast %85 : vector<4x24x1xf32> to vector<4x24x24xf32>
    %87 = arith.subf %83, %86 : vector<4x24x24xf32>
    %88 = math.exp %87 : vector<4x24x24xf32>
    %cst_41 = arith.constant dense<0.000000e+00> : vector<4x24xf32>
    %89 = vector.multi_reduction <add>, %88, %cst_41 [2] : vector<4x24x24xf32> to vector<4x24xf32>
    %90 = vector.shape_cast %89 : vector<4x24xf32> to vector<4x24x1xf32>
    %91 = tpu.reciprocal %90 {approx = true} : vector<4x24x1xf32> -> vector<4x24x1xf32>
    %92 = vector.broadcast %91 : vector<4x24x1xf32> to vector<4x24x24xf32>
    %93 = arith.mulf %88, %92 : vector<4x24x24xf32>
    %94 = arith.truncf %93 : vector<4x24x24xf32> to vector<4x24x24xbf16>
    %95 = arith.truncf %76 : vector<4x24x32xf32> to vector<4x24x32xbf16>
    "tpu.trace_start"() <{level = 10 : i32, message = "hqk,hkd->hqd"}> : () -> ()
    %cst_42 = arith.constant dense<0.000000e+00> : vector<4x24x32xf32>
    %96 = tpu.matmul %94, %95, %cst_42 {dimension_numbers = #tpu.dot_dimension_numbers<[2], [1], [1], [2], [0, 0, 0, 1, 1, 2], [0], [0]>} : vector<4x24x24xbf16>, vector<4x24x32xbf16>, vector<4x24x32xf32> -> vector<4x24x32xf32>
    "tpu.trace_stop"() : () -> ()
    %97 = tpu.transpose %96, [1, 0, 2] : vector<4x24x32xf32> -> vector<24x4x32xf32>
    %98 = vector.shape_cast %97 : vector<24x4x32xf32> to vector<24x128xf32>
    %99 = arith.truncf %98 : vector<24x128xf32> to vector<24x128xbf16>
    %c0_43 = arith.constant 0 : index
    %c0_44 = arith.constant 0 : index
    %c0_45 = arith.constant 0 : index
    %100 = vector.load %arg9[%c0_43, %c0_44, %c0_45] : memref<2x128x128xbf16, #tpu.memory_space<vmem>>, vector<1x128x128xbf16>
    %101 = vector.shape_cast %100 : vector<1x128x128xbf16> to vector<128x128xbf16>
    %cst_46 = arith.constant dense<0.000000e+00> : vector<24x128xf32>
    %102 = tpu.matmul %99, %101, %cst_46 {dimension_numbers = #tpu.dot_dimension_numbers<[1], [0], [0], [1], [0, 0, 1, 1], [], []>} : vector<24x128xbf16>, vector<128x128xbf16>, vector<24x128xf32> -> vector<24x128xf32>
    %103 = arith.addf %29, %102 : vector<24x128xf32>
    %c0_47 = arith.constant 0 : index
    %c0_48 = arith.constant 0 : index
    %c0_49 = arith.constant 0 : index
    %104 = vector.load %arg10[%c0_47, %c0_48, %c0_49] : memref<2x1x128xf32, #tpu.memory_space<vmem>>, vector<1x1x128xf32>
    %105 = vector.shape_cast %104 : vector<1x1x128xf32> to vector<1x128xf32>
    %106 = vector.broadcast %105 : vector<1x128xf32> to vector<24x128xf32>
    %107 = arith.addf %103, %106 : vector<24x128xf32>
    %c0_50 = arith.constant 0 : index
    %c0_51 = arith.constant 0 : index
    %c0_52 = arith.constant 0 : index
    %108 = vector.load %arg11[%c0_50, %c0_51, %c0_52] : memref<2x1x128xf32, #tpu.memory_space<vmem>>, vector<1x1x128xf32>
    %109 = vector.shape_cast %108 : vector<1x1x128xf32> to vector<1x128xf32>
    %c0_53 = arith.constant 0 : index
    %c0_54 = arith.constant 0 : index
    %c0_55 = arith.constant 0 : index
    %110 = vector.load %arg12[%c0_53, %c0_54, %c0_55] : memref<2x1x128xf32, #tpu.memory_space<vmem>>, vector<1x1x128xf32>
    %111 = vector.shape_cast %110 : vector<1x1x128xf32> to vector<1x128xf32>
    %cst_56 = arith.constant dense<0.000000e+00> : vector<24xf32>
    %112 = vector.multi_reduction <add>, %107, %cst_56 [1] : vector<24x128xf32> to vector<24xf32>
    %113 = vector.shape_cast %112 : vector<24xf32> to vector<24x1xf32>
    %cst_57 = arith.constant 1.280000e+02 : f32
    %114 = vector.broadcast %cst_57 : f32 to vector<24x1xf32>
    %115 = arith.divf %113, %114 : vector<24x1xf32>
    %116 = vector.broadcast %115 : vector<24x1xf32> to vector<24x128xf32>
    %117 = arith.subf %107, %116 : vector<24x128xf32>
    %118 = arith.mulf %117, %117 : vector<24x128xf32>
    %cst_58 = arith.constant dense<0.000000e+00> : vector<24xf32>
    %119 = vector.multi_reduction <add>, %118, %cst_58 [1] : vector<24x128xf32> to vector<24xf32>
    %120 = vector.shape_cast %119 : vector<24xf32> to vector<24x1xf32>
    %cst_59 = arith.constant 1.280000e+02 : f32
    %121 = vector.broadcast %cst_59 : f32 to vector<24x1xf32>
    %122 = arith.divf %120, %121 : vector<24x1xf32>
    %cst_60 = arith.constant 9.99999996E-13 : f32
    %123 = vector.broadcast %cst_60 : f32 to vector<24x1xf32>
    %124 = arith.addf %122, %123 : vector<24x1xf32>
    %125 = math.rsqrt %124 : vector<24x1xf32>
    %126 = vector.broadcast %125 : vector<24x1xf32> to vector<24x128xf32>
    %127 = arith.mulf %117, %126 : vector<24x128xf32>
    %128 = vector.broadcast %109 : vector<1x128xf32> to vector<24x128xf32>
    %129 = arith.mulf %127, %128 : vector<24x128xf32>
    %130 = vector.broadcast %111 : vector<1x128xf32> to vector<24x128xf32>
    %131 = arith.addf %129, %130 : vector<24x128xf32>
    %132 = arith.truncf %131 : vector<24x128xf32> to vector<24x128xbf16>
    %c0_61 = arith.constant 0 : index
    %c0_62 = arith.constant 0 : index
    %c0_63 = arith.constant 0 : index
    %133 = vector.load %arg13[%c0_61, %c0_62, %c0_63] : memref<2x128x256xbf16, #tpu.memory_space<vmem>>, vector<1x128x256xbf16>
    %134 = vector.shape_cast %133 : vector<1x128x256xbf16> to vector<128x256xbf16>
    %cst_64 = arith.constant dense<0.000000e+00> : vector<24x256xf32>
    %135 = tpu.matmul %132, %134, %cst_64 {dimension_numbers = #tpu.dot_dimension_numbers<[1], [0], [0], [1], [0, 0, 1, 1], [], []>} : vector<24x128xbf16>, vector<128x256xbf16>, vector<24x256xf32> -> vector<24x256xf32>
    %c0_65 = arith.constant 0 : index
    %c0_66 = arith.constant 0 : index
    %c0_67 = arith.constant 0 : index
    %136 = vector.load %arg14[%c0_65, %c0_66, %c0_67] : memref<2x1x256xf32, #tpu.memory_space<vmem>>, vector<1x1x256xf32>
    %137 = vector.shape_cast %136 : vector<1x1x256xf32> to vector<1x256xf32>
    %138 = vector.broadcast %137 : vector<1x256xf32> to vector<24x256xf32>
    %139 = arith.addf %135, %138 : vector<24x256xf32>
    %140 = arith.mulf %139, %139 : vector<24x256xf32>
    %141 = arith.mulf %139, %140 : vector<24x256xf32>
    %cst_68 = arith.constant 4.471500e-02 : f32
    %142 = vector.broadcast %cst_68 : f32 to vector<24x256xf32>
    %143 = arith.mulf %142, %141 : vector<24x256xf32>
    %144 = arith.addf %139, %143 : vector<24x256xf32>
    %cst_69 = arith.constant 0.797884583 : f32
    %145 = vector.broadcast %cst_69 : f32 to vector<24x256xf32>
    %146 = arith.mulf %145, %144 : vector<24x256xf32>
    %147 = math.tanh %146 : vector<24x256xf32>
    %cst_70 = arith.constant 1.000000e+00 : f32
    %148 = vector.broadcast %cst_70 : f32 to vector<24x256xf32>
    %149 = arith.addf %148, %147 : vector<24x256xf32>
    %cst_71 = arith.constant 5.000000e-01 : f32
    %150 = vector.broadcast %cst_71 : f32 to vector<24x256xf32>
    %151 = arith.mulf %150, %149 : vector<24x256xf32>
    %152 = arith.mulf %139, %151 : vector<24x256xf32>
    %153 = arith.truncf %152 : vector<24x256xf32> to vector<24x256xbf16>
    %c0_72 = arith.constant 0 : index
    %c0_73 = arith.constant 0 : index
    %c0_74 = arith.constant 0 : index
    %154 = vector.load %arg15[%c0_72, %c0_73, %c0_74] : memref<2x256x128xbf16, #tpu.memory_space<vmem>>, vector<1x256x128xbf16>
    %155 = vector.shape_cast %154 : vector<1x256x128xbf16> to vector<256x128xbf16>
    %cst_75 = arith.constant dense<0.000000e+00> : vector<24x128xf32>
    %156 = tpu.matmul %153, %155, %cst_75 {dimension_numbers = #tpu.dot_dimension_numbers<[1], [0], [0], [1], [0, 0, 1, 1], [], []>} : vector<24x256xbf16>, vector<256x128xbf16>, vector<24x128xf32> -> vector<24x128xf32>
    %157 = arith.addf %107, %156 : vector<24x128xf32>
    %c0_76 = arith.constant 0 : index
    %c0_77 = arith.constant 0 : index
    %c0_78 = arith.constant 0 : index
    %158 = vector.load %arg16[%c0_76, %c0_77, %c0_78] : memref<2x1x128xf32, #tpu.memory_space<vmem>>, vector<1x1x128xf32>
    %159 = vector.shape_cast %158 : vector<1x1x128xf32> to vector<1x128xf32>
    %160 = vector.broadcast %159 : vector<1x128xf32> to vector<24x128xf32>
    %161 = arith.addf %157, %160 : vector<24x128xf32>
    %c1 = arith.constant 1 : index
    %c0_79 = arith.constant 0 : index
    %c0_80 = arith.constant 0 : index
    %162 = vector.load %arg5[%c1, %c0_79, %c0_80] : memref<2x1x128xf32, #tpu.memory_space<vmem>>, vector<1x1x128xf32>
    %163 = vector.shape_cast %162 : vector<1x1x128xf32> to vector<1x128xf32>
    %c1_81 = arith.constant 1 : index
    %c0_82 = arith.constant 0 : index
    %c0_83 = arith.constant 0 : index
    %164 = vector.load %arg6[%c1_81, %c0_82, %c0_83] : memref<2x1x128xf32, #tpu.memory_space<vmem>>, vector<1x1x128xf32>
    %165 = vector.shape_cast %164 : vector<1x1x128xf32> to vector<1x128xf32>
    %cst_84 = arith.constant dense<0.000000e+00> : vector<24xf32>
    %166 = vector.multi_reduction <add>, %161, %cst_84 [1] : vector<24x128xf32> to vector<24xf32>
    %167 = vector.shape_cast %166 : vector<24xf32> to vector<24x1xf32>
    %cst_85 = arith.constant 1.280000e+02 : f32
    %168 = vector.broadcast %cst_85 : f32 to vector<24x1xf32>
    %169 = arith.divf %167, %168 : vector<24x1xf32>
    %170 = vector.broadcast %169 : vector<24x1xf32> to vector<24x128xf32>
    %171 = arith.subf %161, %170 : vector<24x128xf32>
    %172 = arith.mulf %171, %171 : vector<24x128xf32>
    %cst_86 = arith.constant dense<0.000000e+00> : vector<24xf32>
    %173 = vector.multi_reduction <add>, %172, %cst_86 [1] : vector<24x128xf32> to vector<24xf32>
    %174 = vector.shape_cast %173 : vector<24xf32> to vector<24x1xf32>
    %cst_87 = arith.constant 1.280000e+02 : f32
    %175 = vector.broadcast %cst_87 : f32 to vector<24x1xf32>
    %176 = arith.divf %174, %175 : vector<24x1xf32>
    %cst_88 = arith.constant 9.99999996E-13 : f32
    %177 = vector.broadcast %cst_88 : f32 to vector<24x1xf32>
    %178 = arith.addf %176, %177 : vector<24x1xf32>
    %179 = math.rsqrt %178 : vector<24x1xf32>
    %180 = vector.broadcast %179 : vector<24x1xf32> to vector<24x128xf32>
    %181 = arith.mulf %171, %180 : vector<24x128xf32>
    %182 = vector.broadcast %163 : vector<1x128xf32> to vector<24x128xf32>
    %183 = arith.mulf %181, %182 : vector<24x128xf32>
    %184 = vector.broadcast %165 : vector<1x128xf32> to vector<24x128xf32>
    %185 = arith.addf %183, %184 : vector<24x128xf32>
    %186 = arith.truncf %185 : vector<24x128xf32> to vector<24x128xbf16>
    %c1_89 = arith.constant 1 : index
    %c0_90 = arith.constant 0 : index
    %c0_91 = arith.constant 0 : index
    %187 = vector.load %arg7[%c1_89, %c0_90, %c0_91] : memref<2x128x384xbf16, #tpu.memory_space<vmem>>, vector<1x128x384xbf16>
    %188 = vector.shape_cast %187 : vector<1x128x384xbf16> to vector<128x384xbf16>
    %cst_92 = arith.constant dense<0.000000e+00> : vector<24x384xf32>
    %189 = tpu.matmul %186, %188, %cst_92 {dimension_numbers = #tpu.dot_dimension_numbers<[1], [0], [0], [1], [0, 0, 1, 1], [], []>} : vector<24x128xbf16>, vector<128x384xbf16>, vector<24x384xf32> -> vector<24x384xf32>
    %c1_93 = arith.constant 1 : index
    %c0_94 = arith.constant 0 : index
    %c0_95 = arith.constant 0 : index
    %190 = vector.load %arg8[%c1_93, %c0_94, %c0_95] : memref<2x1x384xf32, #tpu.memory_space<vmem>>, vector<1x1x384xf32>
    %191 = vector.shape_cast %190 : vector<1x1x384xf32> to vector<1x384xf32>
    %192 = vector.broadcast %191 : vector<1x384xf32> to vector<24x384xf32>
    %193 = arith.addf %189, %192 : vector<24x384xf32>
    %194 = vector.extract_strided_slice %193 {offsets = [0, 0], sizes = [24, 128], strides = [1, 1]} : vector<24x384xf32> to vector<24x128xf32>
    %195 = vector.shape_cast %194 : vector<24x128xf32> to vector<24x4x32xf32>
    %196 = tpu.transpose %195, [1, 0, 2] : vector<24x4x32xf32> -> vector<4x24x32xf32>
    %197 = vector.extract_strided_slice %193 {offsets = [0, 128], sizes = [24, 128], strides = [1, 1]} : vector<24x384xf32> to vector<24x128xf32>
    %198 = vector.shape_cast %197 : vector<24x128xf32> to vector<24x4x32xf32>
    %199 = tpu.transpose %198, [1, 0, 2] : vector<24x4x32xf32> -> vector<4x24x32xf32>
    %200 = vector.extract_strided_slice %193 {offsets = [0, 256], sizes = [24, 128], strides = [1, 1]} : vector<24x384xf32> to vector<24x128xf32>
    %201 = vector.shape_cast %200 : vector<24x128xf32> to vector<24x4x32xf32>
    %202 = tpu.transpose %201, [1, 0, 2] : vector<24x4x32xf32> -> vector<4x24x32xf32>
    %203 = arith.truncf %196 : vector<4x24x32xf32> to vector<4x24x32xbf16>
    %204 = arith.truncf %199 : vector<4x24x32xf32> to vector<4x24x32xbf16>
    "tpu.trace_start"() <{level = 10 : i32, message = "hqd,hkd->hqk"}> : () -> ()
    %cst_96 = arith.constant dense<0.000000e+00> : vector<4x24x24xf32>
    %205 = tpu.matmul %203, %204, %cst_96 {dimension_numbers = #tpu.dot_dimension_numbers<[2], [2], [1], [1], [0, 0, 0, 1, 1, 1], [0], [0]>} : vector<4x24x32xbf16>, vector<4x24x32xbf16>, vector<4x24x24xf32> -> vector<4x24x24xf32>
    "tpu.trace_stop"() : () -> ()
    %cst_97 = arith.constant 0.176776692 : f32
    %206 = vector.broadcast %cst_97 : f32 to vector<4x24x24xf32>
    %207 = arith.mulf %205, %206 : vector<4x24x24xf32>
    %208 = vector.broadcast %35 : vector<1x1x24xf32> to vector<4x24x24xf32>
    %209 = arith.addf %207, %208 : vector<4x24x24xf32>
    %cst_98 = arith.constant dense<0xFF800000> : vector<4x24xf32>
    %210 = vector.multi_reduction <maximumf>, %209, %cst_98 [2] : vector<4x24x24xf32> to vector<4x24xf32>
    %211 = vector.shape_cast %210 : vector<4x24xf32> to vector<4x24x1xf32>
    %212 = vector.broadcast %211 : vector<4x24x1xf32> to vector<4x24x24xf32>
    %213 = arith.subf %209, %212 : vector<4x24x24xf32>
    %214 = math.exp %213 : vector<4x24x24xf32>
    %cst_99 = arith.constant dense<0.000000e+00> : vector<4x24xf32>
    %215 = vector.multi_reduction <add>, %214, %cst_99 [2] : vector<4x24x24xf32> to vector<4x24xf32>
    %216 = vector.shape_cast %215 : vector<4x24xf32> to vector<4x24x1xf32>
    %217 = tpu.reciprocal %216 {approx = true} : vector<4x24x1xf32> -> vector<4x24x1xf32>
    %218 = vector.broadcast %217 : vector<4x24x1xf32> to vector<4x24x24xf32>
    %219 = arith.mulf %214, %218 : vector<4x24x24xf32>
    %220 = arith.truncf %219 : vector<4x24x24xf32> to vector<4x24x24xbf16>
    %221 = arith.truncf %202 : vector<4x24x32xf32> to vector<4x24x32xbf16>
    "tpu.trace_start"() <{level = 10 : i32, message = "hqk,hkd->hqd"}> : () -> ()
    %cst_100 = arith.constant dense<0.000000e+00> : vector<4x24x32xf32>
    %222 = tpu.matmul %220, %221, %cst_100 {dimension_numbers = #tpu.dot_dimension_numbers<[2], [1], [1], [2], [0, 0, 0, 1, 1, 2], [0], [0]>} : vector<4x24x24xbf16>, vector<4x24x32xbf16>, vector<4x24x32xf32> -> vector<4x24x32xf32>
    "tpu.trace_stop"() : () -> ()
    %223 = tpu.transpose %222, [1, 0, 2] : vector<4x24x32xf32> -> vector<24x4x32xf32>
    %224 = vector.shape_cast %223 : vector<24x4x32xf32> to vector<24x128xf32>
    %225 = arith.truncf %224 : vector<24x128xf32> to vector<24x128xbf16>
    %c1_101 = arith.constant 1 : index
    %c0_102 = arith.constant 0 : index
    %c0_103 = arith.constant 0 : index
    %226 = vector.load %arg9[%c1_101, %c0_102, %c0_103] : memref<2x128x128xbf16, #tpu.memory_space<vmem>>, vector<1x128x128xbf16>
    %227 = vector.shape_cast %226 : vector<1x128x128xbf16> to vector<128x128xbf16>
    %cst_104 = arith.constant dense<0.000000e+00> : vector<24x128xf32>
    %228 = tpu.matmul %225, %227, %cst_104 {dimension_numbers = #tpu.dot_dimension_numbers<[1], [0], [0], [1], [0, 0, 1, 1], [], []>} : vector<24x128xbf16>, vector<128x128xbf16>, vector<24x128xf32> -> vector<24x128xf32>
    %229 = arith.addf %161, %228 : vector<24x128xf32>
    %c1_105 = arith.constant 1 : index
    %c0_106 = arith.constant 0 : index
    %c0_107 = arith.constant 0 : index
    %230 = vector.load %arg10[%c1_105, %c0_106, %c0_107] : memref<2x1x128xf32, #tpu.memory_space<vmem>>, vector<1x1x128xf32>
    %231 = vector.shape_cast %230 : vector<1x1x128xf32> to vector<1x128xf32>
    %232 = vector.broadcast %231 : vector<1x128xf32> to vector<24x128xf32>
    %233 = arith.addf %229, %232 : vector<24x128xf32>
    %c1_108 = arith.constant 1 : index
    %c0_109 = arith.constant 0 : index
    %c0_110 = arith.constant 0 : index
    %234 = vector.load %arg11[%c1_108, %c0_109, %c0_110] : memref<2x1x128xf32, #tpu.memory_space<vmem>>, vector<1x1x128xf32>
    %235 = vector.shape_cast %234 : vector<1x1x128xf32> to vector<1x128xf32>
    %c1_111 = arith.constant 1 : index
    %c0_112 = arith.constant 0 : index
    %c0_113 = arith.constant 0 : index
    %236 = vector.load %arg12[%c1_111, %c0_112, %c0_113] : memref<2x1x128xf32, #tpu.memory_space<vmem>>, vector<1x1x128xf32>
    %237 = vector.shape_cast %236 : vector<1x1x128xf32> to vector<1x128xf32>
    %cst_114 = arith.constant dense<0.000000e+00> : vector<24xf32>
    %238 = vector.multi_reduction <add>, %233, %cst_114 [1] : vector<24x128xf32> to vector<24xf32>
    %239 = vector.shape_cast %238 : vector<24xf32> to vector<24x1xf32>
    %cst_115 = arith.constant 1.280000e+02 : f32
    %240 = vector.broadcast %cst_115 : f32 to vector<24x1xf32>
    %241 = arith.divf %239, %240 : vector<24x1xf32>
    %242 = vector.broadcast %241 : vector<24x1xf32> to vector<24x128xf32>
    %243 = arith.subf %233, %242 : vector<24x128xf32>
    %244 = arith.mulf %243, %243 : vector<24x128xf32>
    %cst_116 = arith.constant dense<0.000000e+00> : vector<24xf32>
    %245 = vector.multi_reduction <add>, %244, %cst_116 [1] : vector<24x128xf32> to vector<24xf32>
    %246 = vector.shape_cast %245 : vector<24xf32> to vector<24x1xf32>
    %cst_117 = arith.constant 1.280000e+02 : f32
    %247 = vector.broadcast %cst_117 : f32 to vector<24x1xf32>
    %248 = arith.divf %246, %247 : vector<24x1xf32>
    %cst_118 = arith.constant 9.99999996E-13 : f32
    %249 = vector.broadcast %cst_118 : f32 to vector<24x1xf32>
    %250 = arith.addf %248, %249 : vector<24x1xf32>
    %251 = math.rsqrt %250 : vector<24x1xf32>
    %252 = vector.broadcast %251 : vector<24x1xf32> to vector<24x128xf32>
    %253 = arith.mulf %243, %252 : vector<24x128xf32>
    %254 = vector.broadcast %235 : vector<1x128xf32> to vector<24x128xf32>
    %255 = arith.mulf %253, %254 : vector<24x128xf32>
    %256 = vector.broadcast %237 : vector<1x128xf32> to vector<24x128xf32>
    %257 = arith.addf %255, %256 : vector<24x128xf32>
    %258 = arith.truncf %257 : vector<24x128xf32> to vector<24x128xbf16>
    %c1_119 = arith.constant 1 : index
    %c0_120 = arith.constant 0 : index
    %c0_121 = arith.constant 0 : index
    %259 = vector.load %arg13[%c1_119, %c0_120, %c0_121] : memref<2x128x256xbf16, #tpu.memory_space<vmem>>, vector<1x128x256xbf16>
    %260 = vector.shape_cast %259 : vector<1x128x256xbf16> to vector<128x256xbf16>
    %cst_122 = arith.constant dense<0.000000e+00> : vector<24x256xf32>
    %261 = tpu.matmul %258, %260, %cst_122 {dimension_numbers = #tpu.dot_dimension_numbers<[1], [0], [0], [1], [0, 0, 1, 1], [], []>} : vector<24x128xbf16>, vector<128x256xbf16>, vector<24x256xf32> -> vector<24x256xf32>
    %c1_123 = arith.constant 1 : index
    %c0_124 = arith.constant 0 : index
    %c0_125 = arith.constant 0 : index
    %262 = vector.load %arg14[%c1_123, %c0_124, %c0_125] : memref<2x1x256xf32, #tpu.memory_space<vmem>>, vector<1x1x256xf32>
    %263 = vector.shape_cast %262 : vector<1x1x256xf32> to vector<1x256xf32>
    %264 = vector.broadcast %263 : vector<1x256xf32> to vector<24x256xf32>
    %265 = arith.addf %261, %264 : vector<24x256xf32>
    %266 = arith.mulf %265, %265 : vector<24x256xf32>
    %267 = arith.mulf %265, %266 : vector<24x256xf32>
    %cst_126 = arith.constant 4.471500e-02 : f32
    %268 = vector.broadcast %cst_126 : f32 to vector<24x256xf32>
    %269 = arith.mulf %268, %267 : vector<24x256xf32>
    %270 = arith.addf %265, %269 : vector<24x256xf32>
    %cst_127 = arith.constant 0.797884583 : f32
    %271 = vector.broadcast %cst_127 : f32 to vector<24x256xf32>
    %272 = arith.mulf %271, %270 : vector<24x256xf32>
    %273 = math.tanh %272 : vector<24x256xf32>
    %cst_128 = arith.constant 1.000000e+00 : f32
    %274 = vector.broadcast %cst_128 : f32 to vector<24x256xf32>
    %275 = arith.addf %274, %273 : vector<24x256xf32>
    %cst_129 = arith.constant 5.000000e-01 : f32
    %276 = vector.broadcast %cst_129 : f32 to vector<24x256xf32>
    %277 = arith.mulf %276, %275 : vector<24x256xf32>
    %278 = arith.mulf %265, %277 : vector<24x256xf32>
    %279 = arith.truncf %278 : vector<24x256xf32> to vector<24x256xbf16>
    %c1_130 = arith.constant 1 : index
    %c0_131 = arith.constant 0 : index
    %c0_132 = arith.constant 0 : index
    %280 = vector.load %arg15[%c1_130, %c0_131, %c0_132] : memref<2x256x128xbf16, #tpu.memory_space<vmem>>, vector<1x256x128xbf16>
    %281 = vector.shape_cast %280 : vector<1x256x128xbf16> to vector<256x128xbf16>
    %cst_133 = arith.constant dense<0.000000e+00> : vector<24x128xf32>
    %282 = tpu.matmul %279, %281, %cst_133 {dimension_numbers = #tpu.dot_dimension_numbers<[1], [0], [0], [1], [0, 0, 1, 1], [], []>} : vector<24x256xbf16>, vector<256x128xbf16>, vector<24x128xf32> -> vector<24x128xf32>
    %283 = arith.addf %233, %282 : vector<24x128xf32>
    %c1_134 = arith.constant 1 : index
    %c0_135 = arith.constant 0 : index
    %c0_136 = arith.constant 0 : index
    %284 = vector.load %arg16[%c1_134, %c0_135, %c0_136] : memref<2x1x128xf32, #tpu.memory_space<vmem>>, vector<1x1x128xf32>
    %285 = vector.shape_cast %284 : vector<1x1x128xf32> to vector<1x128xf32>
    %286 = vector.broadcast %285 : vector<1x128xf32> to vector<24x128xf32>
    %287 = arith.addf %283, %286 : vector<24x128xf32>
    %c0_137 = arith.constant 0 : index
    %c0_138 = arith.constant 0 : index
    %288 = vector.load %arg17[%c0_137, %c0_138] : memref<1x128xf32, #tpu.memory_space<vmem>>, vector<1x128xf32>
    %c0_139 = arith.constant 0 : index
    %c0_140 = arith.constant 0 : index
    %289 = vector.load %arg18[%c0_139, %c0_140] : memref<1x128xf32, #tpu.memory_space<vmem>>, vector<1x128xf32>
    %cst_141 = arith.constant dense<0.000000e+00> : vector<24xf32>
    %290 = vector.multi_reduction <add>, %287, %cst_141 [1] : vector<24x128xf32> to vector<24xf32>
    %291 = vector.shape_cast %290 : vector<24xf32> to vector<24x1xf32>
    %cst_142 = arith.constant 1.280000e+02 : f32
    %292 = vector.broadcast %cst_142 : f32 to vector<24x1xf32>
    %293 = arith.divf %291, %292 : vector<24x1xf32>
    %294 = vector.broadcast %293 : vector<24x1xf32> to vector<24x128xf32>
    %295 = arith.subf %287, %294 : vector<24x128xf32>
    %296 = arith.mulf %295, %295 : vector<24x128xf32>
    %cst_143 = arith.constant dense<0.000000e+00> : vector<24xf32>
    %297 = vector.multi_reduction <add>, %296, %cst_143 [1] : vector<24x128xf32> to vector<24xf32>
    %298 = vector.shape_cast %297 : vector<24xf32> to vector<24x1xf32>
    %cst_144 = arith.constant 1.280000e+02 : f32
    %299 = vector.broadcast %cst_144 : f32 to vector<24x1xf32>
    %300 = arith.divf %298, %299 : vector<24x1xf32>
    %cst_145 = arith.constant 9.99999996E-13 : f32
    %301 = vector.broadcast %cst_145 : f32 to vector<24x1xf32>
    %302 = arith.addf %300, %301 : vector<24x1xf32>
    %303 = math.rsqrt %302 : vector<24x1xf32>
    %304 = vector.broadcast %303 : vector<24x1xf32> to vector<24x128xf32>
    %305 = arith.mulf %295, %304 : vector<24x128xf32>
    %306 = vector.broadcast %288 : vector<1x128xf32> to vector<24x128xf32>
    %307 = arith.mulf %305, %306 : vector<24x128xf32>
    %308 = vector.broadcast %289 : vector<1x128xf32> to vector<24x128xf32>
    %309 = arith.addf %307, %308 : vector<24x128xf32>
    %310 = tpu.iota {dimensions = array<i32: 0>} : vector<24x1xi32>
    %c17_i32_146 = arith.constant 17 : i32
    %311 = vector.broadcast %c17_i32_146 : i32 to vector<24x1xi32>
    %312 = arith.cmpi slt, %310, %311 : vector<24x1xi32>
    %cst_147 = arith.constant 0.0588235296 : f32
    %cst_148 = arith.constant 0.000000e+00 : f32
    %313 = vector.broadcast %cst_147 : f32 to vector<24x1xf32>
    %314 = vector.broadcast %cst_148 : f32 to vector<24x1xf32>
    %315 = arith.select %312, %313, %314 : vector<24x1xi1>, vector<24x1xf32>
    %316 = vector.broadcast %315 : vector<24x1xf32> to vector<24x128xf32>
    %317 = arith.mulf %309, %316 : vector<24x128xf32>
    %cst_149 = arith.constant dense<0.000000e+00> : vector<128xf32>
    %318 = vector.multi_reduction <add>, %317, %cst_149 [0] : vector<24x128xf32> to vector<128xf32>
    %319 = vector.shape_cast %318 : vector<128xf32> to vector<1x128xf32>
    %320 = vector.shape_cast %319 : vector<1x128xf32> to vector<1x1x128xf32>
    %c0_150 = arith.constant 0 : index
    %c0_151 = arith.constant 0 : index
    %c0_152 = arith.constant 0 : index
    %321 = vector.load %arg19[%c0_150, %c0_151, %c0_152] : memref<1x1x128xf32, #tpu.memory_space<vmem>>, vector<1x1x128xf32>
    tpu.vector_store %arg19[%c0_150, %c0_151, %c0_152], %320 {strides = array<i32>} : memref<1x1x128xf32, #tpu.memory_space<vmem>>, vector<1x1x128xf32>,
    return
  }
  func.func @transform_0(%arg0: i32) -> (i32, i32, i32) {
    %c0_i32 = arith.constant 0 : i32
    %c0_i32_0 = arith.constant 0 : i32
    %c0_i32_1 = arith.constant 0 : i32
    return %arg0, %c0_i32, %c0_i32_0 : i32, i32, i32
  }
  func.func @transform_1(%arg0: i32) -> (i32, i32) {
    %c0_i32 = arith.constant 0 : i32
    %c0_i32_0 = arith.constant 0 : i32
    %c0_i32_1 = arith.constant 0 : i32
    return %c0_i32, %c0_i32_0 : i32, i32
  }
  func.func @transform_2(%arg0: i32) -> (i32, i32) {
    %c0_i32 = arith.constant 0 : i32
    %c0_i32_0 = arith.constant 0 : i32
    %c0_i32_1 = arith.constant 0 : i32
    return %c0_i32, %c0_i32_0 : i32, i32
  }
  func.func @transform_3(%arg0: i32) -> (i32, i32, i32) {
    %c0_i32 = arith.constant 0 : i32
    %c0_i32_0 = arith.constant 0 : i32
    %c0_i32_1 = arith.constant 0 : i32
    %c0_i32_2 = arith.constant 0 : i32
    return %c0_i32, %c0_i32_0, %c0_i32_1 : i32, i32, i32
  }
  func.func @transform_4(%arg0: i32) -> (i32, i32, i32) {
    %c0_i32 = arith.constant 0 : i32
    %c0_i32_0 = arith.constant 0 : i32
    %c0_i32_1 = arith.constant 0 : i32
    %c0_i32_2 = arith.constant 0 : i32
    return %c0_i32, %c0_i32_0, %c0_i32_1 : i32, i32, i32
  }
  func.func @transform_5(%arg0: i32) -> (i32, i32, i32) {
    %c0_i32 = arith.constant 0 : i32
    %c0_i32_0 = arith.constant 0 : i32
    %c0_i32_1 = arith.constant 0 : i32
    %c0_i32_2 = arith.constant 0 : i32
    return %c0_i32, %c0_i32_0, %c0_i32_1 : i32, i32, i32
  }
  func.func @transform_6(%arg0: i32) -> (i32, i32, i32) {
    %c0_i32 = arith.constant 0 : i32
    %c0_i32_0 = arith.constant 0 : i32
    %c0_i32_1 = arith.constant 0 : i32
    %c0_i32_2 = arith.constant 0 : i32
    return %c0_i32, %c0_i32_0, %c0_i32_1 : i32, i32, i32
  }
  func.func @transform_7(%arg0: i32) -> (i32, i32, i32) {
    %c0_i32 = arith.constant 0 : i32
    %c0_i32_0 = arith.constant 0 : i32
    %c0_i32_1 = arith.constant 0 : i32
    %c0_i32_2 = arith.constant 0 : i32
    return %c0_i32, %c0_i32_0, %c0_i32_1 : i32, i32, i32
  }
  func.func @transform_8(%arg0: i32) -> (i32, i32, i32) {
    %c0_i32 = arith.constant 0 : i32
    %c0_i32_0 = arith.constant 0 : i32
    %c0_i32_1 = arith.constant 0 : i32
    %c0_i32_2 = arith.constant 0 : i32
    return %c0_i32, %c0_i32_0, %c0_i32_1 : i32, i32, i32
  }
  func.func @transform_9(%arg0: i32) -> (i32, i32, i32) {
    %c0_i32 = arith.constant 0 : i32
    %c0_i32_0 = arith.constant 0 : i32
    %c0_i32_1 = arith.constant 0 : i32
    %c0_i32_2 = arith.constant 0 : i32
    return %c0_i32, %c0_i32_0, %c0_i32_1 : i32, i32, i32
  }
  func.func @transform_10(%arg0: i32) -> (i32, i32, i32) {
    %c0_i32 = arith.constant 0 : i32
    %c0_i32_0 = arith.constant 0 : i32
    %c0_i32_1 = arith.constant 0 : i32
    %c0_i32_2 = arith.constant 0 : i32
    return %c0_i32, %c0_i32_0, %c0_i32_1 : i32, i32, i32
  }
  func.func @transform_11(%arg0: i32) -> (i32, i32, i32) {
    %c0_i32 = arith.constant 0 : i32
    %c0_i32_0 = arith.constant 0 : i32
    %c0_i32_1 = arith.constant 0 : i32
    %c0_i32_2 = arith.constant 0 : i32
    return %c0_i32, %c0_i32_0, %c0_i32_1 : i32, i32, i32
  }
  func.func @transform_12(%arg0: i32) -> (i32, i32, i32) {
    %c0_i32 = arith.constant 0 : i32
    %c0_i32_0 = arith.constant 0 : i32
    %c0_i32_1 = arith.constant 0 : i32
    %c0_i32_2 = arith.constant 0 : i32
    return %c0_i32, %c0_i32_0, %c0_i32_1 : i32, i32, i32
  }
  func.func @transform_13(%arg0: i32) -> (i32, i32, i32) {
    %c0_i32 = arith.constant 0 : i32
    %c0_i32_0 = arith.constant 0 : i32
    %c0_i32_1 = arith.constant 0 : i32
    %c0_i32_2 = arith.constant 0 : i32
    return %c0_i32, %c0_i32_0, %c0_i32_1 : i32, i32, i32
  }
  func.func @transform_14(%arg0: i32) -> (i32, i32, i32) {
    %c0_i32 = arith.constant 0 : i32
    %c0_i32_0 = arith.constant 0 : i32
    %c0_i32_1 = arith.constant 0 : i32
    %c0_i32_2 = arith.constant 0 : i32
    return %c0_i32, %c0_i32_0, %c0_i32_1 : i32, i32, i32
  }
  func.func @transform_15(%arg0: i32) -> (i32, i32, i32) {
    %c0_i32 = arith.constant 0 : i32
    %c0_i32_0 = arith.constant 0 : i32
    %c0_i32_1 = arith.constant 0 : i32
    %c0_i32_2 = arith.constant 0 : i32
    return %c0_i32, %c0_i32_0, %c0_i32_1 : i32, i32, i32
  }
  func.func @transform_16(%arg0: i32) -> (i32, i32) {
    %c0_i32 = arith.constant 0 : i32
    %c0_i32_0 = arith.constant 0 : i32
    %c0_i32_1 = arith.constant 0 : i32
    return %c0_i32, %c0_i32_0 : i32, i32
  }
  func.func @transform_17(%arg0: i32) -> (i32, i32) {
    %c0_i32 = arith.constant 0 : i32
    %c0_i32_0 = arith.constant 0 : i32
    %c0_i32_1 = arith.constant 0 : i32
    return %c0_i32, %c0_i32_0 : i32, i32
  }
  func.func @transform_18(%arg0: i32) -> (i32, i32, i32) {
    %c0_i32 = arith.constant 0 : i32
    %c0_i32_0 = arith.constant 0 : i32
    %c0_i32_1 = arith.constant 0 : i32
    return %arg0, %c0_i32, %c0_i32_0 : i32, i32, i32
  }
}

module attributes {stable_mosaic.version = 11 : i64} {
  func.func @_decoder_kernel(%arg0: memref<16x1xi32, #tpu.memory_space<vmem>>, %arg1: memref<2x128xf32, #tpu.memory_space<vmem>>, %arg2: memref<256x128xbf16, #tpu.memory_space<vmem>>, %arg3: memref<2x128x512xbf16, #tpu.memory_space<vmem>>, %arg4: memref<2x128x512xbf16, #tpu.memory_space<vmem>>, %arg5: memref<2x1x512xf32, #tpu.memory_space<vmem>>, %arg6: memref<128x256xbf16, #tpu.memory_space<vmem>>, %arg7: memref<1x256xf32, #tpu.memory_space<vmem>>, %arg8: memref<9x2x256xf32, #tpu.memory_space<vmem>>) attributes {dimension_semantics = [], scalar_prefetch = 0 : i64, scratch_operands = 0 : i64, tpu.core_type = #tpu.core_type<tc>} {
    %c0 = arith.constant 0 : index
    %c0_0 = arith.constant 0 : index
    %0 = vector.load %arg0[%c0, %c0_0] : memref<16x1xi32, #tpu.memory_space<vmem>>, vector<16x1xi32>
    %1 = tpu.iota {dimensions = array<i32: 1>} : vector<16x256xi32>
    %2 = vector.broadcast %0 : vector<16x1xi32> to vector<16x256xi32>
    %3 = arith.cmpi eq, %2, %1 : vector<16x256xi32>
    %cst = arith.constant 1.000000e+00 : f32
    %cst_1 = arith.constant 0.000000e+00 : f32
    %4 = vector.broadcast %cst : f32 to vector<16x256xf32>
    %5 = vector.broadcast %cst_1 : f32 to vector<16x256xf32>
    %6 = arith.select %3, %4, %5 : vector<16x256xi1>, vector<16x256xf32>
    %7 = arith.truncf %6 : vector<16x256xf32> to vector<16x256xbf16>
    %c0_2 = arith.constant 0 : index
    %c0_3 = arith.constant 0 : index
    %8 = vector.load %arg2[%c0_2, %c0_3] : memref<256x128xbf16, #tpu.memory_space<vmem>>, vector<256x128xbf16>
    %cst_4 = arith.constant dense<0.000000e+00> : vector<16x128xf32>
    %9 = tpu.matmul %7, %8, %cst_4 {dimension_numbers = #tpu.dot_dimension_numbers<[1], [0], [0], [1], [0, 0, 1, 1], [], []>} : vector<16x256xbf16>, vector<256x128xbf16>, vector<16x128xf32> -> vector<16x128xf32>
    %c0_5 = arith.constant 0 : index
    %c0_6 = arith.constant 0 : index
    %10 = vector.load %arg1[%c0_5, %c0_6] : memref<2x128xf32, #tpu.memory_space<vmem>>, vector<2x128xf32>
    %11 = tpu.concatenate %10, %9 in 0 : vector<2x128xf32>, vector<16x128xf32> -> vector<18x128xf32>
    %12 = arith.truncf %11 : vector<18x128xf32> to vector<18x128xbf16>
    %c0_7 = arith.constant 0 : index
    %c0_8 = arith.constant 0 : index
    %c0_9 = arith.constant 0 : index
    %13 = vector.load %arg3[%c0_7, %c0_8, %c0_9] : memref<2x128x512xbf16, #tpu.memory_space<vmem>>, vector<1x128x512xbf16>
    %14 = vector.shape_cast %13 : vector<1x128x512xbf16> to vector<128x512xbf16>
    %cst_10 = arith.constant dense<0.000000e+00> : vector<18x512xf32>
    %15 = tpu.matmul %12, %14, %cst_10 {dimension_numbers = #tpu.dot_dimension_numbers<[1], [0], [0], [1], [0, 0, 1, 1], [], []>} : vector<18x128xbf16>, vector<128x512xbf16>, vector<18x512xf32> -> vector<18x512xf32>
    %c0_11 = arith.constant 0 : index
    %c0_12 = arith.constant 0 : index
    %c0_13 = arith.constant 0 : index
    %16 = vector.load %arg5[%c0_11, %c0_12, %c0_13] : memref<2x1x512xf32, #tpu.memory_space<vmem>>, vector<1x1x512xf32>
    %17 = vector.shape_cast %16 : vector<1x1x512xf32> to vector<1x512xf32>
    %18 = vector.broadcast %17 : vector<1x512xf32> to vector<18x512xf32>
    %19 = arith.addf %15, %18 : vector<18x512xf32>
    %c0_14 = arith.constant 0 : index
    %c0_15 = arith.constant 0 : index
    %c0_16 = arith.constant 0 : index
    %20 = vector.load %arg4[%c0_14, %c0_15, %c0_16] : memref<2x128x512xbf16, #tpu.memory_space<vmem>>, vector<1x128x512xbf16>
    %21 = vector.shape_cast %20 : vector<1x128x512xbf16> to vector<128x512xbf16>
    %cst_17 = arith.constant 0.000000e+00 : f32
    %22 = vector.broadcast %cst_17 : f32 to vector<2x128xf32>
    %cst_18 = arith.constant 0.000000e+00 : f32
    %23 = vector.broadcast %cst_18 : f32 to vector<2x128xf32>
    %24 = vector.extract_strided_slice %19 {offsets = [0, 0], sizes = [2, 512], strides = [1, 1]} : vector<18x512xf32> to vector<2x512xf32>
    %25 = arith.truncf %22 : vector<2x128xf32> to vector<2x128xbf16>
    %cst_19 = arith.constant dense<0.000000e+00> : vector<2x512xf32>
    %26 = tpu.matmul %25, %21, %cst_19 {dimension_numbers = #tpu.dot_dimension_numbers<[1], [0], [0], [1], [0, 0, 1, 1], [], []>} : vector<2x128xbf16>, vector<128x512xbf16>, vector<2x512xf32> -> vector<2x512xf32>
    %27 = arith.addf %24, %26 : vector<2x512xf32>
    %28 = vector.extract_strided_slice %27 {offsets = [0, 0], sizes = [2, 128], strides = [1, 1]} : vector<2x512xf32> to vector<2x128xf32>
    %cst_20 = arith.constant 0.000000e+00 : f32
    %29 = vector.broadcast %cst_20 : f32 to vector<2x128xf32>
    %30 = arith.subf %29, %28 : vector<2x128xf32>
    %31 = math.exp %30 : vector<2x128xf32>
    %cst_21 = arith.constant 1.000000e+00 : f32
    %32 = vector.broadcast %cst_21 : f32 to vector<2x128xf32>
    %33 = arith.addf %32, %31 : vector<2x128xf32>
    %cst_22 = arith.constant 1.000000e+00 : f32
    %34 = vector.broadcast %cst_22 : f32 to vector<2x128xf32>
    %35 = arith.divf %34, %33 : vector<2x128xf32>
    %36 = vector.extract_strided_slice %27 {offsets = [0, 128], sizes = [2, 128], strides = [1, 1]} : vector<2x512xf32> to vector<2x128xf32>
    %cst_23 = arith.constant 0.000000e+00 : f32
    %37 = vector.broadcast %cst_23 : f32 to vector<2x128xf32>
    %38 = arith.subf %37, %36 : vector<2x128xf32>
    %39 = math.exp %38 : vector<2x128xf32>
    %cst_24 = arith.constant 1.000000e+00 : f32
    %40 = vector.broadcast %cst_24 : f32 to vector<2x128xf32>
    %41 = arith.addf %40, %39 : vector<2x128xf32>
    %cst_25 = arith.constant 1.000000e+00 : f32
    %42 = vector.broadcast %cst_25 : f32 to vector<2x128xf32>
    %43 = arith.divf %42, %41 : vector<2x128xf32>
    %44 = vector.extract_strided_slice %27 {offsets = [0, 256], sizes = [2, 128], strides = [1, 1]} : vector<2x512xf32> to vector<2x128xf32>
    %45 = math.tanh %44 : vector<2x128xf32>
    %46 = vector.extract_strided_slice %27 {offsets = [0, 384], sizes = [2, 128], strides = [1, 1]} : vector<2x512xf32> to vector<2x128xf32>
    %cst_26 = arith.constant 0.000000e+00 : f32
    %47 = vector.broadcast %cst_26 : f32 to vector<2x128xf32>
    %48 = arith.subf %47, %46 : vector<2x128xf32>
    %49 = math.exp %48 : vector<2x128xf32>
    %cst_27 = arith.constant 1.000000e+00 : f32
    %50 = vector.broadcast %cst_27 : f32 to vector<2x128xf32>
    %51 = arith.addf %50, %49 : vector<2x128xf32>
    %cst_28 = arith.constant 1.000000e+00 : f32
    %52 = vector.broadcast %cst_28 : f32 to vector<2x128xf32>
    %53 = arith.divf %52, %51 : vector<2x128xf32>
    %54 = arith.mulf %43, %23 : vector<2x128xf32>
    %55 = arith.mulf %35, %45 : vector<2x128xf32>
    %56 = arith.addf %54, %55 : vector<2x128xf32>
    %57 = math.tanh %56 : vector<2x128xf32>
    %58 = arith.mulf %53, %57 : vector<2x128xf32>
    %59 = vector.extract_strided_slice %19 {offsets = [2, 0], sizes = [2, 512], strides = [1, 1]} : vector<18x512xf32> to vector<2x512xf32>
    %60 = arith.truncf %58 : vector<2x128xf32> to vector<2x128xbf16>
    %cst_29 = arith.constant dense<0.000000e+00> : vector<2x512xf32>
    %61 = tpu.matmul %60, %21, %cst_29 {dimension_numbers = #tpu.dot_dimension_numbers<[1], [0], [0], [1], [0, 0, 1, 1], [], []>} : vector<2x128xbf16>, vector<128x512xbf16>, vector<2x512xf32> -> vector<2x512xf32>
    %62 = arith.addf %59, %61 : vector<2x512xf32>
    %63 = vector.extract_strided_slice %62 {offsets = [0, 0], sizes = [2, 128], strides = [1, 1]} : vector<2x512xf32> to vector<2x128xf32>
    %cst_30 = arith.constant 0.000000e+00 : f32
    %64 = vector.broadcast %cst_30 : f32 to vector<2x128xf32>
    %65 = arith.subf %64, %63 : vector<2x128xf32>
    %66 = math.exp %65 : vector<2x128xf32>
    %cst_31 = arith.constant 1.000000e+00 : f32
    %67 = vector.broadcast %cst_31 : f32 to vector<2x128xf32>
    %68 = arith.addf %67, %66 : vector<2x128xf32>
    %cst_32 = arith.constant 1.000000e+00 : f32
    %69 = vector.broadcast %cst_32 : f32 to vector<2x128xf32>
    %70 = arith.divf %69, %68 : vector<2x128xf32>
    %71 = vector.extract_strided_slice %62 {offsets = [0, 128], sizes = [2, 128], strides = [1, 1]} : vector<2x512xf32> to vector<2x128xf32>
    %cst_33 = arith.constant 0.000000e+00 : f32
    %72 = vector.broadcast %cst_33 : f32 to vector<2x128xf32>
    %73 = arith.subf %72, %71 : vector<2x128xf32>
    %74 = math.exp %73 : vector<2x128xf32>
    %cst_34 = arith.constant 1.000000e+00 : f32
    %75 = vector.broadcast %cst_34 : f32 to vector<2x128xf32>
    %76 = arith.addf %75, %74 : vector<2x128xf32>
    %cst_35 = arith.constant 1.000000e+00 : f32
    %77 = vector.broadcast %cst_35 : f32 to vector<2x128xf32>
    %78 = arith.divf %77, %76 : vector<2x128xf32>
    %79 = vector.extract_strided_slice %62 {offsets = [0, 256], sizes = [2, 128], strides = [1, 1]} : vector<2x512xf32> to vector<2x128xf32>
    %80 = math.tanh %79 : vector<2x128xf32>
    %81 = vector.extract_strided_slice %62 {offsets = [0, 384], sizes = [2, 128], strides = [1, 1]} : vector<2x512xf32> to vector<2x128xf32>
    %cst_36 = arith.constant 0.000000e+00 : f32
    %82 = vector.broadcast %cst_36 : f32 to vector<2x128xf32>
    %83 = arith.subf %82, %81 : vector<2x128xf32>
    %84 = math.exp %83 : vector<2x128xf32>
    %cst_37 = arith.constant 1.000000e+00 : f32
    %85 = vector.broadcast %cst_37 : f32 to vector<2x128xf32>
    %86 = arith.addf %85, %84 : vector<2x128xf32>
    %cst_38 = arith.constant 1.000000e+00 : f32
    %87 = vector.broadcast %cst_38 : f32 to vector<2x128xf32>
    %88 = arith.divf %87, %86 : vector<2x128xf32>
    %89 = arith.mulf %78, %56 : vector<2x128xf32>
    %90 = arith.mulf %70, %80 : vector<2x128xf32>
    %91 = arith.addf %89, %90 : vector<2x128xf32>
    %92 = math.tanh %91 : vector<2x128xf32>
    %93 = arith.mulf %88, %92 : vector<2x128xf32>
    %94 = vector.extract_strided_slice %19 {offsets = [4, 0], sizes = [2, 512], strides = [1, 1]} : vector<18x512xf32> to vector<2x512xf32>
    %95 = arith.truncf %93 : vector<2x128xf32> to vector<2x128xbf16>
    %cst_39 = arith.constant dense<0.000000e+00> : vector<2x512xf32>
    %96 = tpu.matmul %95, %21, %cst_39 {dimension_numbers = #tpu.dot_dimension_numbers<[1], [0], [0], [1], [0, 0, 1, 1], [], []>} : vector<2x128xbf16>, vector<128x512xbf16>, vector<2x512xf32> -> vector<2x512xf32>
    %97 = arith.addf %94, %96 : vector<2x512xf32>
    %98 = vector.extract_strided_slice %97 {offsets = [0, 0], sizes = [2, 128], strides = [1, 1]} : vector<2x512xf32> to vector<2x128xf32>
    %cst_40 = arith.constant 0.000000e+00 : f32
    %99 = vector.broadcast %cst_40 : f32 to vector<2x128xf32>
    %100 = arith.subf %99, %98 : vector<2x128xf32>
    %101 = math.exp %100 : vector<2x128xf32>
    %cst_41 = arith.constant 1.000000e+00 : f32
    %102 = vector.broadcast %cst_41 : f32 to vector<2x128xf32>
    %103 = arith.addf %102, %101 : vector<2x128xf32>
    %cst_42 = arith.constant 1.000000e+00 : f32
    %104 = vector.broadcast %cst_42 : f32 to vector<2x128xf32>
    %105 = arith.divf %104, %103 : vector<2x128xf32>
    %106 = vector.extract_strided_slice %97 {offsets = [0, 128], sizes = [2, 128], strides = [1, 1]} : vector<2x512xf32> to vector<2x128xf32>
    %cst_43 = arith.constant 0.000000e+00 : f32
    %107 = vector.broadcast %cst_43 : f32 to vector<2x128xf32>
    %108 = arith.subf %107, %106 : vector<2x128xf32>
    %109 = math.exp %108 : vector<2x128xf32>
    %cst_44 = arith.constant 1.000000e+00 : f32
    %110 = vector.broadcast %cst_44 : f32 to vector<2x128xf32>
    %111 = arith.addf %110, %109 : vector<2x128xf32>
    %cst_45 = arith.constant 1.000000e+00 : f32
    %112 = vector.broadcast %cst_45 : f32 to vector<2x128xf32>
    %113 = arith.divf %112, %111 : vector<2x128xf32>
    %114 = vector.extract_strided_slice %97 {offsets = [0, 256], sizes = [2, 128], strides = [1, 1]} : vector<2x512xf32> to vector<2x128xf32>
    %115 = math.tanh %114 : vector<2x128xf32>
    %116 = vector.extract_strided_slice %97 {offsets = [0, 384], sizes = [2, 128], strides = [1, 1]} : vector<2x512xf32> to vector<2x128xf32>
    %cst_46 = arith.constant 0.000000e+00 : f32
    %117 = vector.broadcast %cst_46 : f32 to vector<2x128xf32>
    %118 = arith.subf %117, %116 : vector<2x128xf32>
    %119 = math.exp %118 : vector<2x128xf32>
    %cst_47 = arith.constant 1.000000e+00 : f32
    %120 = vector.broadcast %cst_47 : f32 to vector<2x128xf32>
    %121 = arith.addf %120, %119 : vector<2x128xf32>
    %cst_48 = arith.constant 1.000000e+00 : f32
    %122 = vector.broadcast %cst_48 : f32 to vector<2x128xf32>
    %123 = arith.divf %122, %121 : vector<2x128xf32>
    %124 = arith.mulf %113, %91 : vector<2x128xf32>
    %125 = arith.mulf %105, %115 : vector<2x128xf32>
    %126 = arith.addf %124, %125 : vector<2x128xf32>
    %127 = math.tanh %126 : vector<2x128xf32>
    %128 = arith.mulf %123, %127 : vector<2x128xf32>
    %129 = vector.extract_strided_slice %19 {offsets = [6, 0], sizes = [2, 512], strides = [1, 1]} : vector<18x512xf32> to vector<2x512xf32>
    %130 = arith.truncf %128 : vector<2x128xf32> to vector<2x128xbf16>
    %cst_49 = arith.constant dense<0.000000e+00> : vector<2x512xf32>
    %131 = tpu.matmul %130, %21, %cst_49 {dimension_numbers = #tpu.dot_dimension_numbers<[1], [0], [0], [1], [0, 0, 1, 1], [], []>} : vector<2x128xbf16>, vector<128x512xbf16>, vector<2x512xf32> -> vector<2x512xf32>
    %132 = arith.addf %129, %131 : vector<2x512xf32>
    %133 = vector.extract_strided_slice %132 {offsets = [0, 0], sizes = [2, 128], strides = [1, 1]} : vector<2x512xf32> to vector<2x128xf32>
    %cst_50 = arith.constant 0.000000e+00 : f32
    %134 = vector.broadcast %cst_50 : f32 to vector<2x128xf32>
    %135 = arith.subf %134, %133 : vector<2x128xf32>
    %136 = math.exp %135 : vector<2x128xf32>
    %cst_51 = arith.constant 1.000000e+00 : f32
    %137 = vector.broadcast %cst_51 : f32 to vector<2x128xf32>
    %138 = arith.addf %137, %136 : vector<2x128xf32>
    %cst_52 = arith.constant 1.000000e+00 : f32
    %139 = vector.broadcast %cst_52 : f32 to vector<2x128xf32>
    %140 = arith.divf %139, %138 : vector<2x128xf32>
    %141 = vector.extract_strided_slice %132 {offsets = [0, 128], sizes = [2, 128], strides = [1, 1]} : vector<2x512xf32> to vector<2x128xf32>
    %cst_53 = arith.constant 0.000000e+00 : f32
    %142 = vector.broadcast %cst_53 : f32 to vector<2x128xf32>
    %143 = arith.subf %142, %141 : vector<2x128xf32>
    %144 = math.exp %143 : vector<2x128xf32>
    %cst_54 = arith.constant 1.000000e+00 : f32
    %145 = vector.broadcast %cst_54 : f32 to vector<2x128xf32>
    %146 = arith.addf %145, %144 : vector<2x128xf32>
    %cst_55 = arith.constant 1.000000e+00 : f32
    %147 = vector.broadcast %cst_55 : f32 to vector<2x128xf32>
    %148 = arith.divf %147, %146 : vector<2x128xf32>
    %149 = vector.extract_strided_slice %132 {offsets = [0, 256], sizes = [2, 128], strides = [1, 1]} : vector<2x512xf32> to vector<2x128xf32>
    %150 = math.tanh %149 : vector<2x128xf32>
    %151 = vector.extract_strided_slice %132 {offsets = [0, 384], sizes = [2, 128], strides = [1, 1]} : vector<2x512xf32> to vector<2x128xf32>
    %cst_56 = arith.constant 0.000000e+00 : f32
    %152 = vector.broadcast %cst_56 : f32 to vector<2x128xf32>
    %153 = arith.subf %152, %151 : vector<2x128xf32>
    %154 = math.exp %153 : vector<2x128xf32>
    %cst_57 = arith.constant 1.000000e+00 : f32
    %155 = vector.broadcast %cst_57 : f32 to vector<2x128xf32>
    %156 = arith.addf %155, %154 : vector<2x128xf32>
    %cst_58 = arith.constant 1.000000e+00 : f32
    %157 = vector.broadcast %cst_58 : f32 to vector<2x128xf32>
    %158 = arith.divf %157, %156 : vector<2x128xf32>
    %159 = arith.mulf %148, %126 : vector<2x128xf32>
    %160 = arith.mulf %140, %150 : vector<2x128xf32>
    %161 = arith.addf %159, %160 : vector<2x128xf32>
    %162 = math.tanh %161 : vector<2x128xf32>
    %163 = arith.mulf %158, %162 : vector<2x128xf32>
    %164 = vector.extract_strided_slice %19 {offsets = [8, 0], sizes = [2, 512], strides = [1, 1]} : vector<18x512xf32> to vector<2x512xf32>
    %165 = arith.truncf %163 : vector<2x128xf32> to vector<2x128xbf16>
    %cst_59 = arith.constant dense<0.000000e+00> : vector<2x512xf32>
    %166 = tpu.matmul %165, %21, %cst_59 {dimension_numbers = #tpu.dot_dimension_numbers<[1], [0], [0], [1], [0, 0, 1, 1], [], []>} : vector<2x128xbf16>, vector<128x512xbf16>, vector<2x512xf32> -> vector<2x512xf32>
    %167 = arith.addf %164, %166 : vector<2x512xf32>
    %168 = vector.extract_strided_slice %167 {offsets = [0, 0], sizes = [2, 128], strides = [1, 1]} : vector<2x512xf32> to vector<2x128xf32>
    %cst_60 = arith.constant 0.000000e+00 : f32
    %169 = vector.broadcast %cst_60 : f32 to vector<2x128xf32>
    %170 = arith.subf %169, %168 : vector<2x128xf32>
    %171 = math.exp %170 : vector<2x128xf32>
    %cst_61 = arith.constant 1.000000e+00 : f32
    %172 = vector.broadcast %cst_61 : f32 to vector<2x128xf32>
    %173 = arith.addf %172, %171 : vector<2x128xf32>
    %cst_62 = arith.constant 1.000000e+00 : f32
    %174 = vector.broadcast %cst_62 : f32 to vector<2x128xf32>
    %175 = arith.divf %174, %173 : vector<2x128xf32>
    %176 = vector.extract_strided_slice %167 {offsets = [0, 128], sizes = [2, 128], strides = [1, 1]} : vector<2x512xf32> to vector<2x128xf32>
    %cst_63 = arith.constant 0.000000e+00 : f32
    %177 = vector.broadcast %cst_63 : f32 to vector<2x128xf32>
    %178 = arith.subf %177, %176 : vector<2x128xf32>
    %179 = math.exp %178 : vector<2x128xf32>
    %cst_64 = arith.constant 1.000000e+00 : f32
    %180 = vector.broadcast %cst_64 : f32 to vector<2x128xf32>
    %181 = arith.addf %180, %179 : vector<2x128xf32>
    %cst_65 = arith.constant 1.000000e+00 : f32
    %182 = vector.broadcast %cst_65 : f32 to vector<2x128xf32>
    %183 = arith.divf %182, %181 : vector<2x128xf32>
    %184 = vector.extract_strided_slice %167 {offsets = [0, 256], sizes = [2, 128], strides = [1, 1]} : vector<2x512xf32> to vector<2x128xf32>
    %185 = math.tanh %184 : vector<2x128xf32>
    %186 = vector.extract_strided_slice %167 {offsets = [0, 384], sizes = [2, 128], strides = [1, 1]} : vector<2x512xf32> to vector<2x128xf32>
    %cst_66 = arith.constant 0.000000e+00 : f32
    %187 = vector.broadcast %cst_66 : f32 to vector<2x128xf32>
    %188 = arith.subf %187, %186 : vector<2x128xf32>
    %189 = math.exp %188 : vector<2x128xf32>
    %cst_67 = arith.constant 1.000000e+00 : f32
    %190 = vector.broadcast %cst_67 : f32 to vector<2x128xf32>
    %191 = arith.addf %190, %189 : vector<2x128xf32>
    %cst_68 = arith.constant 1.000000e+00 : f32
    %192 = vector.broadcast %cst_68 : f32 to vector<2x128xf32>
    %193 = arith.divf %192, %191 : vector<2x128xf32>
    %194 = arith.mulf %183, %161 : vector<2x128xf32>
    %195 = arith.mulf %175, %185 : vector<2x128xf32>
    %196 = arith.addf %194, %195 : vector<2x128xf32>
    %197 = math.tanh %196 : vector<2x128xf32>
    %198 = arith.mulf %193, %197 : vector<2x128xf32>
    %199 = vector.extract_strided_slice %19 {offsets = [10, 0], sizes = [2, 512], strides = [1, 1]} : vector<18x512xf32> to vector<2x512xf32>
    %200 = arith.truncf %198 : vector<2x128xf32> to vector<2x128xbf16>
    %cst_69 = arith.constant dense<0.000000e+00> : vector<2x512xf32>
    %201 = tpu.matmul %200, %21, %cst_69 {dimension_numbers = #tpu.dot_dimension_numbers<[1], [0], [0], [1], [0, 0, 1, 1], [], []>} : vector<2x128xbf16>, vector<128x512xbf16>, vector<2x512xf32> -> vector<2x512xf32>
    %202 = arith.addf %199, %201 : vector<2x512xf32>
    %203 = vector.extract_strided_slice %202 {offsets = [0, 0], sizes = [2, 128], strides = [1, 1]} : vector<2x512xf32> to vector<2x128xf32>
    %cst_70 = arith.constant 0.000000e+00 : f32
    %204 = vector.broadcast %cst_70 : f32 to vector<2x128xf32>
    %205 = arith.subf %204, %203 : vector<2x128xf32>
    %206 = math.exp %205 : vector<2x128xf32>
    %cst_71 = arith.constant 1.000000e+00 : f32
    %207 = vector.broadcast %cst_71 : f32 to vector<2x128xf32>
    %208 = arith.addf %207, %206 : vector<2x128xf32>
    %cst_72 = arith.constant 1.000000e+00 : f32
    %209 = vector.broadcast %cst_72 : f32 to vector<2x128xf32>
    %210 = arith.divf %209, %208 : vector<2x128xf32>
    %211 = vector.extract_strided_slice %202 {offsets = [0, 128], sizes = [2, 128], strides = [1, 1]} : vector<2x512xf32> to vector<2x128xf32>
    %cst_73 = arith.constant 0.000000e+00 : f32
    %212 = vector.broadcast %cst_73 : f32 to vector<2x128xf32>
    %213 = arith.subf %212, %211 : vector<2x128xf32>
    %214 = math.exp %213 : vector<2x128xf32>
    %cst_74 = arith.constant 1.000000e+00 : f32
    %215 = vector.broadcast %cst_74 : f32 to vector<2x128xf32>
    %216 = arith.addf %215, %214 : vector<2x128xf32>
    %cst_75 = arith.constant 1.000000e+00 : f32
    %217 = vector.broadcast %cst_75 : f32 to vector<2x128xf32>
    %218 = arith.divf %217, %216 : vector<2x128xf32>
    %219 = vector.extract_strided_slice %202 {offsets = [0, 256], sizes = [2, 128], strides = [1, 1]} : vector<2x512xf32> to vector<2x128xf32>
    %220 = math.tanh %219 : vector<2x128xf32>
    %221 = vector.extract_strided_slice %202 {offsets = [0, 384], sizes = [2, 128], strides = [1, 1]} : vector<2x512xf32> to vector<2x128xf32>
    %cst_76 = arith.constant 0.000000e+00 : f32
    %222 = vector.broadcast %cst_76 : f32 to vector<2x128xf32>
    %223 = arith.subf %222, %221 : vector<2x128xf32>
    %224 = math.exp %223 : vector<2x128xf32>
    %cst_77 = arith.constant 1.000000e+00 : f32
    %225 = vector.broadcast %cst_77 : f32 to vector<2x128xf32>
    %226 = arith.addf %225, %224 : vector<2x128xf32>
    %cst_78 = arith.constant 1.000000e+00 : f32
    %227 = vector.broadcast %cst_78 : f32 to vector<2x128xf32>
    %228 = arith.divf %227, %226 : vector<2x128xf32>
    %229 = arith.mulf %218, %196 : vector<2x128xf32>
    %230 = arith.mulf %210, %220 : vector<2x128xf32>
    %231 = arith.addf %229, %230 : vector<2x128xf32>
    %232 = math.tanh %231 : vector<2x128xf32>
    %233 = arith.mulf %228, %232 : vector<2x128xf32>
    %234 = vector.extract_strided_slice %19 {offsets = [12, 0], sizes = [2, 512], strides = [1, 1]} : vector<18x512xf32> to vector<2x512xf32>
    %235 = arith.truncf %233 : vector<2x128xf32> to vector<2x128xbf16>
    %cst_79 = arith.constant dense<0.000000e+00> : vector<2x512xf32>
    %236 = tpu.matmul %235, %21, %cst_79 {dimension_numbers = #tpu.dot_dimension_numbers<[1], [0], [0], [1], [0, 0, 1, 1], [], []>} : vector<2x128xbf16>, vector<128x512xbf16>, vector<2x512xf32> -> vector<2x512xf32>
    %237 = arith.addf %234, %236 : vector<2x512xf32>
    %238 = vector.extract_strided_slice %237 {offsets = [0, 0], sizes = [2, 128], strides = [1, 1]} : vector<2x512xf32> to vector<2x128xf32>
    %cst_80 = arith.constant 0.000000e+00 : f32
    %239 = vector.broadcast %cst_80 : f32 to vector<2x128xf32>
    %240 = arith.subf %239, %238 : vector<2x128xf32>
    %241 = math.exp %240 : vector<2x128xf32>
    %cst_81 = arith.constant 1.000000e+00 : f32
    %242 = vector.broadcast %cst_81 : f32 to vector<2x128xf32>
    %243 = arith.addf %242, %241 : vector<2x128xf32>
    %cst_82 = arith.constant 1.000000e+00 : f32
    %244 = vector.broadcast %cst_82 : f32 to vector<2x128xf32>
    %245 = arith.divf %244, %243 : vector<2x128xf32>
    %246 = vector.extract_strided_slice %237 {offsets = [0, 128], sizes = [2, 128], strides = [1, 1]} : vector<2x512xf32> to vector<2x128xf32>
    %cst_83 = arith.constant 0.000000e+00 : f32
    %247 = vector.broadcast %cst_83 : f32 to vector<2x128xf32>
    %248 = arith.subf %247, %246 : vector<2x128xf32>
    %249 = math.exp %248 : vector<2x128xf32>
    %cst_84 = arith.constant 1.000000e+00 : f32
    %250 = vector.broadcast %cst_84 : f32 to vector<2x128xf32>
    %251 = arith.addf %250, %249 : vector<2x128xf32>
    %cst_85 = arith.constant 1.000000e+00 : f32
    %252 = vector.broadcast %cst_85 : f32 to vector<2x128xf32>
    %253 = arith.divf %252, %251 : vector<2x128xf32>
    %254 = vector.extract_strided_slice %237 {offsets = [0, 256], sizes = [2, 128], strides = [1, 1]} : vector<2x512xf32> to vector<2x128xf32>
    %255 = math.tanh %254 : vector<2x128xf32>
    %256 = vector.extract_strided_slice %237 {offsets = [0, 384], sizes = [2, 128], strides = [1, 1]} : vector<2x512xf32> to vector<2x128xf32>
    %cst_86 = arith.constant 0.000000e+00 : f32
    %257 = vector.broadcast %cst_86 : f32 to vector<2x128xf32>
    %258 = arith.subf %257, %256 : vector<2x128xf32>
    %259 = math.exp %258 : vector<2x128xf32>
    %cst_87 = arith.constant 1.000000e+00 : f32
    %260 = vector.broadcast %cst_87 : f32 to vector<2x128xf32>
    %261 = arith.addf %260, %259 : vector<2x128xf32>
    %cst_88 = arith.constant 1.000000e+00 : f32
    %262 = vector.broadcast %cst_88 : f32 to vector<2x128xf32>
    %263 = arith.divf %262, %261 : vector<2x128xf32>
    %264 = arith.mulf %253, %231 : vector<2x128xf32>
    %265 = arith.mulf %245, %255 : vector<2x128xf32>
    %266 = arith.addf %264, %265 : vector<2x128xf32>
    %267 = math.tanh %266 : vector<2x128xf32>
    %268 = arith.mulf %263, %267 : vector<2x128xf32>
    %269 = vector.extract_strided_slice %19 {offsets = [14, 0], sizes = [2, 512], strides = [1, 1]} : vector<18x512xf32> to vector<2x512xf32>
    %270 = arith.truncf %268 : vector<2x128xf32> to vector<2x128xbf16>
    %cst_89 = arith.constant dense<0.000000e+00> : vector<2x512xf32>
    %271 = tpu.matmul %270, %21, %cst_89 {dimension_numbers = #tpu.dot_dimension_numbers<[1], [0], [0], [1], [0, 0, 1, 1], [], []>} : vector<2x128xbf16>, vector<128x512xbf16>, vector<2x512xf32> -> vector<2x512xf32>
    %272 = arith.addf %269, %271 : vector<2x512xf32>
    %273 = vector.extract_strided_slice %272 {offsets = [0, 0], sizes = [2, 128], strides = [1, 1]} : vector<2x512xf32> to vector<2x128xf32>
    %cst_90 = arith.constant 0.000000e+00 : f32
    %274 = vector.broadcast %cst_90 : f32 to vector<2x128xf32>
    %275 = arith.subf %274, %273 : vector<2x128xf32>
    %276 = math.exp %275 : vector<2x128xf32>
    %cst_91 = arith.constant 1.000000e+00 : f32
    %277 = vector.broadcast %cst_91 : f32 to vector<2x128xf32>
    %278 = arith.addf %277, %276 : vector<2x128xf32>
    %cst_92 = arith.constant 1.000000e+00 : f32
    %279 = vector.broadcast %cst_92 : f32 to vector<2x128xf32>
    %280 = arith.divf %279, %278 : vector<2x128xf32>
    %281 = vector.extract_strided_slice %272 {offsets = [0, 128], sizes = [2, 128], strides = [1, 1]} : vector<2x512xf32> to vector<2x128xf32>
    %cst_93 = arith.constant 0.000000e+00 : f32
    %282 = vector.broadcast %cst_93 : f32 to vector<2x128xf32>
    %283 = arith.subf %282, %281 : vector<2x128xf32>
    %284 = math.exp %283 : vector<2x128xf32>
    %cst_94 = arith.constant 1.000000e+00 : f32
    %285 = vector.broadcast %cst_94 : f32 to vector<2x128xf32>
    %286 = arith.addf %285, %284 : vector<2x128xf32>
    %cst_95 = arith.constant 1.000000e+00 : f32
    %287 = vector.broadcast %cst_95 : f32 to vector<2x128xf32>
    %288 = arith.divf %287, %286 : vector<2x128xf32>
    %289 = vector.extract_strided_slice %272 {offsets = [0, 256], sizes = [2, 128], strides = [1, 1]} : vector<2x512xf32> to vector<2x128xf32>
    %290 = math.tanh %289 : vector<2x128xf32>
    %291 = vector.extract_strided_slice %272 {offsets = [0, 384], sizes = [2, 128], strides = [1, 1]} : vector<2x512xf32> to vector<2x128xf32>
    %cst_96 = arith.constant 0.000000e+00 : f32
    %292 = vector.broadcast %cst_96 : f32 to vector<2x128xf32>
    %293 = arith.subf %292, %291 : vector<2x128xf32>
    %294 = math.exp %293 : vector<2x128xf32>
    %cst_97 = arith.constant 1.000000e+00 : f32
    %295 = vector.broadcast %cst_97 : f32 to vector<2x128xf32>
    %296 = arith.addf %295, %294 : vector<2x128xf32>
    %cst_98 = arith.constant 1.000000e+00 : f32
    %297 = vector.broadcast %cst_98 : f32 to vector<2x128xf32>
    %298 = arith.divf %297, %296 : vector<2x128xf32>
    %299 = arith.mulf %288, %266 : vector<2x128xf32>
    %300 = arith.mulf %280, %290 : vector<2x128xf32>
    %301 = arith.addf %299, %300 : vector<2x128xf32>
    %302 = math.tanh %301 : vector<2x128xf32>
    %303 = arith.mulf %298, %302 : vector<2x128xf32>
    %304 = vector.extract_strided_slice %19 {offsets = [16, 0], sizes = [2, 512], strides = [1, 1]} : vector<18x512xf32> to vector<2x512xf32>
    %305 = arith.truncf %303 : vector<2x128xf32> to vector<2x128xbf16>
    %cst_99 = arith.constant dense<0.000000e+00> : vector<2x512xf32>
    %306 = tpu.matmul %305, %21, %cst_99 {dimension_numbers = #tpu.dot_dimension_numbers<[1], [0], [0], [1], [0, 0, 1, 1], [], []>} : vector<2x128xbf16>, vector<128x512xbf16>, vector<2x512xf32> -> vector<2x512xf32>
    %307 = arith.addf %304, %306 : vector<2x512xf32>
    %308 = vector.extract_strided_slice %307 {offsets = [0, 0], sizes = [2, 128], strides = [1, 1]} : vector<2x512xf32> to vector<2x128xf32>
    %cst_100 = arith.constant 0.000000e+00 : f32
    %309 = vector.broadcast %cst_100 : f32 to vector<2x128xf32>
    %310 = arith.subf %309, %308 : vector<2x128xf32>
    %311 = math.exp %310 : vector<2x128xf32>
    %cst_101 = arith.constant 1.000000e+00 : f32
    %312 = vector.broadcast %cst_101 : f32 to vector<2x128xf32>
    %313 = arith.addf %312, %311 : vector<2x128xf32>
    %cst_102 = arith.constant 1.000000e+00 : f32
    %314 = vector.broadcast %cst_102 : f32 to vector<2x128xf32>
    %315 = arith.divf %314, %313 : vector<2x128xf32>
    %316 = vector.extract_strided_slice %307 {offsets = [0, 128], sizes = [2, 128], strides = [1, 1]} : vector<2x512xf32> to vector<2x128xf32>
    %cst_103 = arith.constant 0.000000e+00 : f32
    %317 = vector.broadcast %cst_103 : f32 to vector<2x128xf32>
    %318 = arith.subf %317, %316 : vector<2x128xf32>
    %319 = math.exp %318 : vector<2x128xf32>
    %cst_104 = arith.constant 1.000000e+00 : f32
    %320 = vector.broadcast %cst_104 : f32 to vector<2x128xf32>
    %321 = arith.addf %320, %319 : vector<2x128xf32>
    %cst_105 = arith.constant 1.000000e+00 : f32
    %322 = vector.broadcast %cst_105 : f32 to vector<2x128xf32>
    %323 = arith.divf %322, %321 : vector<2x128xf32>
    %324 = vector.extract_strided_slice %307 {offsets = [0, 256], sizes = [2, 128], strides = [1, 1]} : vector<2x512xf32> to vector<2x128xf32>
    %325 = math.tanh %324 : vector<2x128xf32>
    %326 = vector.extract_strided_slice %307 {offsets = [0, 384], sizes = [2, 128], strides = [1, 1]} : vector<2x512xf32> to vector<2x128xf32>
    %cst_106 = arith.constant 0.000000e+00 : f32
    %327 = vector.broadcast %cst_106 : f32 to vector<2x128xf32>
    %328 = arith.subf %327, %326 : vector<2x128xf32>
    %329 = math.exp %328 : vector<2x128xf32>
    %cst_107 = arith.constant 1.000000e+00 : f32
    %330 = vector.broadcast %cst_107 : f32 to vector<2x128xf32>
    %331 = arith.addf %330, %329 : vector<2x128xf32>
    %cst_108 = arith.constant 1.000000e+00 : f32
    %332 = vector.broadcast %cst_108 : f32 to vector<2x128xf32>
    %333 = arith.divf %332, %331 : vector<2x128xf32>
    %334 = arith.mulf %323, %301 : vector<2x128xf32>
    %335 = arith.mulf %315, %325 : vector<2x128xf32>
    %336 = arith.addf %334, %335 : vector<2x128xf32>
    %337 = math.tanh %336 : vector<2x128xf32>
    %338 = arith.mulf %333, %337 : vector<2x128xf32>
    %339 = tpu.concatenate %58, %93, %128, %163, %198, %233, %268, %303, %338 in 0 : vector<2x128xf32>, vector<2x128xf32>, vector<2x128xf32>, vector<2x128xf32>, vector<2x128xf32>, vector<2x128xf32>, vector<2x128xf32>, vector<2x128xf32>, vector<2x128xf32> -> vector<18x128xf32>
    %340 = arith.truncf %339 : vector<18x128xf32> to vector<18x128xbf16>
    %c1 = arith.constant 1 : index
    %c0_109 = arith.constant 0 : index
    %c0_110 = arith.constant 0 : index
    %341 = vector.load %arg3[%c1, %c0_109, %c0_110] : memref<2x128x512xbf16, #tpu.memory_space<vmem>>, vector<1x128x512xbf16>
    %342 = vector.shape_cast %341 : vector<1x128x512xbf16> to vector<128x512xbf16>
    %cst_111 = arith.constant dense<0.000000e+00> : vector<18x512xf32>
    %343 = tpu.matmul %340, %342, %cst_111 {dimension_numbers = #tpu.dot_dimension_numbers<[1], [0], [0], [1], [0, 0, 1, 1], [], []>} : vector<18x128xbf16>, vector<128x512xbf16>, vector<18x512xf32> -> vector<18x512xf32>
    %c1_112 = arith.constant 1 : index
    %c0_113 = arith.constant 0 : index
    %c0_114 = arith.constant 0 : index
    %344 = vector.load %arg5[%c1_112, %c0_113, %c0_114] : memref<2x1x512xf32, #tpu.memory_space<vmem>>, vector<1x1x512xf32>
    %345 = vector.shape_cast %344 : vector<1x1x512xf32> to vector<1x512xf32>
    %346 = vector.broadcast %345 : vector<1x512xf32> to vector<18x512xf32>
    %347 = arith.addf %343, %346 : vector<18x512xf32>
    %c1_115 = arith.constant 1 : index
    %c0_116 = arith.constant 0 : index
    %c0_117 = arith.constant 0 : index
    %348 = vector.load %arg4[%c1_115, %c0_116, %c0_117] : memref<2x128x512xbf16, #tpu.memory_space<vmem>>, vector<1x128x512xbf16>
    %349 = vector.shape_cast %348 : vector<1x128x512xbf16> to vector<128x512xbf16>
    %cst_118 = arith.constant 0.000000e+00 : f32
    %350 = vector.broadcast %cst_118 : f32 to vector<2x128xf32>
    %cst_119 = arith.constant 0.000000e+00 : f32
    %351 = vector.broadcast %cst_119 : f32 to vector<2x128xf32>
    %352 = vector.extract_strided_slice %347 {offsets = [0, 0], sizes = [2, 512], strides = [1, 1]} : vector<18x512xf32> to vector<2x512xf32>
    %353 = arith.truncf %350 : vector<2x128xf32> to vector<2x128xbf16>
    %cst_120 = arith.constant dense<0.000000e+00> : vector<2x512xf32>
    %354 = tpu.matmul %353, %349, %cst_120 {dimension_numbers = #tpu.dot_dimension_numbers<[1], [0], [0], [1], [0, 0, 1, 1], [], []>} : vector<2x128xbf16>, vector<128x512xbf16>, vector<2x512xf32> -> vector<2x512xf32>
    %355 = arith.addf %352, %354 : vector<2x512xf32>
    %356 = vector.extract_strided_slice %355 {offsets = [0, 0], sizes = [2, 128], strides = [1, 1]} : vector<2x512xf32> to vector<2x128xf32>
    %cst_121 = arith.constant 0.000000e+00 : f32
    %357 = vector.broadcast %cst_121 : f32 to vector<2x128xf32>
    %358 = arith.subf %357, %356 : vector<2x128xf32>
    %359 = math.exp %358 : vector<2x128xf32>
    %cst_122 = arith.constant 1.000000e+00 : f32
    %360 = vector.broadcast %cst_122 : f32 to vector<2x128xf32>
    %361 = arith.addf %360, %359 : vector<2x128xf32>
    %cst_123 = arith.constant 1.000000e+00 : f32
    %362 = vector.broadcast %cst_123 : f32 to vector<2x128xf32>
    %363 = arith.divf %362, %361 : vector<2x128xf32>
    %364 = vector.extract_strided_slice %355 {offsets = [0, 128], sizes = [2, 128], strides = [1, 1]} : vector<2x512xf32> to vector<2x128xf32>
    %cst_124 = arith.constant 0.000000e+00 : f32
    %365 = vector.broadcast %cst_124 : f32 to vector<2x128xf32>
    %366 = arith.subf %365, %364 : vector<2x128xf32>
    %367 = math.exp %366 : vector<2x128xf32>
    %cst_125 = arith.constant 1.000000e+00 : f32
    %368 = vector.broadcast %cst_125 : f32 to vector<2x128xf32>
    %369 = arith.addf %368, %367 : vector<2x128xf32>
    %cst_126 = arith.constant 1.000000e+00 : f32
    %370 = vector.broadcast %cst_126 : f32 to vector<2x128xf32>
    %371 = arith.divf %370, %369 : vector<2x128xf32>
    %372 = vector.extract_strided_slice %355 {offsets = [0, 256], sizes = [2, 128], strides = [1, 1]} : vector<2x512xf32> to vector<2x128xf32>
    %373 = math.tanh %372 : vector<2x128xf32>
    %374 = vector.extract_strided_slice %355 {offsets = [0, 384], sizes = [2, 128], strides = [1, 1]} : vector<2x512xf32> to vector<2x128xf32>
    %cst_127 = arith.constant 0.000000e+00 : f32
    %375 = vector.broadcast %cst_127 : f32 to vector<2x128xf32>
    %376 = arith.subf %375, %374 : vector<2x128xf32>
    %377 = math.exp %376 : vector<2x128xf32>
    %cst_128 = arith.constant 1.000000e+00 : f32
    %378 = vector.broadcast %cst_128 : f32 to vector<2x128xf32>
    %379 = arith.addf %378, %377 : vector<2x128xf32>
    %cst_129 = arith.constant 1.000000e+00 : f32
    %380 = vector.broadcast %cst_129 : f32 to vector<2x128xf32>
    %381 = arith.divf %380, %379 : vector<2x128xf32>
    %382 = arith.mulf %371, %351 : vector<2x128xf32>
    %383 = arith.mulf %363, %373 : vector<2x128xf32>
    %384 = arith.addf %382, %383 : vector<2x128xf32>
    %385 = math.tanh %384 : vector<2x128xf32>
    %386 = arith.mulf %381, %385 : vector<2x128xf32>
    %387 = vector.extract_strided_slice %347 {offsets = [2, 0], sizes = [2, 512], strides = [1, 1]} : vector<18x512xf32> to vector<2x512xf32>
    %388 = arith.truncf %386 : vector<2x128xf32> to vector<2x128xbf16>
    %cst_130 = arith.constant dense<0.000000e+00> : vector<2x512xf32>
    %389 = tpu.matmul %388, %349, %cst_130 {dimension_numbers = #tpu.dot_dimension_numbers<[1], [0], [0], [1], [0, 0, 1, 1], [], []>} : vector<2x128xbf16>, vector<128x512xbf16>, vector<2x512xf32> -> vector<2x512xf32>
    %390 = arith.addf %387, %389 : vector<2x512xf32>
    %391 = vector.extract_strided_slice %390 {offsets = [0, 0], sizes = [2, 128], strides = [1, 1]} : vector<2x512xf32> to vector<2x128xf32>
    %cst_131 = arith.constant 0.000000e+00 : f32
    %392 = vector.broadcast %cst_131 : f32 to vector<2x128xf32>
    %393 = arith.subf %392, %391 : vector<2x128xf32>
    %394 = math.exp %393 : vector<2x128xf32>
    %cst_132 = arith.constant 1.000000e+00 : f32
    %395 = vector.broadcast %cst_132 : f32 to vector<2x128xf32>
    %396 = arith.addf %395, %394 : vector<2x128xf32>
    %cst_133 = arith.constant 1.000000e+00 : f32
    %397 = vector.broadcast %cst_133 : f32 to vector<2x128xf32>
    %398 = arith.divf %397, %396 : vector<2x128xf32>
    %399 = vector.extract_strided_slice %390 {offsets = [0, 128], sizes = [2, 128], strides = [1, 1]} : vector<2x512xf32> to vector<2x128xf32>
    %cst_134 = arith.constant 0.000000e+00 : f32
    %400 = vector.broadcast %cst_134 : f32 to vector<2x128xf32>
    %401 = arith.subf %400, %399 : vector<2x128xf32>
    %402 = math.exp %401 : vector<2x128xf32>
    %cst_135 = arith.constant 1.000000e+00 : f32
    %403 = vector.broadcast %cst_135 : f32 to vector<2x128xf32>
    %404 = arith.addf %403, %402 : vector<2x128xf32>
    %cst_136 = arith.constant 1.000000e+00 : f32
    %405 = vector.broadcast %cst_136 : f32 to vector<2x128xf32>
    %406 = arith.divf %405, %404 : vector<2x128xf32>
    %407 = vector.extract_strided_slice %390 {offsets = [0, 256], sizes = [2, 128], strides = [1, 1]} : vector<2x512xf32> to vector<2x128xf32>
    %408 = math.tanh %407 : vector<2x128xf32>
    %409 = vector.extract_strided_slice %390 {offsets = [0, 384], sizes = [2, 128], strides = [1, 1]} : vector<2x512xf32> to vector<2x128xf32>
    %cst_137 = arith.constant 0.000000e+00 : f32
    %410 = vector.broadcast %cst_137 : f32 to vector<2x128xf32>
    %411 = arith.subf %410, %409 : vector<2x128xf32>
    %412 = math.exp %411 : vector<2x128xf32>
    %cst_138 = arith.constant 1.000000e+00 : f32
    %413 = vector.broadcast %cst_138 : f32 to vector<2x128xf32>
    %414 = arith.addf %413, %412 : vector<2x128xf32>
    %cst_139 = arith.constant 1.000000e+00 : f32
    %415 = vector.broadcast %cst_139 : f32 to vector<2x128xf32>
    %416 = arith.divf %415, %414 : vector<2x128xf32>
    %417 = arith.mulf %406, %384 : vector<2x128xf32>
    %418 = arith.mulf %398, %408 : vector<2x128xf32>
    %419 = arith.addf %417, %418 : vector<2x128xf32>
    %420 = math.tanh %419 : vector<2x128xf32>
    %421 = arith.mulf %416, %420 : vector<2x128xf32>
    %422 = vector.extract_strided_slice %347 {offsets = [4, 0], sizes = [2, 512], strides = [1, 1]} : vector<18x512xf32> to vector<2x512xf32>
    %423 = arith.truncf %421 : vector<2x128xf32> to vector<2x128xbf16>
    %cst_140 = arith.constant dense<0.000000e+00> : vector<2x512xf32>
    %424 = tpu.matmul %423, %349, %cst_140 {dimension_numbers = #tpu.dot_dimension_numbers<[1], [0], [0], [1], [0, 0, 1, 1], [], []>} : vector<2x128xbf16>, vector<128x512xbf16>, vector<2x512xf32> -> vector<2x512xf32>
    %425 = arith.addf %422, %424 : vector<2x512xf32>
    %426 = vector.extract_strided_slice %425 {offsets = [0, 0], sizes = [2, 128], strides = [1, 1]} : vector<2x512xf32> to vector<2x128xf32>
    %cst_141 = arith.constant 0.000000e+00 : f32
    %427 = vector.broadcast %cst_141 : f32 to vector<2x128xf32>
    %428 = arith.subf %427, %426 : vector<2x128xf32>
    %429 = math.exp %428 : vector<2x128xf32>
    %cst_142 = arith.constant 1.000000e+00 : f32
    %430 = vector.broadcast %cst_142 : f32 to vector<2x128xf32>
    %431 = arith.addf %430, %429 : vector<2x128xf32>
    %cst_143 = arith.constant 1.000000e+00 : f32
    %432 = vector.broadcast %cst_143 : f32 to vector<2x128xf32>
    %433 = arith.divf %432, %431 : vector<2x128xf32>
    %434 = vector.extract_strided_slice %425 {offsets = [0, 128], sizes = [2, 128], strides = [1, 1]} : vector<2x512xf32> to vector<2x128xf32>
    %cst_144 = arith.constant 0.000000e+00 : f32
    %435 = vector.broadcast %cst_144 : f32 to vector<2x128xf32>
    %436 = arith.subf %435, %434 : vector<2x128xf32>
    %437 = math.exp %436 : vector<2x128xf32>
    %cst_145 = arith.constant 1.000000e+00 : f32
    %438 = vector.broadcast %cst_145 : f32 to vector<2x128xf32>
    %439 = arith.addf %438, %437 : vector<2x128xf32>
    %cst_146 = arith.constant 1.000000e+00 : f32
    %440 = vector.broadcast %cst_146 : f32 to vector<2x128xf32>
    %441 = arith.divf %440, %439 : vector<2x128xf32>
    %442 = vector.extract_strided_slice %425 {offsets = [0, 256], sizes = [2, 128], strides = [1, 1]} : vector<2x512xf32> to vector<2x128xf32>
    %443 = math.tanh %442 : vector<2x128xf32>
    %444 = vector.extract_strided_slice %425 {offsets = [0, 384], sizes = [2, 128], strides = [1, 1]} : vector<2x512xf32> to vector<2x128xf32>
    %cst_147 = arith.constant 0.000000e+00 : f32
    %445 = vector.broadcast %cst_147 : f32 to vector<2x128xf32>
    %446 = arith.subf %445, %444 : vector<2x128xf32>
    %447 = math.exp %446 : vector<2x128xf32>
    %cst_148 = arith.constant 1.000000e+00 : f32
    %448 = vector.broadcast %cst_148 : f32 to vector<2x128xf32>
    %449 = arith.addf %448, %447 : vector<2x128xf32>
    %cst_149 = arith.constant 1.000000e+00 : f32
    %450 = vector.broadcast %cst_149 : f32 to vector<2x128xf32>
    %451 = arith.divf %450, %449 : vector<2x128xf32>
    %452 = arith.mulf %441, %419 : vector<2x128xf32>
    %453 = arith.mulf %433, %443 : vector<2x128xf32>
    %454 = arith.addf %452, %453 : vector<2x128xf32>
    %455 = math.tanh %454 : vector<2x128xf32>
    %456 = arith.mulf %451, %455 : vector<2x128xf32>
    %457 = vector.extract_strided_slice %347 {offsets = [6, 0], sizes = [2, 512], strides = [1, 1]} : vector<18x512xf32> to vector<2x512xf32>
    %458 = arith.truncf %456 : vector<2x128xf32> to vector<2x128xbf16>
    %cst_150 = arith.constant dense<0.000000e+00> : vector<2x512xf32>
    %459 = tpu.matmul %458, %349, %cst_150 {dimension_numbers = #tpu.dot_dimension_numbers<[1], [0], [0], [1], [0, 0, 1, 1], [], []>} : vector<2x128xbf16>, vector<128x512xbf16>, vector<2x512xf32> -> vector<2x512xf32>
    %460 = arith.addf %457, %459 : vector<2x512xf32>
    %461 = vector.extract_strided_slice %460 {offsets = [0, 0], sizes = [2, 128], strides = [1, 1]} : vector<2x512xf32> to vector<2x128xf32>
    %cst_151 = arith.constant 0.000000e+00 : f32
    %462 = vector.broadcast %cst_151 : f32 to vector<2x128xf32>
    %463 = arith.subf %462, %461 : vector<2x128xf32>
    %464 = math.exp %463 : vector<2x128xf32>
    %cst_152 = arith.constant 1.000000e+00 : f32
    %465 = vector.broadcast %cst_152 : f32 to vector<2x128xf32>
    %466 = arith.addf %465, %464 : vector<2x128xf32>
    %cst_153 = arith.constant 1.000000e+00 : f32
    %467 = vector.broadcast %cst_153 : f32 to vector<2x128xf32>
    %468 = arith.divf %467, %466 : vector<2x128xf32>
    %469 = vector.extract_strided_slice %460 {offsets = [0, 128], sizes = [2, 128], strides = [1, 1]} : vector<2x512xf32> to vector<2x128xf32>
    %cst_154 = arith.constant 0.000000e+00 : f32
    %470 = vector.broadcast %cst_154 : f32 to vector<2x128xf32>
    %471 = arith.subf %470, %469 : vector<2x128xf32>
    %472 = math.exp %471 : vector<2x128xf32>
    %cst_155 = arith.constant 1.000000e+00 : f32
    %473 = vector.broadcast %cst_155 : f32 to vector<2x128xf32>
    %474 = arith.addf %473, %472 : vector<2x128xf32>
    %cst_156 = arith.constant 1.000000e+00 : f32
    %475 = vector.broadcast %cst_156 : f32 to vector<2x128xf32>
    %476 = arith.divf %475, %474 : vector<2x128xf32>
    %477 = vector.extract_strided_slice %460 {offsets = [0, 256], sizes = [2, 128], strides = [1, 1]} : vector<2x512xf32> to vector<2x128xf32>
    %478 = math.tanh %477 : vector<2x128xf32>
    %479 = vector.extract_strided_slice %460 {offsets = [0, 384], sizes = [2, 128], strides = [1, 1]} : vector<2x512xf32> to vector<2x128xf32>
    %cst_157 = arith.constant 0.000000e+00 : f32
    %480 = vector.broadcast %cst_157 : f32 to vector<2x128xf32>
    %481 = arith.subf %480, %479 : vector<2x128xf32>
    %482 = math.exp %481 : vector<2x128xf32>
    %cst_158 = arith.constant 1.000000e+00 : f32
    %483 = vector.broadcast %cst_158 : f32 to vector<2x128xf32>
    %484 = arith.addf %483, %482 : vector<2x128xf32>
    %cst_159 = arith.constant 1.000000e+00 : f32
    %485 = vector.broadcast %cst_159 : f32 to vector<2x128xf32>
    %486 = arith.divf %485, %484 : vector<2x128xf32>
    %487 = arith.mulf %476, %454 : vector<2x128xf32>
    %488 = arith.mulf %468, %478 : vector<2x128xf32>
    %489 = arith.addf %487, %488 : vector<2x128xf32>
    %490 = math.tanh %489 : vector<2x128xf32>
    %491 = arith.mulf %486, %490 : vector<2x128xf32>
    %492 = vector.extract_strided_slice %347 {offsets = [8, 0], sizes = [2, 512], strides = [1, 1]} : vector<18x512xf32> to vector<2x512xf32>
    %493 = arith.truncf %491 : vector<2x128xf32> to vector<2x128xbf16>
    %cst_160 = arith.constant dense<0.000000e+00> : vector<2x512xf32>
    %494 = tpu.matmul %493, %349, %cst_160 {dimension_numbers = #tpu.dot_dimension_numbers<[1], [0], [0], [1], [0, 0, 1, 1], [], []>} : vector<2x128xbf16>, vector<128x512xbf16>, vector<2x512xf32> -> vector<2x512xf32>
    %495 = arith.addf %492, %494 : vector<2x512xf32>
    %496 = vector.extract_strided_slice %495 {offsets = [0, 0], sizes = [2, 128], strides = [1, 1]} : vector<2x512xf32> to vector<2x128xf32>
    %cst_161 = arith.constant 0.000000e+00 : f32
    %497 = vector.broadcast %cst_161 : f32 to vector<2x128xf32>
    %498 = arith.subf %497, %496 : vector<2x128xf32>
    %499 = math.exp %498 : vector<2x128xf32>
    %cst_162 = arith.constant 1.000000e+00 : f32
    %500 = vector.broadcast %cst_162 : f32 to vector<2x128xf32>
    %501 = arith.addf %500, %499 : vector<2x128xf32>
    %cst_163 = arith.constant 1.000000e+00 : f32
    %502 = vector.broadcast %cst_163 : f32 to vector<2x128xf32>
    %503 = arith.divf %502, %501 : vector<2x128xf32>
    %504 = vector.extract_strided_slice %495 {offsets = [0, 128], sizes = [2, 128], strides = [1, 1]} : vector<2x512xf32> to vector<2x128xf32>
    %cst_164 = arith.constant 0.000000e+00 : f32
    %505 = vector.broadcast %cst_164 : f32 to vector<2x128xf32>
    %506 = arith.subf %505, %504 : vector<2x128xf32>
    %507 = math.exp %506 : vector<2x128xf32>
    %cst_165 = arith.constant 1.000000e+00 : f32
    %508 = vector.broadcast %cst_165 : f32 to vector<2x128xf32>
    %509 = arith.addf %508, %507 : vector<2x128xf32>
    %cst_166 = arith.constant 1.000000e+00 : f32
    %510 = vector.broadcast %cst_166 : f32 to vector<2x128xf32>
    %511 = arith.divf %510, %509 : vector<2x128xf32>
    %512 = vector.extract_strided_slice %495 {offsets = [0, 256], sizes = [2, 128], strides = [1, 1]} : vector<2x512xf32> to vector<2x128xf32>
    %513 = math.tanh %512 : vector<2x128xf32>
    %514 = vector.extract_strided_slice %495 {offsets = [0, 384], sizes = [2, 128], strides = [1, 1]} : vector<2x512xf32> to vector<2x128xf32>
    %cst_167 = arith.constant 0.000000e+00 : f32
    %515 = vector.broadcast %cst_167 : f32 to vector<2x128xf32>
    %516 = arith.subf %515, %514 : vector<2x128xf32>
    %517 = math.exp %516 : vector<2x128xf32>
    %cst_168 = arith.constant 1.000000e+00 : f32
    %518 = vector.broadcast %cst_168 : f32 to vector<2x128xf32>
    %519 = arith.addf %518, %517 : vector<2x128xf32>
    %cst_169 = arith.constant 1.000000e+00 : f32
    %520 = vector.broadcast %cst_169 : f32 to vector<2x128xf32>
    %521 = arith.divf %520, %519 : vector<2x128xf32>
    %522 = arith.mulf %511, %489 : vector<2x128xf32>
    %523 = arith.mulf %503, %513 : vector<2x128xf32>
    %524 = arith.addf %522, %523 : vector<2x128xf32>
    %525 = math.tanh %524 : vector<2x128xf32>
    %526 = arith.mulf %521, %525 : vector<2x128xf32>
    %527 = vector.extract_strided_slice %347 {offsets = [10, 0], sizes = [2, 512], strides = [1, 1]} : vector<18x512xf32> to vector<2x512xf32>
    %528 = arith.truncf %526 : vector<2x128xf32> to vector<2x128xbf16>
    %cst_170 = arith.constant dense<0.000000e+00> : vector<2x512xf32>
    %529 = tpu.matmul %528, %349, %cst_170 {dimension_numbers = #tpu.dot_dimension_numbers<[1], [0], [0], [1], [0, 0, 1, 1], [], []>} : vector<2x128xbf16>, vector<128x512xbf16>, vector<2x512xf32> -> vector<2x512xf32>
    %530 = arith.addf %527, %529 : vector<2x512xf32>
    %531 = vector.extract_strided_slice %530 {offsets = [0, 0], sizes = [2, 128], strides = [1, 1]} : vector<2x512xf32> to vector<2x128xf32>
    %cst_171 = arith.constant 0.000000e+00 : f32
    %532 = vector.broadcast %cst_171 : f32 to vector<2x128xf32>
    %533 = arith.subf %532, %531 : vector<2x128xf32>
    %534 = math.exp %533 : vector<2x128xf32>
    %cst_172 = arith.constant 1.000000e+00 : f32
    %535 = vector.broadcast %cst_172 : f32 to vector<2x128xf32>
    %536 = arith.addf %535, %534 : vector<2x128xf32>
    %cst_173 = arith.constant 1.000000e+00 : f32
    %537 = vector.broadcast %cst_173 : f32 to vector<2x128xf32>
    %538 = arith.divf %537, %536 : vector<2x128xf32>
    %539 = vector.extract_strided_slice %530 {offsets = [0, 128], sizes = [2, 128], strides = [1, 1]} : vector<2x512xf32> to vector<2x128xf32>
    %cst_174 = arith.constant 0.000000e+00 : f32
    %540 = vector.broadcast %cst_174 : f32 to vector<2x128xf32>
    %541 = arith.subf %540, %539 : vector<2x128xf32>
    %542 = math.exp %541 : vector<2x128xf32>
    %cst_175 = arith.constant 1.000000e+00 : f32
    %543 = vector.broadcast %cst_175 : f32 to vector<2x128xf32>
    %544 = arith.addf %543, %542 : vector<2x128xf32>
    %cst_176 = arith.constant 1.000000e+00 : f32
    %545 = vector.broadcast %cst_176 : f32 to vector<2x128xf32>
    %546 = arith.divf %545, %544 : vector<2x128xf32>
    %547 = vector.extract_strided_slice %530 {offsets = [0, 256], sizes = [2, 128], strides = [1, 1]} : vector<2x512xf32> to vector<2x128xf32>
    %548 = math.tanh %547 : vector<2x128xf32>
    %549 = vector.extract_strided_slice %530 {offsets = [0, 384], sizes = [2, 128], strides = [1, 1]} : vector<2x512xf32> to vector<2x128xf32>
    %cst_177 = arith.constant 0.000000e+00 : f32
    %550 = vector.broadcast %cst_177 : f32 to vector<2x128xf32>
    %551 = arith.subf %550, %549 : vector<2x128xf32>
    %552 = math.exp %551 : vector<2x128xf32>
    %cst_178 = arith.constant 1.000000e+00 : f32
    %553 = vector.broadcast %cst_178 : f32 to vector<2x128xf32>
    %554 = arith.addf %553, %552 : vector<2x128xf32>
    %cst_179 = arith.constant 1.000000e+00 : f32
    %555 = vector.broadcast %cst_179 : f32 to vector<2x128xf32>
    %556 = arith.divf %555, %554 : vector<2x128xf32>
    %557 = arith.mulf %546, %524 : vector<2x128xf32>
    %558 = arith.mulf %538, %548 : vector<2x128xf32>
    %559 = arith.addf %557, %558 : vector<2x128xf32>
    %560 = math.tanh %559 : vector<2x128xf32>
    %561 = arith.mulf %556, %560 : vector<2x128xf32>
    %562 = vector.extract_strided_slice %347 {offsets = [12, 0], sizes = [2, 512], strides = [1, 1]} : vector<18x512xf32> to vector<2x512xf32>
    %563 = arith.truncf %561 : vector<2x128xf32> to vector<2x128xbf16>
    %cst_180 = arith.constant dense<0.000000e+00> : vector<2x512xf32>
    %564 = tpu.matmul %563, %349, %cst_180 {dimension_numbers = #tpu.dot_dimension_numbers<[1], [0], [0], [1], [0, 0, 1, 1], [], []>} : vector<2x128xbf16>, vector<128x512xbf16>, vector<2x512xf32> -> vector<2x512xf32>
    %565 = arith.addf %562, %564 : vector<2x512xf32>
    %566 = vector.extract_strided_slice %565 {offsets = [0, 0], sizes = [2, 128], strides = [1, 1]} : vector<2x512xf32> to vector<2x128xf32>
    %cst_181 = arith.constant 0.000000e+00 : f32
    %567 = vector.broadcast %cst_181 : f32 to vector<2x128xf32>
    %568 = arith.subf %567, %566 : vector<2x128xf32>
    %569 = math.exp %568 : vector<2x128xf32>
    %cst_182 = arith.constant 1.000000e+00 : f32
    %570 = vector.broadcast %cst_182 : f32 to vector<2x128xf32>
    %571 = arith.addf %570, %569 : vector<2x128xf32>
    %cst_183 = arith.constant 1.000000e+00 : f32
    %572 = vector.broadcast %cst_183 : f32 to vector<2x128xf32>
    %573 = arith.divf %572, %571 : vector<2x128xf32>
    %574 = vector.extract_strided_slice %565 {offsets = [0, 128], sizes = [2, 128], strides = [1, 1]} : vector<2x512xf32> to vector<2x128xf32>
    %cst_184 = arith.constant 0.000000e+00 : f32
    %575 = vector.broadcast %cst_184 : f32 to vector<2x128xf32>
    %576 = arith.subf %575, %574 : vector<2x128xf32>
    %577 = math.exp %576 : vector<2x128xf32>
    %cst_185 = arith.constant 1.000000e+00 : f32
    %578 = vector.broadcast %cst_185 : f32 to vector<2x128xf32>
    %579 = arith.addf %578, %577 : vector<2x128xf32>
    %cst_186 = arith.constant 1.000000e+00 : f32
    %580 = vector.broadcast %cst_186 : f32 to vector<2x128xf32>
    %581 = arith.divf %580, %579 : vector<2x128xf32>
    %582 = vector.extract_strided_slice %565 {offsets = [0, 256], sizes = [2, 128], strides = [1, 1]} : vector<2x512xf32> to vector<2x128xf32>
    %583 = math.tanh %582 : vector<2x128xf32>
    %584 = vector.extract_strided_slice %565 {offsets = [0, 384], sizes = [2, 128], strides = [1, 1]} : vector<2x512xf32> to vector<2x128xf32>
    %cst_187 = arith.constant 0.000000e+00 : f32
    %585 = vector.broadcast %cst_187 : f32 to vector<2x128xf32>
    %586 = arith.subf %585, %584 : vector<2x128xf32>
    %587 = math.exp %586 : vector<2x128xf32>
    %cst_188 = arith.constant 1.000000e+00 : f32
    %588 = vector.broadcast %cst_188 : f32 to vector<2x128xf32>
    %589 = arith.addf %588, %587 : vector<2x128xf32>
    %cst_189 = arith.constant 1.000000e+00 : f32
    %590 = vector.broadcast %cst_189 : f32 to vector<2x128xf32>
    %591 = arith.divf %590, %589 : vector<2x128xf32>
    %592 = arith.mulf %581, %559 : vector<2x128xf32>
    %593 = arith.mulf %573, %583 : vector<2x128xf32>
    %594 = arith.addf %592, %593 : vector<2x128xf32>
    %595 = math.tanh %594 : vector<2x128xf32>
    %596 = arith.mulf %591, %595 : vector<2x128xf32>
    %597 = vector.extract_strided_slice %347 {offsets = [14, 0], sizes = [2, 512], strides = [1, 1]} : vector<18x512xf32> to vector<2x512xf32>
    %598 = arith.truncf %596 : vector<2x128xf32> to vector<2x128xbf16>
    %cst_190 = arith.constant dense<0.000000e+00> : vector<2x512xf32>
    %599 = tpu.matmul %598, %349, %cst_190 {dimension_numbers = #tpu.dot_dimension_numbers<[1], [0], [0], [1], [0, 0, 1, 1], [], []>} : vector<2x128xbf16>, vector<128x512xbf16>, vector<2x512xf32> -> vector<2x512xf32>
    %600 = arith.addf %597, %599 : vector<2x512xf32>
    %601 = vector.extract_strided_slice %600 {offsets = [0, 0], sizes = [2, 128], strides = [1, 1]} : vector<2x512xf32> to vector<2x128xf32>
    %cst_191 = arith.constant 0.000000e+00 : f32
    %602 = vector.broadcast %cst_191 : f32 to vector<2x128xf32>
    %603 = arith.subf %602, %601 : vector<2x128xf32>
    %604 = math.exp %603 : vector<2x128xf32>
    %cst_192 = arith.constant 1.000000e+00 : f32
    %605 = vector.broadcast %cst_192 : f32 to vector<2x128xf32>
    %606 = arith.addf %605, %604 : vector<2x128xf32>
    %cst_193 = arith.constant 1.000000e+00 : f32
    %607 = vector.broadcast %cst_193 : f32 to vector<2x128xf32>
    %608 = arith.divf %607, %606 : vector<2x128xf32>
    %609 = vector.extract_strided_slice %600 {offsets = [0, 128], sizes = [2, 128], strides = [1, 1]} : vector<2x512xf32> to vector<2x128xf32>
    %cst_194 = arith.constant 0.000000e+00 : f32
    %610 = vector.broadcast %cst_194 : f32 to vector<2x128xf32>
    %611 = arith.subf %610, %609 : vector<2x128xf32>
    %612 = math.exp %611 : vector<2x128xf32>
    %cst_195 = arith.constant 1.000000e+00 : f32
    %613 = vector.broadcast %cst_195 : f32 to vector<2x128xf32>
    %614 = arith.addf %613, %612 : vector<2x128xf32>
    %cst_196 = arith.constant 1.000000e+00 : f32
    %615 = vector.broadcast %cst_196 : f32 to vector<2x128xf32>
    %616 = arith.divf %615, %614 : vector<2x128xf32>
    %617 = vector.extract_strided_slice %600 {offsets = [0, 256], sizes = [2, 128], strides = [1, 1]} : vector<2x512xf32> to vector<2x128xf32>
    %618 = math.tanh %617 : vector<2x128xf32>
    %619 = vector.extract_strided_slice %600 {offsets = [0, 384], sizes = [2, 128], strides = [1, 1]} : vector<2x512xf32> to vector<2x128xf32>
    %cst_197 = arith.constant 0.000000e+00 : f32
    %620 = vector.broadcast %cst_197 : f32 to vector<2x128xf32>
    %621 = arith.subf %620, %619 : vector<2x128xf32>
    %622 = math.exp %621 : vector<2x128xf32>
    %cst_198 = arith.constant 1.000000e+00 : f32
    %623 = vector.broadcast %cst_198 : f32 to vector<2x128xf32>
    %624 = arith.addf %623, %622 : vector<2x128xf32>
    %cst_199 = arith.constant 1.000000e+00 : f32
    %625 = vector.broadcast %cst_199 : f32 to vector<2x128xf32>
    %626 = arith.divf %625, %624 : vector<2x128xf32>
    %627 = arith.mulf %616, %594 : vector<2x128xf32>
    %628 = arith.mulf %608, %618 : vector<2x128xf32>
    %629 = arith.addf %627, %628 : vector<2x128xf32>
    %630 = math.tanh %629 : vector<2x128xf32>
    %631 = arith.mulf %626, %630 : vector<2x128xf32>
    %632 = vector.extract_strided_slice %347 {offsets = [16, 0], sizes = [2, 512], strides = [1, 1]} : vector<18x512xf32> to vector<2x512xf32>
    %633 = arith.truncf %631 : vector<2x128xf32> to vector<2x128xbf16>
    %cst_200 = arith.constant dense<0.000000e+00> : vector<2x512xf32>
    %634 = tpu.matmul %633, %349, %cst_200 {dimension_numbers = #tpu.dot_dimension_numbers<[1], [0], [0], [1], [0, 0, 1, 1], [], []>} : vector<2x128xbf16>, vector<128x512xbf16>, vector<2x512xf32> -> vector<2x512xf32>
    %635 = arith.addf %632, %634 : vector<2x512xf32>
    %636 = vector.extract_strided_slice %635 {offsets = [0, 0], sizes = [2, 128], strides = [1, 1]} : vector<2x512xf32> to vector<2x128xf32>
    %cst_201 = arith.constant 0.000000e+00 : f32
    %637 = vector.broadcast %cst_201 : f32 to vector<2x128xf32>
    %638 = arith.subf %637, %636 : vector<2x128xf32>
    %639 = math.exp %638 : vector<2x128xf32>
    %cst_202 = arith.constant 1.000000e+00 : f32
    %640 = vector.broadcast %cst_202 : f32 to vector<2x128xf32>
    %641 = arith.addf %640, %639 : vector<2x128xf32>
    %cst_203 = arith.constant 1.000000e+00 : f32
    %642 = vector.broadcast %cst_203 : f32 to vector<2x128xf32>
    %643 = arith.divf %642, %641 : vector<2x128xf32>
    %644 = vector.extract_strided_slice %635 {offsets = [0, 128], sizes = [2, 128], strides = [1, 1]} : vector<2x512xf32> to vector<2x128xf32>
    %cst_204 = arith.constant 0.000000e+00 : f32
    %645 = vector.broadcast %cst_204 : f32 to vector<2x128xf32>
    %646 = arith.subf %645, %644 : vector<2x128xf32>
    %647 = math.exp %646 : vector<2x128xf32>
    %cst_205 = arith.constant 1.000000e+00 : f32
    %648 = vector.broadcast %cst_205 : f32 to vector<2x128xf32>
    %649 = arith.addf %648, %647 : vector<2x128xf32>
    %cst_206 = arith.constant 1.000000e+00 : f32
    %650 = vector.broadcast %cst_206 : f32 to vector<2x128xf32>
    %651 = arith.divf %650, %649 : vector<2x128xf32>
    %652 = vector.extract_strided_slice %635 {offsets = [0, 256], sizes = [2, 128], strides = [1, 1]} : vector<2x512xf32> to vector<2x128xf32>
    %653 = math.tanh %652 : vector<2x128xf32>
    %654 = vector.extract_strided_slice %635 {offsets = [0, 384], sizes = [2, 128], strides = [1, 1]} : vector<2x512xf32> to vector<2x128xf32>
    %cst_207 = arith.constant 0.000000e+00 : f32
    %655 = vector.broadcast %cst_207 : f32 to vector<2x128xf32>
    %656 = arith.subf %655, %654 : vector<2x128xf32>
    %657 = math.exp %656 : vector<2x128xf32>
    %cst_208 = arith.constant 1.000000e+00 : f32
    %658 = vector.broadcast %cst_208 : f32 to vector<2x128xf32>
    %659 = arith.addf %658, %657 : vector<2x128xf32>
    %cst_209 = arith.constant 1.000000e+00 : f32
    %660 = vector.broadcast %cst_209 : f32 to vector<2x128xf32>
    %661 = arith.divf %660, %659 : vector<2x128xf32>
    %662 = arith.mulf %651, %629 : vector<2x128xf32>
    %663 = arith.mulf %643, %653 : vector<2x128xf32>
    %664 = arith.addf %662, %663 : vector<2x128xf32>
    %665 = math.tanh %664 : vector<2x128xf32>
    %666 = arith.mulf %661, %665 : vector<2x128xf32>
    %667 = tpu.concatenate %386, %421, %456, %491, %526, %561, %596, %631, %666 in 0 : vector<2x128xf32>, vector<2x128xf32>, vector<2x128xf32>, vector<2x128xf32>, vector<2x128xf32>, vector<2x128xf32>, vector<2x128xf32>, vector<2x128xf32>, vector<2x128xf32> -> vector<18x128xf32>
    %668 = arith.truncf %667 : vector<18x128xf32> to vector<18x128xbf16>
    %c0_210 = arith.constant 0 : index
    %c0_211 = arith.constant 0 : index
    %669 = vector.load %arg6[%c0_210, %c0_211] : memref<128x256xbf16, #tpu.memory_space<vmem>>, vector<128x256xbf16>
    %cst_212 = arith.constant dense<0.000000e+00> : vector<18x256xf32>
    %670 = tpu.matmul %668, %669, %cst_212 {dimension_numbers = #tpu.dot_dimension_numbers<[1], [0], [0], [1], [0, 0, 1, 1], [], []>} : vector<18x128xbf16>, vector<128x256xbf16>, vector<18x256xf32> -> vector<18x256xf32>
    %c0_213 = arith.constant 0 : index
    %c0_214 = arith.constant 0 : index
    %671 = vector.load %arg7[%c0_213, %c0_214] : memref<1x256xf32, #tpu.memory_space<vmem>>, vector<1x256xf32>
    %672 = vector.broadcast %671 : vector<1x256xf32> to vector<18x256xf32>
    %673 = arith.addf %670, %672 : vector<18x256xf32>
    %674 = vector.shape_cast %673 : vector<18x256xf32> to vector<9x2x256xf32>
    %c0_215 = arith.constant 0 : index
    %c0_216 = arith.constant 0 : index
    %c0_217 = arith.constant 0 : index
    %675 = vector.load %arg8[%c0_215, %c0_216, %c0_217] : memref<9x2x256xf32, #tpu.memory_space<vmem>>, vector<9x2x256xf32>
    tpu.vector_store %arg8[%c0_215, %c0_216, %c0_217], %674 {strides = array<i32>} : memref<9x2x256xf32, #tpu.memory_space<vmem>>, vector<9x2x256xf32>,
    return
  }
}

</mosaic_0001>

<bundles_post_ra>
// kernel: caption_rl_forward.3
= control target key start
LH: loop header
LB: loop body
LE: loop exit
PB: predicated region body
PF: predicated region fallthrough
CT: control target
= control target key end

     0   :  { %v6612_v1 = vmov 0   ;;  %s6602_s0 = inlined_call_operand.vmem [shape: s32[16,1], index: 0, kind: input, shape index: {}]   ;;  %s6603_s1 = inlined_call_operand.vmem [shape: f32[2,128], index: 1, kind: input, shape index: {}]   ;;  %s6604_s2 = inlined_call_operand.vmem [shape: bf16[256,128], index: 2, kind: input, shape index: {}]   ;;  %s6605_s3 = inlined_call_operand.vmem [shape: bf16[2,128,512], index: 3, kind: input, shape index: {}]   ;;  %s6606_s4 = inlined_call_operand.vmem [shape: bf16[2,128,512], index: 4, kind: input, shape index: {}]   ;;  %s6607_s5 = inlined_call_operand.vmem [shape: f32[2,1,512], index: 5, kind: input, shape index: {}]   ;;  %s6608_s6 = inlined_call_operand.vmem [shape: bf16[128,256], index: 6, kind: input, shape index: {}]   ;;  %s6609_s7 = inlined_call_operand.vmem [shape: f32[1,256], index: 7, kind: input, shape index: {}]   ;;  %s6610_s8 = inlined_call_operand.hbm [shape: f32[9,2,256], index: 8, kind: output, shape index: {}]  }
   0x1   :  { %v31_v0 = vld [vmem:[%s6602_s0] sm:$0xff]  ;;  %4024 = vset.pattern.permute.xlu0 %v6612_v1  ;;  %v32_v2 = vld [vmem:[%s6602_s0 + $0x8] sm:$0xff]  ;;  %480 = vmatprep.mubr.bf16.mxu1 %v6612_v1  ;;  %v4029_v7 = vld [vmem:[%s6604_s2 + $0x50] sm:$0xff]  }
   0x2   :  { %v4025_v3 = vld [vmem:[%s6604_s2 + $0x40] sm:$0xff]   ;;  %37 = vperm.xlu0 %4024, %v31_v0   ;;  %v4027_v5 = vld [vmem:[%s6604_s2 + $0x48] sm:$0xff]   ;;  %v4030_v8 = vld [vmem:[%s6604_s2 + $0x10] sm:$0xff]  }
   0x3   :  { %v4026_v4 = vld [vmem:[%s6604_s2] sm:$0xff]   ;;  %3972 = vmatprep.subr.bf16.mxu0 %v4025_v3  ;;  %v4028_v6 = vld [vmem:[%s6604_s2 + $0x8] sm:$0xff]   ;;  %v4031_v9 = vld [vmem:[%s6604_s2 + $0x58] sm:$0xff]  }
   0x4   :  { %3973 = vmatpush3.bf16.msra.mxu0 %v4026_v4  ;;  %v4032_v10 = vld [vmem:[%s6604_s2 + $0x18] sm:$0xff]   ;;  %v4033_v11 = vld [vmem:[%s6604_s2 + $0x60] sm:$0xff]   ;;  %v4035_v13 = vld [vmem:[%s6604_s2 + $0x68] sm:$0xff]  }
   0x5   :  { %3974 = vmatprep.subr.bf16.mxu0 %v4027_v5  ;;  %v4034_v12 = vld [vmem:[%s6604_s2 + $0x20] sm:$0xff]   ;;  %v4036_v15 = vld [vmem:[%s6604_s2 + $0x28] sm:$0xff]   ;;  %v4037_v18 = vld [vmem:[%s6604_s2 + $0x70] sm:$0xff]  }
   0x6   :  { %40 = vperm.xlu0 %4024, %v32_v2   ;;  %v4041_v14 = vld [vmem:[%s6605_s3 + $0x4] ss:$16 sps:$4 sm:$0xff]   ;;  %v4046_v16 = vld [vmem:[%s6605_s3] ss:$16 sps:$4 sm:$0xff]   ;;  %v4039_v22 = vld [vmem:[%s6604_s2 + $0x78] sm:$0xff]  }
   0x7   :  { %448 = vmatprep.subr.bf16.mxu1 %v4041_v14  ;;  %v4047_v17 = vld [vmem:[%s6605_s3 + $0x24] ss:$16 sps:$4 sm:$0xff]   ;;  %v4052_v19 = vld [vmem:[%s6605_s3 + $0x20] ss:$16 sps:$4 sm:$0xff]   ;;  %v4040_v25 = vld [vmem:[%s6604_s2 + $0x38] sm:$0xff]  }
   0x8   :  { %3975 = vmatpush3.bf16.msra.mxu0 %v4028_v6  ;;  %449 = vmatpush1.bf16.msra.mxu1 %v4046_v16  ;;  %v4053_v20 = vld [vmem:[%s6605_s3 + $0x44] ss:$16 sps:$4 sm:$0xff]   ;;  %v4058_v23 = vld [vmem:[%s6605_s3 + $0x40] ss:$16 sps:$4 sm:$0xff]   ;;  %v4045_v26 = vld [vmem:[%s6605_s3 + $0xc] ss:$16 sps:$4 sm:$0xff]  }
   0x9   :  { %3976 = vmatprep.subr.bf16.mxu0 %v4029_v7  ;;  %450 = vmatprep.subr.bf16.mxu1 %v4047_v17  ;;  %v4038_v21 = vld [vmem:[%s6604_s2 + $0x30] sm:$0xff]  }
   0xa   :  { %v4059_v24 = vld [vmem:[%s6605_s3 + $0x64] ss:$16 sps:$4 sm:$0xff]   ;;  %v4064_v27 = vld [vmem:[%s6605_s3 + $0x60] ss:$16 sps:$4 sm:$0xff]  }
   0xb   :  { %v4065_v28 = vld [vmem:[%s6605_s3 + $0x84] ss:$16 sps:$4 sm:$0xff]   ;;  %v4070_v29 = vld [vmem:[%s6605_s3 + $0x80] ss:$16 sps:$4 sm:$0xff]  }
   0xc   :  { %3977 = vmatpush3.bf16.msra.mxu0 %v4030_v8  ;;  %451 = vmatpush1.bf16.msra.mxu1 %v4052_v19  ;;  %v4071_v30 = vld [vmem:[%s6605_s3 + $0xa4] ss:$16 sps:$4 sm:$0xff]   ;;  %v4076_v31 = vld [vmem:[%s6605_s3 + $0xa0] ss:$16 sps:$4 sm:$0xff]  }
   0xd   :  { %3978 = vmatprep.subr.bf16.mxu0 %v4031_v9  ;;  %452 = vmatprep.subr.bf16.mxu1 %v4053_v20 }
  0x10   :  { %3979 = vmatpush3.bf16.msra.mxu0 %v4032_v10  ;;  %453 = vmatpush1.bf16.msra.mxu1 %v4058_v23 }
  0x11   :  { %3980 = vmatprep.subr.bf16.mxu0 %v4033_v11  ;;  %454 = vmatprep.subr.bf16.mxu1 %v4059_v24 }
  0x14   :  { %3981 = vmatpush3.bf16.msra.mxu0 %v4034_v12  ;;  %455 = vmatpush1.bf16.msra.mxu1 %v4064_v27 }
  0x15   :  { %3982 = vmatprep.subr.bf16.mxu0 %v4035_v13  ;;  %456 = vmatprep.subr.bf16.mxu1 %v4065_v28 }
  0x18   :  { %3983 = vmatpush3.bf16.msra.mxu0 %v4036_v15  ;;  %457 = vmatpush1.bf16.msra.mxu1 %v4070_v29 }
  0x19   :  { %3984 = vmatprep.subr.bf16.mxu0 %v4037_v18  ;;  %458 = vmatprep.subr.bf16.mxu1 %v4071_v30 }
  0x1c   :  { %3985 = vmatpush3.bf16.msra.mxu0 %v4038_v21  ;;  %459 = vmatpush1.bf16.msra.mxu1 %v4076_v31 }
  0x1d   :  { %3986 = vmatprep.subr.bf16.mxu0 %v4039_v22 }
  0x20   :  { %3987 = vmatpush3.bf16.msra.mxu0 %v4040_v25 }
  0x21   :  { %499 = vmatprep.subr.bf16.mxu0 %v4045_v26 }
  0x22   :  { %13 = vsyncpa [#allocation3], 0  ;;  %v33_v32 = vlaneseq  ;;  %v4043_v37 = vld [vmem:[%s6605_s3 + $0x8] ss:$16 sps:$4 sm:$0xff]   ;;  %v4051_v38 = vld [vmem:[%s6605_s3 + $0x2c] ss:$16 sps:$4 sm:$0xff]  }
  0x23   :  { %v4634_v39 = vmov 1.0|1.0   ;;  %v4049_v40 = vld [vmem:[%s6605_s3 + $0x28] ss:$16 sps:$4 sm:$0xff]   ;;  %v4057_v41 = vld [vmem:[%s6605_s3 + $0x4c] ss:$16 sps:$4 sm:$0xff]  }
  0x24   :  { %v34_v33 = vand.u32 127, %v33_v32  ;;  %v4055_v42 = vld [vmem:[%s6605_s3 + $0x48] ss:$16 sps:$4 sm:$0xff]   ;;  %v4063_v43 = vld [vmem:[%s6605_s3 + $0x6c] ss:$16 sps:$4 sm:$0xff]   ;;  %vm224_vm6 = vcmask 1041408  }
  0x25   :  { %v4061_v44 = vld [vmem:[%s6605_s3 + $0x68] ss:$16 sps:$4 sm:$0xff]   ;;  %v4069_v45 = vld [vmem:[%s6605_s3 + $0x8c] ss:$16 sps:$4 sm:$0xff]   ;;  %v4077_v49 = vld [vmem:[%s6605_s3 + $0xc4] ss:$16 sps:$4 sm:$0xff]  }
  0x26   :  { %v35_v35 = vadd.s32 128, %v34_v33  ;;  %v4067_v46 = vld [vmem:[%s6605_s3 + $0x88] ss:$16 sps:$4 sm:$0xff]   ;;  %v4075_v47 = vld [vmem:[%s6605_s3 + $0xac] ss:$16 sps:$4 sm:$0xff]   ;;  %460 = vmatprep.subr.bf16.mxu1 %v4077_v49  ;;  %vm1855_vm7 = vcmask 1043456  }
  0x27   :  { %v4073_v48 = vld [vmem:[%s6605_s3 + $0xa8] ss:$16 sps:$4 sm:$0xff]   ;;  %v4081_v50 = vld [vmem:[%s6605_s3 + $0xcc] ss:$16 sps:$4 sm:$0xff]   ;;  %v4082_v52 = vld [vmem:[%s6605_s3 + $0xc0] ss:$16 sps:$4 sm:$0xff]  }
  0x28   :  { %v4079_v51 = vld [vmem:[%s6605_s3 + $0xc8] ss:$16 sps:$4 sm:$0xff]   ;;  %461 = vmatpush1.bf16.msra.mxu1 %v4082_v52  ;;  %v4083_v53 = vld [vmem:[%s6605_s3 + $0xe4] ss:$16 sps:$4 sm:$0xff]   ;;  %v4087_v54 = vld [vmem:[%s6605_s3 + $0xec] ss:$16 sps:$4 sm:$0xff]  }
  0x29   :  { %v4085_v55 = vld [vmem:[%s6605_s3 + $0xe8] ss:$16 sps:$4 sm:$0xff]   ;;  %v4088_v56 = vld [vmem:[%s6605_s3 + $0xe0] ss:$16 sps:$4 sm:$0xff]   ;;  %462 = vmatprep.subr.bf16.mxu1 %v4083_v53  ;;  %v4841_v57 = vld [vmem:[%s6606_s4 + $0x4] ss:$16 sps:$4 sm:$0xff]  }
  0x2a   :  { %v4846_v58 = vld [vmem:[%s6606_s4 + $0xc] ss:$16 sps:$4 sm:$0xff]   ;;  %v221_v3 = vld [vmem:[%s6603_s1] sm:$0x3]  ;;  %v4863_v8 = vld [vmem:[%s6606_s4 + $0x8] ss:$16 sps:$4 sm:$0xff]  }
  0x2b   :  { %v4858_v7 = vld [vmem:[%s6606_s4] ss:$16 sps:$4 sm:$0xff]   ;;  %v4868_v10 = vld [vmem:[%s6606_s4 + $0x24] ss:$16 sps:$4 sm:$0xff]   ;;  %v4873_v11 = vld [vmem:[%s6606_s4 + $0x2c] ss:$16 sps:$4 sm:$0xff]  }
  0x2c   :  { %463 = vmatpush1.bf16.msra.mxu1 %v4088_v56  ;;  %v4880_v12 = vld [vmem:[%s6606_s4 + $0x20] ss:$16 sps:$4 sm:$0xff]   ;;  %v4885_v13 = vld [vmem:[%s6606_s4 + $0x28] ss:$16 sps:$4 sm:$0xff]   ;;  %v4892_v14 = vld [vmem:[%s6606_s4 + $0x44] ss:$16 sps:$4 sm:$0xff]  }
  0x2d   :  { %742 = vmatprep.subr.bf16.mxu1 %v4841_v57  ;;  %v4897_v15 = vld [vmem:[%s6606_s4 + $0x4c] ss:$16 sps:$4 sm:$0xff]   ;;  %v4906_v16 = vld [vmem:[%s6606_s4 + $0x40] ss:$16 sps:$4 sm:$0xff]   ;;  %v4911_v17 = vld [vmem:[%s6606_s4 + $0x48] ss:$16 sps:$4 sm:$0xff]  }
  0x2e   :  { %v4918_v19 = vld [vmem:[%s6606_s4 + $0x64] ss:$16 sps:$4 sm:$0xff]   ;;  %v4923_v20 = vld [vmem:[%s6606_s4 + $0x6c] ss:$16 sps:$4 sm:$0xff]   ;;  %v4930_v21 = vld [vmem:[%s6606_s4 + $0x60] ss:$16 sps:$4 sm:$0xff]  }
  0x2f   :  { %v4935_v22 = vld [vmem:[%s6606_s4 + $0x68] ss:$16 sps:$4 sm:$0xff]   ;;  %v4942_v23 = vld [vmem:[%s6606_s4 + $0x84] ss:$16 sps:$4 sm:$0xff]   ;;  %v4947_v24 = vld [vmem:[%s6606_s4 + $0x8c] ss:$16 sps:$4 sm:$0xff]  }
  0x30   :  { %v4956_v25 = vld [vmem:[%s6606_s4 + $0x80] ss:$16 sps:$4 sm:$0xff]   ;;  %v4961_v26 = vld [vmem:[%s6606_s4 + $0x88] ss:$16 sps:$4 sm:$0xff]   ;;  %v4968_v27 = vld [vmem:[%s6606_s4 + $0xa4] ss:$16 sps:$4 sm:$0xff]  }
  0x31   :  { %v4973_v28 = vld [vmem:[%s6606_s4 + $0xac] ss:$16 sps:$4 sm:$0xff]   ;;  %v4980_v29 = vld [vmem:[%s6606_s4 + $0xa0] ss:$16 sps:$4 sm:$0xff]   ;;  %v4985_v30 = vld [vmem:[%s6606_s4 + $0xa8] ss:$16 sps:$4 sm:$0xff]  }
  0x32   :  { %v4992_v31 = vld [vmem:[%s6606_s4 + $0xc4] ss:$16 sps:$4 sm:$0xff]   ;;  %vm1857_vm8 = vcmask 1045504  }
  0x81   :  { %v38_v34 = vpop.permute.xlu0 %37 }
  0x82   :  { %vm42_vm0 = vcmp.eq.s32.totalorder %v38_v34, %v34_v33  ;;  %vm43_vm4 = vcmp.eq.s32.totalorder %v38_v34, %v35_v35  ;;  %v5004_v34 = vld [vmem:[%s6606_s4 + $0xc0] ss:$16 sps:$4 sm:$0xff]  }
  0x85   :  { %v41_v36 = vpop.permute.xlu0 %40 }
  0x86   :  { %vm44_vm1 = vcmp.eq.s32.totalorder %v41_v36, %v34_v33  ;;  %vm45_vm2 = vcmp.eq.s32.totalorder %v41_v36, %v35_v35  ;;  %v4997_v33 = vld [vmem:[%s6606_s4 + $0xcc] ss:$16 sps:$4 sm:$0xff]   ;;  %v5009_v35 = vld [vmem:[%s6606_s4 + $0xc8] ss:$16 sps:$4 sm:$0xff]   ;;  %v5016_v36 = vld [vmem:[%s6606_s4 + $0xe4] ss:$16 sps:$4 sm:$0xff]  }
  0x87   :  { %vm3756_vm3 = vmpackc.low %vm44_vm1, %vm42_vm0 }
  0x88   :  { %vm3754_vm5 = vmpackc.low %vm45_vm2, %vm43_vm4 }
  0x89   :  { %3755 = vmatprep.mubr.msk.bf16.mxu0 %vm3754_vm5, %v4634_v39 }
  0x8a   :  { %3757 = vmatmul.mubr.msk.bf16.vlgmr.msra.gmra.mrb[0].mxu0 %vm3756_vm3, %v4634_v39  ;;  %v5033_v39 = vld [vmem:[%s6606_s4 + $0xe8] ss:$16 sps:$4 sm:$0xff]  }
  0x8b   :  { %500 = vmatpush1.bf16.msra.mxu0 %v4043_v37  ;;  %531 = vmatprep.mubr.bf16.mxu0 %v6612_v1  ;;  %v5021_v37 = vld [vmem:[%s6606_s4 + $0xec] ss:$16 sps:$4 sm:$0xff]  }
  0x8c   :  { %501 = vmatprep.subr.bf16.mxu0 %v4051_v38  ;;  %v5028_v38 = vld [vmem:[%s6606_s4 + $0xe0] ss:$16 sps:$4 sm:$0xff]  }
  0x8f   :  { %502 = vmatpush1.bf16.msra.mxu0 %v4049_v40 }
  0x90   :  { %503 = vmatprep.subr.bf16.mxu0 %v4057_v41 }
  0x93   :  { %504 = vmatpush1.bf16.msra.mxu0 %v4055_v42 }
  0x94   :  { %505 = vmatprep.subr.bf16.mxu0 %v4063_v43 }
  0x97   :  { %506 = vmatpush1.bf16.msra.mxu0 %v4061_v44 }
  0x98   :  { %507 = vmatprep.subr.bf16.mxu0 %v4069_v45 }
  0x9b   :  { %508 = vmatpush1.bf16.msra.mxu0 %v4067_v46 }
  0x9c   :  { %509 = vmatprep.subr.bf16.mxu0 %v4075_v47 }
  0x9f   :  { %510 = vmatpush1.bf16.msra.mxu0 %v4073_v48  ;;  %v5086_v48 = vshrl.u32 %v33_v32, 7 }
  0xa0   :  { %511 = vmatprep.subr.bf16.mxu0 %v4081_v50  ;;  %v266_v50 = vld [vmem:[%s6607_s5] sm:$0xf] }
  0xa1   :  { %6628 = vst [vmem:[#allocation7_spill] sm:$0xff] %v5086_v48  ;;  %v5089_v49 = vsub.s32 0, %v5086_v48 }
  0xa3   :  { %512 = vmatpush1.bf16.msra.mxu0 %v4079_v51  ;;  %6629 = vst [vmem:[#allocation8_spill] sm:$0xff] %v5089_v49  ;;  %v5095_v51 = vsub.s32 1, %v5086_v48  ;;  %v5098_v52 = vrot.slane %v266_v50, %v5089_v49 }
  0xa4   :  { %513 = vmatprep.subr.bf16.mxu0 %v4087_v54  ;;  %v6611_v54 = vsub.s32 3, %v5086_v48 }
  0xa5   :  { %6630 = vst [vmem:[#allocation9_spill] sm:$0xff] %v5095_v51  ;;  %v5101_v53 = vrot.slane %v266_v50, %v5095_v51 }
  0xa6   :  { %v5112_v56 = vrot.slane %v266_v50, %v6611_v54 }
  0xa7   :  { %514 = vmatpush1.bf16.msra.mxu0 %v4085_v55 }
  0xa8   :  { %783 = vmatprep.subr.bf16.mxu0 %v4846_v58 }
 0x15d   :  { %v3988_v59 = vpop.f32.mrb[0].mxu0 }
 0x15e   :  { %v3989_v60 = vpop.f32.mrb[1].mxu0 }
 0x15f   :  { %v3990_v61 = vadd.f32 %v3989_v60, %v3988_v59  ;;  %v3991_v62 = vpop.f32.mrb[2].mxu0 }
 0x160   :  { %v3992_v63 = vpop.f32.mrb[3].mxu0 }
 0x161   :  { %v225_v0 = vrot.slane %v3990_v61, 6  ;;  %v3993_v2 = vadd.f32 %v3992_v63, %v3991_v62 }
 0x163   :  { %v226_v4 = vrot.slane %v3993_v2, 6  ;;  %v231_v6 = vsel %vm224_vm6, %v221_v3, %v225_v0 }
 0x165   :  { %v227_v5 = vsel %vm224_vm6, %v225_v0, %v226_v4  ;;  %v233_v18 = vpack.c.bf16 %v226_v4, %v226_v4 }
 0x166   :  { %v232_v9 = vpack.c.bf16 %v227_v5, %v231_v6 }
 0x168   :  { %481 = vmatmul.mubr.bf16.vlgmr.msra.gmra.mrb[0].mxu1 %v232_v9  ;;  %532 = vmatmul.mubr.bf16.vlgmr.msra.gmra.mrb[4].mxu0 %v232_v9 }
 0x169   :  { %743 = vmatpush1.bf16.msra.mxu1 %v4858_v7  ;;  %784 = vmatpush1.bf16.msra.mxu0 %v4863_v8 }
 0x16a   :  { %744 = vmatprep.subr.bf16.mxu1 %v4868_v10  ;;  %785 = vmatprep.subr.bf16.mxu0 %v4873_v11 }
 0x16b   :  { %490 = vmatprep.mubr.bf16.mxu1 %v6612_v1  ;;  %541 = vmatprep.mubr.bf16.mxu0 %v6612_v1 }
 0x16d   :  { %745 = vmatpush1.bf16.msra.mxu1 %v4880_v12  ;;  %786 = vmatpush1.bf16.msra.mxu0 %v4885_v13 }
 0x16e   :  { %746 = vmatprep.subr.bf16.mxu1 %v4892_v14  ;;  %787 = vmatprep.subr.bf16.mxu0 %v4897_v15 }
 0x170   :  { %491 = vmatmul.mubr.bf16.gmra.mrb[4].mxu1 %v233_v18  ;;  %542 = vmatmul.mubr.bf16.gmra.mrb[8].mxu0 %v233_v18 }
 0x171   :  { %747 = vmatpush1.bf16.msra.mxu1 %v4906_v16  ;;  %788 = vmatpush1.bf16.msra.mxu0 %v4911_v17 }
 0x172   :  { %748 = vmatprep.subr.bf16.mxu1 %v4918_v19  ;;  %789 = vmatprep.subr.bf16.mxu0 %v4923_v20 }
 0x173   :  { %774 = vmatprep.mubr.bf16.mxu1 %v6612_v1  ;;  %815 = vmatprep.mubr.bf16.mxu0 %v6612_v1 }
 0x175   :  { %749 = vmatpush1.bf16.msra.mxu1 %v4930_v21  ;;  %790 = vmatpush1.bf16.msra.mxu0 %v4935_v22 }
 0x176   :  { %750 = vmatprep.subr.bf16.mxu1 %v4942_v23  ;;  %791 = vmatprep.subr.bf16.mxu0 %v4947_v24 }
 0x179   :  { %751 = vmatpush1.bf16.msra.mxu1 %v4956_v25  ;;  %792 = vmatpush1.bf16.msra.mxu0 %v4961_v26 }
 0x17a   :  { %752 = vmatprep.subr.bf16.mxu1 %v4968_v27  ;;  %793 = vmatprep.subr.bf16.mxu0 %v4973_v28 }
 0x17d   :  { %753 = vmatpush1.bf16.msra.mxu1 %v4980_v29  ;;  %794 = vmatpush1.bf16.msra.mxu0 %v4985_v30 }
 0x17e   :  { %754 = vmatprep.subr.bf16.mxu1 %v4992_v31  ;;  %795 = vmatprep.subr.bf16.mxu0 %v4997_v33 }
 0x181   :  { %755 = vmatpush1.bf16.msra.mxu1 %v5004_v34  ;;  %796 = vmatpush1.bf16.msra.mxu0 %v5009_v35 }
 0x182   :  { %756 = vmatprep.subr.bf16.mxu1 %v5016_v36  ;;  %797 = vmatprep.subr.bf16.mxu0 %v5021_v37 }
 0x185   :  { %757 = vmatpush1.bf16.msra.mxu1 %v5028_v38  ;;  %798 = vmatpush1.bf16.msra.mxu0 %v5033_v39 }
 0x186   :  { %853 = vmatprep.subr.bf16.mxu1 %v4841_v57  ;;  %894 = vmatprep.subr.bf16.mxu0 %v4846_v58 }
 0x188   :  { %775 = vmatmul.mubr.bf16.vlgmr.msra.gmra.mrb[8].mxu1 %v6612_v1  ;;  %816 = vmatmul.mubr.bf16.vlgmr.msra.gmra.mrb[12].mxu0 %v6612_v1 }
 0x189   :  { %854 = vmatpush1.bf16.msra.mxu1 %v4858_v7  ;;  %895 = vmatpush1.bf16.msra.mxu0 %v4863_v8 }
 0x18a   :  { %855 = vmatprep.subr.bf16.mxu1 %v4868_v10  ;;  %896 = vmatprep.subr.bf16.mxu0 %v4873_v11 }
 0x18b   :  { %885 = vmatprep.mubr.bf16.mxu1 %v6612_v1  ;;  %926 = vmatprep.mubr.bf16.mxu0 %v6612_v1 }
 0x18d   :  { %856 = vmatpush1.bf16.msra.mxu1 %v4880_v12  ;;  %897 = vmatpush1.bf16.msra.mxu0 %v4885_v13 }
 0x18e   :  { %857 = vmatprep.subr.bf16.mxu1 %v4892_v14  ;;  %898 = vmatprep.subr.bf16.mxu0 %v4897_v15 }
 0x191   :  { %858 = vmatpush1.bf16.msra.mxu1 %v4906_v16  ;;  %899 = vmatpush1.bf16.msra.mxu0 %v4911_v17 }
 0x192   :  { %859 = vmatprep.subr.bf16.mxu1 %v4918_v19  ;;  %900 = vmatprep.subr.bf16.mxu0 %v4923_v20 }
 0x195   :  { %860 = vmatpush1.bf16.msra.mxu1 %v4930_v21  ;;  %901 = vmatpush1.bf16.msra.mxu0 %v4935_v22 }
 0x196   :  { %861 = vmatprep.subr.bf16.mxu1 %v4942_v23  ;;  %902 = vmatprep.subr.bf16.mxu0 %v4947_v24 }
 0x199   :  { %862 = vmatpush1.bf16.msra.mxu1 %v4956_v25  ;;  %903 = vmatpush1.bf16.msra.mxu0 %v4961_v26 }
 0x19a   :  { %863 = vmatprep.subr.bf16.mxu1 %v4968_v27  ;;  %904 = vmatprep.subr.bf16.mxu0 %v4973_v28 }
 0x19d   :  { %864 = vmatpush1.bf16.msra.mxu1 %v4980_v29  ;;  %905 = vmatpush1.bf16.msra.mxu0 %v4985_v30 }
 0x19e   :  { %865 = vmatprep.subr.bf16.mxu1 %v4992_v31  ;;  %906 = vmatprep.subr.bf16.mxu0 %v4997_v33 }
 0x1a1   :  { %866 = vmatpush1.bf16.msra.mxu1 %v5004_v34  ;;  %907 = vmatpush1.bf16.msra.mxu0 %v5009_v35 }
 0x1a2   :  { %867 = vmatprep.subr.bf16.mxu1 %v5016_v36  ;;  %908 = vmatprep.subr.bf16.mxu0 %v5021_v37 }
 0x1a5   :  { %868 = vmatpush1.bf16.msra.mxu1 %v5028_v38  ;;  %909 = vmatpush1.bf16.msra.mxu0 %v5033_v39 }
 0x1a6   :  { %982 = vmatprep.subr.bf16.mxu1 %v4841_v57  ;;  %1023 = vmatprep.subr.bf16.mxu0 %v4846_v58 }
 0x23b   :  { %v482_v40 = vpop.f32.mrb[0].mxu1  ;;  %v533_v41 = vpop.f32.mrb[4].mxu0 }
 0x23c   :  { %v484_v42 = vpop.f32.mrb[1].mxu1  ;;  %v535_v43 = vpop.f32.mrb[5].mxu0  ;;  %v5105_v32 = vadd.f32 %v482_v40, %v5098_v52  ;;  %v6614_v40 = vsub.s32 2, %v5086_v48 }
 0x23d   :  { %v5077_v44 = vpop.f32.mrb[2].mxu1  ;;  %v5079_v45 = vpop.f32.mrb[6].mxu0  ;;  %v5108_v55 = vadd.f32 %v484_v42, %v5101_v53  ;;  %v5117_v9 = vadd.f32 %v535_v43, %v5112_v56 }
 0x23e   :  { %6626 = vst [vmem:[#allocation5_spill] sm:$0xff] %v5079_v45  ;;  %v5081_v46 = vpop.f32.mrb[3].mxu1  ;;  %v5083_v47 = vpop.f32.mrb[7].mxu0 }
 0x23f   :  { %6627 = vst [vmem:[#allocation6_spill] sm:$0xff] %v5083_v47 }
 0x25b   :  { %v776_v59 = vpop.f32.mrb[8].mxu1  ;;  %v817_v60 = vpop.f32.mrb[12].mxu0 }
 0x25c   :  { %v824_v61 = vadd.f32 %v776_v59, %v5105_v32  ;;  %v778_v62 = vpop.f32.mrb[9].mxu1  ;;  %v819_v63 = vpop.f32.mrb[13].mxu0  ;;  %v5123_v59 = vrot.slane %v266_v50, %v6614_v40 }
 0x25d   :  { %v825_v0 = vadd.f32 %v778_v62, %v5108_v55  ;;  %v780_v2 = vpop.f32.mrb[10].mxu1  ;;  %v821_v3 = vpop.f32.mrb[14].mxu0  ;;  %v827_v1 = vadd.f32 %v819_v63, %v5117_v9 }
 0x25e   :  { %v828_v4 = vsub.f32 0.0, %v824_v61  ;;  %v781_v5 = vpop.f32.mrb[11].mxu1  ;;  %v822_v6 = vpop.f32.mrb[15].mxu0  ;;  %6631 = vst [vmem:[#allocation10_spill] sm:$0xff] %v5123_v59  ;;  %v5126_v61 = vadd.f32 %v533_v41, %v5123_v59 }
 0x25f   :  { %v834_v18 = vsub.f32 0.0, %v825_v0  ;;  %v841_v62 = vsub.f32 0.0, %v827_v1 }
 0x260   :  { %v829_v42 = vmul.f32 1.442695, %v828_v4  ;;  %v826_v43 = vadd.f32 %v817_v60, %v5126_v61 }
 0x261   :  { %v835_v54 = vmul.f32 1.442695, %v834_v18  ;;  %v842_v2 = vmul.f32 1.442695, %v841_v62 }
 0x262   :  { %4257 = vpow2.f32 %v829_v42 }
 0x263   :  { %4259 = vpow2.f32 %v835_v54 }
 0x264   :  { %4261 = vpow2.f32 %v842_v2 }
 0x265   :  { %4263 = vtanh.f32 %v826_v43  ;;  %v6632_v43 = vmov 0  }
 0x26c   :  { %v4258_v0 = vpop.eup %4257 }
 0x26d   :  { %v4260_v3 = vpop.eup %4259  ;;  %v831_v5 = vadd.f32 1.0, %v4258_v0 }
 0x26e   :  { %v837_v4 = vadd.f32 1.0, %v4260_v3  ;;  %v4262_v54 = vpop.eup %4261 }
 0x26f   :  { %4265 = vrcp.f32 %v831_v5  ;;  %v4264_v63 = vpop.eup %4263  ;;  %v844_v1 = vadd.f32 1.0, %v4262_v54 }
 0x270   :  { %4267 = vrcp.f32 %v837_v4 }
 0x271   :  { %4269 = vrcp.f32 %v844_v1 }
 0x279   :  { %v4266_v6 = vpop.eup %4265 }
 0x27a   :  { %v4268_v50 = vpop.eup %4267  ;;  %v848_v18 = vmul.f32 %v4266_v6, %v4264_v63 }
 0x27b   :  { %v847_v42 = vmul.f32 0.0, %v4268_v50  ;;  %v4270_v60 = vpop.eup %4269 }
 0x27d   :  { %v5129_v41 = vadd.f32 %v848_v18, %v847_v42 }
 0x27f   :  { %4271 = vtanh.f32 %v5129_v41 }
 0x289   :  { %v4272_v62 = vpop.eup %4271 }
 0x28a   :  { %v5132_v0 = vmul.f32 %v4272_v62, %v4270_v60 }
 0x28c   :  { %v852_v2 = vpack.c.bf16 %v5132_v0, %v5132_v0 }
 0x28e   :  { %886 = vmatmul.mubr.bf16.vlgmr.msra.gmra.mrb[12].mxu1 %v852_v2  ;;  %927 = vmatmul.mubr.bf16.vlgmr.msra.gmra.mrb[16].mxu0 %v852_v2 }
 0x28f   :  { %983 = vmatpush1.bf16.msra.mxu1 %v4858_v7  ;;  %1024 = vmatpush1.bf16.msra.mxu0 %v4863_v8 }
 0x290   :  { %984 = vmatprep.subr.bf16.mxu1 %v4868_v10  ;;  %1025 = vmatprep.subr.bf16.mxu0 %v4873_v11 }
 0x291   :  { %1014 = vmatprep.mubr.bf16.mxu1 %v6632_v43  ;;  %1055 = vmatprep.mubr.bf16.mxu0 %v6632_v43 }
 0x293   :  { %985 = vmatpush1.bf16.msra.mxu1 %v4880_v12  ;;  %1026 = vmatpush1.bf16.msra.mxu0 %v4885_v13 }
 0x294   :  { %986 = vmatprep.subr.bf16.mxu1 %v4892_v14  ;;  %1027 = vmatprep.subr.bf16.mxu0 %v4897_v15 }
 0x297   :  { %987 = vmatpush1.bf16.msra.mxu1 %v4906_v16  ;;  %1028 = vmatpush1.bf16.msra.mxu0 %v4911_v17 }
 0x298   :  { %988 = vmatprep.subr.bf16.mxu1 %v4918_v19  ;;  %1029 = vmatprep.subr.bf16.mxu0 %v4923_v20 }
 0x29b   :  { %989 = vmatpush1.bf16.msra.mxu1 %v4930_v21  ;;  %1030 = vmatpush1.bf16.msra.mxu0 %v4935_v22 }
 0x29c   :  { %990 = vmatprep.subr.bf16.mxu1 %v4942_v23  ;;  %1031 = vmatprep.subr.bf16.mxu0 %v4947_v24 }
 0x29f   :  { %991 = vmatpush1.bf16.msra.mxu1 %v4956_v25  ;;  %1032 = vmatpush1.bf16.msra.mxu0 %v4961_v26 }
 0x2a0   :  { %992 = vmatprep.subr.bf16.mxu1 %v4968_v27  ;;  %1033 = vmatprep.subr.bf16.mxu0 %v4973_v28 }
 0x2a3   :  { %993 = vmatpush1.bf16.msra.mxu1 %v4980_v29  ;;  %1034 = vmatpush1.bf16.msra.mxu0 %v4985_v30 }
 0x2a4   :  { %994 = vmatprep.subr.bf16.mxu1 %v4992_v31  ;;  %1035 = vmatprep.subr.bf16.mxu0 %v4997_v33 }
 0x2a7   :  { %995 = vmatpush1.bf16.msra.mxu1 %v5004_v34  ;;  %1036 = vmatpush1.bf16.msra.mxu0 %v5009_v35 }
 0x2a8   :  { %996 = vmatprep.subr.bf16.mxu1 %v5016_v36  ;;  %1037 = vmatprep.subr.bf16.mxu0 %v5021_v37 }
 0x2ab   :  { %997 = vmatpush1.bf16.msra.mxu1 %v5028_v38  ;;  %1038 = vmatpush1.bf16.msra.mxu0 %v5033_v39 }
 0x2ac   :  { %1111 = vmatprep.subr.bf16.mxu1 %v4841_v57  ;;  %1152 = vmatprep.subr.bf16.mxu0 %v4846_v58 }
 0x361   :  { %v887_v3 = vpop.f32.mrb[12].mxu1  ;;  %v928_v5 = vpop.f32.mrb[16].mxu0 }
 0x362   :  { %v939_v4 = vrot.slane %v887_v3, 6  ;;  %v889_v54 = vpop.f32.mrb[13].mxu1  ;;  %v930_v63 = vpop.f32.mrb[17].mxu0  ;;  %v941_v59 = vrot.slane %v928_v5, 6 }
 0x363   :  { %v940_v6 = vrot.slane %v889_v54, 6  ;;  %v891_v50 = vpop.f32.mrb[14].mxu1  ;;  %v932_v18 = vpop.f32.mrb[18].mxu0  ;;  %v942_v2 = vrot.slane %v930_v63, 6 }
 0x364   :  { %v947_v1 = vadd.f32 %v939_v4, %v5105_v32  ;;  %v892_v42 = vpop.f32.mrb[15].mxu1  ;;  %v933_v60 = vpop.f32.mrb[19].mxu0  ;;  %v949_v50 = vadd.f32 %v941_v59, %v5126_v61 }
 0x365   :  { %v948_v62 = vadd.f32 %v940_v6, %v5108_v55  ;;  %v950_v45 = vadd.f32 %v942_v2, %v5117_v9 }
 0x366   :  { %v951_v40 = vsub.f32 0.0, %v947_v1  ;;  %v971_v1 = vrot.slane %v5129_v41, 6 }
 0x367   :  { %v957_v48 = vsub.f32 0.0, %v948_v62  ;;  %v964_v3 = vsub.f32 0.0, %v950_v45 }
 0x368   :  { %v952_v51 = vmul.f32 1.442695, %v951_v40 }
 0x369   :  { %v958_v49 = vmul.f32 1.442695, %v957_v48  ;;  %v965_v54 = vmul.f32 1.442695, %v964_v3 }
 0x36a   :  { %4273 = vpow2.f32 %v952_v51 }
 0x36b   :  { %4275 = vpow2.f32 %v958_v49 }
 0x36c   :  { %4277 = vpow2.f32 %v965_v54 }
 0x36d   :  { %4279 = vtanh.f32 %v949_v50 }
 0x374   :  { %v4274_v18 = vpop.eup %4273 }
 0x375   :  { %v4276_v4 = vpop.eup %4275  ;;  %v954_v42 = vadd.f32 1.0, %v4274_v18 }
 0x376   :  { %v960_v6 = vadd.f32 1.0, %v4276_v4  ;;  %v4278_v63 = vpop.eup %4277 }
 0x377   :  { %4281 = vrcp.f32 %v954_v42  ;;  %v4280_v40 = vpop.eup %4279  ;;  %v967_v45 = vadd.f32 1.0, %v4278_v63 }
 0x378   :  { %4283 = vrcp.f32 %v960_v6 }
 0x379   :  { %4285 = vrcp.f32 %v967_v45 }
 0x381   :  { %v4282_v48 = vpop.eup %4281 }
 0x382   :  { %v4284_v51 = vpop.eup %4283  ;;  %v974_v49 = vmul.f32 %v4282_v48, %v4280_v40 }
 0x383   :  { %v973_v5 = vmul.f32 %v4284_v51, %v971_v1  ;;  %v4286_v59 = vpop.eup %4285 }
 0x385   :  { %v5175_v60 = vadd.f32 %v974_v49, %v973_v5 }
 0x387   :  { %4287 = vtanh.f32 %v5175_v60 }
 0x391   :  { %v4288_v62 = vpop.eup %4287 }
 0x392   :  { %v5178_v2 = vmul.f32 %v4288_v62, %v4286_v59 }
 0x394   :  { %v978_v3 = vpack.c.bf16 %v5178_v2, %v5178_v2 }
 0x396   :  { %v980_v54 = vrot.slane %v978_v3, 1 }
 0x398   :  { %1015 = vmatmul.mubr.bf16.vlgmr.msra.gmra.mrb[16].mxu1 %v980_v54  ;;  %1056 = vmatmul.mubr.bf16.vlgmr.msra.gmra.mrb[20].mxu0 %v980_v54 }
 0x399   :  { %1112 = vmatpush1.bf16.msra.mxu1 %v4858_v7  ;;  %1153 = vmatpush1.bf16.msra.mxu0 %v4863_v8 }
 0x39a   :  { %1113 = vmatprep.subr.bf16.mxu1 %v4868_v10  ;;  %1154 = vmatprep.subr.bf16.mxu0 %v4873_v11 }
 0x39b   :  { %1143 = vmatprep.mubr.bf16.mxu1 %v6632_v43  ;;  %1184 = vmatprep.mubr.bf16.mxu0 %v6632_v43 }
 0x39d   :  { %1114 = vmatpush1.bf16.msra.mxu1 %v4880_v12  ;;  %1155 = vmatpush1.bf16.msra.mxu0 %v4885_v13 }
 0x39e   :  { %1115 = vmatprep.subr.bf16.mxu1 %v4892_v14  ;;  %1156 = vmatprep.subr.bf16.mxu0 %v4897_v15 }
 0x3a1   :  { %1116 = vmatpush1.bf16.msra.mxu1 %v4906_v16  ;;  %1157 = vmatpush1.bf16.msra.mxu0 %v4911_v17 }
 0x3a2   :  { %1117 = vmatprep.subr.bf16.mxu1 %v4918_v19  ;;  %1158 = vmatprep.subr.bf16.mxu0 %v4923_v20 }
 0x3a5   :  { %1118 = vmatpush1.bf16.msra.mxu1 %v4930_v21  ;;  %1159 = vmatpush1.bf16.msra.mxu0 %v4935_v22 }
 0x3a6   :  { %1119 = vmatprep.subr.bf16.mxu1 %v4942_v23  ;;  %1160 = vmatprep.subr.bf16.mxu0 %v4947_v24 }
 0x3a9   :  { %1120 = vmatpush1.bf16.msra.mxu1 %v4956_v25  ;;  %1161 = vmatpush1.bf16.msra.mxu0 %v4961_v26 }
 0x3aa   :  { %1121 = vmatprep.subr.bf16.mxu1 %v4968_v27  ;;  %1162 = vmatprep.subr.bf16.mxu0 %v4973_v28 }
 0x3ad   :  { %1122 = vmatpush1.bf16.msra.mxu1 %v4980_v29  ;;  %1163 = vmatpush1.bf16.msra.mxu0 %v4985_v30 }
 0x3ae   :  { %1123 = vmatprep.subr.bf16.mxu1 %v4992_v31  ;;  %1164 = vmatprep.subr.bf16.mxu0 %v4997_v33 }
 0x3b1   :  { %1124 = vmatpush1.bf16.msra.mxu1 %v5004_v34  ;;  %1165 = vmatpush1.bf16.msra.mxu0 %v5009_v35 }
 0x3b2   :  { %1125 = vmatprep.subr.bf16.mxu1 %v5016_v36  ;;  %1166 = vmatprep.subr.bf16.mxu0 %v5021_v37 }
 0x3b5   :  { %1126 = vmatpush1.bf16.msra.mxu1 %v5028_v38  ;;  %1167 = vmatpush1.bf16.msra.mxu0 %v5033_v39 }
 0x3b6   :  { %1240 = vmatprep.subr.bf16.mxu1 %v4841_v57  ;;  %1281 = vmatprep.subr.bf16.mxu0 %v4846_v58 }
 0x46b   :  { %v1016_v41 = vpop.f32.mrb[16].mxu1  ;;  %v1057_v50 = vpop.f32.mrb[20].mxu0 }
 0x46c   :  { %v1068_v18 = vrot.slane %v1016_v41, 4  ;;  %v1018_v4 = vpop.f32.mrb[17].mxu1  ;;  %v1059_v42 = vpop.f32.mrb[21].mxu0  ;;  %v1070_v47 = vrot.slane %v1057_v50, 4 }
 0x46d   :  { %v1069_v6 = vrot.slane %v1018_v4, 4  ;;  %v1020_v63 = vpop.f32.mrb[18].mxu1  ;;  %v1061_v40 = vpop.f32.mrb[22].mxu0  ;;  %v1071_v45 = vrot.slane %v1059_v42, 4 }
 0x46e   :  { %v1076_v48 = vadd.f32 %v1068_v18, %v5105_v32  ;;  %v1021_v1 = vpop.f32.mrb[19].mxu1  ;;  %v1062_v51 = vpop.f32.mrb[23].mxu0  ;;  %v1078_v63 = vadd.f32 %v1070_v47, %v5126_v61 }
 0x46f   :  { %v1077_v49 = vadd.f32 %v1069_v6, %v5108_v55  ;;  %v1079_v54 = vadd.f32 %v1071_v45, %v5117_v9 }
 0x470   :  { %v1080_v5 = vsub.f32 0.0, %v1076_v48 }
 0x471   :  { %v1086_v59 = vsub.f32 0.0, %v1077_v49  ;;  %v1093_v41 = vsub.f32 0.0, %v1079_v54  ;;  %v1100_v49 = vrot.slane %v5175_v60, 6 }
 0x472   :  { %v1081_v62 = vmul.f32 1.442695, %v1080_v5 }
 0x473   :  { %v1087_v3 = vmul.f32 1.442695, %v1086_v59  ;;  %v1094_v4 = vmul.f32 1.442695, %v1093_v41  ;;  %v1854_v41 = vsel %vm224_vm6, %v5132_v0, %v5178_v2 }
 0x474   :  { %4289 = vpow2.f32 %v1081_v62 }
 0x475   :  { %4291 = vpow2.f32 %v1087_v3 }
 0x476   :  { %4293 = vpow2.f32 %v1094_v4 }
 0x477   :  { %4295 = vtanh.f32 %v1078_v63 }
 0x47e   :  { %v4290_v40 = vpop.eup %4289 }
 0x47f   :  { %v4292_v18 = vpop.eup %4291  ;;  %v1083_v1 = vadd.f32 1.0, %v4290_v40 }
 0x480   :  { %v1089_v6 = vadd.f32 1.0, %v4292_v18  ;;  %v4294_v42 = vpop.eup %4293 }
 0x481   :  { %4297 = vrcp.f32 %v1083_v1  ;;  %v4296_v48 = vpop.eup %4295  ;;  %v1096_v59 = vadd.f32 1.0, %v4294_v42 }
 0x482   :  { %4299 = vrcp.f32 %v1089_v6 }
 0x483   :  { %4301 = vrcp.f32 %v1096_v59 }
 0x48b   :  { %v4298_v51 = vpop.eup %4297 }
 0x48c   :  { %v4300_v45 = vpop.eup %4299  ;;  %v1103_v5 = vmul.f32 %v4298_v51, %v4296_v48 }
 0x48d   :  { %v1102_v50 = vmul.f32 %v4300_v45, %v1100_v49  ;;  %v4302_v47 = vpop.eup %4301 }
 0x48f   :  { %v5221_v62 = vadd.f32 %v1103_v5, %v1102_v50 }
 0x491   :  { %4303 = vtanh.f32 %v5221_v62 }
 0x49b   :  { %v4304_v3 = vpop.eup %4303 }
 0x49c   :  { %v1106_v54 = vmul.f32 %v4304_v3, %v4302_v47 }
 0x49e   :  { %v1107_v4 = vpack.c.bf16 %v1106_v54, %v1106_v54  ;;  %v5228_v60 = vsel %vm1855_vm7, %v1854_v41, %v1106_v54 }
 0x4a0   :  { %v1109_v63 = vrot.slane %v1107_v4, 2 }
 0x4a2   :  { %1144 = vmatmul.mubr.bf16.vlgmr.msra.gmra.mrb[20].mxu1 %v1109_v63  ;;  %1185 = vmatmul.mubr.bf16.vlgmr.msra.gmra.mrb[24].mxu0 %v1109_v63 }
 0x4a3   :  { %1241 = vmatpush1.bf16.msra.mxu1 %v4858_v7  ;;  %1282 = vmatpush1.bf16.msra.mxu0 %v4863_v8 }
 0x4a4   :  { %1242 = vmatprep.subr.bf16.mxu1 %v4868_v10  ;;  %1283 = vmatprep.subr.bf16.mxu0 %v4873_v11 }
 0x4a5   :  { %1272 = vmatprep.mubr.bf16.mxu1 %v6632_v43  ;;  %1313 = vmatprep.mubr.bf16.mxu0 %v6632_v43 }
 0x4a7   :  { %1243 = vmatpush1.bf16.msra.mxu1 %v4880_v12  ;;  %1284 = vmatpush1.bf16.msra.mxu0 %v4885_v13 }
 0x4a8   :  { %1244 = vmatprep.subr.bf16.mxu1 %v4892_v14  ;;  %1285 = vmatprep.subr.bf16.mxu0 %v4897_v15 }
 0x4ab   :  { %1245 = vmatpush1.bf16.msra.mxu1 %v4906_v16  ;;  %1286 = vmatpush1.bf16.msra.mxu0 %v4911_v17 }
 0x4ac   :  { %1246 = vmatprep.subr.bf16.mxu1 %v4918_v19  ;;  %1287 = vmatprep.subr.bf16.mxu0 %v4923_v20 }
 0x4af   :  { %1247 = vmatpush1.bf16.msra.mxu1 %v4930_v21  ;;  %1288 = vmatpush1.bf16.msra.mxu0 %v4935_v22 }
 0x4b0   :  { %1248 = vmatprep.subr.bf16.mxu1 %v4942_v23  ;;  %1289 = vmatprep.subr.bf16.mxu0 %v4947_v24 }
 0x4b3   :  { %1249 = vmatpush1.bf16.msra.mxu1 %v4956_v25  ;;  %1290 = vmatpush1.bf16.msra.mxu0 %v4961_v26 }
 0x4b4   :  { %1250 = vmatprep.subr.bf16.mxu1 %v4968_v27  ;;  %1291 = vmatprep.subr.bf16.mxu0 %v4973_v28 }
 0x4b7   :  { %1251 = vmatpush1.bf16.msra.mxu1 %v4980_v29  ;;  %1292 = vmatpush1.bf16.msra.mxu0 %v4985_v30 }
 0x4b8   :  { %1252 = vmatprep.subr.bf16.mxu1 %v4992_v31  ;;  %1293 = vmatprep.subr.bf16.mxu0 %v4997_v33 }
 0x4bb   :  { %1253 = vmatpush1.bf16.msra.mxu1 %v5004_v34  ;;  %1294 = vmatpush1.bf16.msra.mxu0 %v5009_v35 }
 0x4bc   :  { %1254 = vmatprep.subr.bf16.mxu1 %v5016_v36  ;;  %1295 = vmatprep.subr.bf16.mxu0 %v5021_v37 }
 0x4bf   :  { %1255 = vmatpush1.bf16.msra.mxu1 %v5028_v38  ;;  %1296 = vmatpush1.bf16.msra.mxu0 %v5033_v39 }
 0x4c0   :  { %1354 = vmatprep.subr.bf16.mxu1 %v4841_v57  ;;  %1395 = vmatprep.subr.bf16.mxu0 %v4846_v58 }
 0x575   :  { %v1145_v0 = vpop.f32.mrb[20].mxu1  ;;  %v1186_v2 = vpop.f32.mrb[24].mxu0 }
 0x576   :  { %v1197_v40 = vrot.slane %v1145_v0, 2  ;;  %v1147_v18 = vpop.f32.mrb[21].mxu1  ;;  %v1188_v1 = vpop.f32.mrb[25].mxu0  ;;  %v1199_v63 = vrot.slane %v1186_v2, 2 }
 0x577   :  { %v1198_v6 = vrot.slane %v1147_v18, 2  ;;  %v1149_v42 = vpop.f32.mrb[22].mxu1  ;;  %v1190_v48 = vpop.f32.mrb[26].mxu0  ;;  %v1200_v59 = vrot.slane %v1188_v1, 2 }
 0x578   :  { %v1205_v51 = vadd.f32 %v1197_v40, %v5105_v32  ;;  %v1150_v49 = vpop.f32.mrb[23].mxu1  ;;  %v1191_v45 = vpop.f32.mrb[27].mxu0  ;;  %v1207_v18 = vadd.f32 %v1199_v63, %v5126_v61 }
 0x579   :  { %v1206_v5 = vadd.f32 %v1198_v6, %v5108_v55  ;;  %v1208_v41 = vadd.f32 %v1200_v59, %v5117_v9  ;;  %v1229_v9 = vrot.slane %v5221_v62, 6 }
 0x57a   :  { %v1209_v50 = vsub.f32 0.0, %v1205_v51 }
 0x57b   :  { %v1215_v47 = vsub.f32 0.0, %v1206_v5  ;;  %v1222_v4 = vsub.f32 0.0, %v1208_v41 }
 0x57c   :  { %v1210_v3 = vmul.f32 1.442695, %v1209_v50 }
 0x57d   :  { %v1216_v54 = vmul.f32 1.442695, %v1215_v47  ;;  %v1223_v0 = vmul.f32 1.442695, %v1222_v4 }
 0x57e   :  { %4305 = vpow2.f32 %v1210_v3 }
 0x57f   :  { %4307 = vpow2.f32 %v1216_v54 }
 0x580   :  { %4309 = vpow2.f32 %v1223_v0 }
 0x581   :  { %4311 = vtanh.f32 %v1207_v18 }
 0x588   :  { %v4306_v42 = vpop.eup %4305 }
 0x589   :  { %v4308_v32 = vpop.eup %4307  ;;  %v1212_v40 = vadd.f32 1.0, %v4306_v42 }
 0x58a   :  { %v1218_v55 = vadd.f32 1.0, %v4308_v32  ;;  %v4310_v1 = vpop.eup %4309 }
 0x58b   :  { %4313 = vrcp.f32 %v1212_v40  ;;  %v4312_v6 = vpop.eup %4311  ;;  %v1225_v45 = vadd.f32 1.0, %v4310_v1 }
 0x58c   :  { %4315 = vrcp.f32 %v1218_v55 }
 0x58d   :  { %4317 = vrcp.f32 %v1225_v45 }
 0x595   :  { %v4314_v48 = vpop.eup %4313 }
 0x596   :  { %v4316_v51 = vpop.eup %4315  ;;  %v1232_v49 = vmul.f32 %v4314_v48, %v4312_v6  ;;  %v6634_v6 = vld [vmem:[#allocation10_spill] sm:$0xff]  ;;  %v6635_v48 = vld [vmem:[#allocation5_spill] sm:$0xff] }
 0x597   :  { %v1231_v2 = vmul.f32 %v4316_v51, %v1229_v9  ;;  %v4318_v61 = vpop.eup %4317  ;;  %v5327_v9 = vadd.f32 %v6635_v48, %v6634_v6 }
 0x599   :  { %v5269_v5 = vadd.f32 %v1232_v49, %v1231_v2 }
 0x59b   :  { %4319 = vtanh.f32 %v5269_v5 }
 0x5a5   :  { %v4320_v59 = vpop.eup %4319 }
 0x5a6   :  { %v1235_v50 = vmul.f32 %v4320_v59, %v4318_v61 }
 0x5a8   :  { %v1236_v47 = vpack.c.bf16 %v1235_v50, %v1235_v50  ;;  %v5274_v3 = vsel %vm1857_vm8, %v5228_v60, %v1235_v50 }
 0x5aa   :  { %v1238_v54 = vrot.slane %v1236_v47, 3 }
 0x5ac   :  { %1273 = vmatmul.mubr.bf16.vlgmr.msra.gmra.mrb[24].mxu1 %v1238_v54  ;;  %1314 = vmatmul.mubr.bf16.vlgmr.msra.gmra.mrb[28].mxu0 %v1238_v54 }
 0x5ad   :  { %1355 = vmatpush1.bf16.msra.mxu1 %v4858_v7  ;;  %1396 = vmatpush1.bf16.msra.mxu0 %v4863_v8  ;;  %v5312_v7 = vadd.f32 %v5077_v44, %v5098_v52  ;;  %v5316_v8 = vadd.f32 %v5081_v46, %v5101_v53  ;;  %v6633_v44 = vld [vmem:[#allocation6_spill] sm:$0xff] }
 0x5ae   :  { %1356 = vmatprep.subr.bf16.mxu1 %v4868_v10  ;;  %1397 = vmatprep.subr.bf16.mxu0 %v4873_v11  ;;  %v5322_v42 = vadd.f32 %v6633_v44, %v5112_v56  ;;  %v5353_v44 = vld [vmem:[%s6606_s4 + $0x24] ss:$16 sps:$4 sm:$0xff]  }
 0x5af   :  { %1386 = vmatprep.mubr.bf16.mxu1 %v6632_v43  ;;  %1427 = vmatprep.mubr.bf16.mxu0 %v6632_v43 }
 0x5b1   :  { %1357 = vmatpush1.bf16.msra.mxu1 %v4880_v12  ;;  %1398 = vmatpush1.bf16.msra.mxu0 %v4885_v13 }
 0x5b2   :  { %1358 = vmatprep.subr.bf16.mxu1 %v4892_v14  ;;  %1399 = vmatprep.subr.bf16.mxu0 %v4897_v15 }
 0x5b5   :  { %1359 = vmatpush1.bf16.msra.mxu1 %v4906_v16  ;;  %1400 = vmatpush1.bf16.msra.mxu0 %v4911_v17 }
 0x5b6   :  { %1360 = vmatprep.subr.bf16.mxu1 %v4918_v19  ;;  %1401 = vmatprep.subr.bf16.mxu0 %v4923_v20 }
 0x5b9   :  { %1361 = vmatpush1.bf16.msra.mxu1 %v4930_v21  ;;  %1402 = vmatpush1.bf16.msra.mxu0 %v4935_v22 }
 0x5ba   :  { %1362 = vmatprep.subr.bf16.mxu1 %v4942_v23  ;;  %1403 = vmatprep.subr.bf16.mxu0 %v4947_v24 }
 0x5bd   :  { %1363 = vmatpush1.bf16.msra.mxu1 %v4956_v25  ;;  %1404 = vmatpush1.bf16.msra.mxu0 %v4961_v26 }
 0x5be   :  { %1364 = vmatprep.subr.bf16.mxu1 %v4968_v27  ;;  %1405 = vmatprep.subr.bf16.mxu0 %v4973_v28 }
 0x5c1   :  { %1365 = vmatpush1.bf16.msra.mxu1 %v4980_v29  ;;  %1406 = vmatpush1.bf16.msra.mxu0 %v4985_v30 }
 0x5c2   :  { %1366 = vmatprep.subr.bf16.mxu1 %v4992_v31  ;;  %1407 = vmatprep.subr.bf16.mxu0 %v4997_v33 }
 0x5c5   :  { %1367 = vmatpush1.bf16.msra.mxu1 %v5004_v34  ;;  %1408 = vmatpush1.bf16.msra.mxu0 %v5009_v35 }
 0x5c6   :  { %1368 = vmatprep.subr.bf16.mxu1 %v5016_v36  ;;  %1409 = vmatprep.subr.bf16.mxu0 %v5021_v37 }
 0x5c9   :  { %1369 = vmatpush1.bf16.msra.mxu1 %v5028_v38  ;;  %1410 = vmatpush1.bf16.msra.mxu0 %v5033_v39 }
 0x5ca   :  { %1483 = vmatprep.subr.bf16.mxu1 %v4841_v57  ;;  %1524 = vmatprep.subr.bf16.mxu0 %v4846_v58 }
 0x67f   :  { %v1274_v10 = vpop.f32.mrb[24].mxu1  ;;  %v1315_v11 = vpop.f32.mrb[28].mxu0 }
 0x680   :  { %v1322_v62 = vadd.f32 %v1274_v10, %v5312_v7  ;;  %v1276_v60 = vpop.f32.mrb[25].mxu1  ;;  %v1317_v41 = vpop.f32.mrb[29].mxu0  ;;  %v1324_v49 = vadd.f32 %v1315_v11, %v5327_v9  ;;  %v1346_v10 = vrot.slane %v5269_v5, 6  ;;  %v5341_v5 = vld [vmem:[%s6606_s4] ss:$16 sps:$4 sm:$0xff]  }
 0x681   :  { %v1323_v4 = vadd.f32 %v1276_v60, %v5316_v8  ;;  %v1278_v63 = vpop.f32.mrb[26].mxu1  ;;  %v1319_v57 = vpop.f32.mrb[30].mxu0  ;;  %v1325_v55 = vadd.f32 %v1317_v41, %v5322_v42 }
 0x682   :  { %v1326_v0 = vsub.f32 0.0, %v1322_v62  ;;  %v1279_v58 = vpop.f32.mrb[27].mxu1  ;;  %v1320_v18 = vpop.f32.mrb[31].mxu0 }
 0x683   :  { %v1332_v32 = vsub.f32 0.0, %v1323_v4  ;;  %v1339_v1 = vsub.f32 0.0, %v1325_v55  ;;  %v5347_v18 = vld [vmem:[%s6606_s4 + $0x8] ss:$16 sps:$4 sm:$0xff]  }
 0x684   :  { %v1327_v46 = vmul.f32 1.442695, %v1326_v0 }
 0x685   :  { %v1333_v40 = vmul.f32 1.442695, %v1332_v32  ;;  %v1340_v51 = vmul.f32 1.442695, %v1339_v1  ;;  %v5359_v32 = vld [vmem:[%s6606_s4 + $0x2c] ss:$16 sps:$4 sm:$0xff]  }
 0x686   :  { %4321 = vpow2.f32 %v1327_v46 }
 0x687   :  { %4323 = vpow2.f32 %v1333_v40 }
 0x688   :  { %4325 = vpow2.f32 %v1340_v51 }
 0x689   :  { %4327 = vtanh.f32 %v1324_v49 }
 0x690   :  { %v4322_v45 = vpop.eup %4321 }
 0x691   :  { %v4324_v2 = vpop.eup %4323  ;;  %v1329_v61 = vadd.f32 1.0, %v4322_v45 }
 0x692   :  { %v1335_v59 = vadd.f32 1.0, %v4324_v2  ;;  %v4326_v50 = vpop.eup %4325 }
 0x693   :  { %4329 = vrcp.f32 %v1329_v61  ;;  %v4328_v47 = vpop.eup %4327  ;;  %v1342_v41 = vadd.f32 1.0, %v4326_v50 }
 0x694   :  { %4331 = vrcp.f32 %v1335_v59 }
 0x695   :  { %4333 = vrcp.f32 %v1342_v41  ;;  %v5429_v41 = vld [vmem:[%s6606_s4 + $0x28] ss:$16 sps:$4 sm:$0xff]  }
 0x69d   :  { %v4330_v54 = vpop.eup %4329 }
 0x69e   :  { %v4332_v62 = vpop.eup %4331  ;;  %v1349_v60 = vmul.f32 %v4330_v54, %v4328_v47 }
 0x69f   :  { %v1348_v4 = vmul.f32 %v4332_v62, %v1346_v10  ;;  %v4334_v11 = vpop.eup %4333 }
 0x6a1   :  { %v5331_v63 = vadd.f32 %v1349_v60, %v1348_v4  ;;  %v5423_v60 = vld [vmem:[%s6606_s4 + $0x20] ss:$16 sps:$4 sm:$0xff]   ;;  %v5435_v4 = vld [vmem:[%s6606_s4 + $0x44] ss:$16 sps:$4 sm:$0xff]  }
 0x6a3   :  { %4335 = vtanh.f32 %v5331_v63  ;;  %v1472_v51 = vrot.slane %v5331_v63, 6  ;;  %v5441_v63 = vld [vmem:[%s6606_s4 + $0x4c] ss:$16 sps:$4 sm:$0xff]  }
 0x6ad   :  { %v4336_v57 = vpop.eup %4335 }
 0x6ae   :  { %v5334_v0 = vmul.f32 %v4336_v57, %v4334_v11  ;;  %v5447_v11 = vld [vmem:[%s6606_s4 + $0x40] ss:$16 sps:$4 sm:$0xff]   ;;  %v5453_v57 = vld [vmem:[%s6606_s4 + $0x48] ss:$16 sps:$4 sm:$0xff]  }
 0x6b0   :  { %v1353_v58 = vpack.c.bf16 %v5334_v0, %v5334_v0 }
 0x6b2   :  { %1387 = vmatmul.mubr.bf16.vlgmr.msra.gmra.mrb[28].mxu1 %v1353_v58  ;;  %1428 = vmatmul.mubr.bf16.vlgmr.msra.gmra.mrb[32].mxu0 %v1353_v58  ;;  %v5459_v58 = vld [vmem:[%s6606_s4 + $0x64] ss:$16 sps:$4 sm:$0xff]  }
 0x6b3   :  { %1484 = vmatpush1.bf16.msra.mxu1 %v5341_v5  ;;  %1525 = vmatpush1.bf16.msra.mxu0 %v5347_v18 }
 0x6b4   :  { %1485 = vmatprep.subr.bf16.mxu1 %v5353_v44  ;;  %1526 = vmatprep.subr.bf16.mxu0 %v5359_v32 }
 0x6b5   :  { %1515 = vmatprep.mubr.bf16.mxu1 %v6632_v43  ;;  %1556 = vmatprep.mubr.bf16.mxu0 %v6632_v43 }
 0x6b7   :  { %1486 = vmatpush1.bf16.msra.mxu1 %v4880_v12  ;;  %1527 = vmatpush1.bf16.msra.mxu0 %v4885_v13  ;;  %v5393_v12 = vld [vmem:[%s6606_s4 + $0x4] ss:$16 sps:$4 sm:$0xff]   ;;  %v5399_v13 = vld [vmem:[%s6606_s4 + $0xc] ss:$16 sps:$4 sm:$0xff]  }
 0x6b8   :  { %1487 = vmatprep.subr.bf16.mxu1 %v4892_v14  ;;  %1528 = vmatprep.subr.bf16.mxu0 %v4897_v15 }
 0x6bb   :  { %1488 = vmatpush1.bf16.msra.mxu1 %v4906_v16  ;;  %1529 = vmatpush1.bf16.msra.mxu0 %v4911_v17 }
 0x6bc   :  { %1489 = vmatprep.subr.bf16.mxu1 %v4918_v19  ;;  %1530 = vmatprep.subr.bf16.mxu0 %v4923_v20 }
 0x6bf   :  { %1490 = vmatpush1.bf16.msra.mxu1 %v4930_v21  ;;  %1531 = vmatpush1.bf16.msra.mxu0 %v4935_v22 }
 0x6c0   :  { %1491 = vmatprep.subr.bf16.mxu1 %v4942_v23  ;;  %1532 = vmatprep.subr.bf16.mxu0 %v4947_v24 }
 0x6c3   :  { %1492 = vmatpush1.bf16.msra.mxu1 %v4956_v25  ;;  %1533 = vmatpush1.bf16.msra.mxu0 %v4961_v26 }
 0x6c4   :  { %1493 = vmatprep.subr.bf16.mxu1 %v4968_v27  ;;  %1534 = vmatprep.subr.bf16.mxu0 %v4973_v28 }
 0x6c7   :  { %1494 = vmatpush1.bf16.msra.mxu1 %v4980_v29  ;;  %1535 = vmatpush1.bf16.msra.mxu0 %v4985_v30 }
 0x6c8   :  { %1495 = vmatprep.subr.bf16.mxu1 %v4992_v31  ;;  %1536 = vmatprep.subr.bf16.mxu0 %v4997_v33 }
 0x6cb   :  { %1496 = vmatpush1.bf16.msra.mxu1 %v5004_v34  ;;  %1537 = vmatpush1.bf16.msra.mxu0 %v5009_v35 }
 0x6cc   :  { %1497 = vmatprep.subr.bf16.mxu1 %v5016_v36  ;;  %1538 = vmatprep.subr.bf16.mxu0 %v5021_v37 }
 0x6cf   :  { %1498 = vmatpush1.bf16.msra.mxu1 %v5028_v38  ;;  %1539 = vmatpush1.bf16.msra.mxu0 %v5033_v39 }
 0x6d0   :  { %1612 = vmatprep.subr.bf16.mxu1 %v5393_v12  ;;  %1653 = vmatprep.subr.bf16.mxu0 %v5399_v13 }
 0x785   :  { %v1388_v14 = vpop.f32.mrb[28].mxu1  ;;  %v1429_v15 = vpop.f32.mrb[32].mxu0 }
 0x786   :  { %v1440_v16 = vrot.slane %v1388_v14, 6  ;;  %v1390_v17 = vpop.f32.mrb[29].mxu1  ;;  %v1431_v19 = vpop.f32.mrb[33].mxu0  ;;  %v1442_v35 = vrot.slane %v1429_v15, 6  ;;  %v5465_v14 = vld [vmem:[%s6606_s4 + $0x6c] ss:$16 sps:$4 sm:$0xff]  }
 0x787   :  { %v1441_v20 = vrot.slane %v1390_v17, 6  ;;  %v1392_v21 = vpop.f32.mrb[30].mxu1  ;;  %v1433_v22 = vpop.f32.mrb[34].mxu0  ;;  %v1443_v27 = vrot.slane %v1431_v19, 6  ;;  %v5471_v15 = vld [vmem:[%s6606_s4 + $0x60] ss:$16 sps:$4 sm:$0xff]  }
 0x788   :  { %v1448_v23 = vadd.f32 %v1440_v16, %v5312_v7  ;;  %v1393_v24 = vpop.f32.mrb[31].mxu1  ;;  %v1434_v25 = vpop.f32.mrb[35].mxu0  ;;  %v1450_v37 = vadd.f32 %v1442_v35, %v5327_v9  ;;  %v5477_v16 = vld [vmem:[%s6606_s4 + $0x68] ss:$16 sps:$4 sm:$0xff]   ;;  %v5483_v17 = vld [vmem:[%s6606_s4 + $0x84] ss:$16 sps:$4 sm:$0xff]  }
 0x789   :  { %v1449_v26 = vadd.f32 %v1441_v20, %v5316_v8  ;;  %v1451_v33 = vadd.f32 %v1443_v27, %v5322_v42  ;;  %v5489_v19 = vld [vmem:[%s6606_s4 + $0x8c] ss:$16 sps:$4 sm:$0xff]   ;;  %v5495_v20 = vld [vmem:[%s6606_s4 + $0x80] ss:$16 sps:$4 sm:$0xff]   ;;  %v5501_v21 = vld [vmem:[%s6606_s4 + $0x88] ss:$16 sps:$4 sm:$0xff]  }
 0x78a   :  { %v1452_v28 = vsub.f32 0.0, %v1448_v23  ;;  %v5507_v22 = vld [vmem:[%s6606_s4 + $0xa4] ss:$16 sps:$4 sm:$0xff]   ;;  %v5513_v23 = vld [vmem:[%s6606_s4 + $0xac] ss:$16 sps:$4 sm:$0xff]  }
 0x78b   :  { %v1458_v29 = vsub.f32 0.0, %v1449_v26  ;;  %v1465_v34 = vsub.f32 0.0, %v1451_v33  ;;  %v5519_v24 = vld [vmem:[%s6606_s4 + $0xa0] ss:$16 sps:$4 sm:$0xff]   ;;  %v5525_v25 = vld [vmem:[%s6606_s4 + $0xa8] ss:$16 sps:$4 sm:$0xff]  }
 0x78c   :  { %v1453_v30 = vmul.f32 1.442695, %v1452_v28  ;;  %v5531_v26 = vld [vmem:[%s6606_s4 + $0xc4] ss:$16 sps:$4 sm:$0xff]   ;;  %v5537_v27 = vld [vmem:[%s6606_s4 + $0xcc] ss:$16 sps:$4 sm:$0xff]  }
 0x78d   :  { %v1459_v31 = vmul.f32 1.442695, %v1458_v29  ;;  %v1466_v36 = vmul.f32 1.442695, %v1465_v34  ;;  %v5543_v28 = vld [vmem:[%s6606_s4 + $0xc0] ss:$16 sps:$4 sm:$0xff]  }
 0x78e   :  { %4337 = vpow2.f32 %v1453_v30  ;;  %v5549_v29 = vld [vmem:[%s6606_s4 + $0xc8] ss:$16 sps:$4 sm:$0xff]   ;;  %v5555_v30 = vld [vmem:[%s6606_s4 + $0xe4] ss:$16 sps:$4 sm:$0xff]   ;;  %v5567_v33 = vld [vmem:[%s6606_s4 + $0xe0] ss:$16 sps:$4 sm:$0xff]  }
 0x78f   :  { %4339 = vpow2.f32 %v1459_v31  ;;  %v5561_v31 = vld [vmem:[%s6606_s4 + $0xec] ss:$16 sps:$4 sm:$0xff]   ;;  %v5573_v34 = vld [vmem:[%s6606_s4 + $0xe8] ss:$16 sps:$4 sm:$0xff]  }
 0x790   :  { %4341 = vpow2.f32 %v1466_v36 }
 0x791   :  { %4343 = vtanh.f32 %v1450_v37 }
 0x798   :  { %v4338_v38 = vpop.eup %4337 }
 0x799   :  { %v4340_v39 = vpop.eup %4339  ;;  %v1455_v46 = vadd.f32 1.0, %v4338_v38 }
 0x79a   :  { %v1461_v40 = vadd.f32 1.0, %v4340_v39  ;;  %v4342_v55 = vpop.eup %4341 }
 0x79b   :  { %4345 = vrcp.f32 %v1455_v46  ;;  %v4344_v1 = vpop.eup %4343  ;;  %v1468_v2 = vadd.f32 1.0, %v4342_v55 }
 0x79c   :  { %4347 = vrcp.f32 %v1461_v40 }
 0x79d   :  { %4349 = vrcp.f32 %v1468_v2 }
 0x7a5   :  { %v4346_v48 = vpop.eup %4345 }
 0x7a6   :  { %v4348_v49 = vpop.eup %4347  ;;  %v1475_v45 = vmul.f32 %v4346_v48, %v4344_v1 }
 0x7a7   :  { %v1474_v61 = vmul.f32 %v4348_v49, %v1472_v51  ;;  %v4350_v50 = vpop.eup %4349 }
 0x7a9   :  { %v5407_v59 = vadd.f32 %v1475_v45, %v1474_v61 }
 0x7ab   :  { %4351 = vtanh.f32 %v5407_v59 }
 0x7b5   :  { %v4352_v47 = vpop.eup %4351 }
 0x7b6   :  { %v5410_v54 = vmul.f32 %v4352_v47, %v4350_v50 }
 0x7b8   :  { %v1479_v10 = vpack.c.bf16 %v5410_v54, %v5410_v54 }
 0x7ba   :  { %v1481_v62 = vrot.slane %v1479_v10, 1 }
 0x7bc   :  { %1516 = vmatmul.mubr.bf16.vlgmr.msra.gmra.mrb[32].mxu1 %v1481_v62  ;;  %1557 = vmatmul.mubr.bf16.vlgmr.msra.gmra.mrb[36].mxu0 %v1481_v62 }
 0x7bd   :  { %1613 = vmatpush1.bf16.msra.mxu1 %v5341_v5  ;;  %1654 = vmatpush1.bf16.msra.mxu0 %v5347_v18 }
 0x7be   :  { %1614 = vmatprep.subr.bf16.mxu1 %v5353_v44  ;;  %1655 = vmatprep.subr.bf16.mxu0 %v5359_v32 }
 0x7bf   :  { %1644 = vmatprep.mubr.bf16.mxu1 %v6632_v43  ;;  %1685 = vmatprep.mubr.bf16.mxu0 %v6632_v43 }
 0x7c1   :  { %1615 = vmatpush1.bf16.msra.mxu1 %v5423_v60  ;;  %1656 = vmatpush1.bf16.msra.mxu0 %v5429_v41 }
 0x7c2   :  { %1616 = vmatprep.subr.bf16.mxu1 %v5435_v4  ;;  %1657 = vmatprep.subr.bf16.mxu0 %v5441_v63 }
 0x7c5   :  { %1617 = vmatpush1.bf16.msra.mxu1 %v5447_v11  ;;  %1658 = vmatpush1.bf16.msra.mxu0 %v5453_v57 }
 0x7c6   :  { %1618 = vmatprep.subr.bf16.mxu1 %v5459_v58  ;;  %1659 = vmatprep.subr.bf16.mxu0 %v5465_v14 }
 0x7c9   :  { %1619 = vmatpush1.bf16.msra.mxu1 %v5471_v15  ;;  %1660 = vmatpush1.bf16.msra.mxu0 %v5477_v16 }
 0x7ca   :  { %1620 = vmatprep.subr.bf16.mxu1 %v5483_v17  ;;  %1661 = vmatprep.subr.bf16.mxu0 %v5489_v19 }
 0x7cd   :  { %1621 = vmatpush1.bf16.msra.mxu1 %v5495_v20  ;;  %1662 = vmatpush1.bf16.msra.mxu0 %v5501_v21 }
 0x7ce   :  { %1622 = vmatprep.subr.bf16.mxu1 %v5507_v22  ;;  %1663 = vmatprep.subr.bf16.mxu0 %v5513_v23 }
 0x7d1   :  { %1623 = vmatpush1.bf16.msra.mxu1 %v5519_v24  ;;  %1664 = vmatpush1.bf16.msra.mxu0 %v5525_v25 }
 0x7d2   :  { %1624 = vmatprep.subr.bf16.mxu1 %v5531_v26  ;;  %1665 = vmatprep.subr.bf16.mxu0 %v5537_v27 }
 0x7d5   :  { %1625 = vmatpush1.bf16.msra.mxu1 %v5543_v28  ;;  %1666 = vmatpush1.bf16.msra.mxu0 %v5549_v29 }
 0x7d6   :  { %1626 = vmatprep.subr.bf16.mxu1 %v5555_v30  ;;  %1667 = vmatprep.subr.bf16.mxu0 %v5561_v31 }
 0x7d9   :  { %1627 = vmatpush1.bf16.msra.mxu1 %v5567_v33  ;;  %1668 = vmatpush1.bf16.msra.mxu0 %v5573_v34 }
 0x7da   :  { %1741 = vmatprep.subr.bf16.mxu1 %v5393_v12  ;;  %1782 = vmatprep.subr.bf16.mxu0 %v5399_v13 }
 0x88f   :  { %v1517_v35 = vpop.f32.mrb[32].mxu1  ;;  %v1558_v36 = vpop.f32.mrb[36].mxu0 }
 0x890   :  { %v1569_v37 = vrot.slane %v1517_v35, 4  ;;  %v1519_v38 = vpop.f32.mrb[33].mxu1  ;;  %v1560_v39 = vpop.f32.mrb[37].mxu0  ;;  %v1571_v10 = vrot.slane %v1558_v36, 4 }
 0x891   :  { %v1570_v46 = vrot.slane %v1519_v38, 4  ;;  %v1521_v40 = vpop.f32.mrb[34].mxu1  ;;  %v1562_v55 = vpop.f32.mrb[38].mxu0  ;;  %v1572_v45 = vrot.slane %v1560_v39, 4 }
 0x892   :  { %v1577_v1 = vadd.f32 %v1569_v37, %v5312_v7  ;;  %v1522_v48 = vpop.f32.mrb[35].mxu1  ;;  %v1563_v51 = vpop.f32.mrb[39].mxu0  ;;  %v1579_v35 = vadd.f32 %v1571_v10, %v5327_v9 }
 0x893   :  { %v1578_v49 = vadd.f32 %v1570_v46, %v5316_v8  ;;  %v1580_v13 = vadd.f32 %v1572_v45, %v5322_v42  ;;  %v1601_v48 = vrot.slane %v5407_v59, 6 }
 0x894   :  { %v1581_v2 = vsub.f32 0.0, %v1577_v1 }
 0x895   :  { %v1587_v61 = vsub.f32 0.0, %v1578_v49  ;;  %v1594_v47 = vsub.f32 0.0, %v1580_v13  ;;  %v1859_v13 = vsel %vm224_vm6, %v5334_v0, %v5410_v54  ;;  %v4139_v0 = vld [vmem:[%s6605_s3 + $0x104] ss:$16 sps:$4 sm:$0xff]  }
 0x896   :  { %v1582_v12 = vmul.f32 1.442695, %v1581_v2 }
 0x897   :  { %v1588_v50 = vmul.f32 1.442695, %v1587_v61  ;;  %v1595_v62 = vmul.f32 1.442695, %v1594_v47 }
 0x898   :  { %4353 = vpow2.f32 %v1582_v12 }
 0x899   :  { %4355 = vpow2.f32 %v1588_v50 }
 0x89a   :  { %4357 = vpow2.f32 %v1595_v62 }
 0x89b   :  { %4359 = vtanh.f32 %v1579_v35 }
 0x8a2   :  { %v4354_v38 = vpop.eup %4353 }
 0x8a3   :  { %v4356_v37 = vpop.eup %4355  ;;  %v1584_v40 = vadd.f32 1.0, %v4354_v38 }
 0x8a4   :  { %v1590_v46 = vadd.f32 1.0, %v4356_v37  ;;  %v4358_v39 = vpop.eup %4357 }
 0x8a5   :  { %4361 = vrcp.f32 %v1584_v40  ;;  %v4360_v55 = vpop.eup %4359  ;;  %v1597_v45 = vadd.f32 1.0, %v4358_v39  ;;  %v4137_v39 = vld [vmem:[%s6605_s3 + $0x100] ss:$16 sps:$4 sm:$0xff]  }
 0x8a6   :  { %4363 = vrcp.f32 %v1590_v46 }
 0x8a7   :  { %4365 = vrcp.f32 %v1597_v45  ;;  %v4143_v45 = vld [vmem:[%s6605_s3 + $0x120] ss:$16 sps:$4 sm:$0xff]  }
 0x8af   :  { %v4362_v1 = vpop.eup %4361 }
 0x8b0   :  { %v4364_v51 = vpop.eup %4363  ;;  %v1604_v49 = vmul.f32 %v4362_v1, %v4360_v55  ;;  %v4140_v55 = vld [vmem:[%s6605_s3 + $0x108] ss:$16 sps:$4 sm:$0xff]  }
 0x8b1   :  { %v1603_v36 = vmul.f32 %v4364_v51, %v1601_v48  ;;  %v4366_v61 = vpop.eup %4365  ;;  %v4145_v51 = vld [vmem:[%s6605_s3 + $0x124] ss:$16 sps:$4 sm:$0xff]  }
 0x8b3   :  { %v5583_v2 = vadd.f32 %v1604_v49, %v1603_v36  ;;  %v4148_v49 = vld [vmem:[%s6605_s3 + $0x12c] ss:$16 sps:$4 sm:$0xff]   ;;  %v4151_v36 = vld [vmem:[%s6605_s3 + $0x144] ss:$16 sps:$4 sm:$0xff]  }
 0x8b5   :  { %4367 = vtanh.f32 %v5583_v2 }
 0x8bf   :  { %v4368_v12 = vpop.eup %4367 }
 0x8c0   :  { %v1607_v50 = vmul.f32 %v4368_v12, %v4366_v61  ;;  %v4149_v61 = vld [vmem:[%s6605_s3 + $0x140] ss:$16 sps:$4 sm:$0xff]   ;;  %v4152_v12 = vld [vmem:[%s6605_s3 + $0x148] ss:$16 sps:$4 sm:$0xff]  }
 0x8c2   :  { %v1608_v47 = vpack.c.bf16 %v1607_v50, %v1607_v50  ;;  %v5590_v10 = vsel %vm1855_vm7, %v1859_v13, %v1607_v50  ;;  %v4157_v50 = vld [vmem:[%s6605_s3 + $0x164] ss:$16 sps:$4 sm:$0xff]   ;;  %v4160_v13 = vld [vmem:[%s6605_s3 + $0x16c] ss:$16 sps:$4 sm:$0xff]  }
 0x8c4   :  { %v1610_v59 = vrot.slane %v1608_v47, 2  ;;  %v4155_v47 = vld [vmem:[%s6605_s3 + $0x160] ss:$16 sps:$4 sm:$0xff]  }
 0x8c6   :  { %1645 = vmatmul.mubr.bf16.vlgmr.msra.gmra.mrb[36].mxu1 %v1610_v59  ;;  %1686 = vmatmul.mubr.bf16.vlgmr.msra.gmra.mrb[40].mxu0 %v1610_v59  ;;  %v4163_v59 = vld [vmem:[%s6605_s3 + $0x184] ss:$16 sps:$4 sm:$0xff]  }
 0x8c7   :  { %1742 = vmatpush1.bf16.msra.mxu1 %v5341_v5  ;;  %1783 = vmatpush1.bf16.msra.mxu0 %v5347_v18  ;;  %v4142_v5 = vld [vmem:[%s6605_s3 + $0x10c] ss:$16 sps:$4 sm:$0xff]  }
 0x8c8   :  { %1743 = vmatprep.subr.bf16.mxu1 %v5353_v44  ;;  %1784 = vmatprep.subr.bf16.mxu0 %v5359_v32 }
 0x8c9   :  { %1773 = vmatprep.mubr.bf16.mxu1 %v6632_v43  ;;  %1814 = vmatprep.mubr.bf16.mxu0 %v6632_v43 }
 0x8cb   :  { %1744 = vmatpush1.bf16.msra.mxu1 %v5423_v60  ;;  %1785 = vmatpush1.bf16.msra.mxu0 %v5429_v41 }
 0x8cc   :  { %1745 = vmatprep.subr.bf16.mxu1 %v5435_v4  ;;  %1786 = vmatprep.subr.bf16.mxu0 %v5441_v63 }
 0x8cf   :  { %1746 = vmatpush1.bf16.msra.mxu1 %v5447_v11  ;;  %1787 = vmatpush1.bf16.msra.mxu0 %v5453_v57 }
 0x8d0   :  { %1747 = vmatprep.subr.bf16.mxu1 %v5459_v58  ;;  %1788 = vmatprep.subr.bf16.mxu0 %v5465_v14 }
 0x8d3   :  { %1748 = vmatpush1.bf16.msra.mxu1 %v5471_v15  ;;  %1789 = vmatpush1.bf16.msra.mxu0 %v5477_v16 }
 0x8d4   :  { %1749 = vmatprep.subr.bf16.mxu1 %v5483_v17  ;;  %1790 = vmatprep.subr.bf16.mxu0 %v5489_v19 }
 0x8d7   :  { %1750 = vmatpush1.bf16.msra.mxu1 %v5495_v20  ;;  %1791 = vmatpush1.bf16.msra.mxu0 %v5501_v21 }
 0x8d8   :  { %1751 = vmatprep.subr.bf16.mxu1 %v5507_v22  ;;  %1792 = vmatprep.subr.bf16.mxu0 %v5513_v23 }
 0x8db   :  { %1752 = vmatpush1.bf16.msra.mxu1 %v5519_v24  ;;  %1793 = vmatpush1.bf16.msra.mxu0 %v5525_v25 }
 0x8dc   :  { %1753 = vmatprep.subr.bf16.mxu1 %v5531_v26  ;;  %1794 = vmatprep.subr.bf16.mxu0 %v5537_v27 }
 0x8df   :  { %1754 = vmatpush1.bf16.msra.mxu1 %v5543_v28  ;;  %1795 = vmatpush1.bf16.msra.mxu0 %v5549_v29 }
 0x8e0   :  { %1755 = vmatprep.subr.bf16.mxu1 %v5555_v30  ;;  %1796 = vmatprep.subr.bf16.mxu0 %v5561_v31 }
 0x8e3   :  { %1756 = vmatpush1.bf16.msra.mxu1 %v5567_v33  ;;  %1797 = vmatpush1.bf16.msra.mxu0 %v5573_v34 }
 0x8e4   :  { %2080 = vmatprep.subr.bf16.mxu1 %v4139_v0  ;;  %2131 = vmatprep.subr.bf16.mxu0 %v4142_v5  ;;  %v4166_v0 = vld [vmem:[%s6605_s3 + $0x18c] ss:$16 sps:$4 sm:$0xff]   ;;  %v4161_v5 = vld [vmem:[%s6605_s3 + $0x180] ss:$16 sps:$4 sm:$0xff]  }
 0x999   :  { %v1646_v18 = vpop.f32.mrb[36].mxu1  ;;  %v1687_v44 = vpop.f32.mrb[40].mxu0 }
 0x99a   :  { %v1698_v32 = vrot.slane %v1646_v18, 2  ;;  %v1648_v54 = vpop.f32.mrb[37].mxu1  ;;  %v1689_v60 = vpop.f32.mrb[41].mxu0  ;;  %v1700_v23 = vrot.slane %v1687_v44, 2  ;;  %v4164_v18 = vld [vmem:[%s6605_s3 + $0x188] ss:$16 sps:$4 sm:$0xff]  }
 0x99b   :  { %v1699_v41 = vrot.slane %v1648_v54, 2  ;;  %v1650_v4 = vpop.f32.mrb[38].mxu1  ;;  %v1691_v63 = vpop.f32.mrb[42].mxu0  ;;  %v1701_v15 = vrot.slane %v1689_v60, 2  ;;  %v4169_v44 = vld [vmem:[%s6605_s3 + $0x1a4] ss:$16 sps:$4 sm:$0xff]  }
 0x99c   :  { %v1706_v11 = vadd.f32 %v1698_v32, %v5312_v7  ;;  %v1651_v57 = vpop.f32.mrb[39].mxu1  ;;  %v1692_v58 = vpop.f32.mrb[43].mxu0  ;;  %v1708_v25 = vadd.f32 %v1700_v23, %v5327_v9  ;;  %v4172_v32 = vld [vmem:[%s6605_s3 + $0x1ac] ss:$16 sps:$4 sm:$0xff]   ;;  %v4167_v54 = vld [vmem:[%s6605_s3 + $0x1a0] ss:$16 sps:$4 sm:$0xff]  }
 0x99d   :  { %v1707_v14 = vadd.f32 %v1699_v41, %v5316_v8  ;;  %v1709_v21 = vadd.f32 %v1701_v15, %v5322_v42  ;;  %v1730_v42 = vrot.slane %v5583_v2, 6  ;;  %v4154_v2 = vld [vmem:[%s6605_s3 + $0x14c] ss:$16 sps:$4 sm:$0xff]   ;;  %v4170_v60 = vld [vmem:[%s6605_s3 + $0x1a8] ss:$16 sps:$4 sm:$0xff]  }
 0x99e   :  { %v1710_v16 = vsub.f32 0.0, %v1706_v11  ;;  %v4175_v41 = vld [vmem:[%s6605_s3 + $0x1c4] ss:$16 sps:$4 sm:$0xff]   ;;  %v4178_v4 = vld [vmem:[%s6605_s3 + $0x1cc] ss:$16 sps:$4 sm:$0xff]  }
 0x99f   :  { %v1716_v17 = vsub.f32 0.0, %v1707_v14  ;;  %v1723_v22 = vsub.f32 0.0, %v1709_v21  ;;  %v4173_v63 = vld [vmem:[%s6605_s3 + $0x1c0] ss:$16 sps:$4 sm:$0xff]   ;;  %v4176_v11 = vld [vmem:[%s6605_s3 + $0x1c8] ss:$16 sps:$4 sm:$0xff]  }
 0x9a0   :  { %v1711_v19 = vmul.f32 1.442695, %v1710_v16  ;;  %v4181_v57 = vld [vmem:[%s6605_s3 + $0x1e4] ss:$16 sps:$4 sm:$0xff]   ;;  %v4184_v58 = vld [vmem:[%s6605_s3 + $0x1ec] ss:$16 sps:$4 sm:$0xff]  }
 0x9a1   :  { %v1717_v20 = vmul.f32 1.442695, %v1716_v17  ;;  %v1724_v24 = vmul.f32 1.442695, %v1723_v22  ;;  %v4179_v14 = vld [vmem:[%s6605_s3 + $0x1e0] ss:$16 sps:$4 sm:$0xff]  }
 0x9a2   :  { %4369 = vpow2.f32 %v1711_v19  ;;  %v4182_v15 = vld [vmem:[%s6605_s3 + $0x1e8] ss:$16 sps:$4 sm:$0xff]   ;;  %v5742_v16 = vld [vmem:[%s6606_s4 + $0x104] ss:$16 sps:$4 sm:$0xff]   ;;  %v5747_v17 = vld [vmem:[%s6606_s4 + $0x10c] ss:$16 sps:$4 sm:$0xff]  }
 0x9a3   :  { %4371 = vpow2.f32 %v1717_v20  ;;  %v5752_v19 = vld [vmem:[%s6606_s4 + $0x100] ss:$16 sps:$4 sm:$0xff]   ;;  %v5757_v20 = vld [vmem:[%s6606_s4 + $0x108] ss:$16 sps:$4 sm:$0xff]   ;;  %v5766_v21 = vld [vmem:[%s6606_s4 + $0x124] ss:$16 sps:$4 sm:$0xff]  }
 0x9a4   :  { %4373 = vpow2.f32 %v1724_v24  ;;  %v5771_v22 = vld [vmem:[%s6606_s4 + $0x12c] ss:$16 sps:$4 sm:$0xff]   ;;  %v5776_v23 = vld [vmem:[%s6606_s4 + $0x120] ss:$16 sps:$4 sm:$0xff]   ;;  %v5781_v24 = vld [vmem:[%s6606_s4 + $0x128] ss:$16 sps:$4 sm:$0xff]  }
 0x9a5   :  { %4375 = vtanh.f32 %v1708_v25  ;;  %v5790_v25 = vld [vmem:[%s6606_s4 + $0x144] ss:$16 sps:$4 sm:$0xff]  }
 0x9ac   :  { %v4370_v26 = vpop.eup %4369 }
 0x9ad   :  { %v4372_v7 = vpop.eup %4371  ;;  %v1713_v27 = vadd.f32 1.0, %v4370_v26  ;;  %v5795_v26 = vld [vmem:[%s6606_s4 + $0x14c] ss:$16 sps:$4 sm:$0xff]  }
 0x9ae   :  { %v1719_v8 = vadd.f32 1.0, %v4372_v7  ;;  %v4374_v28 = vpop.eup %4373  ;;  %v5800_v7 = vld [vmem:[%s6606_s4 + $0x140] ss:$16 sps:$4 sm:$0xff]  }
 0x9af   :  { %4377 = vrcp.f32 %v1713_v27  ;;  %v4376_v29 = vpop.eup %4375  ;;  %v1726_v34 = vadd.f32 1.0, %v4374_v28  ;;  %v5805_v27 = vld [vmem:[%s6606_s4 + $0x148] ss:$16 sps:$4 sm:$0xff]   ;;  %v5817_v28 = vld [vmem:[%s6606_s4 + $0x16c] ss:$16 sps:$4 sm:$0xff]  }
 0x9b0   :  { %4379 = vrcp.f32 %v1719_v8  ;;  %v5812_v8 = vld [vmem:[%s6606_s4 + $0x164] ss:$16 sps:$4 sm:$0xff]  }
 0x9b1   :  { %4381 = vrcp.f32 %v1726_v34  ;;  %v5853_v34 = vld [vmem:[%s6606_s4 + $0x188] ss:$16 sps:$4 sm:$0xff]  }
 0x9b9   :  { %v4378_v30 = vpop.eup %4377 }
 0x9ba   :  { %v4380_v31 = vpop.eup %4379  ;;  %v1733_v33 = vmul.f32 %v4378_v30, %v4376_v29  ;;  %v5824_v29 = vld [vmem:[%s6606_s4 + $0x160] ss:$16 sps:$4 sm:$0xff]   ;;  %v5829_v30 = vld [vmem:[%s6606_s4 + $0x168] ss:$16 sps:$4 sm:$0xff]  }
 0x9bb   :  { %v1732_v62 = vmul.f32 %v4380_v31, %v1730_v42  ;;  %v4382_v9 = vpop.eup %4381  ;;  %v5836_v42 = vld [vmem:[%s6606_s4 + $0x184] ss:$16 sps:$4 sm:$0xff]   ;;  %v5841_v31 = vld [vmem:[%s6606_s4 + $0x18c] ss:$16 sps:$4 sm:$0xff]  }
 0x9bd   :  { %v5635_v35 = vadd.f32 %v1733_v33, %v1732_v62  ;;  %v5848_v33 = vld [vmem:[%s6606_s4 + $0x180] ss:$16 sps:$4 sm:$0xff]   ;;  %v5860_v62 = vld [vmem:[%s6606_s4 + $0x1a4] ss:$16 sps:$4 sm:$0xff]  }
 0x9bf   :  { %4383 = vtanh.f32 %v5635_v35 }
 0x9c9   :  { %v4384_v38 = vpop.eup %4383 }
 0x9ca   :  { %v1736_v37 = vmul.f32 %v4384_v38, %v4382_v9  ;;  %v5865_v9 = vld [vmem:[%s6606_s4 + $0x1ac] ss:$16 sps:$4 sm:$0xff]   ;;  %v5872_v38 = vld [vmem:[%s6606_s4 + $0x1a0] ss:$16 sps:$4 sm:$0xff]  }
 0x9cc   :  { %v1737_v40 = vpack.c.bf16 %v1736_v37, %v1736_v37  ;;  %v1861_v46 = vsel %vm1857_vm8, %v5590_v10, %v1736_v37  ;;  %v4158_v10 = vld [vmem:[%s6605_s3 + $0x168] ss:$16 sps:$4 sm:$0xff]  }
 0x9cd   :  { %v5647_v1 = vpack.c.bf16 %v1861_v46, %v5274_v3  ;;  %v4146_v3 = vld [vmem:[%s6605_s3 + $0x128] ss:$16 sps:$4 sm:$0xff]   ;;  %v5891_v46 = vld [vmem:[%s6606_s4 + $0x1cc] ss:$16 sps:$4 sm:$0xff]  }
 0x9ce   :  { %v1739_v48 = vrot.slane %v1737_v40, 3  ;;  %v5877_v37 = vld [vmem:[%s6606_s4 + $0x1a8] ss:$16 sps:$4 sm:$0xff]   ;;  %v5886_v40 = vld [vmem:[%s6606_s4 + $0x1c4] ss:$16 sps:$4 sm:$0xff]  }
 0x9d0   :  { %1774 = vmatmul.mubr.bf16.vlgmr.msra.gmra.mrb[4].mxu1 %v1739_v48  ;;  %1815 = vmatmul.mubr.bf16.vlgmr.msra.gmra.mrb[8].mxu0 %v1739_v48  ;;  %v5913_v48 = vld [vmem:[%s6606_s4 + $0x1ec] ss:$16 sps:$4 sm:$0xff]  }
 0x9d1   :  { %2081 = vmatpush1.bf16.msra.mxu1 %v4137_v39  ;;  %2132 = vmatpush1.bf16.msra.mxu0 %v4140_v55  ;;  %v5896_v39 = vld [vmem:[%s6606_s4 + $0x1c0] ss:$16 sps:$4 sm:$0xff]   ;;  %v5901_v55 = vld [vmem:[%s6606_s4 + $0x1c8] ss:$16 sps:$4 sm:$0xff]  }
 0x9d2   :  { %2082 = vmatprep.subr.bf16.mxu1 %v4145_v51  ;;  %2133 = vmatprep.subr.bf16.mxu0 %v4148_v49  ;;  %v5920_v51 = vld [vmem:[%s6606_s4 + $0x1e0] ss:$16 sps:$4 sm:$0xff]   ;;  %v5925_v49 = vld [vmem:[%s6606_s4 + $0x1e8] ss:$16 sps:$4 sm:$0xff]  }
 0x9d3   :  { %2112 = vmatprep.mubr.bf16.mxu1 %v6632_v43  ;;  %2163 = vmatprep.mubr.bf16.mxu0 %v6632_v43 }
 0x9d5   :  { %2083 = vmatpush1.bf16.msra.mxu1 %v4143_v45  ;;  %2134 = vmatpush1.bf16.msra.mxu0 %v4146_v3 }
 0x9d6   :  { %2084 = vmatprep.subr.bf16.mxu1 %v4151_v36  ;;  %2135 = vmatprep.subr.bf16.mxu0 %v4154_v2 }
 0x9d9   :  { %2085 = vmatpush1.bf16.msra.mxu1 %v4149_v61  ;;  %2136 = vmatpush1.bf16.msra.mxu0 %v4152_v12 }
 0x9da   :  { %2086 = vmatprep.subr.bf16.mxu1 %v4157_v50  ;;  %2137 = vmatprep.subr.bf16.mxu0 %v4160_v13 }
 0x9dd   :  { %2087 = vmatpush1.bf16.msra.mxu1 %v4155_v47  ;;  %2138 = vmatpush1.bf16.msra.mxu0 %v4158_v10 }
 0x9de   :  { %2088 = vmatprep.subr.bf16.mxu1 %v4163_v59  ;;  %2139 = vmatprep.subr.bf16.mxu0 %v4166_v0 }
 0x9e1   :  { %2089 = vmatpush1.bf16.msra.mxu1 %v4161_v5  ;;  %2140 = vmatpush1.bf16.msra.mxu0 %v4164_v18 }
 0x9e2   :  { %2090 = vmatprep.subr.bf16.mxu1 %v4169_v44  ;;  %2141 = vmatprep.subr.bf16.mxu0 %v4172_v32 }
 0x9e5   :  { %2091 = vmatpush1.bf16.msra.mxu1 %v4167_v54  ;;  %2142 = vmatpush1.bf16.msra.mxu0 %v4170_v60 }
 0x9e6   :  { %2092 = vmatprep.subr.bf16.mxu1 %v4175_v41  ;;  %2143 = vmatprep.subr.bf16.mxu0 %v4178_v4 }
 0x9e9   :  { %2093 = vmatpush1.bf16.msra.mxu1 %v4173_v63  ;;  %2144 = vmatpush1.bf16.msra.mxu0 %v4176_v11 }
 0x9ea   :  { %2094 = vmatprep.subr.bf16.mxu1 %v4181_v57  ;;  %2145 = vmatprep.subr.bf16.mxu0 %v4184_v58  ;;  %v1847_v58 = vrot.slane %v5635_v35, 6 }
 0x9ed   :  { %2095 = vmatpush1.bf16.msra.mxu1 %v4179_v14  ;;  %2146 = vmatpush1.bf16.msra.mxu0 %v4182_v15 }
 0x9ee   :  { %2375 = vmatprep.subr.bf16.mxu1 %v5742_v16  ;;  %2416 = vmatprep.subr.bf16.mxu0 %v5747_v17 }
 0x9f0   :  { %2113 = vmatmul.mubr.bf16.vlgmr.msra.gmra.mrb[40].mxu1 %v5647_v1  ;;  %2164 = vmatmul.mubr.bf16.vlgmr.msra.gmra.mrb[44].mxu0 %v5647_v1  ;;  %v5906_v1 = vld [vmem:[%s6606_s4 + $0x1e4] ss:$16 sps:$4 sm:$0xff]  }
 0x9f1   :  { %2122 = vmatprep.mubr.bf16.mxu1 %v6632_v43  ;;  %2173 = vmatprep.mubr.bf16.mxu0 %v6632_v43 }
 0x9f2   :  { %2376 = vmatpush1.bf16.msra.mxu1 %v5752_v19  ;;  %2417 = vmatpush1.bf16.msra.mxu0 %v5757_v20 }
 0x9f3   :  { %2377 = vmatprep.subr.bf16.mxu1 %v5766_v21  ;;  %2418 = vmatprep.subr.bf16.mxu0 %v5771_v22 }
 0x9f6   :  { %2378 = vmatpush1.bf16.msra.mxu1 %v5776_v23  ;;  %2419 = vmatpush1.bf16.msra.mxu0 %v5781_v24 }
 0x9f7   :  { %2379 = vmatprep.subr.bf16.mxu1 %v5790_v25  ;;  %2420 = vmatprep.subr.bf16.mxu0 %v5795_v26 }
 0x9fa   :  { %2380 = vmatpush1.bf16.msra.mxu1 %v5800_v7  ;;  %2421 = vmatpush1.bf16.msra.mxu0 %v5805_v27 }
 0x9fb   :  { %2381 = vmatprep.subr.bf16.mxu1 %v5812_v8  ;;  %2422 = vmatprep.subr.bf16.mxu0 %v5817_v28 }
 0x9fe   :  { %2382 = vmatpush1.bf16.msra.mxu1 %v5824_v29  ;;  %2423 = vmatpush1.bf16.msra.mxu0 %v5829_v30 }
 0x9ff   :  { %2383 = vmatprep.subr.bf16.mxu1 %v5836_v42  ;;  %2424 = vmatprep.subr.bf16.mxu0 %v5841_v31 }
 0xa02   :  { %2384 = vmatpush1.bf16.msra.mxu1 %v5848_v33  ;;  %2425 = vmatpush1.bf16.msra.mxu0 %v5853_v34 }
 0xa03   :  { %2385 = vmatprep.subr.bf16.mxu1 %v5860_v62  ;;  %2426 = vmatprep.subr.bf16.mxu0 %v5865_v9 }
 0xa06   :  { %2386 = vmatpush1.bf16.msra.mxu1 %v5872_v38  ;;  %2427 = vmatpush1.bf16.msra.mxu0 %v5877_v37 }
 0xa07   :  { %2387 = vmatprep.subr.bf16.mxu1 %v5886_v40  ;;  %2428 = vmatprep.subr.bf16.mxu0 %v5891_v46 }
 0xa0a   :  { %2388 = vmatpush1.bf16.msra.mxu1 %v5896_v39  ;;  %2429 = vmatpush1.bf16.msra.mxu0 %v5901_v55 }
 0xa0b   :  { %2389 = vmatprep.subr.bf16.mxu1 %v5906_v1  ;;  %2430 = vmatprep.subr.bf16.mxu0 %v5913_v48 }
 0xa0e   :  { %2390 = vmatpush1.bf16.msra.mxu1 %v5920_v51  ;;  %2431 = vmatpush1.bf16.msra.mxu0 %v5925_v49 }
 0xa0f   :  { %2486 = vmatprep.subr.bf16.mxu1 %v5742_v16  ;;  %2527 = vmatprep.subr.bf16.mxu0 %v5747_v17 }
 0xaa3   :  { %v1775_v45 = vpop.f32.mrb[4].mxu1  ;;  %v1816_v3 = vpop.f32.mrb[8].mxu0 }
 0xaa4   :  { %v3994_v36 = vadd.f32 %v1775_v45, %v5098_v52  ;;  %v1777_v2 = vpop.f32.mrb[5].mxu1  ;;  %v1818_v61 = vpop.f32.mrb[9].mxu0  ;;  %v3996_v52 = vadd.f32 %v1816_v3, %v6634_v6 }
 0xaa5   :  { %v3995_v12 = vadd.f32 %v1777_v2, %v5101_v53  ;;  %v1779_v50 = vpop.f32.mrb[6].mxu1  ;;  %v1820_v13 = vpop.f32.mrb[10].mxu0  ;;  %v3997_v44 = vadd.f32 %v1818_v61, %v5112_v56 }
 0xaa6   :  { %v1827_v47 = vsub.f32 0.0, %v3994_v36  ;;  %v1780_v10 = vpop.f32.mrb[7].mxu1  ;;  %v1821_v59 = vpop.f32.mrb[11].mxu0 }
 0xaa7   :  { %v1833_v0 = vsub.f32 0.0, %v3995_v12  ;;  %v1840_v32 = vsub.f32 0.0, %v3997_v44 }
 0xaa8   :  { %v1828_v5 = vmul.f32 1.442695, %v1827_v47 }
 0xaa9   :  { %v1834_v18 = vmul.f32 1.442695, %v1833_v0  ;;  %v1841_v54 = vmul.f32 1.442695, %v1840_v32  ;;  %v6639_v32 = vld [vmem:[#allocation9_spill] sm:$0xff] }
 0xaaa   :  { %4385 = vpow2.f32 %v1828_v5  ;;  %v3854_v5 = vld [vmem:[%s6607_s5 + $0x4] sm:$0xf] }
 0xaab   :  { %4387 = vpow2.f32 %v1834_v18  ;;  %v6638_v18 = vld [vmem:[#allocation8_spill] sm:$0xff] }
 0xaac   :  { %4389 = vpow2.f32 %v1841_v54  ;;  %v5992_v44 = vrot.slane %v3854_v5, %v6638_v18  ;;  %v5995_v54 = vrot.slane %v3854_v5, %v6639_v32 }
 0xaad   :  { %4391 = vtanh.f32 %v3996_v52 }
 0xab4   :  { %v4386_v60 = vpop.eup %4385 }
 0xab5   :  { %v4388_v41 = vpop.eup %4387  ;;  %v1830_v4 = vadd.f32 1.0, %v4386_v60 }
 0xab6   :  { %v1836_v53 = vadd.f32 1.0, %v4388_v41  ;;  %v4390_v63 = vpop.eup %4389  ;;  %v6640_v41 = vld [vmem:[#allocation7_spill] sm:$0xff] }
 0xab7   :  { %4393 = vrcp.f32 %v1830_v4  ;;  %v4392_v11 = vpop.eup %4391  ;;  %v1843_v15 = vadd.f32 1.0, %v4390_v63  ;;  %v6641_v4 = vsub.s32 3, %v6640_v41 }
 0xab8   :  { %4395 = vrcp.f32 %v1836_v53 }
 0xab9   :  { %4397 = vrcp.f32 %v1843_v15  ;;  %v6005_v53 = vrot.slane %v3854_v5, %v6641_v4 }
 0xac1   :  { %v4394_v57 = vpop.eup %4393 }
 0xac2   :  { %v4396_v56 = vpop.eup %4395  ;;  %v1850_v14 = vmul.f32 %v4394_v57, %v4392_v11 }
 0xac3   :  { %v1849_v45 = vmul.f32 %v4396_v56, %v1847_v58  ;;  %v2114_v36 = vpop.f32.mrb[40].mxu1  ;;  %v5938_v2 = vpop.f32.mrb[44].mxu0 }
 0xac4   :  { %v2116_v6 = vpop.f32.mrb[41].mxu1  ;;  %v5940_v3 = vpop.f32.mrb[45].mxu0  ;;  %v5998_v52 = vadd.f32 %v2114_v36, %v5992_v44 }
 0xac5   :  { %v5942_v61 = vpop.f32.mrb[42].mxu1  ;;  %v5944_v12 = vpop.f32.mrb[46].mxu0  ;;  %v1851_v50 = vadd.f32 %v1850_v14, %v1849_v45  ;;  %v6001_v60 = vadd.f32 %v2116_v6, %v5995_v54  ;;  %v6011_v6 = vadd.f32 %v5940_v3, %v6005_v53 }
 0xac6   :  { %6636 = vst [vmem:[#allocation6_spill] sm:$0xff] %v5944_v12  ;;  %v5946_v13 = vpop.f32.mrb[43].mxu1  ;;  %v5948_v47 = vpop.f32.mrb[47].mxu0 }
 0xac7   :  { %6637 = vst [vmem:[#allocation10_spill] sm:$0xff] %v5948_v47  ;;  %4399 = vtanh.f32 %v1851_v50  ;;  %v4398_v35 = vpop.eup %4397 }
 0xad1   :  { %v4400_v10 = vpop.eup %4399 }
 0xad2   :  { %v1853_v59 = vmul.f32 %v4400_v10, %v4398_v35 }
 0xad4   :  { %v1863_v0 = vpack.c.bf16 %v1853_v59, %v1853_v59 }
 0xad6   :  { %2123 = vmatmul.mubr.bf16.gmra.mrb[44].mxu1 %v1863_v0  ;;  %2174 = vmatmul.mubr.bf16.gmra.mrb[48].mxu0 %v1863_v0 }
 0xad7   :  { %2407 = vmatprep.mubr.bf16.mxu1 %v6632_v43  ;;  %2448 = vmatprep.mubr.bf16.mxu0 %v6632_v43 }
 0xade   :  { %2408 = vmatmul.mubr.bf16.vlgmr.msra.gmra.mrb[48].mxu1 %v6632_v43  ;;  %2449 = vmatmul.mubr.bf16.vlgmr.msra.gmra.mrb[52].mxu0 %v6632_v43 }
 0xadf   :  { %2487 = vmatpush1.bf16.msra.mxu1 %v5752_v19  ;;  %2528 = vmatpush1.bf16.msra.mxu0 %v5757_v20 }
 0xae0   :  { %2488 = vmatprep.subr.bf16.mxu1 %v5766_v21  ;;  %2529 = vmatprep.subr.bf16.mxu0 %v5771_v22 }
 0xae1   :  { %2518 = vmatprep.mubr.bf16.mxu1 %v6632_v43  ;;  %2559 = vmatprep.mubr.bf16.mxu0 %v6632_v43 }
 0xae3   :  { %2489 = vmatpush1.bf16.msra.mxu1 %v5776_v23  ;;  %2530 = vmatpush1.bf16.msra.mxu0 %v5781_v24 }
 0xae4   :  { %2490 = vmatprep.subr.bf16.mxu1 %v5790_v25  ;;  %2531 = vmatprep.subr.bf16.mxu0 %v5795_v26 }
 0xae7   :  { %2491 = vmatpush1.bf16.msra.mxu1 %v5800_v7  ;;  %2532 = vmatpush1.bf16.msra.mxu0 %v5805_v27 }
 0xae8   :  { %2492 = vmatprep.subr.bf16.mxu1 %v5812_v8  ;;  %2533 = vmatprep.subr.bf16.mxu0 %v5817_v28 }
 0xaeb   :  { %2493 = vmatpush1.bf16.msra.mxu1 %v5824_v29  ;;  %2534 = vmatpush1.bf16.msra.mxu0 %v5829_v30 }
 0xaec   :  { %2494 = vmatprep.subr.bf16.mxu1 %v5836_v42  ;;  %2535 = vmatprep.subr.bf16.mxu0 %v5841_v31 }
 0xaef   :  { %2495 = vmatpush1.bf16.msra.mxu1 %v5848_v33  ;;  %2536 = vmatpush1.bf16.msra.mxu0 %v5853_v34 }
 0xaf0   :  { %2496 = vmatprep.subr.bf16.mxu1 %v5860_v62  ;;  %2537 = vmatprep.subr.bf16.mxu0 %v5865_v9 }
 0xaf3   :  { %2497 = vmatpush1.bf16.msra.mxu1 %v5872_v38  ;;  %2538 = vmatpush1.bf16.msra.mxu0 %v5877_v37 }
 0xaf4   :  { %2498 = vmatprep.subr.bf16.mxu1 %v5886_v40  ;;  %2539 = vmatprep.subr.bf16.mxu0 %v5891_v46 }
 0xaf7   :  { %2499 = vmatpush1.bf16.msra.mxu1 %v5896_v39  ;;  %2540 = vmatpush1.bf16.msra.mxu0 %v5901_v55 }
 0xaf8   :  { %2500 = vmatprep.subr.bf16.mxu1 %v5906_v1  ;;  %2541 = vmatprep.subr.bf16.mxu0 %v5913_v48 }
 0xafb   :  { %2501 = vmatpush1.bf16.msra.mxu1 %v5920_v51  ;;  %2542 = vmatpush1.bf16.msra.mxu0 %v5925_v49 }
 0xafc   :  { %2615 = vmatprep.subr.bf16.mxu1 %v5742_v16  ;;  %2656 = vmatprep.subr.bf16.mxu0 %v5747_v17 }
 0xbb1   :  { %v2409_v63 = vpop.f32.mrb[48].mxu1  ;;  %v2450_v11 = vpop.f32.mrb[52].mxu0 }
 0xbb2   :  { %v2457_v57 = vadd.f32 %v2409_v63, %v5998_v52  ;;  %v2411_v58 = vpop.f32.mrb[49].mxu1  ;;  %v2452_v56 = vpop.f32.mrb[53].mxu0  ;;  %v6642_v63 = vsub.s32 2, %v6640_v41 }
 0xbb3   :  { %v2458_v14 = vadd.f32 %v2411_v58, %v6001_v60  ;;  %v2413_v15 = vpop.f32.mrb[50].mxu1  ;;  %v2454_v45 = vpop.f32.mrb[54].mxu0  ;;  %v2460_v4 = vadd.f32 %v2452_v56, %v6011_v6 }
 0xbb4   :  { %v2461_v50 = vsub.f32 0.0, %v2457_v57  ;;  %v2414_v36 = vpop.f32.mrb[51].mxu1  ;;  %v2455_v35 = vpop.f32.mrb[55].mxu0  ;;  %v6016_v32 = vrot.slane %v3854_v5, %v6642_v63 }
 0xbb5   :  { %v2467_v10 = vsub.f32 0.0, %v2458_v14  ;;  %v2474_v58 = vsub.f32 0.0, %v2460_v4 }
 0xbb6   :  { %v2462_v59 = vmul.f32 1.442695, %v2461_v50  ;;  %6643 = vst [vmem:[#allocation5_spill] sm:$0xff] %v6016_v32  ;;  %v6020_v57 = vadd.f32 %v5938_v2, %v6016_v32 }
 0xbb7   :  { %v2468_v0 = vmul.f32 1.442695, %v2467_v10  ;;  %v2475_v15 = vmul.f32 1.442695, %v2474_v58 }
 0xbb8   :  { %4401 = vpow2.f32 %v2462_v59  ;;  %v2459_v3 = vadd.f32 %v2450_v11, %v6020_v57 }
 0xbb9   :  { %4403 = vpow2.f32 %v2468_v0 }
 0xbba   :  { %4405 = vpow2.f32 %v2475_v15 }
 0xbbb   :  { %4407 = vtanh.f32 %v2459_v3 }
 0xbc2   :  { %v4402_v45 = vpop.eup %4401 }
 0xbc3   :  { %v4404_v14 = vpop.eup %4403  ;;  %v2464_v50 = vadd.f32 1.0, %v4402_v45 }
 0xbc4   :  { %v2470_v56 = vadd.f32 1.0, %v4404_v14  ;;  %v4406_v36 = vpop.eup %4405 }
 0xbc5   :  { %4409 = vrcp.f32 %v2464_v50  ;;  %v4408_v35 = vpop.eup %4407  ;;  %v2477_v0 = vadd.f32 1.0, %v4406_v36 }
 0xbc6   :  { %4411 = vrcp.f32 %v2470_v56 }
 0xbc7   :  { %4413 = vrcp.f32 %v2477_v0 }
 0xbcf   :  { %v4410_v5 = vpop.eup %4409 }
 0xbd0   :  { %v4412_v10 = vpop.eup %4411  ;;  %v2481_v59 = vmul.f32 %v4410_v5, %v4408_v35 }
 0xbd1   :  { %v2480_v4 = vmul.f32 0.0, %v4412_v10  ;;  %v4414_v11 = vpop.eup %4413 }
 0xbd3   :  { %v6023_v2 = vadd.f32 %v2481_v59, %v2480_v4 }
 0xbd5   :  { %4415 = vtanh.f32 %v6023_v2 }
 0xbdf   :  { %v4416_v63 = vpop.eup %4415 }
 0xbe0   :  { %v6026_v58 = vmul.f32 %v4416_v63, %v4414_v11 }
 0xbe2   :  { %v2485_v15 = vpack.c.bf16 %v6026_v58, %v6026_v58 }
 0xbe4   :  { %2519 = vmatmul.mubr.bf16.vlgmr.msra.gmra.mrb[52].mxu1 %v2485_v15  ;;  %2560 = vmatmul.mubr.bf16.vlgmr.msra.gmra.mrb[56].mxu0 %v2485_v15 }
 0xbe5   :  { %2616 = vmatpush1.bf16.msra.mxu1 %v5752_v19  ;;  %2657 = vmatpush1.bf16.msra.mxu0 %v5757_v20 }
 0xbe6   :  { %2617 = vmatprep.subr.bf16.mxu1 %v5766_v21  ;;  %2658 = vmatprep.subr.bf16.mxu0 %v5771_v22 }
 0xbe7   :  { %2647 = vmatprep.mubr.bf16.mxu1 %v6632_v43  ;;  %2688 = vmatprep.mubr.bf16.mxu0 %v6632_v43 }
 0xbe9   :  { %2618 = vmatpush1.bf16.msra.mxu1 %v5776_v23  ;;  %2659 = vmatpush1.bf16.msra.mxu0 %v5781_v24 }
 0xbea   :  { %2619 = vmatprep.subr.bf16.mxu1 %v5790_v25  ;;  %2660 = vmatprep.subr.bf16.mxu0 %v5795_v26 }
 0xbed   :  { %2620 = vmatpush1.bf16.msra.mxu1 %v5800_v7  ;;  %2661 = vmatpush1.bf16.msra.mxu0 %v5805_v27 }
 0xbee   :  { %2621 = vmatprep.subr.bf16.mxu1 %v5812_v8  ;;  %2662 = vmatprep.subr.bf16.mxu0 %v5817_v28 }
 0xbf1   :  { %2622 = vmatpush1.bf16.msra.mxu1 %v5824_v29  ;;  %2663 = vmatpush1.bf16.msra.mxu0 %v5829_v30 }
 0xbf2   :  { %2623 = vmatprep.subr.bf16.mxu1 %v5836_v42  ;;  %2664 = vmatprep.subr.bf16.mxu0 %v5841_v31 }
 0xbf5   :  { %2624 = vmatpush1.bf16.msra.mxu1 %v5848_v33  ;;  %2665 = vmatpush1.bf16.msra.mxu0 %v5853_v34 }
 0xbf6   :  { %2625 = vmatprep.subr.bf16.mxu1 %v5860_v62  ;;  %2666 = vmatprep.subr.bf16.mxu0 %v5865_v9 }
 0xbf9   :  { %2626 = vmatpush1.bf16.msra.mxu1 %v5872_v38  ;;  %2667 = vmatpush1.bf16.msra.mxu0 %v5877_v37 }
 0xbfa   :  { %2627 = vmatprep.subr.bf16.mxu1 %v5886_v40  ;;  %2668 = vmatprep.subr.bf16.mxu0 %v5891_v46 }
 0xbfd   :  { %2628 = vmatpush1.bf16.msra.mxu1 %v5896_v39  ;;  %2669 = vmatpush1.bf16.msra.mxu0 %v5901_v55 }
 0xbfe   :  { %2629 = vmatprep.subr.bf16.mxu1 %v5906_v1  ;;  %2670 = vmatprep.subr.bf16.mxu0 %v5913_v48 }
 0xc01   :  { %2630 = vmatpush1.bf16.msra.mxu1 %v5920_v51  ;;  %2671 = vmatpush1.bf16.msra.mxu0 %v5925_v49 }
 0xc02   :  { %2744 = vmatprep.subr.bf16.mxu1 %v5742_v16  ;;  %2785 = vmatprep.subr.bf16.mxu0 %v5747_v17 }
 0xcb7   :  { %v2520_v3 = vpop.f32.mrb[52].mxu1  ;;  %v2561_v45 = vpop.f32.mrb[56].mxu0 }
 0xcb8   :  { %v2572_v14 = vrot.slane %v2520_v3, 6  ;;  %v2522_v50 = vpop.f32.mrb[53].mxu1  ;;  %v2563_v56 = vpop.f32.mrb[57].mxu0  ;;  %v2574_v32 = vrot.slane %v2561_v45, 6 }
 0xcb9   :  { %v2573_v36 = vrot.slane %v2522_v50, 6  ;;  %v2524_v35 = vpop.f32.mrb[54].mxu1  ;;  %v2565_v5 = vpop.f32.mrb[58].mxu0  ;;  %v2575_v11 = vrot.slane %v2563_v56, 6 }
 0xcba   :  { %v2580_v10 = vadd.f32 %v2572_v14, %v5998_v52  ;;  %v2525_v59 = vpop.f32.mrb[55].mxu1  ;;  %v2566_v0 = vpop.f32.mrb[59].mxu0  ;;  %v2582_v35 = vadd.f32 %v2574_v32, %v6020_v57 }
 0xcbb   :  { %v2581_v4 = vadd.f32 %v2573_v36, %v6001_v60  ;;  %v2583_v12 = vadd.f32 %v2575_v11, %v6011_v6 }
 0xcbc   :  { %v2584_v63 = vsub.f32 0.0, %v2580_v10 }
 0xcbd   :  { %v2590_v15 = vsub.f32 0.0, %v2581_v4  ;;  %v2597_v3 = vsub.f32 0.0, %v2583_v12  ;;  %v2604_v4 = vrot.slane %v6023_v2, 6 }
 0xcbe   :  { %v2585_v41 = vmul.f32 1.442695, %v2584_v63 }
 0xcbf   :  { %v2591_v18 = vmul.f32 1.442695, %v2590_v15  ;;  %v2598_v50 = vmul.f32 1.442695, %v2597_v3 }
 0xcc0   :  { %4417 = vpow2.f32 %v2585_v41 }
 0xcc1   :  { %4419 = vpow2.f32 %v2591_v18 }
 0xcc2   :  { %4421 = vpow2.f32 %v2598_v50 }
 0xcc3   :  { %4423 = vtanh.f32 %v2582_v35 }
 0xcca   :  { %v4418_v5 = vpop.eup %4417 }
 0xccb   :  { %v4420_v14 = vpop.eup %4419  ;;  %v2587_v59 = vadd.f32 1.0, %v4418_v5 }
 0xccc   :  { %v2593_v36 = vadd.f32 1.0, %v4420_v14  ;;  %v4422_v56 = vpop.eup %4421 }
 0xccd   :  { %4425 = vrcp.f32 %v2587_v59  ;;  %v4424_v10 = vpop.eup %4423  ;;  %v2600_v12 = vadd.f32 1.0, %v4422_v56 }
 0xcce   :  { %4427 = vrcp.f32 %v2593_v36 }
 0xccf   :  { %4429 = vrcp.f32 %v2600_v12 }
 0xcd7   :  { %v4426_v0 = vpop.eup %4425 }
 0xcd8   :  { %v4428_v41 = vpop.eup %4427  ;;  %v2607_v18 = vmul.f32 %v4426_v0, %v4424_v10 }
 0xcd9   :  { %v2606_v45 = vmul.f32 %v4428_v41, %v2604_v4  ;;  %v4430_v32 = vpop.eup %4429 }
 0xcdb   :  { %v6069_v11 = vadd.f32 %v2607_v18, %v2606_v45 }
 0xcdd   :  { %4431 = vtanh.f32 %v6069_v11 }
 0xce7   :  { %v4432_v63 = vpop.eup %4431 }
 0xce8   :  { %v6072_v15 = vmul.f32 %v4432_v63, %v4430_v32 }
 0xcea   :  { %v2611_v3 = vpack.c.bf16 %v6072_v15, %v6072_v15 }
 0xcec   :  { %v2613_v50 = vrot.slane %v2611_v3, 1 }
 0xcee   :  { %2648 = vmatmul.mubr.bf16.vlgmr.msra.gmra.mrb[56].mxu1 %v2613_v50  ;;  %2689 = vmatmul.mubr.bf16.vlgmr.msra.gmra.mrb[60].mxu0 %v2613_v50 }
 0xcef   :  { %2745 = vmatpush1.bf16.msra.mxu1 %v5752_v19  ;;  %2786 = vmatpush1.bf16.msra.mxu0 %v5757_v20 }
 0xcf0   :  { %2746 = vmatprep.subr.bf16.mxu1 %v5766_v21  ;;  %2787 = vmatprep.subr.bf16.mxu0 %v5771_v22 }
 0xcf1   :  { %2776 = vmatprep.mubr.bf16.mxu1 %v6632_v43  ;;  %2817 = vmatprep.mubr.bf16.mxu0 %v6632_v43 }
 0xcf3   :  { %2747 = vmatpush1.bf16.msra.mxu1 %v5776_v23  ;;  %2788 = vmatpush1.bf16.msra.mxu0 %v5781_v24 }
 0xcf4   :  { %2748 = vmatprep.subr.bf16.mxu1 %v5790_v25  ;;  %2789 = vmatprep.subr.bf16.mxu0 %v5795_v26 }
 0xcf7   :  { %2749 = vmatpush1.bf16.msra.mxu1 %v5800_v7  ;;  %2790 = vmatpush1.bf16.msra.mxu0 %v5805_v27 }
 0xcf8   :  { %2750 = vmatprep.subr.bf16.mxu1 %v5812_v8  ;;  %2791 = vmatprep.subr.bf16.mxu0 %v5817_v28 }
 0xcfb   :  { %2751 = vmatpush1.bf16.msra.mxu1 %v5824_v29  ;;  %2792 = vmatpush1.bf16.msra.mxu0 %v5829_v30 }
 0xcfc   :  { %2752 = vmatprep.subr.bf16.mxu1 %v5836_v42  ;;  %2793 = vmatprep.subr.bf16.mxu0 %v5841_v31 }
 0xcff   :  { %2753 = vmatpush1.bf16.msra.mxu1 %v5848_v33  ;;  %2794 = vmatpush1.bf16.msra.mxu0 %v5853_v34 }
 0xd00   :  { %2754 = vmatprep.subr.bf16.mxu1 %v5860_v62  ;;  %2795 = vmatprep.subr.bf16.mxu0 %v5865_v9 }
 0xd03   :  { %2755 = vmatpush1.bf16.msra.mxu1 %v5872_v38  ;;  %2796 = vmatpush1.bf16.msra.mxu0 %v5877_v37 }
 0xd04   :  { %2756 = vmatprep.subr.bf16.mxu1 %v5886_v40  ;;  %2797 = vmatprep.subr.bf16.mxu0 %v5891_v46 }
 0xd07   :  { %2757 = vmatpush1.bf16.msra.mxu1 %v5896_v39  ;;  %2798 = vmatpush1.bf16.msra.mxu0 %v5901_v55 }
 0xd08   :  { %2758 = vmatprep.subr.bf16.mxu1 %v5906_v1  ;;  %2799 = vmatprep.subr.bf16.mxu0 %v5913_v48 }
 0xd0b   :  { %2759 = vmatpush1.bf16.msra.mxu1 %v5920_v51  ;;  %2800 = vmatpush1.bf16.msra.mxu0 %v5925_v49 }
 0xd0c   :  { %2873 = vmatprep.subr.bf16.mxu1 %v5742_v16  ;;  %2914 = vmatprep.subr.bf16.mxu0 %v5747_v17 }
 0xdc1   :  { %v2649_v2 = vpop.f32.mrb[56].mxu1  ;;  %v2690_v35 = vpop.f32.mrb[60].mxu0 }
 0xdc2   :  { %v2701_v5 = vrot.slane %v2649_v2, 4  ;;  %v2651_v14 = vpop.f32.mrb[57].mxu1  ;;  %v2692_v59 = vpop.f32.mrb[61].mxu0  ;;  %v2703_v47 = vrot.slane %v2690_v35, 4 }
 0xdc3   :  { %v2702_v36 = vrot.slane %v2651_v14, 4  ;;  %v2653_v56 = vpop.f32.mrb[58].mxu1  ;;  %v2694_v10 = vpop.f32.mrb[62].mxu0  ;;  %v2704_v12 = vrot.slane %v2692_v59, 4 }
 0xdc4   :  { %v2709_v0 = vadd.f32 %v2701_v5, %v5998_v52  ;;  %v2654_v4 = vpop.f32.mrb[59].mxu1  ;;  %v2695_v41 = vpop.f32.mrb[63].mxu0  ;;  %v2711_v56 = vadd.f32 %v2703_v47, %v6020_v57 }
 0xdc5   :  { %v2710_v18 = vadd.f32 %v2702_v36, %v6001_v60  ;;  %v2712_v50 = vadd.f32 %v2704_v12, %v6011_v6 }
 0xdc6   :  { %v2713_v45 = vsub.f32 0.0, %v2709_v0 }
 0xdc7   :  { %v2719_v32 = vsub.f32 0.0, %v2710_v18  ;;  %v2726_v2 = vsub.f32 0.0, %v2712_v50  ;;  %v2733_v18 = vrot.slane %v6069_v11, 6 }
 0xdc8   :  { %v2714_v63 = vmul.f32 1.442695, %v2713_v45 }
 0xdc9   :  { %v2720_v3 = vmul.f32 1.442695, %v2719_v32  ;;  %v2727_v14 = vmul.f32 1.442695, %v2726_v2  ;;  %v3487_v2 = vsel %vm224_vm6, %v6026_v58, %v6072_v15 }
 0xdca   :  { %4433 = vpow2.f32 %v2714_v63 }
 0xdcb   :  { %4435 = vpow2.f32 %v2720_v3 }
 0xdcc   :  { %4437 = vpow2.f32 %v2727_v14 }
 0xdcd   :  { %4439 = vtanh.f32 %v2711_v56 }
 0xdd4   :  { %v4434_v10 = vpop.eup %4433 }
 0xdd5   :  { %v4436_v5 = vpop.eup %4435  ;;  %v2716_v4 = vadd.f32 1.0, %v4434_v10 }
 0xdd6   :  { %v2722_v36 = vadd.f32 1.0, %v4436_v5  ;;  %v4438_v59 = vpop.eup %4437 }
 0xdd7   :  { %4441 = vrcp.f32 %v2716_v4  ;;  %v4440_v0 = vpop.eup %4439  ;;  %v2729_v32 = vadd.f32 1.0, %v4438_v59 }
 0xdd8   :  { %4443 = vrcp.f32 %v2722_v36 }
 0xdd9   :  { %4445 = vrcp.f32 %v2729_v32 }
 0xde1   :  { %v4442_v41 = vpop.eup %4441 }
 0xde2   :  { %v4444_v12 = vpop.eup %4443  ;;  %v2736_v45 = vmul.f32 %v4442_v41, %v4440_v0 }
 0xde3   :  { %v2735_v35 = vmul.f32 %v4444_v12, %v2733_v18  ;;  %v4446_v47 = vpop.eup %4445 }
 0xde5   :  { %v6115_v63 = vadd.f32 %v2736_v45, %v2735_v35 }
 0xde7   :  { %4447 = vtanh.f32 %v6115_v63 }
 0xdf1   :  { %v4448_v3 = vpop.eup %4447 }
 0xdf2   :  { %v2739_v50 = vmul.f32 %v4448_v3, %v4446_v47 }
 0xdf4   :  { %v2740_v14 = vpack.c.bf16 %v2739_v50, %v2739_v50  ;;  %v6122_v56 = vsel %vm1855_vm7, %v3487_v2, %v2739_v50 }
 0xdf6   :  { %v2742_v11 = vrot.slane %v2740_v14, 2 }
 0xdf8   :  { %2777 = vmatmul.mubr.bf16.vlgmr.msra.gmra.mrb[60].mxu1 %v2742_v11  ;;  %2818 = vmatmul.mubr.bf16.vlgmr.msra.gmra.mrb[64].mxu0 %v2742_v11 }
 0xdf9   :  { %2874 = vmatpush1.bf16.msra.mxu1 %v5752_v19  ;;  %2915 = vmatpush1.bf16.msra.mxu0 %v5757_v20 }
 0xdfa   :  { %2875 = vmatprep.subr.bf16.mxu1 %v5766_v21  ;;  %2916 = vmatprep.subr.bf16.mxu0 %v5771_v22 }
 0xdfb   :  { %2905 = vmatprep.mubr.bf16.mxu1 %v6632_v43  ;;  %2946 = vmatprep.mubr.bf16.mxu0 %v6632_v43 }
 0xdfd   :  { %2876 = vmatpush1.bf16.msra.mxu1 %v5776_v23  ;;  %2917 = vmatpush1.bf16.msra.mxu0 %v5781_v24 }
 0xdfe   :  { %2877 = vmatprep.subr.bf16.mxu1 %v5790_v25  ;;  %2918 = vmatprep.subr.bf16.mxu0 %v5795_v26 }
 0xe01   :  { %2878 = vmatpush1.bf16.msra.mxu1 %v5800_v7  ;;  %2919 = vmatpush1.bf16.msra.mxu0 %v5805_v27 }
 0xe02   :  { %2879 = vmatprep.subr.bf16.mxu1 %v5812_v8  ;;  %2920 = vmatprep.subr.bf16.mxu0 %v5817_v28 }
 0xe05   :  { %2880 = vmatpush1.bf16.msra.mxu1 %v5824_v29  ;;  %2921 = vmatpush1.bf16.msra.mxu0 %v5829_v30 }
 0xe06   :  { %2881 = vmatprep.subr.bf16.mxu1 %v5836_v42  ;;  %2922 = vmatprep.subr.bf16.mxu0 %v5841_v31 }
 0xe09   :  { %2882 = vmatpush1.bf16.msra.mxu1 %v5848_v33  ;;  %2923 = vmatpush1.bf16.msra.mxu0 %v5853_v34 }
 0xe0a   :  { %2883 = vmatprep.subr.bf16.mxu1 %v5860_v62  ;;  %2924 = vmatprep.subr.bf16.mxu0 %v5865_v9 }
 0xe0d   :  { %2884 = vmatpush1.bf16.msra.mxu1 %v5872_v38  ;;  %2925 = vmatpush1.bf16.msra.mxu0 %v5877_v37 }
 0xe0e   :  { %2885 = vmatprep.subr.bf16.mxu1 %v5886_v40  ;;  %2926 = vmatprep.subr.bf16.mxu0 %v5891_v46 }
 0xe11   :  { %2886 = vmatpush1.bf16.msra.mxu1 %v5896_v39  ;;  %2927 = vmatpush1.bf16.msra.mxu0 %v5901_v55 }
 0xe12   :  { %2887 = vmatprep.subr.bf16.mxu1 %v5906_v1  ;;  %2928 = vmatprep.subr.bf16.mxu0 %v5913_v48 }
 0xe15   :  { %2888 = vmatpush1.bf16.msra.mxu1 %v5920_v51  ;;  %2929 = vmatpush1.bf16.msra.mxu0 %v5925_v49 }
 0xe16   :  { %2987 = vmatprep.subr.bf16.mxu1 %v5742_v16  ;;  %3028 = vmatprep.subr.bf16.mxu0 %v5747_v17 }
 0xecb   :  { %v2778_v58 = vpop.f32.mrb[60].mxu1  ;;  %v2819_v15 = vpop.f32.mrb[64].mxu0 }
 0xecc   :  { %v2830_v10 = vrot.slane %v2778_v58, 2  ;;  %v2780_v5 = vpop.f32.mrb[61].mxu1  ;;  %v2821_v4 = vpop.f32.mrb[65].mxu0  ;;  %v2832_v11 = vrot.slane %v2819_v15, 2 }
 0xecd   :  { %v2831_v36 = vrot.slane %v2780_v5, 2  ;;  %v2782_v59 = vpop.f32.mrb[62].mxu1  ;;  %v2823_v0 = vpop.f32.mrb[66].mxu0  ;;  %v2833_v32 = vrot.slane %v2821_v4, 2 }
 0xece   :  { %v2838_v41 = vadd.f32 %v2830_v10, %v5998_v52  ;;  %v2783_v18 = vpop.f32.mrb[63].mxu1  ;;  %v2824_v12 = vpop.f32.mrb[67].mxu0  ;;  %v2840_v5 = vadd.f32 %v2832_v11, %v6020_v57 }
 0xecf   :  { %v2839_v45 = vadd.f32 %v2831_v36, %v6001_v60  ;;  %v2841_v2 = vadd.f32 %v2833_v32, %v6011_v6  ;;  %v2862_v6 = vrot.slane %v6115_v63, 6 }
 0xed0   :  { %v2842_v35 = vsub.f32 0.0, %v2838_v41 }
 0xed1   :  { %v2848_v47 = vsub.f32 0.0, %v2839_v45  ;;  %v2855_v14 = vsub.f32 0.0, %v2841_v2 }
 0xed2   :  { %v2843_v3 = vmul.f32 1.442695, %v2842_v35 }
 0xed3   :  { %v2849_v50 = vmul.f32 1.442695, %v2848_v47  ;;  %v2856_v58 = vmul.f32 1.442695, %v2855_v14 }
 0xed4   :  { %4449 = vpow2.f32 %v2843_v3 }
 0xed5   :  { %4451 = vpow2.f32 %v2849_v50 }
 0xed6   :  { %4453 = vpow2.f32 %v2856_v58 }
 0xed7   :  { %4455 = vtanh.f32 %v2840_v5 }
 0xede   :  { %v4450_v59 = vpop.eup %4449 }
 0xedf   :  { %v4452_v52 = vpop.eup %4451  ;;  %v2845_v10 = vadd.f32 1.0, %v4450_v59 }
 0xee0   :  { %v2851_v60 = vadd.f32 1.0, %v4452_v52  ;;  %v4454_v4 = vpop.eup %4453  ;;  %v6235_v52 = vld [vmem:[%s6606_s4 + $0x100] ss:$16 sps:$4 sm:$0xff]  }
 0xee1   :  { %4457 = vrcp.f32 %v2845_v10  ;;  %v4456_v36 = vpop.eup %4455  ;;  %v2858_v12 = vadd.f32 1.0, %v4454_v4  ;;  %v6241_v10 = vld [vmem:[%s6606_s4 + $0x108] ss:$16 sps:$4 sm:$0xff]   ;;  %v6253_v4 = vld [vmem:[%s6606_s4 + $0x12c] ss:$16 sps:$4 sm:$0xff]  }
 0xee2   :  { %4459 = vrcp.f32 %v2851_v60  ;;  %v6247_v60 = vld [vmem:[%s6606_s4 + $0x124] ss:$16 sps:$4 sm:$0xff]  }
 0xee3   :  { %4461 = vrcp.f32 %v2858_v12  ;;  %v6291_v12 = vld [vmem:[%s6606_s4 + $0x148] ss:$16 sps:$4 sm:$0xff]  }
 0xeeb   :  { %v4458_v0 = vpop.eup %4457 }
 0xeec   :  { %v4460_v41 = vpop.eup %4459  ;;  %v2865_v18 = vmul.f32 %v4458_v0, %v4456_v36  ;;  %v6261_v36 = vld [vmem:[%s6606_s4 + $0x120] ss:$16 sps:$4 sm:$0xff]   ;;  %v6267_v0 = vld [vmem:[%s6606_s4 + $0x128] ss:$16 sps:$4 sm:$0xff]  }
 0xeed   :  { %v2864_v15 = vmul.f32 %v4460_v41, %v2862_v6  ;;  %v4462_v57 = vpop.eup %4461  ;;  %v6273_v6 = vld [vmem:[%s6606_s4 + $0x144] ss:$16 sps:$4 sm:$0xff]   ;;  %v6279_v41 = vld [vmem:[%s6606_s4 + $0x14c] ss:$16 sps:$4 sm:$0xff]  }
 0xeef   :  { %v6163_v45 = vadd.f32 %v2865_v18, %v2864_v15  ;;  %v6285_v18 = vld [vmem:[%s6606_s4 + $0x140] ss:$16 sps:$4 sm:$0xff]   ;;  %v6297_v15 = vld [vmem:[%s6606_s4 + $0x164] ss:$16 sps:$4 sm:$0xff]  }
 0xef1   :  { %4463 = vtanh.f32 %v6163_v45 }
 0xefb   :  { %v4464_v32 = vpop.eup %4463 }
 0xefc   :  { %v2868_v35 = vmul.f32 %v4464_v32, %v4462_v57  ;;  %v6309_v57 = vld [vmem:[%s6606_s4 + $0x160] ss:$16 sps:$4 sm:$0xff]   ;;  %v6315_v32 = vld [vmem:[%s6606_s4 + $0x168] ss:$16 sps:$4 sm:$0xff]  }
 0xefe   :  { %v2869_v47 = vpack.c.bf16 %v2868_v35, %v2868_v35  ;;  %v6168_v3 = vsel %vm1857_vm8, %v6122_v56, %v2868_v35  ;;  %v6321_v35 = vld [vmem:[%s6606_s4 + $0x184] ss:$16 sps:$4 sm:$0xff]  }
 0xf00   :  { %v2871_v50 = vrot.slane %v2869_v47, 3  ;;  %v6327_v47 = vld [vmem:[%s6606_s4 + $0x18c] ss:$16 sps:$4 sm:$0xff]  }
 0xf02   :  { %2906 = vmatmul.mubr.bf16.vlgmr.msra.gmra.mrb[64].mxu1 %v2871_v50  ;;  %2947 = vmatmul.mubr.bf16.vlgmr.msra.gmra.mrb[68].mxu0 %v2871_v50  ;;  %v6333_v50 = vld [vmem:[%s6606_s4 + $0x180] ss:$16 sps:$4 sm:$0xff]  }
 0xf03   :  { %2988 = vmatpush1.bf16.msra.mxu1 %v5752_v19  ;;  %3029 = vmatpush1.bf16.msra.mxu0 %v5757_v20  ;;  %v6206_v19 = vadd.f32 %v5942_v61, %v5992_v44  ;;  %v6210_v20 = vadd.f32 %v5946_v13, %v5995_v54  ;;  %v2979_v61 = vrot.slane %v6163_v45, 6  ;;  %v6303_v45 = vld [vmem:[%s6606_s4 + $0x16c] ss:$16 sps:$4 sm:$0xff]  }
 0xf04   :  { %2989 = vmatprep.subr.bf16.mxu1 %v5766_v21  ;;  %3030 = vmatprep.subr.bf16.mxu0 %v5771_v22 }
 0xf05   :  { %3019 = vmatprep.mubr.bf16.mxu1 %v6632_v43  ;;  %3060 = vmatprep.mubr.bf16.mxu0 %v6632_v43 }
 0xf07   :  { %2990 = vmatpush1.bf16.msra.mxu1 %v5776_v23  ;;  %3031 = vmatpush1.bf16.msra.mxu0 %v5781_v24 }
 0xf08   :  { %2991 = vmatprep.subr.bf16.mxu1 %v5790_v25  ;;  %3032 = vmatprep.subr.bf16.mxu0 %v5795_v26 }
 0xf0b   :  { %2992 = vmatpush1.bf16.msra.mxu1 %v5800_v7  ;;  %3033 = vmatpush1.bf16.msra.mxu0 %v5805_v27 }
 0xf0c   :  { %2993 = vmatprep.subr.bf16.mxu1 %v5812_v8  ;;  %3034 = vmatprep.subr.bf16.mxu0 %v5817_v28  ;;  %v6644_v28 = vld [vmem:[#allocation10_spill] sm:$0xff] }
 0xf0f   :  { %2994 = vmatpush1.bf16.msra.mxu1 %v5824_v29  ;;  %3035 = vmatpush1.bf16.msra.mxu0 %v5829_v30  ;;  %v6216_v29 = vadd.f32 %v6644_v28, %v6005_v53  ;;  %v6405_v28 = vld [vmem:[%s6606_s4 + $0x1e0] ss:$16 sps:$4 sm:$0xff]  }
 0xf10   :  { %2995 = vmatprep.subr.bf16.mxu1 %v5836_v42  ;;  %3036 = vmatprep.subr.bf16.mxu0 %v5841_v31 }
 0xf13   :  { %2996 = vmatpush1.bf16.msra.mxu1 %v5848_v33  ;;  %3037 = vmatpush1.bf16.msra.mxu0 %v5853_v34 }
 0xf14   :  { %2997 = vmatprep.subr.bf16.mxu1 %v5860_v62  ;;  %3038 = vmatprep.subr.bf16.mxu0 %v5865_v9  ;;  %v6645_v62 = vld [vmem:[#allocation5_spill] sm:$0xff]  ;;  %v6646_v9 = vld [vmem:[#allocation6_spill] sm:$0xff] }
 0xf17   :  { %2998 = vmatpush1.bf16.msra.mxu1 %v5872_v38  ;;  %3039 = vmatpush1.bf16.msra.mxu0 %v5877_v37  ;;  %v6221_v38 = vadd.f32 %v6646_v9, %v6645_v62 }
 0xf18   :  { %2999 = vmatprep.subr.bf16.mxu1 %v5886_v40  ;;  %3040 = vmatprep.subr.bf16.mxu0 %v5891_v46 }
 0xf1b   :  { %3000 = vmatpush1.bf16.msra.mxu1 %v5896_v39  ;;  %3041 = vmatpush1.bf16.msra.mxu0 %v5901_v55 }
 0xf1c   :  { %3001 = vmatprep.subr.bf16.mxu1 %v5906_v1  ;;  %3042 = vmatprep.subr.bf16.mxu0 %v5913_v48 }
 0xf1f   :  { %3002 = vmatpush1.bf16.msra.mxu1 %v5920_v51  ;;  %3043 = vmatpush1.bf16.msra.mxu0 %v5925_v49 }
 0xf20   :  { %3116 = vmatprep.subr.bf16.mxu1 %v5742_v16  ;;  %3157 = vmatprep.subr.bf16.mxu0 %v5747_v17 }
 0xfd5   :  { %v2907_v21 = vpop.f32.mrb[64].mxu1  ;;  %v2948_v22 = vpop.f32.mrb[68].mxu0 }
 0xfd6   :  { %v2955_v23 = vadd.f32 %v2907_v21, %v6206_v19  ;;  %v2909_v24 = vpop.f32.mrb[65].mxu1  ;;  %v2950_v25 = vpop.f32.mrb[69].mxu0  ;;  %v2957_v40 = vadd.f32 %v2948_v22, %v6221_v38  ;;  %v6339_v21 = vld [vmem:[%s6606_s4 + $0x188] ss:$16 sps:$4 sm:$0xff]   ;;  %v6345_v22 = vld [vmem:[%s6606_s4 + $0x1a4] ss:$16 sps:$4 sm:$0xff]  }
 0xfd7   :  { %v2956_v26 = vadd.f32 %v2909_v24, %v6210_v20  ;;  %v2911_v7 = vpop.f32.mrb[66].mxu1  ;;  %v2952_v16 = vpop.f32.mrb[70].mxu0  ;;  %v2958_v33 = vadd.f32 %v2950_v25, %v6216_v29  ;;  %v6357_v24 = vld [vmem:[%s6606_s4 + $0x1a0] ss:$16 sps:$4 sm:$0xff]   ;;  %v6363_v25 = vld [vmem:[%s6606_s4 + $0x1a8] ss:$16 sps:$4 sm:$0xff]  }
 0xfd8   :  { %v2959_v27 = vsub.f32 0.0, %v2955_v23  ;;  %v2912_v17 = vpop.f32.mrb[67].mxu1  ;;  %v2953_v8 = vpop.f32.mrb[71].mxu0  ;;  %v6351_v23 = vld [vmem:[%s6606_s4 + $0x1ac] ss:$16 sps:$4 sm:$0xff]  }
 0xfd9   :  { %v2965_v30 = vsub.f32 0.0, %v2956_v26  ;;  %v2972_v34 = vsub.f32 0.0, %v2958_v33  ;;  %v6369_v26 = vld [vmem:[%s6606_s4 + $0x1c4] ss:$16 sps:$4 sm:$0xff]   ;;  %v6375_v7 = vld [vmem:[%s6606_s4 + $0x1cc] ss:$16 sps:$4 sm:$0xff]  }
 0xfda   :  { %v2960_v42 = vmul.f32 1.442695, %v2959_v27  ;;  %v6381_v16 = vld [vmem:[%s6606_s4 + $0x1c0] ss:$16 sps:$4 sm:$0xff]   ;;  %v6387_v27 = vld [vmem:[%s6606_s4 + $0x1c8] ss:$16 sps:$4 sm:$0xff]  }
 0xfdb   :  { %v2966_v31 = vmul.f32 1.442695, %v2965_v30  ;;  %v2973_v37 = vmul.f32 1.442695, %v2972_v34  ;;  %v6393_v17 = vld [vmem:[%s6606_s4 + $0x1e4] ss:$16 sps:$4 sm:$0xff]  }
 0xfdc   :  { %4465 = vpow2.f32 %v2960_v42  ;;  %v6399_v8 = vld [vmem:[%s6606_s4 + $0x1ec] ss:$16 sps:$4 sm:$0xff]   ;;  %v6411_v30 = vld [vmem:[%s6606_s4 + $0x1e8] ss:$16 sps:$4 sm:$0xff]   ;;  %v6417_v42 = vld [vmem:[%s6606_s4 + $0x104] ss:$16 sps:$4 sm:$0xff]  }
 0xfdd   :  { %4467 = vpow2.f32 %v2966_v31  ;;  %v6423_v31 = vld [vmem:[%s6606_s4 + $0x10c] ss:$16 sps:$4 sm:$0xff]  }
 0xfde   :  { %4469 = vpow2.f32 %v2973_v37 }
 0xfdf   :  { %4471 = vtanh.f32 %v2957_v40 }
 0xfe6   :  { %v4466_v46 = vpop.eup %4465 }
 0xfe7   :  { %v4468_v39 = vpop.eup %4467  ;;  %v2962_v55 = vadd.f32 1.0, %v4466_v46 }
 0xfe8   :  { %v2968_v1 = vadd.f32 1.0, %v4468_v39  ;;  %v4470_v48 = vpop.eup %4469 }
 0xfe9   :  { %4473 = vrcp.f32 %v2962_v55  ;;  %v4472_v51 = vpop.eup %4471  ;;  %v2975_v56 = vadd.f32 1.0, %v4470_v48 }
 0xfea   :  { %4475 = vrcp.f32 %v2968_v1 }
 0xfeb   :  { %4477 = vrcp.f32 %v2975_v56 }
 0xff3   :  { %v4474_v49 = vpop.eup %4473 }
 0xff4   :  { %v4476_v13 = vpop.eup %4475  ;;  %v2982_v63 = vmul.f32 %v4474_v49, %v4472_v51 }
 0xff5   :  { %v2981_v2 = vmul.f32 %v4476_v13, %v2979_v61  ;;  %v4478_v11 = vpop.eup %4477 }
 0xff7   :  { %v6225_v14 = vadd.f32 %v2982_v63, %v2981_v2 }
 0xff9   :  { %4479 = vtanh.f32 %v6225_v14 }
0x1003   :  { %v4480_v58 = vpop.eup %4479 }
0x1004   :  { %v6228_v5 = vmul.f32 %v4480_v58, %v4478_v11 }
0x1006   :  { %v2986_v59 = vpack.c.bf16 %v6228_v5, %v6228_v5 }
0x1008   :  { %3020 = vmatmul.mubr.bf16.vlgmr.msra.gmra.mrb[68].mxu1 %v2986_v59  ;;  %3061 = vmatmul.mubr.bf16.vlgmr.msra.gmra.mrb[72].mxu0 %v2986_v59 }
0x1009   :  { %3117 = vmatpush1.bf16.msra.mxu1 %v6235_v52  ;;  %3158 = vmatpush1.bf16.msra.mxu0 %v6241_v10 }
0x100a   :  { %3118 = vmatprep.subr.bf16.mxu1 %v6247_v60  ;;  %3159 = vmatprep.subr.bf16.mxu0 %v6253_v4 }
0x100b   :  { %3148 = vmatprep.mubr.bf16.mxu1 %v6632_v43  ;;  %3189 = vmatprep.mubr.bf16.mxu0 %v6632_v43 }
0x100d   :  { %3119 = vmatpush1.bf16.msra.mxu1 %v6261_v36  ;;  %3160 = vmatpush1.bf16.msra.mxu0 %v6267_v0 }
0x100e   :  { %3120 = vmatprep.subr.bf16.mxu1 %v6273_v6  ;;  %3161 = vmatprep.subr.bf16.mxu0 %v6279_v41 }
0x1011   :  { %3121 = vmatpush1.bf16.msra.mxu1 %v6285_v18  ;;  %3162 = vmatpush1.bf16.msra.mxu0 %v6291_v12 }
0x1012   :  { %3122 = vmatprep.subr.bf16.mxu1 %v6297_v15  ;;  %3163 = vmatprep.subr.bf16.mxu0 %v6303_v45 }
0x1015   :  { %3123 = vmatpush1.bf16.msra.mxu1 %v6309_v57  ;;  %3164 = vmatpush1.bf16.msra.mxu0 %v6315_v32 }
0x1016   :  { %3124 = vmatprep.subr.bf16.mxu1 %v6321_v35  ;;  %3165 = vmatprep.subr.bf16.mxu0 %v6327_v47 }
0x1019   :  { %3125 = vmatpush1.bf16.msra.mxu1 %v6333_v50  ;;  %3166 = vmatpush1.bf16.msra.mxu0 %v6339_v21 }
0x101a   :  { %3126 = vmatprep.subr.bf16.mxu1 %v6345_v22  ;;  %3167 = vmatprep.subr.bf16.mxu0 %v6351_v23 }
0x101d   :  { %3127 = vmatpush1.bf16.msra.mxu1 %v6357_v24  ;;  %3168 = vmatpush1.bf16.msra.mxu0 %v6363_v25 }
0x101e   :  { %3128 = vmatprep.subr.bf16.mxu1 %v6369_v26  ;;  %3169 = vmatprep.subr.bf16.mxu0 %v6375_v7 }
0x1021   :  { %3129 = vmatpush1.bf16.msra.mxu1 %v6381_v16  ;;  %3170 = vmatpush1.bf16.msra.mxu0 %v6387_v27 }
0x1022   :  { %3130 = vmatprep.subr.bf16.mxu1 %v6393_v17  ;;  %3171 = vmatprep.subr.bf16.mxu0 %v6399_v8 }
0x1025   :  { %3131 = vmatpush1.bf16.msra.mxu1 %v6405_v28  ;;  %3172 = vmatpush1.bf16.msra.mxu0 %v6411_v30 }
0x1026   :  { %3245 = vmatprep.subr.bf16.mxu1 %v6417_v42  ;;  %3286 = vmatprep.subr.bf16.mxu0 %v6423_v31 }
0x10db   :  { %v3021_v33 = vpop.f32.mrb[68].mxu1  ;;  %v3062_v34 = vpop.f32.mrb[72].mxu0 }
0x10dc   :  { %v3073_v9 = vrot.slane %v3021_v33, 6  ;;  %v3023_v37 = vpop.f32.mrb[69].mxu1  ;;  %v3064_v40 = vpop.f32.mrb[73].mxu0  ;;  %v3075_v59 = vrot.slane %v3062_v34, 6 }
0x10dd   :  { %v3074_v46 = vrot.slane %v3023_v37, 6  ;;  %v3025_v39 = vpop.f32.mrb[70].mxu1  ;;  %v3066_v55 = vpop.f32.mrb[74].mxu0  ;;  %v3076_v61 = vrot.slane %v3064_v40, 6 }
0x10de   :  { %v3081_v1 = vadd.f32 %v3073_v9, %v6206_v19  ;;  %v3026_v48 = vpop.f32.mrb[71].mxu1  ;;  %v3067_v51 = vpop.f32.mrb[75].mxu0  ;;  %v3083_v37 = vadd.f32 %v3075_v59, %v6221_v38 }
0x10df   :  { %v3082_v49 = vadd.f32 %v3074_v46, %v6210_v20  ;;  %v3084_v11 = vadd.f32 %v3076_v61, %v6216_v29  ;;  %v3105_v51 = vrot.slane %v6225_v14, 6 }
0x10e0   :  { %v3085_v13 = vsub.f32 0.0, %v3081_v1 }
0x10e1   :  { %v3091_v63 = vsub.f32 0.0, %v3082_v49  ;;  %v3098_v58 = vsub.f32 0.0, %v3084_v11 }
0x10e2   :  { %v3086_v56 = vmul.f32 1.442695, %v3085_v13 }
0x10e3   :  { %v3092_v2 = vmul.f32 1.442695, %v3091_v63  ;;  %v3099_v33 = vmul.f32 1.442695, %v3098_v58 }
0x10e4   :  { %4481 = vpow2.f32 %v3086_v56 }
0x10e5   :  { %4483 = vpow2.f32 %v3092_v2 }
0x10e6   :  { %4485 = vpow2.f32 %v3099_v33 }
0x10e7   :  { %4487 = vtanh.f32 %v3083_v37 }
0x10ee   :  { %v4482_v39 = vpop.eup %4481 }
0x10ef   :  { %v4484_v9 = vpop.eup %4483  ;;  %v3088_v55 = vadd.f32 1.0, %v4482_v39 }
0x10f0   :  { %v3094_v46 = vadd.f32 1.0, %v4484_v9  ;;  %v4486_v40 = vpop.eup %4485 }
0x10f1   :  { %4489 = vrcp.f32 %v3088_v55  ;;  %v4488_v1 = vpop.eup %4487  ;;  %v3101_v13 = vadd.f32 1.0, %v4486_v40 }
0x10f2   :  { %4491 = vrcp.f32 %v3094_v46 }
0x10f3   :  { %4493 = vrcp.f32 %v3101_v13 }
0x10fb   :  { %v4490_v48 = vpop.eup %4489 }
0x10fc   :  { %v4492_v49 = vpop.eup %4491  ;;  %v3108_v61 = vmul.f32 %v4490_v48, %v4488_v1 }
0x10fd   :  { %v3107_v34 = vmul.f32 %v4492_v49, %v3105_v51  ;;  %v4494_v56 = vpop.eup %4493 }
0x10ff   :  { %v6431_v63 = vadd.f32 %v3108_v61, %v3107_v34 }
0x1101   :  { %4495 = vtanh.f32 %v6431_v63 }
0x110b   :  { %v4496_v2 = vpop.eup %4495 }
0x110c   :  { %v6434_v11 = vmul.f32 %v4496_v2, %v4494_v56 }
0x110e   :  { %v3112_v58 = vpack.c.bf16 %v6434_v11, %v6434_v11 }
0x1110   :  { %v3114_v59 = vrot.slane %v3112_v58, 1 }
0x1112   :  { %3149 = vmatmul.mubr.bf16.vlgmr.msra.gmra.mrb[72].mxu1 %v3114_v59  ;;  %3190 = vmatmul.mubr.bf16.vlgmr.msra.gmra.mrb[76].mxu0 %v3114_v59 }
0x1113   :  { %3246 = vmatpush1.bf16.msra.mxu1 %v6235_v52  ;;  %3287 = vmatpush1.bf16.msra.mxu0 %v6241_v10 }
0x1114   :  { %3247 = vmatprep.subr.bf16.mxu1 %v6247_v60  ;;  %3288 = vmatprep.subr.bf16.mxu0 %v6253_v4 }
0x1115   :  { %3277 = vmatprep.mubr.bf16.mxu1 %v6632_v43  ;;  %3318 = vmatprep.mubr.bf16.mxu0 %v6632_v43 }
0x1117   :  { %3248 = vmatpush1.bf16.msra.mxu1 %v6261_v36  ;;  %3289 = vmatpush1.bf16.msra.mxu0 %v6267_v0 }
0x1118   :  { %3249 = vmatprep.subr.bf16.mxu1 %v6273_v6  ;;  %3290 = vmatprep.subr.bf16.mxu0 %v6279_v41 }
0x111b   :  { %3250 = vmatpush1.bf16.msra.mxu1 %v6285_v18  ;;  %3291 = vmatpush1.bf16.msra.mxu0 %v6291_v12 }
0x111c   :  { %3251 = vmatprep.subr.bf16.mxu1 %v6297_v15  ;;  %3292 = vmatprep.subr.bf16.mxu0 %v6303_v45 }
0x111f   :  { %3252 = vmatpush1.bf16.msra.mxu1 %v6309_v57  ;;  %3293 = vmatpush1.bf16.msra.mxu0 %v6315_v32 }
0x1120   :  { %3253 = vmatprep.subr.bf16.mxu1 %v6321_v35  ;;  %3294 = vmatprep.subr.bf16.mxu0 %v6327_v47 }
0x1123   :  { %3254 = vmatpush1.bf16.msra.mxu1 %v6333_v50  ;;  %3295 = vmatpush1.bf16.msra.mxu0 %v6339_v21 }
0x1124   :  { %3255 = vmatprep.subr.bf16.mxu1 %v6345_v22  ;;  %3296 = vmatprep.subr.bf16.mxu0 %v6351_v23 }
0x1127   :  { %3256 = vmatpush1.bf16.msra.mxu1 %v6357_v24  ;;  %3297 = vmatpush1.bf16.msra.mxu0 %v6363_v25 }
0x1128   :  { %3257 = vmatprep.subr.bf16.mxu1 %v6369_v26  ;;  %3298 = vmatprep.subr.bf16.mxu0 %v6375_v7 }
0x112b   :  { %3258 = vmatpush1.bf16.msra.mxu1 %v6381_v16  ;;  %3299 = vmatpush1.bf16.msra.mxu0 %v6387_v27 }
0x112c   :  { %3259 = vmatprep.subr.bf16.mxu1 %v6393_v17  ;;  %3300 = vmatprep.subr.bf16.mxu0 %v6399_v8 }
0x112f   :  { %3260 = vmatpush1.bf16.msra.mxu1 %v6405_v28  ;;  %3301 = vmatpush1.bf16.msra.mxu0 %v6411_v30 }
0x1130   :  { %3374 = vmatprep.subr.bf16.mxu1 %v6417_v42  ;;  %3415 = vmatprep.subr.bf16.mxu0 %v6423_v31 }
0x11e5   :  { %v3150_v14 = vpop.f32.mrb[72].mxu1  ;;  %v3191_v33 = vpop.f32.mrb[76].mxu0 }
0x11e6   :  { %v3202_v37 = vrot.slane %v3150_v14, 4  ;;  %v3152_v39 = vpop.f32.mrb[73].mxu1  ;;  %v3193_v9 = vpop.f32.mrb[77].mxu0  ;;  %v3204_v58 = vrot.slane %v3191_v33, 4 }
0x11e7   :  { %v3203_v55 = vrot.slane %v3152_v39, 4  ;;  %v3154_v46 = vpop.f32.mrb[74].mxu1  ;;  %v3195_v40 = vpop.f32.mrb[78].mxu0  ;;  %v3205_v61 = vrot.slane %v3193_v9, 4 }
0x11e8   :  { %v3210_v1 = vadd.f32 %v3202_v37, %v6206_v19  ;;  %v3155_v48 = vpop.f32.mrb[75].mxu1  ;;  %v3196_v51 = vpop.f32.mrb[79].mxu0  ;;  %v3212_v14 = vadd.f32 %v3204_v58, %v6221_v38 }
0x11e9   :  { %v3211_v49 = vadd.f32 %v3203_v55, %v6210_v20  ;;  %v3213_v31 = vadd.f32 %v3205_v61, %v6216_v29  ;;  %v3234_v48 = vrot.slane %v6431_v63, 6 }
0x11ea   :  { %v3214_v13 = vsub.f32 0.0, %v3210_v1 }
0x11eb   :  { %v3220_v34 = vsub.f32 0.0, %v3211_v49  ;;  %v3227_v2 = vsub.f32 0.0, %v3213_v31  ;;  %v3490_v31 = vsel %vm224_vm6, %v6228_v5, %v6434_v11  ;;  %v4235_v5 = vld [vmem:[%s6608_s6 + $0x4] ss:$8 sps:$4 sm:$0xff]  }
0x11ec   :  { %v3215_v42 = vmul.f32 1.442695, %v3214_v13 }
0x11ed   :  { %v3221_v56 = vmul.f32 1.442695, %v3220_v34  ;;  %v3228_v59 = vmul.f32 1.442695, %v3227_v2 }
0x11ee   :  { %4497 = vpow2.f32 %v3215_v42 }
0x11ef   :  { %4499 = vpow2.f32 %v3221_v56 }
0x11f0   :  { %4501 = vpow2.f32 %v3228_v59 }
0x11f1   :  { %4503 = vtanh.f32 %v3212_v14 }
0x11f8   :  { %v4498_v39 = vpop.eup %4497 }
0x11f9   :  { %v4500_v37 = vpop.eup %4499  ;;  %v3217_v46 = vadd.f32 1.0, %v4498_v39 }
0x11fa   :  { %v3223_v55 = vadd.f32 1.0, %v4500_v37  ;;  %v4502_v9 = vpop.eup %4501 }
0x11fb   :  { %4505 = vrcp.f32 %v3217_v46  ;;  %v4504_v40 = vpop.eup %4503  ;;  %v3230_v61 = vadd.f32 1.0, %v4502_v9 }
0x11fc   :  { %4507 = vrcp.f32 %v3223_v55  ;;  %v4233_v55 = vld [vmem:[%s6608_s6] ss:$8 sps:$4 sm:$0xff]  }
0x11fd   :  { %4509 = vrcp.f32 %v3230_v61  ;;  %v4242_v61 = vld [vmem:[%s6608_s6 + $0x30] ss:$8 sps:$4 sm:$0xff]  }
0x1205   :  { %v4506_v1 = vpop.eup %4505 }
0x1206   :  { %v4508_v51 = vpop.eup %4507  ;;  %v3237_v49 = vmul.f32 %v4506_v1, %v4504_v40  ;;  %v4238_v1 = vld [vmem:[%s6608_s6 + $0x14] ss:$8 sps:$4 sm:$0xff]  }
0x1207   :  { %v3236_v33 = vmul.f32 %v4508_v51, %v3234_v48  ;;  %v4510_v34 = vpop.eup %4509  ;;  %v4236_v48 = vld [vmem:[%s6608_s6 + $0x10] ss:$8 sps:$4 sm:$0xff]   ;;  %v4241_v51 = vld [vmem:[%s6608_s6 + $0x24] ss:$8 sps:$4 sm:$0xff]  }
0x1209   :  { %v6477_v13 = vadd.f32 %v3237_v49, %v3236_v33  ;;  %v4244_v49 = vld [vmem:[%s6608_s6 + $0x34] ss:$8 sps:$4 sm:$0xff]   ;;  %v4247_v33 = vld [vmem:[%s6608_s6 + $0x44] ss:$8 sps:$4 sm:$0xff]  }
0x120b   :  { %4511 = vtanh.f32 %v6477_v13 }
0x1215   :  { %v4512_v42 = vpop.eup %4511 }
0x1216   :  { %v3240_v56 = vmul.f32 %v4512_v42, %v4510_v34  ;;  %v4250_v34 = vld [vmem:[%s6608_s6 + $0x54] ss:$8 sps:$4 sm:$0xff]   ;;  %v4248_v42 = vld [vmem:[%s6608_s6 + $0x50] ss:$8 sps:$4 sm:$0xff]  }
0x1218   :  { %v3241_v2 = vpack.c.bf16 %v3240_v56, %v3240_v56  ;;  %v6484_v58 = vsel %vm1855_vm7, %v3490_v31, %v3240_v56  ;;  %v4253_v56 = vld [vmem:[%s6608_s6 + $0x64] ss:$8 sps:$4 sm:$0xff]   ;;  %v4251_v31 = vld [vmem:[%s6608_s6 + $0x60] ss:$8 sps:$4 sm:$0xff]  }
0x121a   :  { %v3243_v63 = vrot.slane %v3241_v2, 2  ;;  %v4256_v2 = vld [vmem:[%s6608_s6 + $0x74] ss:$8 sps:$4 sm:$0xff]  }
0x121c   :  { %3278 = vmatmul.mubr.bf16.vlgmr.msra.gmra.mrb[76].mxu1 %v3243_v63  ;;  %3319 = vmatmul.mubr.bf16.vlgmr.msra.gmra.mrb[80].mxu0 %v3243_v63 }
0x121d   :  { %3375 = vmatpush1.bf16.msra.mxu1 %v6235_v52  ;;  %3416 = vmatpush1.bf16.msra.mxu0 %v6241_v10 }
0x121e   :  { %3376 = vmatprep.subr.bf16.mxu1 %v6247_v60  ;;  %3417 = vmatprep.subr.bf16.mxu0 %v6253_v4 }
0x121f   :  { %3406 = vmatprep.mubr.bf16.mxu1 %v6632_v43  ;;  %3447 = vmatprep.mubr.bf16.mxu0 %v6632_v43 }
0x1221   :  { %3377 = vmatpush1.bf16.msra.mxu1 %v6261_v36  ;;  %3418 = vmatpush1.bf16.msra.mxu0 %v6267_v0 }
0x1222   :  { %3378 = vmatprep.subr.bf16.mxu1 %v6273_v6  ;;  %3419 = vmatprep.subr.bf16.mxu0 %v6279_v41 }
0x1225   :  { %3379 = vmatpush1.bf16.msra.mxu1 %v6285_v18  ;;  %3420 = vmatpush1.bf16.msra.mxu0 %v6291_v12 }
0x1226   :  { %3380 = vmatprep.subr.bf16.mxu1 %v6297_v15  ;;  %3421 = vmatprep.subr.bf16.mxu0 %v6303_v45 }
0x1229   :  { %3381 = vmatpush1.bf16.msra.mxu1 %v6309_v57  ;;  %3422 = vmatpush1.bf16.msra.mxu0 %v6315_v32 }
0x122a   :  { %3382 = vmatprep.subr.bf16.mxu1 %v6321_v35  ;;  %3423 = vmatprep.subr.bf16.mxu0 %v6327_v47 }
0x122d   :  { %3383 = vmatpush1.bf16.msra.mxu1 %v6333_v50  ;;  %3424 = vmatpush1.bf16.msra.mxu0 %v6339_v21 }
0x122e   :  { %3384 = vmatprep.subr.bf16.mxu1 %v6345_v22  ;;  %3425 = vmatprep.subr.bf16.mxu0 %v6351_v23 }
0x1231   :  { %3385 = vmatpush1.bf16.msra.mxu1 %v6357_v24  ;;  %3426 = vmatpush1.bf16.msra.mxu0 %v6363_v25 }
0x1232   :  { %3386 = vmatprep.subr.bf16.mxu1 %v6369_v26  ;;  %3427 = vmatprep.subr.bf16.mxu0 %v6375_v7 }
0x1235   :  { %3387 = vmatpush1.bf16.msra.mxu1 %v6381_v16  ;;  %3428 = vmatpush1.bf16.msra.mxu0 %v6387_v27 }
0x1236   :  { %3388 = vmatprep.subr.bf16.mxu1 %v6393_v17  ;;  %3429 = vmatprep.subr.bf16.mxu0 %v6399_v8 }
0x1239   :  { %3389 = vmatpush1.bf16.msra.mxu1 %v6405_v28  ;;  %3430 = vmatpush1.bf16.msra.mxu0 %v6411_v30 }
0x123a   :  { %3603 = vmatprep.subr.bf16.mxu1 %v4235_v5 }
0x12ef   :  { %v3279_v52 = vpop.f32.mrb[76].mxu1  ;;  %v3320_v10 = vpop.f32.mrb[80].mxu0 }
0x12f0   :  { %v3331_v60 = vrot.slane %v3279_v52, 2  ;;  %v3281_v4 = vpop.f32.mrb[77].mxu1  ;;  %v3322_v36 = vpop.f32.mrb[81].mxu0  ;;  %v3333_v23 = vrot.slane %v3320_v10, 2 }
0x12f1   :  { %v3332_v0 = vrot.slane %v3281_v4, 2  ;;  %v3283_v6 = vpop.f32.mrb[78].mxu1  ;;  %v3324_v41 = vpop.f32.mrb[82].mxu0  ;;  %v3334_v57 = vrot.slane %v3322_v36, 2 }
0x12f2   :  { %v3339_v18 = vadd.f32 %v3331_v60, %v6206_v19  ;;  %v3284_v12 = vpop.f32.mrb[79].mxu1  ;;  %v3325_v15 = vpop.f32.mrb[83].mxu0  ;;  %v3341_v25 = vadd.f32 %v3333_v23, %v6221_v38 }
0x12f3   :  { %v3340_v45 = vadd.f32 %v3332_v0, %v6210_v20  ;;  %v3342_v21 = vadd.f32 %v3334_v57, %v6216_v29  ;;  %v3363_v29 = vrot.slane %v6477_v13, 6  ;;  %v4245_v13 = vld [vmem:[%s6608_s6 + $0x40] ss:$8 sps:$4 sm:$0xff]  }
0x12f4   :  { %v3343_v32 = vsub.f32 0.0, %v3339_v18 }
0x12f5   :  { %v3349_v35 = vsub.f32 0.0, %v3340_v45  ;;  %v3356_v22 = vsub.f32 0.0, %v3342_v21  ;;  %v3511_v21 = vld [vmem:[%s6609_s7] sm:$0x3]  ;;  %s4636_s7 = smov [#allocation2]  }
0x12f6   :  { %v3344_v47 = vmul.f32 1.442695, %v3343_v32  ;;  %s3727_s30 = sshll.u32 %s4636_s7, 4  ;;  %s3728_s30 = int_to_ptr.vmem [resolvable:$true] %s3727_s30 }
0x12f7   :  { %v3350_v50 = vmul.f32 1.442695, %v3349_v35  ;;  %v3357_v24 = vmul.f32 1.442695, %v3356_v22  ;;  %v4635_v22 = vmov 1983009808   ;;  %p4614_p1 = scmp.lt.s32.totalorder %s3728_s30, %s3728_s30 }
0x12f8   :  { %4513 = vpow2.f32 %v3344_v47  ;;  %s4609_s9 = scalar_lea.vmem %s3728_s30, 576 }
0x12f9   :  { %4515 = vpow2.f32 %v3350_v50  ;;  %p4610_p0 = scmp.ne.s32.totalorder %s3728_s30, %s4609_s9  ;;  %p4615_p2 = scmp.lt.s32.totalorder %s4609_s9, %s4609_s9 }
0x12fa   :  { %4517 = vpow2.f32 %v3357_v24 }
0x12fb   :  { %4519 = vtanh.f32 %v3341_v25  ;;  %v6647_v25 = vld [vmem:[#allocation8_spill] sm:$0xff]  ;;  %p4616_p3 = por %p4615_p2, %p4614_p1 }
0x12fd   :  { %p4617_p4 = pnand %p4616_p3, %p4610_p0 }
0x1302   :  { %v4514_v26 = vpop.eup %4513 }
0x1303   :  { %v4516_v19 = vpop.eup %4515  ;;  %v3346_v7 = vadd.f32 1.0, %v4514_v26  ;;  %v3516_v26 = vrot.slane %v3511_v21, %v6647_v25 }
0x1304   :  { %v3352_v20 = vadd.f32 1.0, %v4516_v19  ;;  %v4518_v16 = vpop.eup %4517 }
0x1305   :  { %4521 = vrcp.f32 %v3346_v7  ;;  %v4520_v27 = vpop.eup %4519  ;;  %v3359_v30 = vadd.f32 1.0, %v4518_v16  ;;  %v6648_v7 = vld [vmem:[#allocation9_spill] sm:$0xff] }
0x1306   :  { %4523 = vrcp.f32 %v3352_v20  ;;  %v3520_v20 = vrot.slane %v3511_v21, %v6648_v7 }
0x1307   :  { %4525 = vrcp.f32 %v3359_v30 }
0x130f   :  { %v4522_v17 = vpop.eup %4521 }
0x1310   :  { %v4524_v8 = vpop.eup %4523  ;;  %v3366_v28 = vmul.f32 %v4522_v17, %v4520_v27 }
0x1311   :  { %v3365_v11 = vmul.f32 %v4524_v8, %v3363_v29  ;;  %v4526_v38 = vpop.eup %4525 }
0x1313   :  { %v6526_v59 = vadd.f32 %v3366_v28, %v3365_v11 }
0x1315   :  { %4527 = vtanh.f32 %v6526_v59 }
0x131f   :  { %v4528_v14 = vpop.eup %4527 }
0x1320   :  { %v3369_v39 = vmul.f32 %v4528_v14, %v4526_v38  ;;  %v6649_v14 = vld [vmem:[#allocation7_spill] sm:$0xff] }
0x1322   :  { %v3370_v37 = vpack.c.bf16 %v3369_v39, %v3369_v39  ;;  %v3492_v46 = vsel %vm1857_vm8, %v6484_v58, %v3369_v39  ;;  %v4254_v58 = vld [vmem:[%s6608_s6 + $0x70] ss:$8 sps:$4 sm:$0xff]  }
0x1323   :  { %v3493_v9 = vpack.c.bf16 %v3492_v46, %v6168_v3  ;;  %v4239_v3 = vld [vmem:[%s6608_s6 + $0x20] ss:$8 sps:$4 sm:$0xff]  }
0x1324   :  { %v3372_v40 = vrot.slane %v3370_v37, 3 }
0x1326   :  { %3407 = vmatmul.mubr.bf16.vlgmr.msra.gmra.mrb[44].mxu1 %v3372_v40  ;;  %3448 = vmatmul.mubr.bf16.vlgmr.msra.gmra.mrb[48].mxu0 %v3372_v40 }
0x1327   :  { %3604 = vmatpush1.bf16.msra.mxu1 %v4233_v55  ;;  %3635 = vmatprep.mubr.bf16.mxu1 %v6632_v43 }
0x1328   :  { %3605 = vmatprep.subr.bf16.mxu1 %v4238_v1 }
0x132b   :  { %3606 = vmatpush1.bf16.msra.mxu1 %v4236_v48 }
0x132c   :  { %3607 = vmatprep.subr.bf16.mxu1 %v4241_v51 }
0x132f   :  { %3608 = vmatpush1.bf16.msra.mxu1 %v4239_v3 }
0x1330   :  { %3609 = vmatprep.subr.bf16.mxu1 %v4244_v49 }
0x1333   :  { %3610 = vmatpush1.bf16.msra.mxu1 %v4242_v61 }
0x1334   :  { %3611 = vmatprep.subr.bf16.mxu1 %v4247_v33 }
0x1337   :  { %3612 = vmatpush1.bf16.msra.mxu1 %v4245_v13 }
0x1338   :  { %3613 = vmatprep.subr.bf16.mxu1 %v4250_v34 }
0x133b   :  { %3614 = vmatpush1.bf16.msra.mxu1 %v4248_v42 }
0x133c   :  { %3615 = vmatprep.subr.bf16.mxu1 %v4253_v56 }
0x133f   :  { %3616 = vmatpush1.bf16.msra.mxu1 %v4251_v31 }
0x1340   :  { %3617 = vmatprep.subr.bf16.mxu1 %v4256_v2 }
0x1343   :  { %3618 = vmatpush1.bf16.msra.mxu1 %v4254_v58 }
0x1346   :  { %3636 = vmatmul.mubr.bf16.vlgmr.msra.gmra.mrb[80].mxu1 %v3493_v9 }
0x1347   :  { %3645 = vmatprep.mubr.bf16.mxu1 %v6632_v43 }
0x13f9   :  { %v3408_v63 = vpop.f32.mrb[44].mxu1  ;;  %v3449_v5 = vpop.f32.mrb[48].mxu0 }
0x13fa   :  { %v3998_v52 = vadd.f32 %v3408_v63, %v5992_v44  ;;  %v3410_v10 = vpop.f32.mrb[45].mxu1  ;;  %v3451_v60 = vpop.f32.mrb[49].mxu0  ;;  %v4000_v44 = vadd.f32 %v3449_v5, %v6645_v62  ;;  %v3480_v62 = vrot.slane %v6526_v59, 6 }
0x13fb   :  { %v3999_v4 = vadd.f32 %v3410_v10, %v5995_v54  ;;  %v3412_v36 = vpop.f32.mrb[46].mxu1  ;;  %v3453_v0 = vpop.f32.mrb[50].mxu0  ;;  %v4001_v57 = vadd.f32 %v3451_v60, %v6005_v53  ;;  %v3663_v53 = vunpack.c.l.s4 %v4635_v22 }
0x13fc   :  { %v3460_v6 = vsub.f32 0.0, %v3998_v52  ;;  %v3413_v41 = vpop.f32.mrb[47].mxu1  ;;  %v3454_v18 = vpop.f32.mrb[51].mxu0 }
0x13fd   :  { %v3466_v12 = vsub.f32 0.0, %v3999_v4  ;;  %v3473_v43 = vsub.f32 0.0, %v4001_v57  ;;  %v3664_v16 = vunpack.c.0.s8 %v3663_v53 }
0x13fe   :  { %v3461_v15 = vmul.f32 1.442695, %v3460_v6 }
0x13ff   :  { %v3467_v45 = vmul.f32 1.442695, %v3466_v12  ;;  %v3474_v32 = vmul.f32 1.442695, %v3473_v43  ;;  %v3667_v39 = vsub.s32 %v3664_v16, %v6649_v14 }
0x1400   :  { %4529 = vpow2.f32 %v3461_v15 }
0x1401   :  { %4531 = vpow2.f32 %v3467_v45 }
0x1402   :  { %4533 = vpow2.f32 %v3474_v32 }
0x1403   :  { %4535 = vtanh.f32 %v4000_v44 }
0x140a   :  { %v4530_v35 = vpop.eup %4529 }
0x140b   :  { %v4532_v47 = vpop.eup %4531  ;;  %v3463_v50 = vadd.f32 1.0, %v4530_v35 }
0x140c   :  { %v3469_v54 = vadd.f32 1.0, %v4532_v47  ;;  %v4534_v23 = vpop.eup %4533 }
0x140d   :  { %4537 = vrcp.f32 %v3463_v50  ;;  %v4536_v24 = vpop.eup %4535  ;;  %v3476_v29 = vadd.f32 1.0, %v4534_v23 }
0x140e   :  { %4539 = vrcp.f32 %v3469_v54 }
0x140f   :  { %4541 = vrcp.f32 %v3476_v29 }
0x1417   :  { %v4538_v19 = vpop.eup %4537 }
0x1418   :  { %v4540_v27 = vpop.eup %4539  ;;  %v3483_v17 = vmul.f32 %v4538_v19, %v4536_v24 }
0x1419   :  { %v3482_v8 = vmul.f32 %v4540_v27, %v3480_v62  ;;  %v3637_v28 = vpop.f32.mrb[80].mxu1  ;;  %v4542_v31 = vpop.eup %4541 }
0x141a   :  { %v3638_v30 = vadd.f32 %v3637_v28, %v3516_v26  ;;  %v3639_v11 = vpop.f32.mrb[81].mxu1 }
0x141b   :  { %v3640_v38 = vadd.f32 %v3639_v11, %v3520_v20  ;;  %v3641_v37 = vpop.f32.mrb[82].mxu1  ;;  %v3484_v46 = vadd.f32 %v3483_v17, %v3482_v8 }
0x141c   :  { %v3642_v55 = vadd.f32 %v3641_v37, %v3516_v26  ;;  %v3643_v9 = vpop.f32.mrb[83].mxu1 }
0x141d   :  { %v3660_v40 = vcombine.low %v3638_v30, %v3640_v38  ;;  %v3661_v59 = vcombine.high %v3638_v30, %v3640_v38  ;;  %v3644_v1 = vadd.f32 %v3643_v9, %v3520_v20  ;;  %4543 = vtanh.f32 %v3484_v46 }
0x141f   :  { %v3668_v48 = vrot.slane %v3660_v40, %v3667_v39  ;;  %v3675_v51 = vrot.slane %v3661_v59, %v3667_v39  ;;  %3967 = vst.sshfl [vmem:[#allocation2] sm:$0x33 pattern:$0x76325410] %v3660_v40  ;;  %v3678_v3 = vcombine.low %v3642_v55, %v3644_v1  ;;  %v3679_v49 = vcombine.high %v3642_v55, %v3644_v1 }
0x1420   :  { %3968 = vst.sshfl [vmem:[#allocation2 + $0x8] sm:$0x33 pattern:$0x76325410] %v3661_v59 }
0x1421   :  { %v3676_v61 = vcombine.high %v3668_v48, %v3668_v48  ;;  %v3677_v33 = vcombine.high %v3675_v51, %v3675_v51  ;;  %v3686_v13 = vrot.slane %v3678_v3, %v3667_v39  ;;  %v3693_v34 = vrot.slane %v3679_v49, %v3667_v39  ;;  %3969 = vst.sshfl [vmem:[#allocation2 + $0x10] sm:$0x33 pattern:$0x76325410] %v3678_v3 }
0x1422   :  { %3970 = vst.sshfl [vmem:[#allocation2 + $0x18] sm:$0x33 pattern:$0x76325410] %v3679_v49 }
0x1423   :  { %3714 = vst [vmem:[#allocation2 + $0x4] sm:$0xf] %v3676_v61  ;;  %3716 = vst [vmem:[#allocation2 + $0xc] sm:$0xf] %v3677_v33  ;;  %v3694_v42 = vcombine.high %v3686_v13, %v3686_v13  ;;  %v3695_v56 = vcombine.high %v3693_v34, %v3693_v34 }
0x1425   :  { %3718 = vst [vmem:[#allocation2 + $0x14] sm:$0xf] %v3694_v42  ;;  %3720 = vst [vmem:[#allocation2 + $0x1c] sm:$0xf] %v3695_v56 }
0x1427   :  { %v4544_v2 = vpop.eup %4543 }
0x1428   :  { %v3486_v58 = vmul.f32 %v4544_v2, %v4542_v31 }
0x142a   :  { %v3494_v63 = vpack.c.bf16 %v3486_v58, %v3486_v58 }
0x142c   :  { %3646 = vmatmul.mubr.bf16.gmra.mrb[84].mxu1 %v3494_v63 }
0x14ff   :  { %v3647_v5 = vpop.f32.mrb[84].mxu1 }
0x1500   :  { %v3648_v52 = vadd.f32 %v3647_v5, %v3516_v26  ;;  %v3649_v10 = vpop.f32.mrb[85].mxu1 }
0x1501   :  { %v3650_v60 = vadd.f32 %v3649_v10, %v3520_v20  ;;  %v3651_v4 = vpop.f32.mrb[86].mxu1 }
0x1502   :  { %v3652_v36 = vpop.f32.mrb[87].mxu1 }
0x1503   :  { %v3696_v0 = vcombine.low %v3648_v52, %v3650_v60 }
0x1505   :  { %3971 = vst.sshfl [vmem:[#allocation2 + $0x20] sm:$0x33 pattern:$0x76325410] %v3696_v0 }
0x1506   :  { %4620 = shalt.err (!%p4617_p4)
}
0x1507   :  { %s4621_s11 = scalar_lea.hbm %s6610_s8, 576 }
0x1508   :  { %p4622_p5 = scmp.ne.s32.totalorder %s6610_s8, %s4621_s11  ;;  %p4625_p6 = scmp.lt.u32.totalorder %s4621_s11, %s6610_s8 }
0x150a   :  { %p4627_p7 = pnand %p4625_p6, %p4622_p5 }
0x150c   :  { %4630 = shalt.err (!%p4627_p7)
}
0x150d   :  { %s4637_s16 = smov 64   ;;  %s4638_s2 = smov 4  }
0x150e   :  { %3733 = dma.vmem_to_hbm [thread:$0]  %s3728_s30, 576, %s6610_s8, [#allocation3], %s4637_s16, %s4637_s16, %s4638_s2  }
0x150f   :  { %4631 = dma.done.wait [#allocation3], 576  }
0x1510   :  { %4632 = vsyncadd [#allocation3], 4294966720 }
0x1511   :  { %3737 = vsyncpa [#allocation3], 1 }

// kernel: caption_rl_forward.2
= control target key start
LH: loop header
LB: loop body
LE: loop exit
PB: predicated region body
PF: predicated region fallthrough
CT: control target
= control target key end

     0   :  { %s8823_s27 = smov 0   ;;  %s10730_s0 = inlined_call_operand.vmem [shape: f32[2,16,192], index: 0, kind: input, shape index: {}]   ;;  %s10731_s1 = inlined_call_operand.vmem [shape: bf16[192,128], index: 1, kind: input, shape index: {}]   ;;  %s10732_s2 = inlined_call_operand.vmem [shape: f32[1,128], index: 2, kind: input, shape index: {}]   ;;  %s10733_s3 = inlined_call_operand.vmem [shape: f32[1,24,128], index: 3, kind: input, shape index: {}]   ;;  %s10734_s4 = inlined_call_operand.vmem [shape: f32[2,1,128], index: 4, kind: input, shape index: {}]   ;;  %s10735_s5 = inlined_call_operand.vmem [shape: f32[2,1,128], index: 5, kind: input, shape index: {}]   ;;  %s10736_s6 = inlined_call_operand.vmem [shape: bf16[2,128,384], index: 6, kind: input, shape index: {}]   ;;  %s10737_s7 = inlined_call_operand.vmem [shape: f32[2,1,384], index: 7, kind: input, shape index: {}]   ;;  %s10738_s8 = inlined_call_operand.vmem [shape: bf16[2,128,128], index: 8, kind: input, shape index: {}]   ;;  %s10739_s9 = inlined_call_operand.vmem [shape: f32[2,1,128], index: 9, kind: input, shape index: {}]   ;;  %s10740_s10 = inlined_call_operand.vmem [shape: f32[2,1,128], index: 10, kind: input, shape index: {}]   ;;  %s10741_s11 = inlined_call_operand.vmem [shape: f32[2,1,128], index: 11, kind: input, shape index: {}]   ;;  %s10742_s12 = inlined_call_operand.vmem [shape: bf16[2,128,256], index: 12, kind: input, shape index: {}]   ;;  %s10743_s13 = inlined_call_operand.vmem [shape: f32[2,1,256], index: 13, kind: input, shape index: {}]   ;;  %s10744_s14 = inlined_call_operand.vmem [shape: bf16[2,256,128], index: 14, kind: input, shape index: {}]   ;;  %s10745_s15 = inlined_call_operand.vmem [shape: f32[2,1,128], index: 15, kind: input, shape index: {}]   ;;  %s10746_s16 = inlined_call_operand.vmem [shape: f32[1,128], index: 16, kind: input, shape index: {}]   ;;  %s10747_s17 = inlined_call_operand.vmem [shape: f32[1,128], index: 17, kind: input, shape index: {}]   ;;  %s10748_s18 = inlined_call_operand.vmem [shape: f32[2,1,128], index: 18, kind: output, shape index: {}]  }
   0x1   :  { %10752 = sst [smem:[#allocation2_spill]] %s10730_s0 }
   0x2   :  { %10753 = sst [smem:[#allocation3_spill]] %s10731_s1 }
   0x3   :  { %10754 = sst [smem:[#allocation4_spill]] %s10732_s2 }
   0x4 LB: > { %s7597_s28 = sadd.s32 4294967295, %s8718_s27   ;;  %p7601_p0 = scmp.ge.s32.totalorder %s8718_s27, 1  ;;  %s8718_s27 = sphi %s8823_s27, %s28_s27  }
   0x5   : > { %p512_p1 = scmp.lt.s32.totalorder %s8718_s27, 3 }
   0x7   : > { %p513_p2 = pnand %p7601_p0, %p512_p1 }
   0x8   : > { %s10755_s0 = sld [smem:[#allocation3_spill]] (!%p513_p2)  ;;  %v8720_v1 = vmov (!%p513_p2), 0   ;;  %p564_p3 = scmp.lt.s32.totalorder (!%p513_p2), %s7597_s28, 1  ;;  %vm719_vm0 = vcmask (!%p513_p2), 523264   ;;  %v766_v55 = vld [vmem:[%s10733_s3 + $0x10] sm:$0xff] (!%p513_p2)  ;;  %v764_v58 = vld [vmem:[%s10733_s3] sm:$0xff] (!%p513_p2) }
   0x9   : > { %516 = sbr.rel (%p513_p2) target bundleno = 6005 (0x1775), region = 92  ;;  %723 = vmatprep.subr.bf16.mxu0 (!%p513_p2), %v8720_v1  ;;  %1039 = vmatprep.mubr.bf16.mxu1 (!%p513_p2), %v8720_v1  ;;  %s10756_s24 = sld [smem:[#allocation2_spill]] (!%p513_p2)  ;;  %vm2436_vm1 = vcmask (!%p513_p2), 261120   ;;  %vm2701_vm3 = vcmask (!%p513_p2), 195584   ;;  %vm2856_vm4 = vcmask (!%p513_p2), 1043456   ;;  %vm3529_vm5 = vcmask (!%p513_p2), 785408  }
   0xa   : > { %780 = vadd.xlane.f32.xlu1 (!%p513_p2), %v766_v55  ;;  %s8721_s23 = smov (!%p513_p2), 96   ;;  %s10758_s2 = smov (!%p513_p2), 32  }
   0xe   : > { %v8389_v0 = vld [vmem:[%s10755_s0] sm:$0xff] (!%p513_p2)   ;;  %v8390_v2 = vld [vmem:[%s10755_s0 + $0x8] sm:$0xff] (!%p513_p2)   ;;  %v8391_v3 = vld [vmem:[%s10755_s0 + $0x10] sm:$0xff] (!%p513_p2)  }
   0xf   : > { %724 = vmatpush1.bf16.msra.mxu0 (!%p513_p2), %v8389_v0  ;;  %v8392_v4 = vld [vmem:[%s10755_s0 + $0x18] sm:$0xff] (!%p513_p2)   ;;  %v8393_v8 = vld [vmem:[%s10755_s0 + $0x20] sm:$0xff] (!%p513_p2)   ;;  %v8394_v17 = vld [vmem:[%s10755_s0 + $0x28] sm:$0xff] (!%p513_p2)  }
  0x10   : > { %725 = vmatprep.subr.bf16.mxu0 %v8720_v1  ;;  %s10760_s28 = smov (!%p564_p3, %s7597_s28), 1  ;;  %v8395_v26 = vld [vmem:[%s10755_s0 + $0x30] sm:$0xff]   ;;  %v8396_v35 = vld [vmem:[%s10755_s0 + $0x38] sm:$0xff]   ;;  %v8397_v43 = vld [vmem:[%s10755_s0 + $0x40] sm:$0xff]  }
  0x11   : > { %s7950_s22 = sshll.u32 %s10760_s28, 5  ;;  %v8398_v49 = vld [vmem:[%s10755_s0 + $0x48] sm:$0xff]   ;;  %v8399_v50 = vld [vmem:[%s10755_s0 + $0x50] sm:$0xff]   ;;  %v8400_v53 = vld [vmem:[%s10755_s0 + $0x58] sm:$0xff]   ;;  %s571_s19 = scalar_lea.vmem %s10748_s18, %s10760_s28 }
  0x12   : > { %s568_s25 = scalar_lea.vmem %s10756_s24, %s7950_s22  ;;  %s10757_s24 = sld [smem:[#allocation4_spill]] }
  0x13   : > { %726 = vmatpush1.bf16.msra.mxu0 %v8390_v2  ;;  %v574_v5 = vld [vmem:[%s568_s25 + $0x8] sm:$0xff]  ;;  %v576_v6 = vld [vmem:[%s568_s25 + $0x18] sm:$0xff]  ;;  %v573_v7 = vld [vmem:[%s568_s25] sm:$0xff] }
  0x14   : > { %727 = vmatprep.subr.bf16.mxu0 %v8720_v1  ;;  %v578_v9 = vmul.f32 0.5, %v574_v5  ;;  %v580_v10 = vmul.f32 0.5, %v576_v6  ;;  %v575_v11 = vld [vmem:[%s568_s25 + $0x10] sm:$0xff]  ;;  %v577_v12 = vmul.f32 0.5, %v573_v7  ;;  %v765_v2 = vld [vmem:[%s10733_s3 + $0x8] sm:$0xff]  ;;  %s10750_s25 = smov 32  }
  0x15   : > { %v579_v13 = vmul.f32 0.5, %v575_v11  ;;  %v8403_v5 = vld [vmem:[%s10736_s6] ss:$12 sps:$4 sm:$0xff]   ;;  %v8404_v6 = vld [vmem:[%s10736_s6 + $0x1c] ss:$12 sps:$4 sm:$0xff]  }
  0x16   : > { %v582_v14 = vadd.f32 0.5, %v578_v9  ;;  %v584_v15 = vadd.f32 0.5, %v580_v10  ;;  %v581_v16 = vadd.f32 0.5, %v577_v12  ;;  %v8406_v7 = vld [vmem:[%s10736_s6 + $0x18] ss:$12 sps:$4 sm:$0xff]  }
  0x17   : > { %728 = vmatpush1.bf16.msra.mxu0 %v8391_v3  ;;  %v583_v18 = vadd.f32 0.5, %v579_v13 }
  0x18   : > { %729 = vmatprep.subr.bf16.mxu0 %v8720_v1  ;;  %v586_v19 = vmul.f32 255.0, %v582_v14  ;;  %v588_v20 = vmul.f32 255.0, %v584_v15  ;;  %v585_v21 = vmul.f32 255.0, %v581_v16  ;;  %v7608_v56 = vld [vmem:[%s10757_s24] ss:$0 sm:$0xff]  ;;  %s8722_s24 = smov 64  }
  0x19   : > { %v587_v22 = vmul.f32 255.0, %v583_v18 }
  0x1a   : > { %v590_v23 = vmax.f32 %v586_v19, 0.0  ;;  %v592_v24 = vmax.f32 %v588_v20, 0.0  ;;  %v589_v25 = vmax.f32 %v585_v21, 0.0  ;;  %v8407_v20 = vld [vmem:[%s10736_s6 + $0x34] ss:$12 sps:$4 sm:$0xff]  }
  0x1b   : > { %730 = vmatpush1.bf16.msra.mxu0 %v8392_v4  ;;  %v591_v27 = vmax.f32 %v587_v22, 0.0  ;;  %v8401_v4 = vld [vmem:[%s10736_s6 + $0x4] ss:$12 sps:$4 sm:$0xff]   ;;  %v8410_v22 = vld [vmem:[%s10736_s6 + $0x4c] ss:$12 sps:$4 sm:$0xff]  }
  0x1c   : > { %731 = vmatprep.subr.bf16.mxu0 %v8720_v1  ;;  %v594_v28 = vmin.f32 %v590_v23, 255.0  ;;  %v596_v29 = vmin.f32 %v592_v24, 255.0  ;;  %v593_v30 = vmin.f32 %v589_v25, 255.0  ;;  %1007 = vmatprep.subr.bf16.mxu1 %v8401_v4  ;;  %v8409_v21 = vld [vmem:[%s10736_s6 + $0x30] ss:$12 sps:$4 sm:$0xff]   ;;  %v770_v4 = vlaneseq }
  0x1d   : > { %v595_v31 = vmin.f32 %v591_v27, 255.0  ;;  %1008 = vmatpush1.bf16.msra.mxu1 %v8403_v5  ;;  %v8412_v23 = vld [vmem:[%s10736_s6 + $0x48] ss:$12 sps:$4 sm:$0xff]   ;;  %v8413_v24 = vld [vmem:[%s10736_s6 + $0x64] ss:$12 sps:$4 sm:$0xff]  }
  0x1e   : > { %v598_v32 = vfloor.f32 %v594_v28  ;;  %v600_v33 = vfloor.f32 %v596_v29  ;;  %v597_v34 = vfloor.f32 %v593_v30  ;;  %1009 = vmatprep.subr.bf16.mxu1 %v8404_v6  ;;  %v8415_v25 = vld [vmem:[%s10736_s6 + $0x60] ss:$12 sps:$4 sm:$0xff]   ;;  %v8418_v27 = vld [vmem:[%s10736_s6 + $0x78] ss:$12 sps:$4 sm:$0xff]   ;;  %v8421_v29 = vld [vmem:[%s10736_s6 + $0x90] ss:$12 sps:$4 sm:$0xff]  }
  0x1f   : > { %732 = vmatpush1.bf16.msra.mxu0 %v8393_v8  ;;  %v599_v36 = vfloor.f32 %v595_v31  ;;  %v8419_v28 = vld [vmem:[%s10736_s6 + $0x94] ss:$12 sps:$4 sm:$0xff]   ;;  %v8422_v30 = vld [vmem:[%s10736_s6 + $0xac] ss:$12 sps:$4 sm:$0xff]   ;;  %v8987_v5 = vshrl.u32 %v770_v4, 7 }
  0x20   : > { %733 = vmatprep.subr.bf16.mxu0 %v8720_v1  ;;  %v602_v37 = vmul.f32 0.003921569, %v598_v32  ;;  %v604_v38 = vmul.f32 0.003921569, %v600_v33  ;;  %v601_v39 = vmul.f32 0.003921569, %v597_v34 }
  0x21   : > { %v603_v40 = vmul.f32 0.003921569, %v599_v36  ;;  %1010 = vmatpush1.bf16.msra.mxu1 %v8406_v7  ;;  %v8424_v31 = vld [vmem:[%s10736_s6 + $0xa8] ss:$12 sps:$4 sm:$0xff]   ;;  %v8990_v6 = vsub.s32 0, %v8987_v5 }
  0x22   : > { %v7605_v41 = vadd.f32 -0.5, %v602_v37  ;;  %v7607_v42 = vadd.f32 -0.5, %v604_v38  ;;  %v7604_v46 = vadd.f32 -0.5, %v601_v39  ;;  %1011 = vmatprep.subr.bf16.mxu1 %v8407_v20  ;;  %v8425_v32 = vld [vmem:[%s10736_s6 + $0x8] ss:$12 sps:$4 sm:$0xff]  }
  0x23   : > { %734 = vmatpush1.bf16.msra.mxu0 %v8394_v17  ;;  %v7606_v47 = vadd.f32 -0.5, %v603_v40  ;;  %v862_v7 = vld [vmem:[%s10737_s7] sm:$0x7] }
  0x24   : > { %735 = vmatprep.subr.bf16.mxu0 %v8720_v1  ;;  %v611_v44 = vmul.f32 2.0, %v7605_v41  ;;  %v613_v45 = vmul.f32 2.0, %v7607_v42  ;;  %v610_v51 = vmul.f32 2.0, %v7604_v46 }
  0x25   : > { %v612_v52 = vmul.f32 2.0, %v7606_v47  ;;  %1012 = vmatpush1.bf16.msra.mxu1 %v8409_v21 }
  0x26   : > { %v615_v48 = vpack.c.bf16 %v613_v45, %v611_v44  ;;  %1013 = vmatprep.subr.bf16.mxu1 %v8410_v22  ;;  %v7622_v44 = vld [vmem:[%s10734_s4] ss:$0 sm:$0xff] }
  0x27   : > { %736 = vmatpush1.bf16.msra.mxu0 %v8395_v26  ;;  %v614_v54 = vpack.c.bf16 %v612_v52, %v610_v51  ;;  %v8416_v26 = vld [vmem:[%s10736_s6 + $0x7c] ss:$12 sps:$4 sm:$0xff]  }
  0x28   : > { %737 = vmatprep.subr.bf16.mxu0 %v8720_v1  ;;  %7621 = vmatprep.mubr.msk.bf16.mxu0 %vm719_vm0, %v615_v48 }
  0x29   : > { %1014 = vmatpush1.bf16.msra.mxu1 %v8412_v23 }
  0x2a   : > { %1015 = vmatprep.subr.bf16.mxu1 %v8413_v24  ;;  %v874_v24 = vsub.s32 2, %v8987_v5 }
  0x2b   : > { %738 = vmatpush1.bf16.msra.mxu0 %v8396_v35 }
  0x2c   : > { %739 = vmatprep.subr.bf16.mxu0 %v8720_v1 }
  0x2d   : > { %1016 = vmatpush1.bf16.msra.mxu1 %v8415_v25  ;;  %v875_v25 = vrot.slane %v862_v7, %v874_v24 }
  0x2e   : > { %1017 = vmatprep.subr.bf16.mxu1 %v8416_v26 }
  0x2f   : > { %740 = vmatpush1.bf16.msra.mxu0 %v8397_v43 }
  0x30   : > { %741 = vmatprep.subr.bf16.mxu0 %v8720_v1 }
  0x31   : > { %1018 = vmatpush1.bf16.msra.mxu1 %v8418_v27 }
  0x32   : > { %1019 = vmatprep.subr.bf16.mxu1 %v8419_v28 }
  0x33   : > { %742 = vmatpush1.bf16.msra.mxu0 %v8398_v49  ;;  %v7623_v49 = vld [vmem:[%s10735_s5] ss:$0 sm:$0xff] }
  0x34   : > { %743 = vmatprep.subr.bf16.mxu0 %v8720_v1 }
  0x35   : > { %1020 = vmatpush1.bf16.msra.mxu1 %v8421_v29 }
  0x36   : > { %1021 = vmatprep.subr.bf16.mxu1 %v8422_v30 }
  0x37   : > { %744 = vmatpush1.bf16.msra.mxu0 %v8399_v50 }
  0x38   : > { %745 = vmatprep.subr.bf16.mxu0 %v8720_v1 }
  0x39   : > { %1022 = vmatpush1.bf16.msra.mxu1 %v8424_v31 }
  0x3a   : > { %8111 = vmatprep.subr.bf16.mxu1 %v8425_v32 }
  0x3b   : > { %746 = vmatpush1.bf16.msra.mxu0 %v8400_v53 }
  0x3e   : > { %756 = vmatmul.mubr.bf16.vlgmr.msra.gmra.mrb[0].mxu0 %v614_v54 }
  0x97   : > { %v781_v8 = vpop.xlane.xlu1 %780 }
  0x98   : > { %v785_v9 = vmul.f32 0.0078125, %v781_v8  ;;  %v8996_v8 = vsub.s32 1, %v8987_v5 }
  0x9a   : > { %v788_v13 = vsub.f32 %v766_v55, %v785_v9  ;;  %v8426_v55 = vld [vmem:[%s10736_s6 + $0x20] ss:$12 sps:$4 sm:$0xff]   ;;  %v867_v9 = vrot.slane %v862_v7, %v8990_v6 }
  0x9c   : > { %v791_v17 = vmul.f32 %v788_v13, %v788_v13 }
 0x111   : > { %v757_v57 = vpop.f32.mrb[0].mxu0 }
 0x112   : > { %v758_v59 = vadd.f32 %v7608_v56, %v757_v57  ;;  %v759_v60 = vpop.f32.mrb[1].mxu0  ;;  %v8427_v57 = vld [vmem:[%s10736_s6 + $0x38] ss:$12 sps:$4 sm:$0xff]  }
 0x113   : > { %v760_v61 = vpop.f32.mrb[2].mxu0  ;;  %v8428_v60 = vld [vmem:[%s10736_s6 + $0x50] ss:$12 sps:$4 sm:$0xff]  }
 0x114   : > { %v8896_v62 = vadd.f32 %v764_v58, %v758_v59  ;;  %v761_v63 = vadd.f32 %v7608_v56, %v760_v61  ;;  %v762_v0 = vpop.f32.mrb[3].mxu0  ;;  %v8429_v61 = vld [vmem:[%s10736_s6 + $0x68] ss:$12 sps:$4 sm:$0xff]  }
 0x115   : > { %v8431_v0 = vld [vmem:[%s10736_s6 + $0x98] ss:$12 sps:$4 sm:$0xff]  }
 0x116   : > { %776 = vadd.xlane.f32.xlu0 %v8896_v62  ;;  %v8902_v3 = vadd.f32 %v765_v2, %v761_v63  ;;  %v8430_v63 = vld [vmem:[%s10736_s6 + $0x80] ss:$12 sps:$4 sm:$0xff]   ;;  %v8432_v2 = vld [vmem:[%s10736_s6 + $0xb0] ss:$12 sps:$4 sm:$0xff]  }
 0x11a   : > { %778 = vadd.xlane.f32.xlu0 %v8902_v3 }
 0x1a3   : > { %v777_v10 = vpop.xlane.xlu0 %776 }
 0x1a4   : > { %v783_v11 = vmul.f32 0.0078125, %v777_v10  ;;  %v871_v10 = vrot.slane %v862_v7, %v8996_v8 }
 0x1a6   : > { %v786_v12 = vsub.f32 %v8896_v62, %v783_v11 }
 0x1a7   : > { %v779_v14 = vpop.xlane.xlu0 %778 }
 0x1a8   : > { %v784_v15 = vmul.f32 0.0078125, %v779_v14  ;;  %v789_v16 = vmul.f32 %v786_v12, %v786_v12 }
 0x1aa   : > { %792 = vadd.xlane.f32.xlu1 %v789_v16  ;;  %v787_v18 = vsub.f32 %v8902_v3, %v784_v15 }
 0x1ac   : > { %v790_v19 = vmul.f32 %v787_v18, %v787_v18 }
 0x1ae   : > { %796 = vadd.xlane.f32.xlu1 %v791_v17  ;;  %794 = vadd.xlane.f32.xlu0 %v790_v19 }
 0x237   : > { %v793_v33 = vpop.xlane.xlu1 %792 }
 0x238   : > { %v798_v34 = vmul.f32 0.0078125, %v793_v33 }
 0x23a   : > { %v801_v35 = vadd.f32 1e-12, %v798_v34  ;;  %v8724_v34 = vmov 1983009808  }
 0x23b   : > { %v797_v36 = vpop.xlane.xlu1 %796  ;;  %v795_v37 = vpop.xlane.xlu0 %794 }
 0x23c   : > { %8561 = vrsqrt.f32 %v801_v35  ;;  %v800_v38 = vmul.f32 0.0078125, %v797_v36  ;;  %v799_v39 = vmul.f32 0.0078125, %v795_v37  ;;  %v1139_v35 = vunpack.c.l.s4 %v8724_v34 }
 0x23e   : > { %v803_v40 = vadd.f32 1e-12, %v800_v38  ;;  %v802_v41 = vadd.f32 1e-12, %v799_v39  ;;  %v8725_v38 = vmov 1934713408  }
 0x23f   : > { %v1171_v39 = vunpack.c.l.s4 %v8725_v38 }
 0x240   : > { %8563 = vrsqrt.f32 %v803_v40  ;;  %v1140_v40 = vunpack.c.0.s8 %v1139_v35 }
 0x241   : > { %8565 = vrsqrt.f32 %v802_v41 }
 0x246   : > { %v8562_v42 = vpop.eup %8561 }
 0x247   : > { %v807_v43 = vmul.f32 %v8562_v42, %v786_v12 }
 0x249   : > { %v816_v48 = vmul.f32 %v7622_v44, %v807_v43  ;;  %v1172_v43 = vunpack.c.0.s8 %v1171_v39 }
 0x24a   : > { %v8564_v45 = vpop.eup %8563 }
 0x24b   : > { %v8566_v46 = vpop.eup %8565  ;;  %v809_v51 = vmul.f32 %v8564_v45, %v788_v13  ;;  %v825_v52 = vadd.f32 %v7623_v49, %v816_v48 }
 0x24c   : > { %v808_v47 = vmul.f32 %v8566_v46, %v787_v18 }
 0x24d   : > { %v818_v56 = vmul.f32 %v7622_v44, %v809_v51  ;;  %v9069_v51 = vsub.s32 %v1172_v43, %v8987_v5 }
 0x24e   : > { %v817_v50 = vmul.f32 %v7622_v44, %v808_v47  ;;  %v9062_v44 = vsub.s32 %v1140_v40, %v8987_v5 }
 0x24f   : > { %v827_v58 = vadd.f32 %v7623_v49, %v818_v56 }
 0x250   : > { %v826_v53 = vadd.f32 %v7623_v49, %v817_v50 }
 0x251   : > { %v829_v59 = vpack.c.bf16 %v827_v58, %v827_v58 }
 0x252   : > { %v828_v54 = vpack.c.bf16 %v826_v53, %v825_v52 }
 0x254   : > { %1040 = vmatmul.mubr.bf16.vlgmr.msra.gmra.mrb[0].mxu1 %v828_v54 }
 0x255   : > { %8112 = vmatpush3.bf16.msra.mxu1 %v8425_v32  ;;  %1049 = vmatprep.mubr.bf16.mxu1 %v8720_v1 }
 0x256   : > { %8113 = vmatprep.subr.bf16.mxu1 %v8426_v55 }
 0x259   : > { %8114 = vmatpush3.bf16.msra.mxu1 %v8426_v55 }
 0x25a   : > { %8115 = vmatprep.subr.bf16.mxu1 %v8427_v57 }
 0x25c   : > { %1050 = vmatmul.mubr.bf16.gmra.mrb[4].mxu1 %v829_v59 }
 0x25d   : > { %8116 = vmatpush3.bf16.msra.mxu1 %v8427_v57  ;;  %8127 = vmatprep.mubr.bf16.mxu1 %v828_v54 }
 0x25e   : > { %8117 = vmatprep.subr.bf16.mxu1 %v8428_v60 }
 0x261   : > { %8118 = vmatpush3.bf16.msra.mxu1 %v8428_v60 }
 0x262   : > { %8119 = vmatprep.subr.bf16.mxu1 %v8429_v61 }
 0x265   : > { %8120 = vmatpush3.bf16.msra.mxu1 %v8429_v61 }
 0x266   : > { %8121 = vmatprep.subr.bf16.mxu1 %v8430_v63 }
 0x269   : > { %8122 = vmatpush3.bf16.msra.mxu1 %v8430_v63 }
 0x26a   : > { %8123 = vmatprep.subr.bf16.mxu1 %v8431_v0 }
 0x26d   : > { %8124 = vmatpush3.bf16.msra.mxu1 %v8431_v0 }
 0x26e   : > { %8125 = vmatprep.subr.bf16.mxu1 %v8432_v2 }
 0x271   : > { %8126 = vmatpush3.bf16.msra.mxu1 %v8432_v2 }
 0x274   : > { %8128 = vmatmul.mubr.bf16.vlgmr.msra.gmra.mrb[8].mxu1 %v829_v59 }
 0x327   : > { %v1041_v11 = vpop.f32.mrb[0].mxu1 }
 0x328   : > { %v9000_v12 = vadd.f32 %v1041_v11, %v867_v9  ;;  %v1043_v13 = vpop.f32.mrb[1].mxu1 }
 0x329   : > { %v9002_v14 = vadd.f32 %v1043_v13, %v871_v10  ;;  %v1045_v15 = vpop.f32.mrb[2].mxu1 }
 0x32a   : > { %v1047_v16 = vpop.f32.mrb[3].mxu1  ;;  %1109 = vrot.lane.b32.xlu1 %v9000_v12, %s8721_s23  ;;  %v9012_v19 = vadd.f32 %v1045_v15, %v867_v9 }
 0x32b   : > { %1547 = vrot.lane.b32.xlu0 %v9002_v14, %s8721_s23  ;;  %v9018_v22 = vadd.f32 %v1047_v16, %v871_v10 }
 0x32e   : > { %1118 = vrot.lane.b32.xlu1 %v9000_v12, %s8722_s24 }
 0x32f   : > { %v1051_v17 = vpop.f32.mrb[4].mxu1  ;;  %1565 = vrot.lane.b32.xlu0 %v9002_v14, %s10750_s25 }
 0x330   : > { %v1053_v18 = vpop.f32.mrb[5].mxu1  ;;  %v9041_v26 = vadd.f32 %v1051_v17, %v867_v9 }
 0x331   : > { %v1055_v20 = vpop.f32.mrb[6].mxu1  ;;  %v9024_v23 = vadd.f32 %v1053_v18, %v871_v10 }
 0x332   : > { %v1056_v21 = vpop.f32.mrb[7].mxu1  ;;  %1556 = vrot.lane.b32.xlu1 %v9002_v14, %s8722_s24 }
 0x333   : > { %1111 = vrot.lane.b32.xlu0 %v9012_v19, %s8721_s23 }
 0x336   : > { %1549 = vrot.lane.b32.xlu1 %v9018_v22, %s8721_s23 }
 0x337   : > { %1120 = vrot.lane.b32.xlu0 %v9012_v19, %s8722_s24 }
 0x33a   : > { %1558 = vrot.lane.b32.xlu1 %v9018_v22, %s8722_s24 }
 0x33b   : > { %1551 = vrot.lane.b32.xlu0 %v9024_v23, %s8721_s23 }
 0x33e   : > { %1567 = vrot.lane.b32.xlu1 %v9018_v22, %s10750_s25 }
 0x33f   : > { %1569 = vrot.lane.b32.xlu0 %v9024_v23, %s10750_s25 }
 0x342   : > { %1127 = vrot.lane.b32.xlu1 %v9000_v12, %s10750_s25 }
 0x343   : > { %1129 = vrot.lane.b32.xlu0 %v9012_v19, %s10750_s25 }
 0x346   : > { %1560 = vrot.lane.b32.xlu1 %v9024_v23, %s8722_s24 }
 0x347   : > { %v8129_v27 = vpop.f32.mrb[8].mxu1  ;;  %1122 = vrot.lane.b32.xlu0 %v9041_v26, %s8722_s24 }
 0x348   : > { %v9047_v28 = vadd.f32 %v8129_v27, %v875_v25  ;;  %v1092_v29 = vpop.f32.mrb[9].mxu1 }
 0x349   : > { %v8130_v30 = vpop.f32.mrb[10].mxu1  ;;  %v9055_v33 = vadd.f32 %v1092_v29, %v875_v25 }
 0x34a   : > { %v1095_v31 = vpop.f32.mrb[11].mxu1  ;;  %1113 = vrot.lane.b32.xlu1 %v9041_v26, %s8721_s23 }
 0x34b   : > { %v9051_v32 = vadd.f32 %v1095_v31, %v875_v25 }
 0x34e   : > { %1131 = vrot.lane.b32.xlu1 %v9041_v26, %s10750_s25 }
 0x352   : > { %1985 = vrot.lane.b32.xlu1 %v9055_v33, %s8721_s23 }
 0x39c   : > { %v9059_v36 = vpop.permute.xlu1 %1109 }
 0x39d   : > { %v1548_v37 = vpop.permute.xlu0 %1547 }
 0x3a0   : > { %v1119_v41 = vpop.permute.xlu1 %1118 }
 0x3a1   : > { %v1566_v42 = vpop.permute.xlu0 %1565  ;;  %v1136_v9 = vcombine.low %v9000_v12, %v1119_v41  ;;  %v1137_v10 = vcombine.high %v9000_v12, %v1119_v41 }
 0x3a2   : > { %v1590_v45 = vcombine.low %v1548_v37, %v1566_v42  ;;  %v1591_v46 = vcombine.high %v1548_v37, %v1566_v42 }
 0x3a3   : > { %v1144_v30 = vrot.slane %v1136_v9, %v9062_v44  ;;  %v1151_v31 = vrot.slane %v1137_v10, %v9062_v44 }
 0x3a4   : > { %v1557_v47 = vpop.permute.xlu1 %1556  ;;  %v1598_v52 = vrot.slane %v1590_v45, %v9062_v44  ;;  %v1605_v53 = vrot.slane %v1591_v46, %v9062_v44 }
 0x3a5   : > { %v1574_v48 = vcombine.low %v9002_v14, %v1557_v47  ;;  %v1575_v49 = vcombine.high %v9002_v14, %v1557_v47  ;;  %v9066_v50 = vpop.permute.xlu0 %1111 }
 0x3a7   : > { %v1582_v54 = vrot.slane %v1574_v48, %v9062_v44  ;;  %v1589_v55 = vrot.slane %v1575_v49, %v9062_v44 }
 0x3a8   : > { %v1550_v56 = vpop.permute.xlu1 %1549 }
 0x3a9   : > { %v1606_v57 = vcombine.low %v1582_v54, %v1598_v52  ;;  %v1607_v58 = vcombine.high %v1582_v54, %v1598_v52  ;;  %v1622_v59 = vcombine.low %v1589_v55, %v1605_v53  ;;  %v1623_v60 = vcombine.high %v1589_v55, %v1605_v53  ;;  %v1121_v61 = vpop.permute.xlu0 %1120 }
 0x3aa   : > { %v1204_v11 = vcombine.low %v9012_v19, %v1121_v61  ;;  %v1205_v13 = vcombine.high %v9012_v19, %v1121_v61 }
 0x3ab   : > { %v1614_v63 = vrot.slane %v1606_v57, %v9069_v51  ;;  %v1621_v0 = vrot.slane %v1607_v58, %v9069_v51  ;;  %v1630_v2 = vrot.slane %v1622_v59, %v9069_v51  ;;  %v1637_v7 = vrot.slane %v1623_v60, %v9069_v51 }
 0x3ac   : > { %v1559_v14 = vpop.permute.xlu1 %1558  ;;  %v9100_v34 = vrot.slane %v1204_v11, %v9062_v44 }
 0x3ad   : > { %v1778_v15 = vcombine.low %v1614_v63, %v1621_v0  ;;  %v7654_v16 = vcombine.high %v1614_v63, %v1621_v0  ;;  %v1794_v17 = vcombine.low %v1630_v2, %v1637_v7  ;;  %v7655_v18 = vcombine.high %v1630_v2, %v1637_v7  ;;  %v1552_v20 = vpop.permute.xlu0 %1551 }
 0x3ae   : > { %v1642_v21 = vcombine.low %v9018_v22, %v1559_v14  ;;  %v1643_v25 = vcombine.high %v9018_v22, %v1559_v14  ;;  %v9103_v22 = vrot.slane %v1205_v13, %v9062_v44 }
 0x3af   : > { %v9086_v27 = vrot.slane %v1778_v15, %v9062_v44  ;;  %v9089_v29 = vrot.slane %v7654_v16, %v9062_v44  ;;  %v9092_v12 = vrot.slane %v1794_v17, %v9062_v44  ;;  %v9095_v19 = vrot.slane %v7655_v18, %v9062_v44 }
 0x3b0   : > { %v1568_v35 = vpop.permute.xlu1 %1567  ;;  %v1650_v42 = vrot.slane %v1642_v21, %v9062_v44  ;;  %v1657_v43 = vrot.slane %v1643_v25, %v9062_v44 }
 0x3b1   : > { %v1658_v37 = vcombine.low %v1550_v56, %v1568_v35  ;;  %v1659_v38 = vcombine.high %v1550_v56, %v1568_v35  ;;  %v1570_v39 = vpop.permute.xlu0 %1569  ;;  %v1810_v40 = vcombine.low %v9086_v27, %v9089_v29  ;;  %v1826_v41 = vcombine.low %v9092_v12, %v9095_v19 }
 0x3b2   : > { %v1726_v45 = vcombine.low %v1552_v20, %v1570_v39  ;;  %v1727_v46 = vcombine.high %v1552_v20, %v1570_v39  ;;  %v1811_v49 = vcombine.high %v9086_v27, %v9089_v29  ;;  %v1827_v52 = vcombine.high %v9092_v12, %v9095_v19 }
 0x3b3   : > { %v1666_v47 = vrot.slane %v1658_v37, %v9062_v44  ;;  %v1673_v48 = vrot.slane %v1659_v38, %v9062_v44  ;;  %v9124_v56 = vrot.slane %v1810_v40, %v9069_v51  ;;  %v9127_v57 = vrot.slane %v1826_v41, %v9069_v51 }
 0x3b4   : > { %v9118_v53 = vrot.slane %v1726_v45, %v9062_v44  ;;  %v9121_v54 = vrot.slane %v1727_v46, %v9062_v44  ;;  %v1128_v55 = vpop.permute.xlu1 %1127 }
 0x3b5   : > { %v1674_v58 = vcombine.low %v1650_v42, %v1666_v47  ;;  %v1675_v59 = vcombine.high %v1650_v42, %v1666_v47  ;;  %v1690_v60 = vcombine.low %v1657_v43, %v1673_v48  ;;  %v1691_v61 = vcombine.high %v1657_v43, %v1673_v48  ;;  %v1130_v63 = vpop.permute.xlu0 %1129 }
 0x3b6   : > { %v1152_v0 = vcombine.low %v9059_v36, %v1128_v55  ;;  %v1153_v2 = vcombine.high %v9059_v36, %v1128_v55  ;;  %v1220_v7 = vcombine.low %v9066_v50, %v1130_v63  ;;  %v1221_v9 = vcombine.high %v9066_v50, %v1130_v63 }
 0x3b7   : > { %v1682_v10 = vrot.slane %v1674_v58, %v9069_v51  ;;  %v1689_v11 = vrot.slane %v1675_v59, %v9069_v51  ;;  %v1698_v13 = vrot.slane %v1690_v60, %v9069_v51  ;;  %v1705_v14 = vrot.slane %v1691_v61, %v9069_v51 }
 0x3b8   : > { %v1160_v15 = vrot.slane %v1152_v0, %v9062_v44  ;;  %v1167_v16 = vrot.slane %v1153_v2, %v9062_v44  ;;  %v1228_v17 = vrot.slane %v1220_v7, %v9062_v44  ;;  %v1235_v36 = vrot.slane %v1221_v9, %v9062_v44  ;;  %v1561_v18 = vpop.permute.xlu1 %1560 }
 0x3b9   : > { %v1846_v20 = vcombine.low %v1682_v10, %v1689_v11  ;;  %v7656_v21 = vcombine.high %v1682_v10, %v1689_v11  ;;  %v1862_v50 = vcombine.low %v1698_v13, %v1705_v14  ;;  %v7657_v25 = vcombine.high %v1698_v13, %v1705_v14  ;;  %v1123_v11 = vpop.permute.xlu0 %1122 }
 0x3ba   : > { %v1168_v35 = vcombine.low %v1144_v30, %v1160_v15  ;;  %v1169_v37 = vcombine.high %v1144_v30, %v1160_v15  ;;  %v1184_v38 = vcombine.low %v1151_v31, %v1167_v16  ;;  %v1185_v39 = vcombine.high %v1151_v31, %v1167_v16 }
 0x3bb   : > { %v9142_v40 = vrot.slane %v1846_v20, %v9062_v44  ;;  %v9145_v41 = vrot.slane %v7656_v21, %v9062_v44  ;;  %v9148_v42 = vrot.slane %v1862_v50, %v9062_v44  ;;  %v9151_v43 = vrot.slane %v7657_v25, %v9062_v44 }
 0x3bc   : > { %v1176_v45 = vrot.slane %v1168_v35, %v9069_v51  ;;  %v1183_v46 = vrot.slane %v1169_v37, %v9069_v51  ;;  %v1192_v30 = vrot.slane %v1184_v38, %v9069_v51  ;;  %v1199_v31 = vrot.slane %v1185_v39, %v9069_v51  ;;  %v1114_v47 = vpop.permute.xlu1 %1113 }
 0x3bd   : > { %v1236_v48 = vcombine.low %v9100_v34, %v1228_v17  ;;  %v1237_v55 = vcombine.high %v9100_v34, %v1228_v17  ;;  %v1252_v58 = vcombine.low %v9103_v22, %v1235_v36  ;;  %v1253_v59 = vcombine.high %v9103_v22, %v1235_v36 }
 0x3be   : > { %v1340_v60 = vcombine.low %v1176_v45, %v1183_v46  ;;  %v7648_v61 = vcombine.high %v1176_v45, %v1183_v46  ;;  %v1356_v63 = vcombine.low %v1192_v30, %v1199_v31  ;;  %v7649_v0 = vcombine.high %v1192_v30, %v1199_v31 }
 0x3bf   : > { %v1244_v2 = vrot.slane %v1236_v48, %v9069_v51  ;;  %v1251_v7 = vrot.slane %v1237_v55, %v9069_v51  ;;  %v1260_v9 = vrot.slane %v1252_v58, %v9069_v51  ;;  %v1267_v10 = vrot.slane %v1253_v59, %v9069_v51 }
 0x3c0   : > { %v9166_v13 = vrot.slane %v1340_v60, %v9062_v44  ;;  %v9169_v34 = vrot.slane %v7648_v61, %v9062_v44  ;;  %v9172_v22 = vrot.slane %v1356_v63, %v9062_v44  ;;  %v9175_v14 = vrot.slane %v7649_v0, %v9062_v44  ;;  %v1132_v35 = vpop.permute.xlu1 %1131 }
 0x3c1   : > { %v1408_v15 = vcombine.low %v1244_v2, %v1251_v7  ;;  %v7650_v16 = vcombine.high %v1244_v2, %v1251_v7  ;;  %v1424_v17 = vcombine.low %v1260_v9, %v1267_v10  ;;  %v7651_v36 = vcombine.high %v1260_v9, %v1267_v10 }
 0x3c2   : > { %v1710_v20 = vcombine.low %v9024_v23, %v1561_v18  ;;  %v1711_v21 = vcombine.high %v9024_v23, %v1561_v18  ;;  %v1272_v50 = vcombine.low %v9041_v26, %v1123_v11  ;;  %v1273_v25 = vcombine.high %v9041_v26, %v1123_v11 }
 0x3c3   : > { %v9182_v37 = vrot.slane %v1408_v15, %v9062_v44  ;;  %v9185_v38 = vrot.slane %v7650_v16, %v9062_v44  ;;  %v9188_v39 = vrot.slane %v1424_v17, %v9062_v44  ;;  %v9191_v45 = vrot.slane %v7651_v36, %v9062_v44 }
 0x3c4   : > { %v1718_v46 = vrot.slane %v1710_v20, %v9062_v44  ;;  %v1725_v23 = vrot.slane %v1711_v21, %v9062_v44  ;;  %v1280_v18 = vrot.slane %v1272_v50, %v9062_v44  ;;  %v1287_v26 = vrot.slane %v1273_v25, %v9062_v44 }
 0x3c5   : > { %v1288_v30 = vcombine.low %v1114_v47, %v1132_v35  ;;  %v1289_v31 = vcombine.high %v1114_v47, %v1132_v35  ;;  %v1842_v48 = vcombine.low %v9124_v56, %v9127_v57  ;;  %v1878_v55 = vcombine.low %v9142_v40, %v9145_v41 }
 0x3c6   : > { %v1742_v58 = vcombine.low %v1718_v46, %v9118_v53  ;;  %v1743_v59 = vcombine.high %v1718_v46, %v9118_v53  ;;  %v1758_v60 = vcombine.low %v1725_v23, %v9121_v54  ;;  %v1759_v61 = vcombine.high %v1725_v23, %v9121_v54 }
 0x3c7   : > { %v1296_v63 = vrot.slane %v1288_v30, %v9062_v44  ;;  %v1303_v0 = vrot.slane %v1289_v31, %v9062_v44  ;;  %v1886_v47 = vrot.slane %v1878_v55, %v9069_v51  ;;  %v1894_v2 = vcombine.low %v9148_v42, %v9151_v43 }
 0x3c8   : > { %v1750_v7 = vrot.slane %v1742_v58, %v9069_v51  ;;  %v1757_v9 = vrot.slane %v1743_v59, %v9069_v51  ;;  %v1766_v10 = vrot.slane %v1758_v60, %v9069_v51  ;;  %v1773_v53 = vrot.slane %v1759_v61, %v9069_v51 }
 0x3c9   : > { %v1304_v11 = vcombine.low %v1280_v18, %v1296_v63  ;;  %v1305_v15 = vcombine.high %v1280_v18, %v1296_v63  ;;  %v1320_v54 = vcombine.low %v1287_v26, %v1303_v0  ;;  %v1321_v16 = vcombine.high %v1287_v26, %v1303_v0 }
 0x3ca   : > { %v1914_v17 = vcombine.low %v1750_v7, %v1757_v9  ;;  %v7658_v36 = vcombine.high %v1750_v7, %v1757_v9  ;;  %v1930_v20 = vcombine.low %v1766_v10, %v1773_v53  ;;  %v7659_v21 = vcombine.high %v1766_v10, %v1773_v53 }
 0x3cb   : > { %v1312_v50 = vrot.slane %v1304_v11, %v9069_v51  ;;  %v1319_v25 = vrot.slane %v1305_v15, %v9069_v51  ;;  %v1328_v35 = vrot.slane %v1320_v54, %v9069_v51  ;;  %v1335_v46 = vrot.slane %v1321_v16, %v9069_v51 }
 0x3cc   : > { %v9219_v23 = vrot.slane %v1914_v17, %v9062_v44  ;;  %v9222_v30 = vrot.slane %v7658_v36, %v9062_v44  ;;  %v9225_v18 = vrot.slane %v1930_v20, %v9062_v44  ;;  %v9228_v26 = vrot.slane %v7659_v21, %v9062_v44 }
 0x3cd   : > { %v1476_v31 = vcombine.low %v1312_v50, %v1319_v25  ;;  %v7652_v55 = vcombine.high %v1312_v50, %v1319_v25  ;;  %v1492_v58 = vcombine.low %v1328_v35, %v1335_v46  ;;  %v7653_v59 = vcombine.high %v1328_v35, %v1335_v46 }
 0x3ce   : > { %v1902_v60 = vrot.slane %v1894_v2, %v9069_v51  ;;  %v1843_v61 = vcombine.high %v9124_v56, %v9127_v57  ;;  %v1372_v63 = vcombine.low %v9166_v13, %v9169_v34  ;;  %v1388_v0 = vcombine.low %v9172_v22, %v9175_v14 }
 0x3cf   : > { %v9238_v7 = vrot.slane %v1476_v31, %v9062_v44  ;;  %v9241_v9 = vrot.slane %v7652_v55, %v9062_v44  ;;  %v9244_v10 = vrot.slane %v1492_v58, %v9062_v44  ;;  %v9247_v2 = vrot.slane %v7653_v59, %v9062_v44 }
 0x3d0   : > { %v1910_v53 = vcombine.low %v1886_v47, %v1902_v60  ;;  %v1911_v56 = vcombine.high %v1886_v47, %v1902_v60  ;;  %v1380_v57 = vrot.slane %v1372_v63, %v9069_v51  ;;  %v1396_v11 = vrot.slane %v1388_v0, %v9069_v51 }
 0x3d1   : > { %v1508_v15 = vcombine.low %v9238_v7, %v9241_v9  ;;  %v1825_v54 = vrot.slane %v1811_v49, %v9069_v51  ;;  %v1841_v16 = vrot.slane %v1827_v52, %v9069_v51  ;;  %v1524_v47 = vcombine.low %v9244_v10, %v9247_v2 }
 0x3d2   : > { %v2428_v17 = vpack.c.bf16 %v1910_v53, %v1842_v48  ;;  %v2430_v36 = vpack.c.bf16 %v1911_v56, %v1843_v61  ;;  %v1440_v20 = vcombine.low %v9182_v37, %v9185_v38  ;;  %v1404_v21 = vcombine.low %v1380_v57, %v1396_v11 }
 0x3d3   : > { %v1456_v50 = vcombine.low %v9188_v39, %v9191_v45  ;;  %v1946_v27 = vcombine.low %v9219_v23, %v9222_v30  ;;  %v1962_v29 = vcombine.low %v9225_v18, %v9228_v26  ;;  %v1405_v52 = vcombine.high %v1380_v57, %v1396_v11 }
 0x3d4   : > { %8319 = vmatprep.subr.msk.bf16.mxu1 %vm2436_vm1, %v2428_v17  ;;  %8321 = vmatprep.subr.msk.bf16.mxu0 %vm2436_vm1, %v2430_v36  ;;  %v2444_v12 = vsel %vm2436_vm1, %v2428_v17, 0  ;;  %v2504_v19 = vsel %vm2436_vm1, %v2430_v36, 0  ;;  %v1448_v49 = vrot.slane %v1440_v20, %v9069_v51  ;;  %v1844_v46 = vcombine.low %v1825_v54, %v1841_v16 }
 0x3d5   : > { %8132 = vmatpush3.bf16.xpose.msra.mxu1 %v2444_v12  ;;  %8140 = vmatpush3.bf16.xpose.msra.mxu0 %v2504_v19  ;;  %v1464_v48 = vrot.slane %v1456_v50, %v9069_v51  ;;  %v1954_v25 = vrot.slane %v1946_v27, %v9069_v51  ;;  %v1970_v35 = vrot.slane %v1962_v29, %v9069_v51 }
 0x3d6   : > { %v1879_v31 = vcombine.high %v9142_v40, %v9145_v41  ;;  %v1895_v55 = vcombine.high %v9148_v42, %v9151_v43  ;;  %v1516_v58 = vrot.slane %v1508_v15, %v9069_v51  ;;  %v1532_v56 = vrot.slane %v1524_v47, %v9069_v51 }
 0x3d7   : > { %v1472_v59 = vcombine.low %v1448_v49, %v1464_v48  ;;  %v1473_v60 = vcombine.high %v1448_v49, %v1464_v48  ;;  %v1978_v61 = vcombine.low %v1954_v25, %v1970_v35  ;;  %v1979_v63 = vcombine.high %v1954_v25, %v1970_v35 }
 0x3d8   : > { %v1893_v0 = vrot.slane %v1879_v31, %v9069_v51  ;;  %v1909_v53 = vrot.slane %v1895_v55, %v9069_v51  ;;  %v1373_v57 = vcombine.high %v9166_v13, %v9169_v34  ;;  %v1845_v43 = vcombine.high %v1825_v54, %v1841_v16 }
 0x3d9   : > { %v2420_v11 = vpack.c.bf16 %v1472_v59, %v1404_v21  ;;  %v2422_v40 = vpack.c.bf16 %v1473_v60, %v1405_v52  ;;  %v2429_v41 = vpack.c.bf16 %v1978_v61, %v1978_v61  ;;  %v2431_v17 = vpack.c.bf16 %v1979_v63, %v1979_v63 }
 0x3da   : > { %v1912_v42 = vcombine.low %v1893_v0, %v1909_v53  ;;  %v1913_v15 = vcombine.high %v1893_v0, %v1909_v53  ;;  %v1540_v36 = vcombine.low %v1516_v58, %v1532_v56  ;;  %v1541_v47 = vcombine.high %v1516_v58, %v1532_v56 }
 0x3db   : > { %8135 = vmatprep.mubr.msk.bf16.mxu1 %vm2436_vm1, %v2420_v11  ;;  %8143 = vmatprep.mubr.msk.bf16.mxu0 %vm2436_vm1, %v2422_v40  ;;  %v2447_v20 = vsel %vm2436_vm1, %v2429_v41, 0  ;;  %v2507_v50 = vsel %vm2436_vm1, %v2431_v17, 0  ;;  %v1389_v13 = vcombine.high %v9172_v22, %v9175_v14  ;;  %v1387_v16 = vrot.slane %v1373_v57, %v9069_v51 }
 0x3dc   : > { %8320 = vmatprep.subr.msk.bf16.mxu1 %vm2436_vm1, %v2429_v41  ;;  %8322 = vmatprep.subr.msk.bf16.mxu0 %vm2436_vm1, %v2431_v17  ;;  %v2432_v34 = vpack.c.bf16 %v1912_v42, %v1844_v46  ;;  %v2434_v54 = vpack.c.bf16 %v1913_v15, %v1845_v43  ;;  %v1441_v27 = vcombine.high %v9182_v37, %v9185_v38  ;;  %v771_v53 = vand.u32 127, %v770_v4 }
 0x3dd   : > { %8134 = vmatpush3.bf16.xpose.msra.mxu1 %v2447_v20  ;;  %8142 = vmatpush3.bf16.xpose.msra.mxu0 %v2507_v50  ;;  %v1403_v21 = vrot.slane %v1389_v13, %v9069_v51  ;;  %v1457_v22 = vcombine.high %v9188_v39, %v9191_v45  ;;  %v1947_v14 = vcombine.high %v9219_v23, %v9222_v30  ;;  %v8726_v56 = vmov -1e+30  }
 0x3de   : > { %8323 = vmatprep.subr.msk.bf16.mxu1 %vm2436_vm1, %v2432_v34  ;;  %8325 = vmatprep.subr.msk.bf16.mxu0 %vm2436_vm1, %v2434_v54  ;;  %v2421_v29 = vpack.c.bf16 %v1540_v36, %v1540_v36  ;;  %v2423_v12 = vpack.c.bf16 %v1541_v47, %v1541_v47  ;;  %v1455_v19 = vrot.slane %v1441_v27, %v9069_v51  ;;  %v2564_v23 = vsel %vm2436_vm1, %v2432_v34, 0 }
 0x3df   : > { %v1963_v49 = vcombine.high %v9225_v18, %v9228_v26  ;;  %v1406_v52 = vcombine.low %v1387_v16, %v1403_v21  ;;  %v1471_v37 = vrot.slane %v1457_v22, %v9069_v51  ;;  %v1407_v38 = vcombine.high %v1387_v16, %v1403_v21 }
 0x3e0   : > { %v1961_v48 = vrot.slane %v1947_v14, %v9069_v51  ;;  %v2624_v18 = vsel %vm2436_vm1, %v2434_v54, 0  ;;  %v1509_v58 = vcombine.high %v9238_v7, %v9241_v9  ;;  %v1525_v59 = vcombine.high %v9244_v10, %v9247_v2 }
 0x3e1   : > { %v1977_v25 = vrot.slane %v1963_v49, %v9069_v51  ;;  %v1474_v35 = vcombine.low %v1455_v19, %v1471_v37  ;;  %v1475_v39 = vcombine.high %v1455_v19, %v1471_v37  ;;  %vm772_vm2 = vcmp.lt.s32.totalorder %v771_v53, 17 }
 0x3e2   : > { %v1523_v60 = vrot.slane %v1509_v58, %v9069_v51  ;;  %v1539_v61 = vrot.slane %v1525_v59, %v9069_v51  ;;  %v9332_v57 = vsel %vm772_vm2, 0.0, %v8726_v56 }
 0x3e3   : > { %v1980_v45 = vcombine.low %v1961_v48, %v1977_v25  ;;  %v1981_v46 = vcombine.high %v1961_v48, %v1977_v25  ;;  %v2424_v30 = vpack.c.bf16 %v1474_v35, %v1406_v52  ;;  %v2426_v26 = vpack.c.bf16 %v1475_v39, %v1407_v38 }
 0x3e4   : > { %8136 = vmatmul.mubr.msk.bf16.vlgmr.msra.gmra.mrb[12].mxu1 %vm2436_vm1, %v2421_v29  ;;  %8144 = vmatmul.mubr.msk.bf16.vlgmr.msra.gmra.mrb[4].mxu0 %vm2436_vm1, %v2423_v12  ;;  %v1542_v7 = vcombine.low %v1523_v60, %v1539_v61  ;;  %v1543_v9 = vcombine.high %v1523_v60, %v1539_v61 }
 0x3e5   : > { %8148 = vmatpush3.bf16.xpose.msra.mxu1 %v2564_v23  ;;  %8156 = vmatpush3.bf16.xpose.msra.mxu0 %v2624_v18  ;;  %v2433_v31 = vpack.c.bf16 %v1980_v45, %v1980_v45  ;;  %v2435_v55 = vpack.c.bf16 %v1981_v46, %v1981_v46 }
 0x3e6   : > { %8151 = vmatprep.mubr.msk.bf16.mxu1 %vm2436_vm1, %v2424_v30  ;;  %8159 = vmatprep.mubr.msk.bf16.mxu0 %vm2436_vm1, %v2426_v26  ;;  %v2425_v10 = vpack.c.bf16 %v1542_v7, %v1542_v7  ;;  %v2427_v2 = vpack.c.bf16 %v1543_v9, %v1543_v9 }
 0x3e7   : > { %8324 = vmatprep.subr.msk.bf16.mxu1 %vm2436_vm1, %v2433_v31  ;;  %8326 = vmatprep.subr.msk.bf16.mxu0 %vm2436_vm1, %v2435_v55  ;;  %v2567_v63 = vsel %vm2436_vm1, %v2433_v31, 0  ;;  %v2627_v0 = vsel %vm2436_vm1, %v2435_v55, 0 }
 0x3ed   : > { %8150 = vmatpush3.bf16.xpose.msra.mxu1 %v2567_v63  ;;  %8158 = vmatpush3.bf16.xpose.msra.mxu0 %v2627_v0 }
 0x3f4   : > { %8152 = vmatmul.mubr.msk.bf16.vlgmr.msra.gmra.mrb[16].mxu1 %vm2436_vm1, %v2425_v10  ;;  %8160 = vmatmul.mubr.msk.bf16.vlgmr.msra.gmra.mrb[8].mxu0 %vm2436_vm1, %v2427_v2 }
 0x4b7   : > { %v8137_v11 = vpop.f32.mrb[12].mxu1  ;;  %v8145_v40 = vpop.f32.mrb[4].mxu0 }
 0x4b8   : > { %v2679_v41 = vmul.f32 0.17677669, %v8137_v11  ;;  %v2682_v17 = vmul.f32 0.17677669, %v8145_v40  ;;  %v2483_v42 = vpop.f32.mrb[13].mxu1  ;;  %v2543_v43 = vpop.f32.mrb[5].mxu0 }
 0x4b9   : > { %v2677_v15 = vmul.f32 0.17677669, %v2483_v42  ;;  %v8138_v36 = vpop.f32.mrb[14].mxu1  ;;  %v8146_v20 = vpop.f32.mrb[6].mxu0  ;;  %v2680_v54 = vmul.f32 0.17677669, %v2543_v43 }
 0x4ba   : > { %v2486_v50 = vpop.f32.mrb[15].mxu1  ;;  %v2546_v47 = vpop.f32.mrb[7].mxu0  ;;  %v9335_v13 = vadd.f32 %v2682_v17, %v9332_v57  ;;  %v9338_v4 = vadd.f32 %v2679_v41, %v9332_v57 }
 0x4bb   : > { %v2678_v34 = vmul.f32 0.17677669, %v2486_v50  ;;  %v9345_v27 = vadd.f32 %v2677_v15, %v9332_v57  ;;  %v2681_v14 = vmul.f32 0.17677669, %v2546_v47  ;;  %v9355_v19 = vadd.f32 %v2680_v54, %v9332_v57  ;;  %v1986_v40 = vpop.permute.xlu1 %1985 }
 0x4bc   : > { %v2717_v16 = vsel %vm2701_vm3, %v9335_v13, -inf  ;;  %v2708_v21 = vsel %vm2701_vm3, %v9338_v4, -inf }
 0x4bd   : > { %2718 = vmax.xlane.f32.xlu1 %v2717_v16  ;;  %2709 = vmax.xlane.f32.xlu0 %v2708_v21  ;;  %v9348_v22 = vadd.f32 %v2678_v34, %v9332_v57  ;;  %v2702_v12 = vsel %vm2701_vm3, %v9345_v27, -inf  ;;  %v9358_v49 = vadd.f32 %v2681_v14, %v9332_v57  ;;  %v2711_v52 = vsel %vm2701_vm3, %v9355_v19, -inf }
 0x4bf   : > { %v2705_v29 = vsel %vm2701_vm3, %v9348_v22, -inf  ;;  %v2714_v48 = vsel %vm2701_vm3, %v9358_v49, -inf }
 0x4c1   : > { %2703 = vmax.xlane.f32.xlu0 %v2702_v12  ;;  %2706 = vmax.xlane.f32.xlu1 %v2705_v29 }
 0x4c5   : > { %2712 = vmax.xlane.f32.xlu0 %v2711_v52 }
 0x4c7   : > { %v8153_v37 = vpop.f32.mrb[16].mxu1  ;;  %v8161_v38 = vpop.f32.mrb[8].mxu0 }
 0x4c8   : > { %v2685_v25 = vmul.f32 0.17677669, %v8153_v37  ;;  %v2688_v35 = vmul.f32 0.17677669, %v8161_v38  ;;  %v2603_v39 = vpop.f32.mrb[17].mxu1  ;;  %v2663_v45 = vpop.f32.mrb[9].mxu0 }
 0x4c9   : > { %v2683_v46 = vmul.f32 0.17677669, %v2603_v39  ;;  %v8162_v23 = vpop.f32.mrb[10].mxu0  ;;  %2715 = vmax.xlane.f32.xlu0 %v2714_v48  ;;  %v8154_v30 = vpop.f32.mrb[18].mxu1  ;;  %v2686_v58 = vmul.f32 0.17677669, %v2663_v45 }
 0x4ca   : > { %v2606_v18 = vpop.f32.mrb[19].mxu1  ;;  %v2666_v26 = vpop.f32.mrb[11].mxu0  ;;  %v9365_v31 = vadd.f32 %v2688_v35, %v9332_v57  ;;  %v9368_v55 = vadd.f32 %v2685_v25, %v9332_v57 }
 0x4cb   : > { %v2695_v61 = vadd.f32 %v2683_v46, %v9332_v57  ;;  %v9377_v0 = vadd.f32 %v2686_v58, %v9332_v57  ;;  %v2684_v9 = vmul.f32 0.17677669, %v2606_v18  ;;  %v2687_v10 = vmul.f32 0.17677669, %v2666_v26 }
 0x4cc   : > { %v2735_v59 = vsel %vm2701_vm3, %v9365_v31, -inf  ;;  %v2726_v60 = vsel %vm2701_vm3, %v9368_v55, -inf }
 0x4cd   : > { %2736 = vmax.xlane.f32.xlu1 %v2735_v59  ;;  %2727 = vmax.xlane.f32.xlu0 %v2726_v60  ;;  %v2720_v63 = vsel %vm2701_vm3, %v2695_v61, -inf  ;;  %v2729_v7 = vsel %vm2701_vm3, %v9377_v0, -inf  ;;  %v9394_v2 = vadd.f32 %v2684_v9, %v9332_v57  ;;  %v9399_v56 = vadd.f32 %v2687_v10, %v9332_v57 }
 0x4cf   : > { %v2723_v53 = vsel %vm2701_vm3, %v9394_v2, -inf  ;;  %v2732_v11 = vsel %vm2701_vm3, %v9399_v56, -inf }
 0x4d1   : > { %2721 = vmax.xlane.f32.xlu0 %v2720_v63 }
 0x4d5   : > { %2730 = vmax.xlane.f32.xlu0 %v2729_v7 }
 0x4de   : > { %1994 = vrot.lane.b32.xlu1 %v9055_v33, %s8722_s24 }
 0x4e2   : > { %1996 = vrot.lane.b32.xlu1 %v9051_v32, %s8722_s24 }
 0x4e6   : > { %2003 = vrot.lane.b32.xlu1 %v9055_v33, %s10750_s25 }
 0x4eb   : > { %1987 = vrot.lane.b32.xlu0 %v9051_v32, %s8721_s23 }
 0x4ef   : > { %2005 = vrot.lane.b32.xlu0 %v9051_v32, %s10750_s25 }
 0x4f3   : > { %1998 = vrot.lane.b32.xlu0 %v9047_v28, %s8722_s24 }
 0x50a   : > { %2724 = vmax.xlane.f32.xlu1 %v2723_v53 }
 0x50e   : > { %2733 = vmax.xlane.f32.xlu1 %v2732_v11 }
 0x51f   : > { %1989 = vrot.lane.b32.xlu1 %v9047_v28, %s8721_s23 }
 0x54a   : > { %v2710_v41 = vpop.xlane.xlu0 %2709  ;;  %v2719_v17 = vpop.xlane.xlu1 %2718 }
 0x54b   : > { %v2740_v42 = vsub.f32 %v9338_v4, %v2710_v41  ;;  %v2743_v47 = vsub.f32 %v9335_v13, %v2719_v17 }
 0x54d   : > { %v2754_v43 = vmul.f32 1.442695, %v2740_v42  ;;  %v2760_v14 = vmul.f32 1.442695, %v2743_v47 }
 0x54e   : > { %v2704_v15 = vpop.xlane.xlu0 %2703  ;;  %v2707_v36 = vpop.xlane.xlu1 %2706 }
 0x54f   : > { %8567 = vpow2.f32 %v2754_v43  ;;  %v2738_v20 = vsub.f32 %v9345_v27, %v2704_v15  ;;  %v2739_v50 = vsub.f32 %v9348_v22, %v2707_v36 }
 0x551   : > { %v2750_v34 = vmul.f32 1.442695, %v2738_v20  ;;  %v2752_v54 = vmul.f32 1.442695, %v2739_v50 }
 0x552   : > { %v2713_v16 = vpop.xlane.xlu0 %2712 }
 0x553   : > { %8569 = vpow2.f32 %v2750_v34  ;;  %v2741_v21 = vsub.f32 %v9355_v19, %v2713_v16 }
 0x554   : > { %8571 = vpow2.f32 %v2752_v54 }
 0x555   : > { %v2756_v29 = vmul.f32 1.442695, %v2741_v21 }
 0x556   : > { %v9410_v4 = vpop.xlane.xlu0 %2715 }
 0x557   : > { %8573 = vpow2.f32 %v2756_v29 }
 0x558   : > { %8575 = vpow2.f32 %v2760_v14 }
 0x559   : > { %v9412_v12 = vpop.eup %8567 }
 0x55a   : > { %v9414_v27 = vpop.xlane.xlu0 %2727  ;;  %v9416_v22 = vpop.xlane.xlu1 %2736  ;;  %v2780_v13 = vsel %vm2701_vm3, %v9412_v12, 0.0 }
 0x55b   : > { %2781 = vadd.xlane.f32.xlu0 %v2780_v13 }
 0x55d   : > { %v9420_v52 = vpop.eup %8569 }
 0x55e   : > { %v9422_v19 = vpop.eup %8571  ;;  %v2722_v37 = vpop.xlane.xlu0 %2721  ;;  %v2774_v48 = vsel %vm2701_vm3, %v9420_v52, 0.0 }
 0x55f   : > { %v1995_v38 = vpop.permute.xlu1 %1994  ;;  %v2744_v25 = vsub.f32 %v2695_v61, %v2722_v37  ;;  %2775 = vadd.xlane.f32.xlu0 %v2774_v48  ;;  %v2777_v35 = vsel %vm2701_vm3, %v9422_v19, 0.0 }
 0x560   : > { %2778 = vadd.xlane.f32.xlu1 %v2777_v35  ;;  %v2012_v26 = vcombine.low %v9055_v33, %v1995_v38  ;;  %v2013_v58 = vcombine.high %v9055_v33, %v1995_v38 }
 0x561   : > { %v9428_v39 = vpop.eup %8573  ;;  %v2762_v45 = vmul.f32 1.442695, %v2744_v25 }
 0x562   : > { %v9430_v46 = vpop.xlane.xlu0 %2730  ;;  %v2783_v30 = vsel %vm2701_vm3, %v9428_v39, 0.0  ;;  %v9434_v18 = vpop.eup %8575  ;;  %v2020_v10 = vrot.slane %v2012_v26, %v9062_v44  ;;  %v2027_v53 = vrot.slane %v2013_v58, %v9062_v44 }
 0x563   : > { %v1997_v23 = vpop.permute.xlu1 %1996  ;;  %8577 = vpow2.f32 %v2762_v45  ;;  %2784 = vadd.xlane.f32.xlu0 %v2783_v30  ;;  %v2789_v61 = vsel %vm2701_vm3, %v9434_v18, 0.0 }
 0x564   : > { %v2080_v9 = vcombine.low %v9051_v32, %v1997_v23  ;;  %v2081_v33 = vcombine.high %v9051_v32, %v1997_v23 }
 0x566   : > { %v1988_v59 = vpop.permute.xlu0 %1987  ;;  %v2095_v32 = vrot.slane %v2081_v33, %v9062_v44 }
 0x567   : > { %v2004_v60 = vpop.permute.xlu1 %2003  ;;  %2790 = vadd.xlane.f32.xlu0 %v2789_v61 }
 0x568   : > { %v2028_v63 = vcombine.low %v1986_v40, %v2004_v60  ;;  %v2029_v7 = vcombine.high %v1986_v40, %v2004_v60  ;;  %v2088_v40 = vrot.slane %v2080_v9, %v9062_v44 }
 0x56a   : > { %v2036_v11 = vrot.slane %v2028_v63, %v9062_v44  ;;  %v2043_v41 = vrot.slane %v2029_v7, %v9062_v44  ;;  %v2006_v17 = vpop.permute.xlu0 %2005 }
 0x56b   : > { %v2096_v20 = vcombine.low %v1988_v59, %v2006_v17  ;;  %v2097_v50 = vcombine.high %v1988_v59, %v2006_v17 }
 0x56c   : > { %v2044_v42 = vcombine.low %v2020_v10, %v2036_v11  ;;  %v2045_v43 = vcombine.high %v2020_v10, %v2036_v11  ;;  %v2060_v15 = vcombine.low %v2027_v53, %v2043_v41  ;;  %v2061_v36 = vcombine.high %v2027_v53, %v2043_v41 }
 0x56d   : > { %v9447_v47 = vpop.eup %8577  ;;  %v2104_v14 = vrot.slane %v2096_v20, %v9062_v44  ;;  %v2111_v29 = vrot.slane %v2097_v50, %v9062_v44 }
 0x56e   : > { %v2052_v34 = vrot.slane %v2044_v42, %v9069_v51  ;;  %v2059_v54 = vrot.slane %v2045_v43, %v9069_v51  ;;  %v2068_v16 = vrot.slane %v2060_v15, %v9069_v51  ;;  %v2075_v21 = vrot.slane %v2061_v36, %v9069_v51 }
 0x56f   : > { %v2792_v13 = vsel %vm2701_vm3, %v9447_v47, 0.0  ;;  %v2112_v35 = vcombine.low %v2088_v40, %v2104_v14  ;;  %v2113_v45 = vcombine.high %v2088_v40, %v2104_v14  ;;  %v2128_v23 = vcombine.low %v2095_v32, %v2111_v29 }
 0x570   : > { %v2216_v37 = vcombine.low %v2052_v34, %v2059_v54  ;;  %v7660_v38 = vcombine.high %v2052_v34, %v2059_v54  ;;  %v2232_v48 = vcombine.low %v2068_v16, %v2075_v21  ;;  %v7661_v25 = vcombine.high %v2068_v16, %v2075_v21  ;;  %2793 = vadd.xlane.f32.xlu0 %v2792_v13 }
 0x571   : > { %v2129_v30 = vcombine.high %v2095_v32, %v2111_v29  ;;  %v2120_v59 = vrot.slane %v2112_v35, %v9069_v51  ;;  %v2127_v60 = vrot.slane %v2113_v45, %v9069_v51  ;;  %v2136_v61 = vrot.slane %v2128_v23, %v9069_v51  ;;  %2007 = vrot.lane.b32.xlu1 %v9047_v28, %s10750_s25 }
 0x572   : > { %v2223_v26 = vrot.slane %v2216_v37, %v9062_v44  ;;  %v2231_v58 = vrot.slane %v7660_v38, %v9062_v44  ;;  %v2239_v7 = vrot.slane %v2232_v48, %v9062_v44  ;;  %v2247_v9 = vrot.slane %v7661_v25, %v9062_v44 }
 0x573   : > { %v2143_v63 = vrot.slane %v2129_v30, %v9069_v51  ;;  %v2284_v10 = vcombine.low %v2120_v59, %v2127_v60  ;;  %v7662_v53 = vcombine.high %v2120_v59, %v2127_v60 }
 0x574   : > { %v2248_v33 = vcombine.low %v2223_v26, %v2231_v58  ;;  %v2264_v17 = vcombine.low %v2239_v7, %v2247_v9  ;;  %v2249_v42 = vcombine.high %v2223_v26, %v2231_v58  ;;  %v2265_v43 = vcombine.high %v2239_v7, %v2247_v9 }
 0x575   : > { %v2300_v11 = vcombine.low %v2136_v61, %v2143_v63  ;;  %v7663_v41 = vcombine.high %v2136_v61, %v2143_v63  ;;  %v2291_v15 = vrot.slane %v2284_v10, %v9062_v44  ;;  %v2299_v36 = vrot.slane %v7662_v53, %v9062_v44 }
 0x576   : > { %v2256_v50 = vrot.slane %v2248_v33, %v9069_v51  ;;  %v2272_v34 = vrot.slane %v2264_v17, %v9069_v51  ;;  %v2263_v54 = vrot.slane %v2249_v42, %v9069_v51  ;;  %v2279_v16 = vrot.slane %v2265_v43, %v9069_v51 }
 0x577   : > { %v2307_v40 = vrot.slane %v2300_v11, %v9062_v44  ;;  %v2315_v20 = vrot.slane %v7663_v41, %v9062_v44  ;;  %v2316_v21 = vcombine.low %v2291_v15, %v2299_v36  ;;  %v2317_v14 = vcombine.high %v2291_v15, %v2299_v36 }
 0x578   : > { %v2281_v13 = vcombine.high %v2256_v50, %v2272_v34  ;;  %v2280_v35 = vcombine.low %v2256_v50, %v2272_v34  ;;  %v2282_v45 = vcombine.low %v2263_v54, %v2279_v16  ;;  %v2283_v23 = vcombine.high %v2263_v54, %v2279_v16  ;;  %v1999_v16 = vpop.permute.xlu0 %1998 }
 0x579   : > { %v2332_v32 = vcombine.low %v2307_v40, %v2315_v20  ;;  %v2333_v29 = vcombine.high %v2307_v40, %v2315_v20  ;;  %v2324_v37 = vrot.slane %v2316_v21, %v9069_v51  ;;  %v2331_v48 = vrot.slane %v2317_v14, %v9069_v51 }
 0x57a   : > { %v2742_v9 = vsub.f32 %v9358_v49, %v9410_v4  ;;  %v2747_v53 = vsub.f32 %v9377_v0, %v9430_v46  ;;  %v2746_v11 = vsub.f32 %v9368_v55, %v9414_v27  ;;  %v2749_v55 = vsub.f32 %v9365_v31, %v9416_v22 }
 0x57b   : > { %v2340_v38 = vrot.slane %v2332_v32, %v9069_v51  ;;  %v2347_v25 = vrot.slane %v2333_v29, %v9069_v51 }
 0x57c   : > { %v2758_v10 = vmul.f32 1.442695, %v2742_v9  ;;  %v2768_v41 = vmul.f32 1.442695, %v2747_v53  ;;  %v2766_v33 = vmul.f32 1.442695, %v2746_v11 }
 0x57d   : > { %v2348_v30 = vcombine.low %v2324_v37, %v2340_v38  ;;  %v2350_v26 = vcombine.low %v2331_v48, %v2347_v25  ;;  %v2349_v58 = vcombine.high %v2324_v37, %v2340_v38  ;;  %v2351_v59 = vcombine.high %v2331_v48, %v2347_v25 }
 0x57e   : > { %8579 = vpow2.f32 %v2758_v10  ;;  %v2772_v20 = vmul.f32 1.442695, %v2749_v55  ;;  %v2149_v37 = vcombine.high %v9047_v28, %v1999_v16 }
 0x57f   : > { %v2842_v60 = vpack.c.bf16 %v2348_v30, %v2280_v35  ;;  %v2846_v61 = vpack.c.bf16 %v2350_v26, %v2282_v45  ;;  %v9480_v63 = vpack.c.bf16 %v2349_v58, %v2281_v13  ;;  %v9482_v7 = vpack.c.bf16 %v2351_v59, %v2283_v23 }
 0x580   : > { %8581 = vpow2.f32 %v2768_v41  ;;  %v2148_v13 = vcombine.low %v9047_v28, %v1999_v16  ;;  %v2163_v45 = vrot.slane %v2149_v37, %v9062_v44 }
 0x581   : > { %8163 = vmatprep.subr.bf16.mxu1 %v2842_v60  ;;  %8179 = vmatprep.subr.bf16.mxu0 %v2846_v61  ;;  %8583 = vpow2.f32 %v2766_v33 }
 0x582   : > { %8164 = vmatpush3.bf16.msra.mxu1 %v2842_v60  ;;  %8180 = vmatpush3.bf16.msra.mxu0 %v2846_v61  ;;  %v2156_v35 = vrot.slane %v2148_v13, %v9062_v44 }
 0x588   : > { %v9490_v17 = vpop.eup %8579 }
 0x589   : > { %v2786_v49 = vsel %vm2701_vm3, %v9490_v17, 0.0 }
 0x58a   : > { %v9494_v4 = vpop.eup %8581 }
 0x58b   : > { %v2801_v0 = vsel %vm2701_vm3, %v9494_v4, 0.0  ;;  %v9499_v46 = vpop.eup %8583 }
 0x58c   : > { %v2798_v40 = vsel %vm2701_vm3, %v9499_v46, 0.0 }
 0x595   : > { %2787 = vadd.xlane.f32.xlu1 %v2786_v49 }
 0x597   : > { %v2725_v42 = vpop.xlane.xlu1 %2724 }
 0x598   : > { %v2745_v43 = vsub.f32 %v9394_v2, %v2725_v42 }
 0x599   : > { %2802 = vadd.xlane.f32.xlu1 %v2801_v0 }
 0x59a   : > { %v2764_v27 = vmul.f32 1.442695, %v2745_v43 }
 0x59b   : > { %v2734_v15 = vpop.xlane.xlu1 %2733 }
 0x59c   : > { %8585 = vpow2.f32 %v2764_v27  ;;  %v2748_v36 = vsub.f32 %v9399_v56, %v2734_v15 }
 0x59d   : > { %2799 = vadd.xlane.f32.xlu1 %v2798_v40 }
 0x59e   : > { %v2770_v50 = vmul.f32 1.442695, %v2748_v36 }
 0x59f   : > { %v1990_v32 = vpop.permute.xlu1 %1989 }
 0x5a0   : > { %8587 = vpow2.f32 %v2770_v50 }
 0x5a1   : > { %8589 = vpow2.f32 %v2772_v20 }
 0x5a6   : > { %v9506_v2 = vpop.eup %8585 }
 0x5a7   : > { %v2795_v34 = vsel %vm2701_vm3, %v9506_v2, 0.0 }
 0x5a8   : > { %2796 = vadd.xlane.f32.xlu0 %v2795_v34 }
 0x5aa   : > { %v9510_v31 = vpop.eup %8587 }
 0x5ab   : > { %v2804_v22 = vsel %vm2701_vm3, %v9510_v31, 0.0  ;;  %v9514_v56 = vpop.eup %8589 }
 0x5ac   : > { %2805 = vadd.xlane.f32.xlu0 %v2804_v22  ;;  %v2807_v54 = vsel %vm2701_vm3, %v9514_v56, 0.0 }
 0x5b0   : > { %2808 = vadd.xlane.f32.xlu0 %v2807_v54 }
 0x5e8   : > { %v2782_v21 = vpop.xlane.xlu0 %2781 }
 0x5ec   : > { %v2776_v14 = vpop.xlane.xlu0 %2775 }
 0x5ed   : > { %8591 = vrcp.f32 %v2776_v14  ;;  %v2779_v29 = vpop.xlane.xlu1 %2778 }
 0x5ee   : > { %8593 = vrcp.f32 %v2779_v29 }
 0x5ef   : > { %8595 = vrcp.f32 %v2782_v21 }
 0x5f1   : > { %v2008_v38 = vpop.permute.xlu1 %2007 }
 0x5f2   : > { %v2164_v48 = vcombine.low %v1990_v32, %v2008_v38  ;;  %v2165_v25 = vcombine.high %v1990_v32, %v2008_v38 }
 0x5f4   : > { %v2172_v23 = vrot.slane %v2164_v48, %v9062_v44  ;;  %v2179_v30 = vrot.slane %v2165_v25, %v9062_v44 }
 0x5f6   : > { %v2180_v58 = vcombine.low %v2156_v35, %v2172_v23  ;;  %v2181_v59 = vcombine.high %v2156_v35, %v2172_v23  ;;  %v2196_v60 = vcombine.low %v2163_v45, %v2179_v30  ;;  %v2197_v61 = vcombine.high %v2163_v45, %v2179_v30  ;;  %v2785_v23 = vpop.xlane.xlu0 %2784 }
 0x5f7   : > { %v8592_v26 = vpop.eup %8591 }
 0x5f8   : > { %v2822_v9 = vmul.f32 %v8592_v26, %v9420_v52  ;;  %v8594_v28 = vpop.eup %8593  ;;  %v2188_v10 = vrot.slane %v2180_v58, %v9069_v51  ;;  %v2195_v53 = vrot.slane %v2181_v59, %v9069_v51  ;;  %v2204_v11 = vrot.slane %v2196_v60, %v9069_v51 }
 0x5f9   : > { %v2211_v41 = vrot.slane %v2197_v61, %v9069_v51  ;;  %v2823_v33 = vmul.f32 %v8594_v28, %v9422_v19  ;;  %v8596_v21 = vpop.eup %8595 }
 0x5fa   : > { %v2352_v49 = vcombine.low %v2188_v10, %v2195_v53  ;;  %v7664_v42 = vcombine.high %v2188_v10, %v2195_v53  ;;  %v2824_v37 = vmul.f32 %v8596_v21, %v9412_v12  ;;  %v2791_v30 = vpop.xlane.xlu0 %2790 }
 0x5fb   : > { %v2368_v43 = vcombine.low %v2204_v11, %v2211_v41  ;;  %v7665_v0 = vcombine.high %v2204_v11, %v2211_v41  ;;  %v2834_v55 = vpack.c.bf16 %v2823_v33, %v2822_v9  ;;  %8597 = vrcp.f32 %v2791_v30 }
 0x5fc   : > { %v2359_v27 = vrot.slane %v2352_v49, %v9062_v44  ;;  %v2367_v52 = vrot.slane %v7664_v42, %v9062_v44  ;;  %v2835_v35 = vpack.c.bf16 %v2824_v37, %v2824_v37  ;;  %8599 = vrcp.f32 %v2785_v23 }
 0x5fd   : > { %v2375_v15 = vrot.slane %v2368_v43, %v9062_v44  ;;  %v2383_v36 = vrot.slane %v7665_v0, %v9062_v44  ;;  %8167 = vmatprep.mubr.msk.bf16.mxu1 %vm2701_vm3, %v2834_v55 }
 0x5fe   : > { %v2384_v40 = vcombine.low %v2359_v27, %v2367_v52  ;;  %v2385_v50 = vcombine.high %v2359_v27, %v2367_v52  ;;  %v2794_v11 = vpop.xlane.xlu0 %2793 }
 0x5ff   : > { %v2400_v20 = vcombine.low %v2375_v15, %v2383_v36  ;;  %v2401_v34 = vcombine.high %v2375_v15, %v2383_v36 }
 0x600   : > { %v2392_v19 = vrot.slane %v2384_v40, %v9069_v51  ;;  %v2399_v54 = vrot.slane %v2385_v50, %v9069_v51 }
 0x601   : > { %v2408_v22 = vrot.slane %v2400_v20, %v9069_v51  ;;  %v2415_v16 = vrot.slane %v2401_v34, %v9069_v51 }
 0x603   : > { %v2416_v32 = vcombine.low %v2392_v19, %v2408_v22  ;;  %v2418_v14 = vcombine.low %v2399_v54, %v2415_v16  ;;  %v2417_v25 = vcombine.high %v2392_v19, %v2408_v22  ;;  %v2419_v53 = vcombine.high %v2399_v54, %v2415_v16 }
 0x605   : > { %v2843_v29 = vpack.c.bf16 %v2416_v32, %v2416_v32  ;;  %v2847_v13 = vpack.c.bf16 %v2418_v14, %v2418_v14  ;;  %v2845_v45 = vpack.c.bf16 %v2417_v25, %v2417_v25  ;;  %v8598_v59 = vpop.eup %8597  ;;  %v2849_v49 = vpack.c.bf16 %v2419_v53, %v2419_v53 }
 0x606   : > { %v8600_v60 = vpop.eup %8599  ;;  %v2827_v9 = vmul.f32 %v8598_v59, %v9434_v18 }
 0x607   : > { %8327 = vmatprep.subr.msk.bf16.mxu1 %vm2856_vm4, %v2843_v29  ;;  %8329 = vmatprep.subr.msk.bf16.mxu0 %vm2856_vm4, %v2847_v13  ;;  %v2858_v38 = vsel %vm2856_vm4, %v2843_v29, 0  ;;  %v2972_v48 = vsel %vm2856_vm4, %v2847_v13, 0  ;;  %v2915_v12 = vsel %vm2856_vm4, %v2845_v45, 0 }
 0x608   : > { %8166 = vmatpush3.bf16.msra.mxu1 %v2858_v38  ;;  %8182 = vmatpush3.bf16.msra.mxu0 %v2972_v48  ;;  %v2837_v33 = vpack.c.bf16 %v2827_v9, %v2827_v9 }
 0x609   : > { %8171 = vmatprep.subr.bf16.mxu1 %v9480_v63 }
 0x60b   : > { %8168 = vmatmul.mubr.msk.bf16.vlgmr.msra.gmra.mrb[20].mxu1 %vm2701_vm3, %v2835_v35 }
 0x60c   : > { %8172 = vmatpush3.bf16.msra.mxu1 %v9480_v63  ;;  %v2825_v63 = vmul.f32 %v8600_v60, %v9428_v39  ;;  %v3029_v39 = vsel %vm2856_vm4, %v2849_v49, 0 }
 0x60d   : > { %8328 = vmatprep.subr.msk.bf16.mxu1 %vm2856_vm4, %v2845_v45 }
 0x610   : > { %8174 = vmatpush3.bf16.msra.mxu1 %v2915_v12 }
 0x611   : > { %8187 = vmatprep.subr.bf16.mxu1 %v9482_v7 }
 0x622   : > { %v2788_v26 = vpop.xlane.xlu1 %2787 }
 0x623   : > { %8601 = vrcp.f32 %v2788_v26 }
 0x626   : > { %v2803_v58 = vpop.xlane.xlu1 %2802 }
 0x62a   : > { %v2800_v10 = vpop.xlane.xlu1 %2799 }
 0x62b   : > { %8603 = vrcp.f32 %v2800_v10 }
 0x62c   : > { %8605 = vrcp.f32 %v2794_v11 }
 0x62d   : > { %v8602_v61 = vpop.eup %8601 }
 0x62e   : > { %v2826_v28 = vmul.f32 %v8602_v61, %v9490_v17 }
 0x630   : > { %v2836_v41 = vpack.c.bf16 %v2826_v28, %v2825_v63 }
 0x632   : > { %8175 = vmatprep.mubr.msk.bf16.mxu1 %vm2701_vm3, %v2836_v41 }
 0x633   : > { %8176 = vmatmul.mubr.msk.bf16.vlgmr.msra.gmra.mrb[24].mxu1 %vm2701_vm3, %v2837_v33 }
 0x634   : > { %8188 = vmatpush3.bf16.msra.mxu1 %v9482_v7 }
 0x635   : > { %v2797_v42 = vpop.xlane.xlu0 %2796  ;;  %8330 = vmatprep.subr.msk.bf16.mxu1 %vm2856_vm4, %v2849_v49  ;;  %v8604_v17 = vpop.eup %8603 }
 0x636   : > { %8607 = vrcp.f32 %v2797_v42  ;;  %v8606_v0 = vpop.eup %8605  ;;  %v2830_v27 = vmul.f32 %v8604_v17, %v9499_v46 }
 0x637   : > { %8609 = vrcp.f32 %v2803_v58  ;;  %v2828_v52 = vmul.f32 %v8606_v0, %v9447_v47 }
 0x638   : > { %8190 = vmatpush3.bf16.msra.mxu1 %v3029_v39  ;;  %v2839_v20 = vpack.c.bf16 %v2830_v27, %v2830_v27 }
 0x639   : > { %v2806_v18 = vpop.xlane.xlu0 %2805 }
 0x63a   : > { %8611 = vrcp.f32 %v2806_v18 }
 0x63d   : > { %v2809_v43 = vpop.xlane.xlu0 %2808 }
 0x63e   : > { %8613 = vrcp.f32 %v2809_v43 }
 0x640   : > { %v8608_v55 = vpop.eup %8607 }
 0x641   : > { %v2829_v7 = vmul.f32 %v8608_v55, %v9506_v2  ;;  %v8610_v15 = vpop.eup %8609  ;;  %v8433_v2 = vld [vmem:[%s10738_s8] sm:$0xff]  }
 0x642   : > { %v2831_v50 = vmul.f32 %v8610_v15, %v9494_v4  ;;  %v8434_v4 = vld [vmem:[%s10738_s8 + $0x8] sm:$0xff]   ;;  %8195 = vmatprep.subr.bf16.mxu0 %v8433_v2 }
 0x643   : > { %v2838_v36 = vpack.c.bf16 %v2829_v7, %v2828_v52 }
 0x644   : > { %v8612_v40 = vpop.eup %8611 }
 0x645   : > { %8183 = vmatprep.mubr.msk.bf16.mxu0 %vm2701_vm3, %v2838_v36  ;;  %v2832_v34 = vmul.f32 %v8612_v40, %v9510_v31  ;;  %v8435_v31 = vld [vmem:[%s10738_s8 + $0x10] sm:$0xff]  }
 0x646   : > { %8184 = vmatmul.mubr.msk.bf16.vlgmr.msra.gmra.mrb[12].mxu0 %vm2701_vm3, %v2839_v20 }
 0x647   : > { %v2840_v19 = vpack.c.bf16 %v2832_v34, %v2831_v50  ;;  %8196 = vmatpush3.bf16.msra.mxu0 %v8433_v2 }
 0x648   : > { %v8614_v22 = vpop.eup %8613  ;;  %8197 = vmatprep.subr.bf16.mxu0 %v8434_v4 }
 0x649   : > { %v2833_v46 = vmul.f32 %v8614_v22, %v9514_v56  ;;  %8191 = vmatprep.mubr.msk.bf16.mxu1 %vm2701_vm3, %v2840_v19  ;;  %v8436_v56 = vld [vmem:[%s10738_s8 + $0x18] sm:$0xff]  }
 0x64b   : > { %v2841_v47 = vpack.c.bf16 %v2833_v46, %v2833_v46  ;;  %8198 = vmatpush3.bf16.msra.mxu0 %v8434_v4 }
 0x64c   : > { %8199 = vmatprep.subr.bf16.mxu0 %v8435_v31 }
 0x64d   : > { %8192 = vmatmul.mubr.msk.bf16.vlgmr.msra.gmra.mrb[28].mxu1 %vm2701_vm3, %v2841_v47 }
 0x64e   : > { %3855 = vmatprep.mubr.bf16.mxu1 %v8720_v1 }
 0x64f   : > { %8200 = vmatpush3.bf16.msra.mxu0 %v8435_v31 }
 0x650   : > { %8201 = vmatprep.subr.bf16.mxu0 %v8436_v56 }
 0x653   : > { %8202 = vmatpush3.bf16.msra.mxu0 %v8436_v56 }
 0x6de   : > { %v8169_v54 = vpop.f32.mrb[20].mxu1 }
 0x6df   : > { %v2894_v16 = vpop.f32.mrb[21].mxu1 }
 0x6e0   : > { %v8170_v21 = vpop.f32.mrb[22].mxu1 }
 0x6e1   : > { %v2897_v32 = vpop.f32.mrb[23].mxu1 }
 0x706   : > { %v8177_v14 = vpop.f32.mrb[24].mxu1 }
 0x707   : > { %v2951_v29 = vpop.f32.mrb[25].mxu1 }
 0x708   : > { %v8178_v13 = vpop.f32.mrb[26].mxu1 }
 0x709   : > { %v2954_v37 = vpop.f32.mrb[27].mxu1 }
 0x719   : > { %v8185_v38 = vpop.f32.mrb[12].mxu0 }
 0x71a   : > { %v3215_v48 = vcombine.low %v8169_v54, %v8185_v38  ;;  %v3216_v25 = vcombine.high %v8169_v54, %v8185_v38  ;;  %v3008_v35 = vpop.f32.mrb[13].mxu0 }
 0x71b   : > { %v3079_v45 = vcombine.low %v2894_v16, %v3008_v35  ;;  %v3080_v12 = vcombine.high %v2894_v16, %v3008_v35  ;;  %v8186_v23 = vpop.f32.mrb[14].mxu0 }
 0x71c   : > { %v3011_v30 = vpop.f32.mrb[15].mxu0  ;;  %v3223_v60 = vrot.slane %v3215_v48, %v9062_v44  ;;  %v3230_v61 = vrot.slane %v3216_v25, %v9062_v44 }
 0x71d   : > { %v3147_v26 = vcombine.low %v2897_v32, %v3011_v30  ;;  %v3148_v58 = vcombine.high %v2897_v32, %v3011_v30  ;;  %v3087_v10 = vrot.slane %v3079_v45, %v9062_v44  ;;  %v3094_v53 = vrot.slane %v3080_v12, %v9062_v44 }
 0x71f   : > { %v3155_v49 = vrot.slane %v3147_v26, %v9062_v44  ;;  %v3162_v42 = vrot.slane %v3148_v58, %v9062_v44 }
 0x720   : > { %v8193_v59 = vpop.f32.mrb[28].mxu1 }
 0x721   : > { %v3231_v9 = vcombine.low %v8177_v14, %v8193_v59  ;;  %v3232_v63 = vcombine.high %v8177_v14, %v8193_v59  ;;  %v3065_v28 = vpop.f32.mrb[29].mxu1  ;;  %v8437_v14 = vld [vmem:[%s10738_s8 + $0x20] sm:$0xff]  }
 0x722   : > { %v3095_v11 = vcombine.low %v2951_v29, %v3065_v28  ;;  %v3096_v41 = vcombine.high %v2951_v29, %v3065_v28  ;;  %v8194_v33 = vpop.f32.mrb[30].mxu1  ;;  %8203 = vmatprep.subr.bf16.mxu0 %v8437_v14 }
 0x723   : > { %v3239_v39 = vrot.slane %v3231_v9, %v9062_v44  ;;  %v3246_v18 = vrot.slane %v3232_v63, %v9062_v44  ;;  %v3068_v17 = vpop.f32.mrb[31].mxu1  ;;  %8204 = vmatpush3.bf16.msra.mxu0 %v8437_v14 }
 0x724   : > { %v3103_v43 = vrot.slane %v3095_v11, %v9062_v44  ;;  %v3110_v0 = vrot.slane %v3096_v41, %v9062_v44  ;;  %v3163_v55 = vcombine.low %v2954_v37, %v3068_v17  ;;  %v3164_v27 = vcombine.high %v2954_v37, %v3068_v17 }
 0x725   : > { %v3247_v52 = vcombine.low %v3223_v60, %v3239_v39  ;;  %v3248_v7 = vcombine.high %v3223_v60, %v3239_v39  ;;  %v3263_v15 = vcombine.low %v3230_v61, %v3246_v18  ;;  %v3264_v36 = vcombine.high %v3230_v61, %v3246_v18 }
 0x726   : > { %v3111_v40 = vcombine.low %v3087_v10, %v3103_v43  ;;  %v3112_v20 = vcombine.high %v3087_v10, %v3103_v43  ;;  %v3127_v50 = vcombine.low %v3094_v53, %v3110_v0  ;;  %v3128_v34 = vcombine.high %v3094_v53, %v3110_v0 }
 0x727   : > { %v3255_v19 = vrot.slane %v3247_v52, %v9069_v51  ;;  %v3262_v22 = vrot.slane %v3248_v7, %v9069_v51  ;;  %v3271_v46 = vrot.slane %v3263_v15, %v9069_v51  ;;  %v3278_v47 = vrot.slane %v3264_v36, %v9069_v51  ;;  %v8438_v36 = vld [vmem:[%s10738_s8 + $0x28] sm:$0xff]  }
 0x728   : > { %v3119_v2 = vrot.slane %v3111_v40, %v9069_v51  ;;  %v3126_v4 = vrot.slane %v3112_v20, %v9069_v51  ;;  %v3135_v31 = vrot.slane %v3127_v50, %v9069_v51  ;;  %v3142_v56 = vrot.slane %v3128_v34, %v9069_v51  ;;  %8205 = vmatprep.subr.bf16.mxu0 %v8438_v36 }
 0x729   : > { %v3419_v54 = vcombine.low %v3255_v19, %v3262_v22  ;;  %v7686_v16 = vcombine.high %v3255_v19, %v3262_v22  ;;  %v3435_v21 = vcombine.low %v3271_v46, %v3278_v47  ;;  %v7687_v32 = vcombine.high %v3271_v46, %v3278_v47  ;;  %8206 = vmatpush3.bf16.msra.mxu0 %v8438_v36 }
 0x72a   : > { %v3283_v29 = vcombine.low %v3119_v2, %v3126_v4  ;;  %v7682_v13 = vcombine.high %v3119_v2, %v3126_v4  ;;  %v3299_v37 = vcombine.low %v3135_v31, %v3142_v56  ;;  %v7683_v38 = vcombine.high %v3135_v31, %v3142_v56 }
 0x72b   : > { %v3171_v48 = vrot.slane %v3163_v55, %v9062_v44  ;;  %v3178_v25 = vrot.slane %v3164_v27, %v9062_v44  ;;  %v3426_v35 = vrot.slane %v3419_v54, %v9062_v44  ;;  %v3434_v45 = vrot.slane %v7686_v16, %v9062_v44 }
 0x72c   : > { %v3290_v12 = vrot.slane %v3283_v29, %v9062_v44  ;;  %v3298_v23 = vrot.slane %v7682_v13, %v9062_v44  ;;  %v3306_v30 = vrot.slane %v3299_v37, %v9062_v44  ;;  %v3314_v26 = vrot.slane %v7683_v38, %v9062_v44 }
 0x72d   : > { %v3179_v58 = vcombine.low %v3155_v49, %v3171_v48  ;;  %v3180_v59 = vcombine.high %v3155_v49, %v3171_v48  ;;  %v3195_v60 = vcombine.low %v3162_v42, %v3178_v25  ;;  %v3196_v61 = vcombine.high %v3162_v42, %v3178_v25 }
 0x72e   : > { %v3442_v9 = vrot.slane %v3435_v21, %v9062_v44  ;;  %v3450_v63 = vrot.slane %v7687_v32, %v9062_v44  ;;  %v3452_v28 = vcombine.high %v3426_v35, %v3434_v45  ;;  %v3451_v10 = vcombine.low %v3426_v35, %v3434_v45  ;;  %v8439_v32 = vld [vmem:[%s10738_s8 + $0x30] sm:$0xff]   ;;  %v8440_v45 = vld [vmem:[%s10738_s8 + $0x38] sm:$0xff]  }
 0x72f   : > { %v3187_v53 = vrot.slane %v3179_v58, %v9069_v51  ;;  %v3194_v11 = vrot.slane %v3180_v59, %v9069_v51  ;;  %v3203_v41 = vrot.slane %v3195_v60, %v9069_v51  ;;  %v3210_v33 = vrot.slane %v3196_v61, %v9069_v51  ;;  %8207 = vmatprep.subr.bf16.mxu0 %v8439_v32 }
 0x730   : > { %v3466_v39 = vrot.slane %v3452_v28, %v9069_v51  ;;  %v3468_v18 = vcombine.high %v3442_v9, %v3450_v63  ;;  %v9618_v49 = vrot.slane %v3451_v10, %v9069_v51  ;;  %v3467_v42 = vcombine.low %v3442_v9, %v3450_v63  ;;  %8208 = vmatpush3.bf16.msra.mxu0 %v8439_v32 }
 0x731   : > { %v3351_v17 = vcombine.low %v3187_v53, %v3194_v11  ;;  %v7684_v43 = vcombine.high %v3187_v53, %v3194_v11  ;;  %v3367_v0 = vcombine.low %v3203_v41, %v3210_v33  ;;  %v7685_v55 = vcombine.high %v3203_v41, %v3210_v33  ;;  %8209 = vmatprep.subr.bf16.mxu0 %v8440_v45 }
 0x732   : > { %v3482_v27 = vrot.slane %v3468_v18, %v9069_v51  ;;  %v3475_v52 = vrot.slane %v3467_v42, %v9069_v51  ;;  %v3315_v7 = vcombine.low %v3290_v12, %v3298_v23  ;;  %v3331_v15 = vcombine.low %v3306_v30, %v3314_v26 }
 0x733   : > { %v3358_v40 = vrot.slane %v3351_v17, %v9062_v44  ;;  %v3366_v20 = vrot.slane %v7684_v43, %v9062_v44  ;;  %v3374_v50 = vrot.slane %v3367_v0, %v9062_v44  ;;  %v3382_v34 = vrot.slane %v7685_v55, %v9062_v44 }
 0x734   : > { %v3485_v19 = vcombine.low %v3466_v39, %v3482_v27  ;;  %v3484_v22 = vcombine.high %v9618_v49, %v3475_v52  ;;  %v3486_v46 = vcombine.high %v3466_v39, %v3482_v27  ;;  %v3323_v47 = vrot.slane %v3315_v7, %v9069_v51  ;;  %8210 = vmatpush3.bf16.msra.mxu0 %v8440_v45 }
 0x735   : > { %v3339_v2 = vrot.slane %v3331_v15, %v9069_v51  ;;  %v3383_v4 = vcombine.low %v3358_v40, %v3366_v20  ;;  %v3399_v31 = vcombine.low %v3374_v50, %v3382_v34  ;;  %v3316_v56 = vcombine.high %v3290_v12, %v3298_v23 }
 0x736   : > { %3506 = vrot.lane.b32.xlu1 %v3485_v19, %s8722_s24  ;;  %3494 = vrot.lane.b32.xlu0 %v3484_v22, %s10750_s25  ;;  %v3332_v54 = vcombine.high %v3306_v30, %v3314_v26  ;;  %v3384_v16 = vcombine.high %v3358_v40, %v3366_v20  ;;  %v3400_v21 = vcombine.high %v3374_v50, %v3382_v34  ;;  %v7696_v22 = vld [vmem:[%s10739_s9] ss:$0 sm:$0xff] }
 0x737   : > { %v3347_v14 = vcombine.low %v3323_v47, %v3339_v2  ;;  %v3348_v29 = vcombine.high %v3323_v47, %v3339_v2  ;;  %v3391_v13 = vrot.slane %v3383_v4, %v9069_v51  ;;  %v3407_v37 = vrot.slane %v3399_v31, %v9069_v51 }
 0x738   : > { %v3330_v38 = vrot.slane %v3316_v56, %v9069_v51  ;;  %v3346_v48 = vrot.slane %v3332_v54, %v9069_v51  ;;  %v3398_v25 = vrot.slane %v3384_v16, %v9069_v51  ;;  %v3414_v35 = vrot.slane %v3400_v21, %v9069_v51  ;;  %v8711_v54 = vld [vmem:[%s10733_s3 + $0x10] sm:$0xff] }
 0x739   : > { %v3416_v12 = vcombine.high %v3391_v13, %v3407_v37  ;;  %v3415_v23 = vcombine.low %v3391_v13, %v3407_v37  ;;  %v3483_v30 = vcombine.low %v9618_v49, %v3475_v52 }
 0x73a   : > { %3518 = vrot.lane.b32.xlu0 %v3486_v46, %s8721_s23  ;;  %v3349_v26 = vcombine.low %v3330_v38, %v3346_v48  ;;  %v3417_v58 = vcombine.low %v3398_v25, %v3414_v35  ;;  %v3350_v59 = vcombine.high %v3330_v38, %v3346_v48  ;;  %v3418_v60 = vcombine.high %v3398_v25, %v3414_v35 }
 0x73b   : > { %v8359_v61 = vpack.i.bf16 %v3416_v12, %v3348_v29  ;;  %v8444_v29 = vld [vmem:[%s10742_s12 + $0x10] ss:$8 sps:$4 sm:$0xff]  }
 0x73c   : > { %v8364_v9 = vpack.i.bf16 %v3417_v58, %v3349_v26  ;;  %v8369_v63 = vpack.i.bf16 %v3418_v60, %v3350_v59  ;;  %v8449_v59 = vld [vmem:[%s10742_s12 + $0x24] ss:$8 sps:$4 sm:$0xff]   ;;  %v8447_v60 = vld [vmem:[%s10742_s12 + $0x20] ss:$8 sps:$4 sm:$0xff]  }
 0x73d   : > { %8360 = vrot.lane.b32.xlu1 %v8359_v61, %s10750_s25  ;;  %v8452_v61 = vld [vmem:[%s10742_s12 + $0x34] ss:$8 sps:$4 sm:$0xff]  }
 0x741   : > { %8365 = vrot.lane.b32.xlu1 %v8364_v9, %s8722_s24  ;;  %v8450_v9 = vld [vmem:[%s10742_s12 + $0x30] ss:$8 sps:$4 sm:$0xff]  }
 0x745   : > { %8370 = vrot.lane.b32.xlu1 %v8369_v63, %s8721_s23  ;;  %v8455_v63 = vld [vmem:[%s10742_s12 + $0x44] ss:$8 sps:$4 sm:$0xff]  }
 0x7a8   : > { %v3507_v28 = vpop.permute.xlu1 %3506  ;;  %v3495_v53 = vpop.permute.xlu0 %3494 }
 0x7a9   : > { %v3525_v41 = vsel %vm2436_vm1, %v3483_v30, %v3495_v53  ;;  %v8456_v53 = vld [vmem:[%s10742_s12 + $0x50] ss:$8 sps:$4 sm:$0xff]  }
 0x7aa   : > { %v3528_v17 = vsel %vm719_vm0, %v3525_v41, %v3507_v28  ;;  %v8453_v28 = vld [vmem:[%s10742_s12 + $0x40] ss:$8 sps:$4 sm:$0xff]  }
 0x7ab   : > { %v8459_v41 = vld [vmem:[%s10742_s12 + $0x60] ss:$8 sps:$4 sm:$0xff]  }
 0x7ac   : > { %v3519_v42 = vpop.permute.xlu0 %3518 }
 0x7ad   : > { %v3532_v7 = vsel %vm3529_vm5, %v3528_v17, %v3519_v42 }
 0x7ae   : > { %v3534_v34 = vpack.c.bf16 %v3532_v7, %v3532_v7 }
 0x7af   : > { %v8361_v10 = vpop.permute.xlu1 %8360 }
 0x7b0   : > { %v8363_v33 = vunpack.i.h.bf16 %v8361_v10  ;;  %v8362_v39 = vunpack.i.l.bf16 %v8361_v10  ;;  %v8458_v10 = vld [vmem:[%s10742_s12 + $0x54] ss:$8 sps:$4 sm:$0xff]  }
 0x7b2   : > { %v3523_v0 = vsel %vm2436_vm1, %v3347_v14, %v8362_v39  ;;  %v3524_v55 = vsel %vm2436_vm1, %v3415_v23, %v8363_v33  ;;  %v8446_v14 = vld [vmem:[%s10742_s12 + $0x14] ss:$8 sps:$4 sm:$0xff]   ;;  %v8462_v39 = vld [vmem:[%s10742_s12 + $0x70] ss:$8 sps:$4 sm:$0xff]  }
 0x7b3   : > { %v8366_v11 = vpop.permute.xlu1 %8365  ;;  %v8464_v33 = vld [vmem:[%s10742_s12 + $0x74] ss:$8 sps:$4 sm:$0xff]  }
 0x7b4   : > { %v8368_v18 = vunpack.i.h.bf16 %v8366_v11  ;;  %v8367_v49 = vunpack.i.l.bf16 %v8366_v11  ;;  %v8461_v11 = vld [vmem:[%s10742_s12 + $0x64] ss:$8 sps:$4 sm:$0xff]  }
 0x7b6   : > { %v3526_v15 = vsel %vm719_vm0, %v3523_v0, %v8367_v49  ;;  %v3527_v36 = vsel %vm719_vm0, %v3524_v55, %v8368_v18 }
 0x7b7   : > { %v8371_v43 = vpop.permute.xlu1 %8370 }
 0x7b8   : > { %v8373_v27 = vunpack.i.h.bf16 %v8371_v43  ;;  %v8372_v52 = vunpack.i.l.bf16 %v8371_v43 }
 0x7ba   : > { %v3530_v40 = vsel %vm3529_vm5, %v3526_v15, %v8372_v52  ;;  %v3531_v20 = vsel %vm3529_vm5, %v3527_v36, %v8373_v27  ;;  %v7697_v15 = vld [vmem:[%s10740_s10] ss:$0 sm:$0xff] }
 0x7bb   : > { %v3533_v50 = vpack.c.bf16 %v3531_v20, %v3530_v40 }
 0x7bd   : > { %8211 = vmatprep.mubr.bf16.mxu0 %v3533_v50 }
 0x7be   : > { %8212 = vmatmul.mubr.bf16.vlgmr.msra.gmra.mrb[16].mxu0 %v3534_v34  ;;  %v7698_v34 = vld [vmem:[%s10741_s11] ss:$0 sm:$0xff] }
 0x891   : > { %v8213_v19 = vpop.f32.mrb[16].mxu0 }
 0x892   : > { %v3633_v46 = vpop.f32.mrb[17].mxu0  ;;  %v3649_v16 = vadd.f32 %v8711_v54, %v8213_v19 }
 0x893   : > { %v3647_v47 = vadd.f32 %v3633_v46, %v8896_v62  ;;  %v8214_v2 = vpop.f32.mrb[18].mxu0  ;;  %v8441_v62 = vld [vmem:[%s10742_s12] ss:$8 sps:$4 sm:$0xff]  }
 0x894   : > { %v3636_v4 = vpop.f32.mrb[19].mxu0  ;;  %v9674_v32 = vadd.f32 %v7696_v22, %v3649_v16 }
 0x895   : > { %v9664_v31 = vadd.f32 %v7696_v22, %v3647_v47  ;;  %v3648_v56 = vadd.f32 %v3636_v4, %v8902_v3  ;;  %v8443_v3 = vld [vmem:[%s10742_s12 + $0x4] ss:$8 sps:$4 sm:$0xff]  }
 0x896   : > { %3823 = vmatprep.subr.bf16.mxu1 %v8443_v3  ;;  %v8466_v3 = vld [vmem:[%s10744_s14] sm:$0xff]  }
 0x897   : > { %v9670_v21 = vadd.f32 %v7696_v22, %v3648_v56  ;;  %3662 = vadd.xlane.f32.xlu1 %v9664_v31  ;;  %3824 = vmatpush1.bf16.msra.mxu1 %v8441_v62  ;;  %v8465_v62 = vld [vmem:[%s10744_s14 + $0x40] sm:$0xff]  }
 0x898   : > { %3825 = vmatprep.subr.bf16.mxu1 %v8446_v14  ;;  %8003 = vmatprep.subr.bf16.mxu0 %v8465_v62  ;;  %v8467_v14 = vld [vmem:[%s10744_s14 + $0x48] sm:$0xff]  }
 0x899   : > { %3664 = vadd.xlane.f32.xlu0 %v9670_v21  ;;  %8004 = vmatpush3.bf16.msra.mxu0 %v8466_v3 }
 0x89a   : > { %8005 = vmatprep.subr.bf16.mxu0 %v8467_v14 }
 0x89b   : > { %3826 = vmatpush1.bf16.msra.mxu1 %v8444_v29  ;;  %v8468_v29 = vld [vmem:[%s10744_s14 + $0x8] sm:$0xff]  }
 0x89c   : > { %3827 = vmatprep.subr.bf16.mxu1 %v8449_v59  ;;  %v3731_v59 = vld [vmem:[%s10743_s13] sm:$0x3] }
 0x89d   : > { %3666 = vadd.xlane.f32.xlu0 %v9674_v32  ;;  %8006 = vmatpush3.bf16.msra.mxu0 %v8468_v29 }
 0x89f   : > { %3828 = vmatpush1.bf16.msra.mxu1 %v8447_v60  ;;  %v3736_v60 = vrot.slane %v3731_v59, %v8990_v6 }
 0x8a0   : > { %3829 = vmatprep.subr.bf16.mxu1 %v8452_v61  ;;  %v3740_v61 = vrot.slane %v3731_v59, %v8996_v8 }
 0x8a3   : > { %3830 = vmatpush1.bf16.msra.mxu1 %v8450_v9 }
 0x8a4   : > { %3831 = vmatprep.subr.bf16.mxu1 %v8455_v63 }
 0x8a7   : > { %3832 = vmatpush1.bf16.msra.mxu1 %v8453_v28 }
 0x8a8   : > { %3833 = vmatprep.subr.bf16.mxu1 %v8458_v10 }
 0x8ab   : > { %3834 = vmatpush1.bf16.msra.mxu1 %v8456_v53 }
 0x8ac   : > { %3835 = vmatprep.subr.bf16.mxu1 %v8461_v11 }
 0x8af   : > { %3836 = vmatpush1.bf16.msra.mxu1 %v8459_v41 }
 0x8b0   : > { %3837 = vmatprep.subr.bf16.mxu1 %v8464_v33 }
 0x8b3   : > { %3838 = vmatpush1.bf16.msra.mxu1 %v8462_v39 }
 0x924   : > { %v3663_v13 = vpop.xlane.xlu1 %3662 }
 0x925   : > { %v3668_v37 = vmul.f32 0.0078125, %v3663_v13  ;;  %v8469_v13 = vld [vmem:[%s10744_s14 + $0x50] sm:$0xff]  }
 0x926   : > { %v3665_v38 = vpop.xlane.xlu0 %3664  ;;  %8007 = vmatprep.subr.bf16.mxu0 %v8469_v13 }
 0x927   : > { %v3671_v48 = vsub.f32 %v9664_v31, %v3668_v37  ;;  %v3669_v25 = vmul.f32 0.0078125, %v3665_v38  ;;  %v8470_v37 = vld [vmem:[%s10744_s14 + $0x10] sm:$0xff]   ;;  %v8471_v38 = vld [vmem:[%s10744_s14 + $0x58] sm:$0xff]  }
 0x928   : > { %8008 = vmatpush3.bf16.msra.mxu0 %v8470_v37 }
 0x929   : > { %v3672_v35 = vsub.f32 %v9670_v21, %v3669_v25  ;;  %v3674_v45 = vmul.f32 %v3671_v48, %v3671_v48  ;;  %8009 = vmatprep.subr.bf16.mxu0 %v8471_v38  ;;  %v8473_v25 = vld [vmem:[%s10744_s14 + $0x60] sm:$0xff]  }
 0x92a   : > { %v3667_v12 = vpop.xlane.xlu0 %3666 }
 0x92b   : > { %v3670_v23 = vmul.f32 0.0078125, %v3667_v12  ;;  %3677 = vadd.xlane.f32.xlu0 %v3674_v45  ;;  %v3675_v30 = vmul.f32 %v3672_v35, %v3672_v35  ;;  %v8475_v45 = vld [vmem:[%s10744_s14 + $0x68] sm:$0xff]  }
 0x92c   : > { %v8476_v12 = vld [vmem:[%s10744_s14 + $0x28] sm:$0xff]  }
 0x92d   : > { %v3673_v26 = vsub.f32 %v9674_v32, %v3670_v23  ;;  %3679 = vadd.xlane.f32.xlu1 %v3675_v30  ;;  %v8477_v23 = vld [vmem:[%s10744_s14 + $0x70] sm:$0xff]  }
 0x92e   : > { %v8478_v30 = vld [vmem:[%s10744_s14 + $0x30] sm:$0xff]  }
 0x92f   : > { %v3676_v58 = vmul.f32 %v3673_v26, %v3673_v26 }
 0x931   : > { %3681 = vadd.xlane.f32.xlu0 %v3676_v58  ;;  %v8480_v58 = vld [vmem:[%s10744_s14 + $0x38] sm:$0xff]  }
 0x9b8   : > { %v3678_v18 = vpop.xlane.xlu0 %3677 }
 0x9b9   : > { %v3683_v49 = vmul.f32 0.0078125, %v3678_v18 }
 0x9ba   : > { %v3680_v42 = vpop.xlane.xlu1 %3679 }
 0x9bb   : > { %v3686_v17 = vadd.f32 1e-12, %v3683_v49  ;;  %v3684_v43 = vmul.f32 0.0078125, %v3680_v42 }
 0x9bd   : > { %8615 = vrsqrt.f32 %v3686_v17  ;;  %v3687_v0 = vadd.f32 1e-12, %v3684_v43 }
 0x9be   : > { %v3682_v55 = vpop.xlane.xlu0 %3681 }
 0x9bf   : > { %8617 = vrsqrt.f32 %v3687_v0  ;;  %v3685_v27 = vmul.f32 0.0078125, %v3682_v55 }
 0x9c1   : > { %v3688_v52 = vadd.f32 1e-12, %v3685_v27 }
 0x9c3   : > { %8619 = vrsqrt.f32 %v3688_v52 }
 0x9c7   : > { %v8616_v7 = vpop.eup %8615 }
 0x9c8   : > { %v3692_v36 = vmul.f32 %v8616_v7, %v3671_v48  ;;  %v8472_v48 = vld [vmem:[%s10744_s14 + $0x18] sm:$0xff]  }
 0x9c9   : > { %v8618_v40 = vpop.eup %8617  ;;  %8010 = vmatpush3.bf16.msra.mxu0 %v8472_v48 }
 0x9ca   : > { %v3693_v20 = vmul.f32 %v8618_v40, %v3672_v35  ;;  %v3701_v50 = vmul.f32 %v7697_v15, %v3692_v36  ;;  %v8474_v35 = vld [vmem:[%s10744_s14 + $0x20] sm:$0xff]   ;;  %8011 = vmatprep.subr.bf16.mxu0 %v8473_v25 }
 0x9cc   : > { %v3702_v19 = vmul.f32 %v7697_v15, %v3693_v20  ;;  %v3710_v46 = vadd.f32 %v7698_v34, %v3701_v50 }
 0x9cd   : > { %v8620_v22 = vpop.eup %8619  ;;  %8012 = vmatpush3.bf16.msra.mxu0 %v8474_v35 }
 0x9ce   : > { %v3711_v47 = vadd.f32 %v7698_v34, %v3702_v19  ;;  %v3694_v2 = vmul.f32 %v8620_v22, %v3673_v26  ;;  %8013 = vmatprep.subr.bf16.mxu0 %v8475_v45  ;;  %v8479_v26 = vld [vmem:[%s10744_s14 + $0x78] sm:$0xff]  }
 0x9d0   : > { %v3713_v4 = vpack.c.bf16 %v3711_v47, %v3710_v46  ;;  %v3703_v56 = vmul.f32 %v7697_v15, %v3694_v2 }
 0x9d1   : > { %8014 = vmatpush3.bf16.msra.mxu0 %v8476_v12 }
 0x9d2   : > { %3856 = vmatmul.mubr.bf16.vlgmr.msra.gmra.mrb[32].mxu1 %v3713_v4  ;;  %v3712_v54 = vadd.f32 %v7698_v34, %v3703_v56  ;;  %8015 = vmatprep.subr.bf16.mxu0 %v8477_v23 }
 0x9d3   : > { %3865 = vmatprep.mubr.bf16.mxu1 %v8720_v1 }
 0x9d4   : > { %v3714_v16 = vpack.c.bf16 %v3712_v54, %v3712_v54 }
 0x9d5   : > { %8016 = vmatpush3.bf16.msra.mxu0 %v8478_v30 }
 0x9d6   : > { %8017 = vmatprep.subr.bf16.mxu0 %v8479_v26 }
 0x9d9   : > { %8018 = vmatpush3.bf16.msra.mxu0 %v8480_v58 }
 0x9da   : > { %3866 = vmatmul.mubr.bf16.gmra.mrb[36].mxu1 %v3714_v16 }
 0x9db   : > { %4389 = vmatprep.mubr.bf16.mxu1 %v8720_v1 }
 0xaa5   : > { %v3857_v9 = vpop.f32.mrb[32].mxu1 }
 0xaa6   : > { %v3858_v63 = vadd.f32 %v3857_v9, %v3736_v60  ;;  %v3859_v28 = vpop.f32.mrb[33].mxu1 }
 0xaa7   : > { %v3860_v10 = vadd.f32 %v3859_v28, %v3740_v61  ;;  %v3861_v53 = vpop.f32.mrb[34].mxu1 }
 0xaa8   : > { %v3874_v11 = vmul.f32 %v3858_v63, %v3858_v63  ;;  %v3862_v41 = vadd.f32 %v3861_v53, %v3736_v60  ;;  %v3863_v33 = vpop.f32.mrb[35].mxu1 }
 0xaa9   : > { %v3875_v39 = vmul.f32 %v3860_v10, %v3860_v10  ;;  %v3864_v18 = vadd.f32 %v3863_v33, %v3740_v61 }
 0xaaa   : > { %v3880_v49 = vmul.f32 %v3874_v11, %v3858_v63  ;;  %v3876_v42 = vmul.f32 %v3862_v41, %v3862_v41 }
 0xaab   : > { %v3881_v17 = vmul.f32 %v3875_v39, %v3860_v10  ;;  %v3877_v43 = vmul.f32 %v3864_v18, %v3864_v18 }
 0xaac   : > { %v3886_v0 = vmul.f32 0.044715, %v3880_v49  ;;  %v3882_v55 = vmul.f32 %v3876_v42, %v3862_v41 }
 0xaad   : > { %v3887_v27 = vmul.f32 0.044715, %v3881_v17  ;;  %v3883_v52 = vmul.f32 %v3877_v43, %v3864_v18  ;;  %v3867_v7 = vpop.f32.mrb[36].mxu1 }
 0xaae   : > { %v3892_v15 = vadd.f32 %v3886_v0, %v3858_v63  ;;  %v3888_v36 = vmul.f32 0.044715, %v3882_v55  ;;  %v3868_v40 = vadd.f32 %v3867_v7, %v3736_v60  ;;  %v3869_v20 = vpop.f32.mrb[37].mxu1 }
 0xaaf   : > { %v3893_v50 = vadd.f32 %v3887_v27, %v3860_v10  ;;  %v3889_v34 = vmul.f32 0.044715, %v3883_v52  ;;  %v3870_v19 = vadd.f32 %v3869_v20, %v3740_v61  ;;  %v3871_v22 = vpop.f32.mrb[38].mxu1 }
 0xab0   : > { %v3898_v46 = vmul.f32 0.7978846, %v3892_v15  ;;  %v3894_v47 = vadd.f32 %v3888_v36, %v3862_v41  ;;  %v3878_v2 = vmul.f32 %v3868_v40, %v3868_v40  ;;  %v3872_v4 = vpop.f32.mrb[39].mxu1  ;;  %v7731_v22 = vld [vmem:[%s10745_s15] ss:$0 sm:$0xff] }
 0xab1   : > { %v3899_v56 = vmul.f32 0.7978846, %v3893_v50  ;;  %v3895_v54 = vadd.f32 %v3889_v34, %v3864_v18  ;;  %v3879_v16 = vmul.f32 %v3870_v19, %v3870_v19 }
 0xab2   : > { %8621 = vtanh.f32 %v3898_v46  ;;  %v3900_v62 = vmul.f32 0.7978846, %v3894_v47  ;;  %v3884_v3 = vmul.f32 %v3878_v2, %v3868_v40 }
 0xab3   : > { %8623 = vtanh.f32 %v3899_v56  ;;  %v3901_v14 = vmul.f32 0.7978846, %v3895_v54  ;;  %v3885_v29 = vmul.f32 %v3879_v16, %v3870_v19 }
 0xab4   : > { %8625 = vtanh.f32 %v3900_v62  ;;  %v3890_v13 = vmul.f32 0.044715, %v3884_v3 }
 0xab5   : > { %8627 = vtanh.f32 %v3901_v14  ;;  %v3891_v37 = vmul.f32 0.044715, %v3885_v29  ;;  %v8486_v29 = vld [vmem:[%s10736_s6 + $0xdc] ss:$12 sps:$4 sm:$0xff]  }
 0xab6   : > { %v3896_v38 = vadd.f32 %v3890_v13, %v3868_v40  ;;  %v8484_v13 = vld [vmem:[%s10736_s6 + $0xd8] ss:$12 sps:$4 sm:$0xff]  }
 0xab7   : > { %v3897_v48 = vadd.f32 %v3891_v37, %v3870_v19 }
 0xab8   : > { %v3902_v25 = vmul.f32 0.7978846, %v3896_v38 }
 0xab9   : > { %v3903_v35 = vmul.f32 0.7978846, %v3897_v48 }
 0xaba   : > { %8629 = vtanh.f32 %v3902_v25 }
 0xabb   : > { %8631 = vtanh.f32 %v3903_v35 }
 0xabc   : > { %v8622_v45 = vpop.eup %8621 }
 0xabd   : > { %v8624_v12 = vpop.eup %8623  ;;  %v3910_v23 = vadd.f32 1.0, %v8622_v45 }
 0xabe   : > { %v8626_v30 = vpop.eup %8625  ;;  %v3911_v26 = vadd.f32 1.0, %v8624_v12 }
 0xabf   : > { %v8628_v58 = vpop.eup %8627  ;;  %v3916_v59 = vmul.f32 0.5, %v3910_v23  ;;  %v3912_v60 = vadd.f32 1.0, %v8626_v30 }
 0xac0   : > { %v3913_v61 = vadd.f32 1.0, %v8628_v58  ;;  %v3917_v9 = vmul.f32 0.5, %v3911_v26 }
 0xac1   : > { %v3918_v28 = vmul.f32 0.5, %v3912_v60  ;;  %v3922_v11 = vmul.f32 %v3916_v59, %v3858_v63  ;;  %v8490_v60 = vld [vmem:[%s10736_s6 + $0xf4] ss:$12 sps:$4 sm:$0xff]  }
 0xac2   : > { %v3919_v53 = vmul.f32 0.5, %v3913_v61  ;;  %v3923_v49 = vmul.f32 %v3917_v9, %v3860_v10  ;;  %v8488_v61 = vld [vmem:[%s10736_s6 + $0xf0] ss:$12 sps:$4 sm:$0xff]   ;;  %v8491_v9 = vld [vmem:[%s10736_s6 + $0xe0] ss:$12 sps:$4 sm:$0xff]  }
 0xac3   : > { %v3924_v33 = vmul.f32 %v3918_v28, %v3862_v41  ;;  %v8494_v28 = vld [vmem:[%s10736_s6 + $0x10c] ss:$12 sps:$4 sm:$0xff]  }
 0xac4   : > { %v8630_v39 = vpop.eup %8629  ;;  %v3925_v42 = vmul.f32 %v3919_v53, %v3864_v18  ;;  %v8492_v53 = vld [vmem:[%s10736_s6 + $0x108] ss:$12 sps:$4 sm:$0xff]  }
 0xac5   : > { %v8632_v17 = vpop.eup %8631  ;;  %v3928_v43 = vpack.c.bf16 %v3924_v33, %v3922_v11  ;;  %v3914_v0 = vadd.f32 1.0, %v8630_v39  ;;  %v8495_v11 = vld [vmem:[%s10736_s6 + $0xf8] ss:$12 sps:$4 sm:$0xff]   ;;  %v8496_v39 = vld [vmem:[%s10736_s6 + $0x120] ss:$12 sps:$4 sm:$0xff]  }
 0xac6   : > { %v3929_v55 = vpack.c.bf16 %v3925_v42, %v3923_v49  ;;  %v3915_v27 = vadd.f32 1.0, %v8632_v17  ;;  %v8498_v33 = vld [vmem:[%s10736_s6 + $0x124] ss:$12 sps:$4 sm:$0xff]   ;;  %v8502_v17 = vld [vmem:[%s10736_s6 + $0x13c] ss:$12 sps:$4 sm:$0xff]  }
 0xac7   : > { %v3920_v52 = vmul.f32 0.5, %v3914_v0  ;;  %v8499_v49 = vld [vmem:[%s10736_s6 + $0x110] ss:$12 sps:$4 sm:$0xff]   ;;  %v8500_v42 = vld [vmem:[%s10736_s6 + $0x138] ss:$12 sps:$4 sm:$0xff]  }
 0xac8   : > { %4092 = vmatprep.mubr.bf16.mxu0 %v3929_v55  ;;  %v3921_v7 = vmul.f32 0.5, %v3915_v27  ;;  %v8506_v0 = vld [vmem:[%s10736_s6 + $0x154] ss:$12 sps:$4 sm:$0xff]   ;;  %v8504_v27 = vld [vmem:[%s10736_s6 + $0x150] ss:$12 sps:$4 sm:$0xff]  }
 0xac9   : > { %4093 = vmatmul.mubr.bf16.vlgmr.msra.gmra.mrb[20].mxu0 %v3928_v43  ;;  %v3926_v36 = vmul.f32 %v3920_v52, %v3868_v40  ;;  %v8503_v43 = vld [vmem:[%s10736_s6 + $0x128] ss:$12 sps:$4 sm:$0xff]   ;;  %v8507_v55 = vld [vmem:[%s10736_s6 + $0x140] ss:$12 sps:$4 sm:$0xff]  }
 0xaca   : > { %v3927_v15 = vmul.f32 %v3921_v7, %v3870_v19  ;;  %v8510_v52 = vld [vmem:[%s10736_s6 + $0x16c] ss:$12 sps:$4 sm:$0xff]  }
 0xacb   : > { %v3930_v50 = vpack.c.bf16 %v3926_v36, %v3926_v36  ;;  %v8511_v7 = vld [vmem:[%s10736_s6 + $0x158] ss:$12 sps:$4 sm:$0xff]   ;;  %v8512_v36 = vld [vmem:[%s10736_s6 + $0x170] ss:$12 sps:$4 sm:$0xff]  }
 0xacc   : > { %v3931_v20 = vpack.c.bf16 %v3927_v15, %v3927_v15  ;;  %v8508_v15 = vld [vmem:[%s10736_s6 + $0x168] ss:$12 sps:$4 sm:$0xff]  }
 0xace   : > { %4100 = vmatprep.mubr.bf16.mxu0 %v3931_v20 }
 0xad1   : > { %4101 = vmatmul.mubr.bf16.gmra.mrb[24].mxu0 %v3930_v50 }
 0xb9c   : > { %v8019_v63 = vpop.f32.mrb[20].mxu0 }
 0xb9d   : > { %v8020_v41 = vpop.f32.mrb[21].mxu0 }
 0xb9e   : > { %v8021_v34 = vadd.f32 %v8020_v41, %v8019_v63  ;;  %v8022_v10 = vpop.f32.mrb[22].mxu0 }
 0xb9f   : > { %v8023_v18 = vpop.f32.mrb[23].mxu0 }
 0xba0   : > { %v4108_v46 = vadd.f32 %v8021_v34, %v9664_v31  ;;  %v8024_v47 = vadd.f32 %v8023_v18, %v8022_v10  ;;  %v8481_v31 = vld [vmem:[%s10736_s6 + $0xc0] ss:$12 sps:$4 sm:$0xff]  }
 0xba2   : > { %v4109_v2 = vadd.f32 %v8024_v47, %v9670_v21  ;;  %v9794_v19 = vadd.f32 %v7731_v22, %v4108_v46  ;;  %v8483_v21 = vld [vmem:[%s10736_s6 + $0xc4] ss:$12 sps:$4 sm:$0xff]  }
 0xba3   : > { %4357 = vmatprep.subr.bf16.mxu1 %v8483_v21 }
 0xba4   : > { %4125 = vadd.xlane.f32.xlu1 %v9794_v19  ;;  %v8025_v40 = vpop.f32.mrb[24].mxu0  ;;  %v9797_v4 = vadd.f32 %v7731_v22, %v4109_v2  ;;  %4358 = vmatpush1.bf16.msra.mxu1 %v8481_v31  ;;  %v7734_v2 = vld [vmem:[%s10734_s4 + $0x1] ss:$0 sm:$0xff] }
 0xba5   : > { %v8026_v56 = vpop.f32.mrb[25].mxu0  ;;  %4359 = vmatprep.subr.bf16.mxu1 %v8486_v29 }
 0xba6   : > { %v8027_v54 = vadd.f32 %v8026_v56, %v8025_v40  ;;  %4127 = vadd.xlane.f32.xlu0 %v9797_v4  ;;  %v8028_v16 = vpop.f32.mrb[26].mxu0 }
 0xba7   : > { %v8029_v62 = vpop.f32.mrb[27].mxu0 }
 0xba8   : > { %v4110_v3 = vadd.f32 %v8027_v54, %v9674_v32  ;;  %v8487_v32 = vld [vmem:[%s10736_s6 + $0xc8] ss:$12 sps:$4 sm:$0xff]   ;;  %4360 = vmatpush1.bf16.msra.mxu1 %v8484_v13  ;;  %v7735_v62 = vld [vmem:[%s10735_s5 + $0x1] ss:$0 sm:$0xff] }
 0xba9   : > { %8215 = vmatprep.subr.bf16.mxu0 %v8487_v32  ;;  %4361 = vmatprep.subr.bf16.mxu1 %v8490_v60 }
 0xbaa   : > { %v9801_v14 = vadd.f32 %v7731_v22, %v4110_v3  ;;  %8216 = vmatpush3.bf16.msra.mxu0 %v8487_v32 }
 0xbab   : > { %8217 = vmatprep.subr.bf16.mxu0 %v8491_v9 }
 0xbac   : > { %4129 = vadd.xlane.f32.xlu1 %v9801_v14  ;;  %4362 = vmatpush1.bf16.msra.mxu1 %v8488_v61 }
 0xbad   : > { %4363 = vmatprep.subr.bf16.mxu1 %v8494_v28 }
 0xbae   : > { %8218 = vmatpush3.bf16.msra.mxu0 %v8491_v9 }
 0xbaf   : > { %8219 = vmatprep.subr.bf16.mxu0 %v8495_v11 }
 0xbb0   : > { %4364 = vmatpush1.bf16.msra.mxu1 %v8492_v53 }
 0xbb1   : > { %4365 = vmatprep.subr.bf16.mxu1 %v8498_v33 }
 0xbb2   : > { %8220 = vmatpush3.bf16.msra.mxu0 %v8495_v11 }
 0xbb3   : > { %8221 = vmatprep.subr.bf16.mxu0 %v8499_v49 }
 0xbb4   : > { %4366 = vmatpush1.bf16.msra.mxu1 %v8496_v39 }
 0xbb5   : > { %4367 = vmatprep.subr.bf16.mxu1 %v8502_v17 }
 0xbb6   : > { %8222 = vmatpush3.bf16.msra.mxu0 %v8499_v49 }
 0xbb7   : > { %8223 = vmatprep.subr.bf16.mxu0 %v8503_v43 }
 0xbb8   : > { %4368 = vmatpush1.bf16.msra.mxu1 %v8500_v42 }
 0xbb9   : > { %4369 = vmatprep.subr.bf16.mxu1 %v8506_v0 }
 0xbba   : > { %8224 = vmatpush3.bf16.msra.mxu0 %v8503_v43 }
 0xbbb   : > { %8225 = vmatprep.subr.bf16.mxu0 %v8507_v55 }
 0xbbc   : > { %4370 = vmatpush1.bf16.msra.mxu1 %v8504_v27 }
 0xbbd   : > { %4371 = vmatprep.subr.bf16.mxu1 %v8510_v52 }
 0xbbe   : > { %8226 = vmatpush3.bf16.msra.mxu0 %v8507_v55 }
 0xbbf   : > { %8227 = vmatprep.subr.bf16.mxu0 %v8511_v7 }
 0xbc0   : > { %4372 = vmatpush1.bf16.msra.mxu1 %v8508_v15 }
 0xbc2   : > { %8228 = vmatpush3.bf16.msra.mxu0 %v8511_v7 }
 0xbc3   : > { %8229 = vmatprep.subr.bf16.mxu0 %v8512_v36 }
 0xbc6   : > { %8230 = vmatpush3.bf16.msra.mxu0 %v8512_v36 }
 0xc31   : > { %v4126_v37 = vpop.xlane.xlu1 %4125 }
 0xc32   : > { %v4131_v38 = vmul.f32 0.0078125, %v4126_v37 }
 0xc33   : > { %v4128_v48 = vpop.xlane.xlu0 %4127 }
 0xc34   : > { %v9820_v25 = vsub.f32 %v9794_v19, %v4131_v38  ;;  %v4132_v35 = vmul.f32 0.0078125, %v4128_v48 }
 0xc36   : > { %v9823_v45 = vsub.f32 %v9797_v4, %v4132_v35  ;;  %v4137_v12 = vmul.f32 %v9820_v25, %v9820_v25 }
 0xc38   : > { %4140 = vadd.xlane.f32.xlu0 %v4137_v12  ;;  %v4138_v23 = vmul.f32 %v9823_v45, %v9823_v45 }
 0xc39   : > { %v4130_v30 = vpop.xlane.xlu1 %4129 }
 0xc3a   : > { %v4133_v26 = vmul.f32 0.0078125, %v4130_v30  ;;  %4142 = vadd.xlane.f32.xlu1 %v4138_v23 }
 0xc3c   : > { %v9830_v58 = vsub.f32 %v9801_v14, %v4133_v26 }
 0xc3e   : > { %v4139_v59 = vmul.f32 %v9830_v58, %v9830_v58 }
 0xc40   : > { %4144 = vadd.xlane.f32.xlu0 %v4139_v59 }
 0xcc5   : > { %v4141_v20 = vpop.xlane.xlu0 %4140 }
 0xcc6   : > { %v4146_v50 = vmul.f32 0.0078125, %v4141_v20 }
 0xcc7   : > { %v4143_v63 = vpop.xlane.xlu1 %4142 }
 0xcc8   : > { %v4149_v41 = vadd.f32 1e-12, %v4146_v50  ;;  %v4147_v34 = vmul.f32 0.0078125, %v4143_v63 }
 0xcca   : > { %8633 = vrsqrt.f32 %v4149_v41  ;;  %v4150_v10 = vadd.f32 1e-12, %v4147_v34 }
 0xccc   : > { %8635 = vrsqrt.f32 %v4150_v10 }
 0xccd   : > { %v4145_v18 = vpop.xlane.xlu0 %4144 }
 0xcce   : > { %v4148_v22 = vmul.f32 0.0078125, %v4145_v18 }
 0xcd0   : > { %v4151_v46 = vadd.f32 1e-12, %v4148_v22 }
 0xcd2   : > { %8637 = vrsqrt.f32 %v4151_v46 }
 0xcd4   : > { %v8634_v47 = vpop.eup %8633 }
 0xcd5   : > { %v4155_v40 = vmul.f32 %v8634_v47, %v9820_v25  ;;  %v9904_v25 = vld [vmem:[%s10737_s7 + $0x3] sm:$0x7] }
 0xcd6   : > { %v8636_v56 = vpop.eup %8635  ;;  %v4217_v35 = vrot.slane %v9904_v25, %v8990_v6 }
 0xcd7   : > { %v4164_v54 = vmul.f32 %v7734_v2, %v4155_v40  ;;  %v4156_v16 = vmul.f32 %v8636_v56, %v9823_v45  ;;  %v4221_v45 = vrot.slane %v9904_v25, %v8996_v8 }
 0xcd9   : > { %v4165_v3 = vmul.f32 %v7734_v2, %v4156_v16  ;;  %v4173_v31 = vadd.f32 %v7735_v62, %v4164_v54 }
 0xcdb   : > { %v4174_v21 = vadd.f32 %v7735_v62, %v4165_v3 }
 0xcdc   : > { %v8638_v29 = vpop.eup %8637 }
 0xcdd   : > { %v4157_v32 = vmul.f32 %v8638_v29, %v9830_v58  ;;  %v4176_v13 = vpack.c.bf16 %v4174_v21, %v4173_v31 }
 0xcdf   : > { %4390 = vmatmul.mubr.bf16.vlgmr.msra.gmra.mrb[40].mxu1 %v4176_v13  ;;  %8231 = vmatprep.mubr.bf16.mxu0 %v4176_v13  ;;  %v4166_v37 = vmul.f32 %v7734_v2, %v4157_v32 }
 0xce0   : > { %4399 = vmatprep.mubr.bf16.mxu1 %v8720_v1 }
 0xce1   : > { %v4175_v38 = vadd.f32 %v7735_v62, %v4166_v37 }
 0xce3   : > { %v4177_v48 = vpack.c.bf16 %v4175_v38, %v4175_v38 }
 0xce5   : > { %8232 = vmatmul.mubr.bf16.vlgmr.msra.gmra.mrb[28].mxu0 %v4177_v48 }
 0xce7   : > { %4400 = vmatmul.mubr.bf16.gmra.mrb[44].mxu1 %v4177_v48 }
 0xdb2   : > { %v4391_v12 = vpop.f32.mrb[40].mxu1 }
 0xdb3   : > { %v9910_v23 = vadd.f32 %v4391_v12, %v4217_v35  ;;  %v4393_v30 = vpop.f32.mrb[41].mxu1 }
 0xdb4   : > { %v4394_v26 = vadd.f32 %v4393_v30, %v4221_v45  ;;  %v4395_v58 = vpop.f32.mrb[42].mxu1 }
 0xdb5   : > { %v4397_v59 = vpop.f32.mrb[43].mxu1  ;;  %4459 = vrot.lane.b32.xlu0 %v9910_v23, %s8721_s23  ;;  %v9929_v42 = vadd.f32 %v4395_v58, %v4217_v35 }
 0xdb6   : > { %v9914_v60 = vadd.f32 %v4397_v59, %v4221_v45  ;;  %4897 = vrot.lane.b32.xlu1 %v4394_v26, %s8721_s23 }
 0xdb8   : > { %v9917_v61 = vpop.f32.mrb[28].mxu0 }
 0xdb9   : > { %4899 = vrot.lane.b32.xlu0 %v9914_v60, %s8721_s23  ;;  %v9921_v9 = vpop.f32.mrb[29].mxu0 }
 0xdba   : > { %4906 = vrot.lane.b32.xlu1 %v4394_v26, %s8722_s24  ;;  %v4401_v28 = vpop.f32.mrb[44].mxu1  ;;  %v8234_v53 = vpop.f32.mrb[30].mxu0 }
 0xdbb   : > { %v4403_v11 = vpop.f32.mrb[45].mxu1  ;;  %v9924_v33 = vpop.f32.mrb[31].mxu0  ;;  %v9945_v43 = vadd.f32 %v4401_v28, %v4217_v35 }
 0xdbc   : > { %v4405_v39 = vpop.f32.mrb[46].mxu1  ;;  %v9935_v17 = vadd.f32 %v4403_v11, %v4221_v45 }
 0xdbd   : > { %4917 = vrot.lane.b32.xlu0 %v9914_v60, %s10758_s2  ;;  %v4406_v49 = vpop.f32.mrb[47].mxu1 }
 0xdbe   : > { %4915 = vrot.lane.b32.xlu1 %v4394_v26, %s10758_s2 }
 0xdc1   : > { %4468 = vrot.lane.b32.xlu0 %v9910_v23, %s8722_s24 }
 0xdc2   : > { %4461 = vrot.lane.b32.xlu1 %v9929_v42, %s8721_s23 }
 0xdc5   : > { %4910 = vrot.lane.b32.xlu0 %v9935_v17, %s8722_s24 }
 0xdc6   : > { %4908 = vrot.lane.b32.xlu1 %v9914_v60, %s8722_s24 }
 0xdc9   : > { %4477 = vrot.lane.b32.xlu0 %v9910_v23, %s10758_s2 }
 0xdca   : > { %4901 = vrot.lane.b32.xlu1 %v9935_v17, %s8721_s23 }
 0xdcd   : > { %4463 = vrot.lane.b32.xlu0 %v9945_v43, %s8721_s23 }
 0xdce   : > { %4919 = vrot.lane.b32.xlu1 %v9935_v17, %s10758_s2 }
 0xdd1   : > { %4481 = vrot.lane.b32.xlu0 %v9945_v43, %s10758_s2 }
 0xdd2   : > { %4470 = vrot.lane.b32.xlu1 %v9929_v42, %s8722_s24 }
 0xdd6   : > { %4479 = vrot.lane.b32.xlu1 %v9929_v42, %s10758_s2 }
 0xdda   : > { %4472 = vrot.lane.b32.xlu1 %v9945_v43, %s8722_s24 }
 0xe27   : > { %v9959_v0 = vpop.permute.xlu0 %4459 }
 0xe28   : > { %v4898_v55 = vpop.permute.xlu1 %4897 }
 0xe2b   : > { %v4900_v27 = vpop.permute.xlu0 %4899 }
 0xe2c   : > { %v4907_v52 = vpop.permute.xlu1 %4906 }
 0xe2d   : > { %v4924_v7 = vcombine.low %v4394_v26, %v4907_v52  ;;  %v4925_v15 = vcombine.high %v4394_v26, %v4907_v52 }
 0xe2f   : > { %v4918_v36 = vpop.permute.xlu0 %4917  ;;  %v4932_v34 = vrot.slane %v4924_v7, %v9062_v44  ;;  %v4939_v10 = vrot.slane %v4925_v15, %v9062_v44 }
 0xe30   : > { %v4916_v20 = vpop.permute.xlu1 %4915  ;;  %v5008_v41 = vcombine.low %v4900_v27, %v4918_v36  ;;  %v5009_v47 = vcombine.high %v4900_v27, %v4918_v36 }
 0xe31   : > { %v4940_v50 = vcombine.low %v4898_v55, %v4916_v20  ;;  %v4941_v63 = vcombine.high %v4898_v55, %v4916_v20 }
 0xe32   : > { %v5016_v3 = vrot.slane %v5008_v41, %v9062_v44  ;;  %v5023_v38 = vrot.slane %v5009_v47, %v9062_v44 }
 0xe33   : > { %v4948_v18 = vrot.slane %v4940_v50, %v9062_v44  ;;  %v4955_v22 = vrot.slane %v4941_v63, %v9062_v44  ;;  %v4469_v46 = vpop.permute.xlu0 %4468 }
 0xe34   : > { %v4486_v2 = vcombine.low %v9910_v23, %v4469_v46  ;;  %v9966_v40 = vpop.permute.xlu1 %4461  ;;  %v4487_v31 = vcombine.high %v9910_v23, %v4469_v46 }
 0xe35   : > { %v4956_v56 = vcombine.low %v4932_v34, %v4948_v18  ;;  %v4957_v54 = vcombine.high %v4932_v34, %v4948_v18  ;;  %v4972_v16 = vcombine.low %v4939_v10, %v4955_v22  ;;  %v4973_v62 = vcombine.high %v4939_v10, %v4955_v22 }
 0xe36   : > { %v4494_v48 = vrot.slane %v4486_v2, %v9062_v44  ;;  %v4501_v59 = vrot.slane %v4487_v31, %v9062_v44 }
 0xe37   : > { %v4964_v21 = vrot.slane %v4956_v56, %v9069_v51  ;;  %v4971_v29 = vrot.slane %v4957_v54, %v9069_v51  ;;  %v4980_v32 = vrot.slane %v4972_v16, %v9069_v51  ;;  %v4987_v13 = vrot.slane %v4973_v62, %v9069_v51  ;;  %v4911_v37 = vpop.permute.xlu0 %4910 }
 0xe38   : > { %v5060_v35 = vcombine.low %v9935_v17, %v4911_v37  ;;  %v5061_v45 = vcombine.high %v9935_v17, %v4911_v37  ;;  %v4909_v12 = vpop.permute.xlu1 %4908 }
 0xe39   : > { %v5128_v30 = vcombine.low %v4964_v21, %v4971_v29  ;;  %v7799_v23 = vcombine.high %v4964_v21, %v4971_v29  ;;  %v5144_v26 = vcombine.low %v4980_v32, %v4987_v13  ;;  %v7800_v58 = vcombine.high %v4980_v32, %v4987_v13 }
 0xe3a   : > { %v9980_v28 = vrot.slane %v5060_v35, %v9062_v44  ;;  %v4992_v53 = vcombine.low %v9914_v60, %v4909_v12  ;;  %v4993_v11 = vcombine.high %v9914_v60, %v4909_v12  ;;  %v10001_v20 = vrot.slane %v5061_v45, %v9062_v44 }
 0xe3b   : > { %v9985_v39 = vrot.slane %v5128_v30, %v9062_v44  ;;  %v9988_v49 = vrot.slane %v7799_v23, %v9062_v44  ;;  %v9991_v17 = vrot.slane %v5144_v26, %v9062_v44  ;;  %v9994_v55 = vrot.slane %v7800_v58, %v9062_v44  ;;  %v4478_v27 = vpop.permute.xlu0 %4477 }
 0xe3c   : > { %v5000_v52 = vrot.slane %v4992_v53, %v9062_v44  ;;  %v5007_v7 = vrot.slane %v4993_v11, %v9062_v44  ;;  %v4502_v15 = vcombine.low %v9959_v0, %v4478_v27  ;;  %v4503_v60 = vcombine.high %v9959_v0, %v4478_v27  ;;  %v4902_v36 = vpop.permute.xlu1 %4901 }
 0xe3d   : > { %v5160_v50 = vcombine.low %v9985_v39, %v9988_v49  ;;  %v5176_v63 = vcombine.low %v9991_v17, %v9994_v55  ;;  %v5161_v41 = vcombine.high %v9985_v39, %v9988_v49  ;;  %v5177_v56 = vcombine.high %v9991_v17, %v9994_v55 }
 0xe3e   : > { %v5024_v34 = vcombine.low %v5000_v52, %v5016_v3  ;;  %v5025_v10 = vcombine.high %v5000_v52, %v5016_v3  ;;  %v5040_v18 = vcombine.low %v5007_v7, %v5023_v38  ;;  %v5041_v22 = vcombine.high %v5007_v7, %v5023_v38 }
 0xe3f   : > { %v4510_v46 = vrot.slane %v4502_v15, %v9062_v44  ;;  %v4517_v0 = vrot.slane %v4503_v60, %v9062_v44  ;;  %v10011_v47 = vpop.permute.xlu0 %4463  ;;  %v10014_v2 = vrot.slane %v5160_v50, %v9069_v51  ;;  %v10036_v27 = vrot.slane %v5176_v63, %v9069_v51 }
 0xe40   : > { %v5032_v54 = vrot.slane %v5024_v34, %v9069_v51  ;;  %v5039_v16 = vrot.slane %v5025_v10, %v9069_v51  ;;  %v5048_v62 = vrot.slane %v5040_v18, %v9069_v51  ;;  %v5055_v3 = vrot.slane %v5041_v22, %v9069_v51  ;;  %v4920_v31 = vpop.permute.xlu1 %4919 }
 0xe41   : > { %v4518_v21 = vcombine.low %v4494_v48, %v4510_v46  ;;  %v4519_v29 = vcombine.high %v4494_v48, %v4510_v46  ;;  %v4534_v32 = vcombine.low %v4501_v59, %v4517_v0  ;;  %v4535_v13 = vcombine.high %v4501_v59, %v4517_v0 }
 0xe42   : > { %v5196_v37 = vcombine.low %v5032_v54, %v5039_v16  ;;  %v7801_v38 = vcombine.high %v5032_v54, %v5039_v16  ;;  %v5212_v35 = vcombine.low %v5048_v62, %v5055_v3  ;;  %v7802_v45 = vcombine.high %v5048_v62, %v5055_v3 }
 0xe43   : > { %v4526_v12 = vrot.slane %v4518_v21, %v9069_v51  ;;  %v4533_v30 = vrot.slane %v4519_v29, %v9069_v51  ;;  %v4542_v23 = vrot.slane %v4534_v32, %v9069_v51  ;;  %v4549_v26 = vrot.slane %v4535_v13, %v9069_v51  ;;  %v4482_v58 = vpop.permute.xlu0 %4481 }
 0xe44   : > { %v10027_v53 = vrot.slane %v5196_v37, %v9062_v44  ;;  %v10030_v48 = vrot.slane %v7801_v38, %v9062_v44  ;;  %v10033_v59 = vrot.slane %v5212_v35, %v9062_v44  ;;  %v4471_v11 = vpop.permute.xlu1 %4470  ;;  %v10039_v50 = vrot.slane %v7802_v45, %v9062_v44 }
 0xe45   : > { %v4690_v52 = vcombine.low %v4526_v12, %v4533_v30  ;;  %v7793_v7 = vcombine.high %v4526_v12, %v4533_v30  ;;  %v4706_v15 = vcombine.low %v4542_v23, %v4549_v26  ;;  %v7794_v60 = vcombine.high %v4542_v23, %v4549_v26 }
 0xe46   : > { %v5076_v34 = vcombine.low %v4902_v36, %v4920_v31  ;;  %v5077_v10 = vcombine.high %v4902_v36, %v4920_v31  ;;  %v4638_v18 = vcombine.low %v10011_v47, %v4482_v58  ;;  %v4639_v0 = vcombine.high %v10011_v47, %v4482_v58 }
 0xe47   : > { %v10043_v22 = vrot.slane %v4690_v52, %v9062_v44  ;;  %v10046_v46 = vrot.slane %v7793_v7, %v9062_v44  ;;  %v10049_v63 = vrot.slane %v4706_v15, %v9062_v44  ;;  %v10053_v54 = vrot.slane %v7794_v60, %v9062_v44 }
 0xe48   : > { %v5084_v16 = vrot.slane %v5076_v34, %v9062_v44  ;;  %v5091_v36 = vrot.slane %v5077_v10, %v9062_v44  ;;  %v10058_v62 = vrot.slane %v4638_v18, %v9062_v44  ;;  %v4480_v3 = vpop.permute.xlu1 %4479  ;;  %v4554_v31 = vcombine.low %v9929_v42, %v4471_v11 }
 0xe49   : > { %v4555_v21 = vcombine.high %v9929_v42, %v4471_v11  ;;  %v4570_v29 = vcombine.low %v9966_v40, %v4480_v3  ;;  %v4571_v32 = vcombine.high %v9966_v40, %v4480_v3 }
 0xe4a   : > { %v5092_v47 = vcombine.low %v9980_v28, %v5084_v16  ;;  %v5093_v13 = vcombine.high %v9980_v28, %v5084_v16  ;;  %v5108_v37 = vcombine.low %v10001_v20, %v5091_v36  ;;  %v5109_v38 = vcombine.high %v10001_v20, %v5091_v36 }
 0xe4b   : > { %v4562_v35 = vrot.slane %v4554_v31, %v9062_v44  ;;  %v4569_v45 = vrot.slane %v4555_v21, %v9062_v44  ;;  %v4578_v12 = vrot.slane %v4570_v29, %v9062_v44  ;;  %v4585_v42 = vrot.slane %v4571_v32, %v9062_v44 }
 0xe4c   : > { %v5100_v30 = vrot.slane %v5092_v47, %v9069_v51  ;;  %v5107_v40 = vrot.slane %v5093_v13, %v9069_v51  ;;  %v5116_v23 = vrot.slane %v5108_v37, %v9069_v51  ;;  %v5123_v28 = vrot.slane %v5109_v38, %v9069_v51  ;;  %v4473_v36 = vpop.permute.xlu1 %4472 }
 0xe4d   : > { %v4586_v26 = vcombine.low %v4562_v35, %v4578_v12  ;;  %v4587_v58 = vcombine.high %v4562_v35, %v4578_v12  ;;  %v4602_v11 = vcombine.low %v4569_v45, %v4585_v42  ;;  %v4603_v20 = vcombine.high %v4569_v45, %v4585_v42 }
 0xe4e   : > { %v5264_v52 = vcombine.low %v5100_v30, %v5107_v40  ;;  %v7803_v7 = vcombine.high %v5100_v30, %v5107_v40  ;;  %v5280_v15 = vcombine.low %v5116_v23, %v5123_v28  ;;  %v7804_v60 = vcombine.high %v5116_v23, %v5123_v28 }
 0xe4f   : > { %v4594_v34 = vrot.slane %v4586_v26, %v9069_v51  ;;  %v4601_v10 = vrot.slane %v4587_v58, %v9069_v51  ;;  %v4610_v18 = vrot.slane %v4602_v11, %v9069_v51  ;;  %v4617_v16 = vrot.slane %v4603_v20, %v9069_v51 }
 0xe50   : > { %v10081_v3 = vrot.slane %v5264_v52, %v9062_v44  ;;  %v10084_v31 = vrot.slane %v7803_v7, %v9062_v44  ;;  %v10087_v21 = vrot.slane %v5280_v15, %v9062_v44  ;;  %v4653_v29 = vrot.slane %v4639_v0, %v9062_v44 }
 0xe51   : > { %v10091_v32 = vrot.slane %v7804_v60, %v9062_v44  ;;  %v4758_v47 = vcombine.low %v4594_v34, %v4601_v10  ;;  %v7795_v13 = vcombine.high %v4594_v34, %v4601_v10  ;;  %v4774_v37 = vcombine.low %v4610_v18, %v4617_v16 }
 0xe52   : > { %v7796_v38 = vcombine.high %v4610_v18, %v4617_v16  ;;  %v4622_v35 = vcombine.low %v9945_v43, %v4473_v36  ;;  %v4623_v45 = vcombine.high %v9945_v43, %v4473_v36  ;;  %v5228_v12 = vcombine.low %v10027_v53, %v10030_v48 }
 0xe53   : > { %v10098_v42 = vrot.slane %v4758_v47, %v9062_v44  ;;  %v10101_v30 = vrot.slane %v7795_v13, %v9062_v44  ;;  %v10104_v0 = vrot.slane %v4774_v37, %v9062_v44  ;;  %v5192_v40 = vcombine.low %v10014_v2, %v10036_v27 }
 0xe54   : > { %v4630_v23 = vrot.slane %v4622_v35, %v9062_v44  ;;  %v4637_v28 = vrot.slane %v4623_v45, %v9062_v44  ;;  %v10111_v43 = vrot.slane %v5228_v12, %v9069_v51  ;;  %v5244_v26 = vcombine.low %v10033_v59, %v10039_v50 }
 0xe55   : > { %v10119_v58 = vrot.slane %v5161_v41, %v9069_v51  ;;  %v10125_v11 = vrot.slane %v5177_v56, %v9069_v51  ;;  %v5229_v20 = vcombine.high %v10027_v53, %v10030_v48  ;;  %v5245_v52 = vcombine.high %v10033_v59, %v10039_v50 }
 0xe56   : > { %v4654_v7 = vcombine.low %v4630_v23, %v10058_v62  ;;  %v4655_v15 = vcombine.high %v4630_v23, %v10058_v62  ;;  %v4670_v60 = vcombine.low %v4637_v28, %v4653_v29  ;;  %v4671_v39 = vcombine.high %v4637_v28, %v4653_v29 }
 0xe57   : > { %v10134_v49 = vrot.slane %v5244_v26, %v9069_v51  ;;  %v5194_v17 = vcombine.low %v10119_v58, %v10125_v11  ;;  %v10139_v55 = vrot.slane %v5229_v20, %v9069_v51  ;;  %v10142_v41 = vrot.slane %v5245_v52, %v9069_v51 }
 0xe58   : > { %v4662_v56 = vrot.slane %v4654_v7, %v9069_v51  ;;  %v4669_v53 = vrot.slane %v4655_v15, %v9069_v51  ;;  %v4678_v48 = vrot.slane %v4670_v60, %v9069_v51  ;;  %v4685_v59 = vrot.slane %v4671_v39, %v9069_v51 }
 0xe59   : > { %v5260_v50 = vcombine.low %v10111_v43, %v10134_v49  ;;  %v5262_v62 = vcombine.low %v10139_v55, %v10142_v41  ;;  %v5296_v34 = vcombine.low %v10081_v3, %v10084_v31  ;;  %v5312_v10 = vcombine.low %v10087_v21, %v10091_v32 }
 0xe5a   : > { %v4826_v18 = vcombine.low %v4662_v56, %v4669_v53  ;;  %v7797_v16 = vcombine.high %v4662_v56, %v4669_v53  ;;  %v4842_v36 = vcombine.low %v4678_v48, %v4685_v59  ;;  %v7798_v29 = vcombine.high %v4678_v48, %v4685_v59 }
 0xe5b   : > { %v5778_v47 = vpack.c.bf16 %v5260_v50, %v5192_v40  ;;  %v5782_v13 = vpack.c.bf16 %v5262_v62, %v5194_v17  ;;  %v10157_v37 = vrot.slane %v5296_v34, %v9069_v51  ;;  %v5320_v35 = vrot.slane %v5312_v10, %v9069_v51 }
 0xe5c   : > { %v4833_v45 = vrot.slane %v4826_v18, %v9062_v44  ;;  %v4841_v12 = vrot.slane %v7797_v16, %v9062_v44  ;;  %v4849_v23 = vrot.slane %v4842_v36, %v9062_v44  ;;  %v4857_v28 = vrot.slane %v7798_v29, %v9062_v44 }
 0xe5d   : > { %8331 = vmatprep.subr.msk.bf16.mxu1 %vm2436_vm1, %v5778_v47  ;;  %8335 = vmatprep.subr.msk.bf16.mxu0 %vm2436_vm1, %v5782_v13  ;;  %v5793_v40 = vsel %vm2436_vm1, %v5778_v47, 0  ;;  %v5913_v26 = vsel %vm2436_vm1, %v5782_v13, 0  ;;  %v5328_v20 = vcombine.low %v10157_v37, %v5320_v35  ;;  %v5297_v52 = vcombine.high %v10081_v3, %v10084_v31 }
 0xe5e   : > { %v4789_v7 = vrot.slane %v7796_v38, %v9062_v44  ;;  %v4858_v15 = vcombine.low %v4833_v45, %v4841_v12  ;;  %v4859_v60 = vcombine.high %v4833_v45, %v4841_v12  ;;  %v4874_v39 = vcombine.low %v4849_v23, %v4857_v28  ;;  %8236 = vmatpush3.bf16.xpose.msra.mxu1 %v5793_v40 }
 0xe5f   : > { %v4875_v17 = vcombine.high %v4849_v23, %v4857_v28  ;;  %8252 = vmatpush3.bf16.xpose.msra.mxu0 %v5913_v26  ;;  %v5779_v56 = vpack.c.bf16 %v5328_v20, %v5328_v20  ;;  %v10173_v53 = vrot.slane %v5297_v52, %v9069_v51  ;;  %v5313_v48 = vcombine.high %v10087_v21, %v10091_v32 }
 0xe60   : > { %v4866_v59 = vrot.slane %v4858_v15, %v9069_v51  ;;  %v4882_v50 = vrot.slane %v4874_v39, %v9069_v51  ;;  %v5193_v3 = vcombine.high %v10014_v2, %v10036_v27  ;;  %v4722_v31 = vcombine.low %v10043_v22, %v10046_v46 }
 0xe61   : > { %8332 = vmatprep.subr.msk.bf16.mxu1 %vm2436_vm1, %v5779_v56  ;;  %v5327_v38 = vrot.slane %v5313_v48, %v9069_v51  ;;  %v5261_v62 = vcombine.high %v10111_v43, %v10134_v49  ;;  %v4738_v21 = vcombine.low %v10049_v63, %v10053_v54  ;;  %v4790_v32 = vcombine.low %v10098_v42, %v10101_v30 }
 0xe62   : > { %v4890_v34 = vcombine.low %v4866_v59, %v4882_v50  ;;  %v5796_v10 = vsel %vm2436_vm1, %v5779_v56, 0  ;;  %v4730_v2 = vrot.slane %v4722_v31, %v9069_v51  ;;  %v4806_v27 = vcombine.low %v10104_v0, %v4789_v7 }
 0xe63   : > { %v5330_v18 = vcombine.low %v10173_v53, %v5327_v38  ;;  %v4746_v16 = vrot.slane %v4738_v21, %v9069_v51  ;;  %v4798_v36 = vrot.slane %v4790_v32, %v9069_v51  ;;  %v4723_v43 = vcombine.high %v10043_v22, %v10046_v46 }
 0xe64   : > { %v4814_v49 = vrot.slane %v4806_v27, %v9069_v51  ;;  %v4739_v29 = vcombine.high %v10049_v63, %v10053_v54  ;;  %v4791_v47 = vcombine.high %v10098_v42, %v10101_v30  ;;  %v4807_v13 = vcombine.high %v10104_v0, %v4789_v7 }
 0xe65   : > { %v5783_v45 = vpack.c.bf16 %v5330_v18, %v5330_v18  ;;  %v5780_v12 = vpack.c.bf16 %v5261_v62, %v5193_v3  ;;  %v4754_v23 = vcombine.low %v4730_v2, %v4746_v16  ;;  %v4737_v28 = vrot.slane %v4723_v43, %v9069_v51 }
 0xe66   : > { %8238 = vmatpush3.bf16.xpose.msra.mxu1 %v5796_v10  ;;  %v4822_v40 = vcombine.low %v4798_v36, %v4814_v49  ;;  %v4753_v26 = vrot.slane %v4739_v29, %v9069_v51  ;;  %v4805_v22 = vrot.slane %v4791_v47, %v9069_v51  ;;  %v4821_v46 = vrot.slane %v4807_v13, %v9069_v51 }
 0xe67   : > { %8336 = vmatprep.subr.msk.bf16.mxu0 %vm2436_vm1, %v5783_v45  ;;  %v5916_v63 = vsel %vm2436_vm1, %v5783_v45, 0  ;;  %8333 = vmatprep.subr.msk.bf16.mxu1 %vm2436_vm1, %v5780_v12  ;;  %v4873_v54 = vrot.slane %v4859_v60, %v9069_v51  ;;  %v4889_v42 = vrot.slane %v4875_v17, %v9069_v51  ;;  %v5771_v52 = vpack.c.bf16 %v4890_v34, %v4890_v34 }
 0xe68   : > { %8254 = vmatpush3.bf16.xpose.msra.mxu0 %v5916_v63  ;;  %v5770_v30 = vpack.c.bf16 %v4822_v40, %v4754_v23  ;;  %v4756_v0 = vcombine.low %v4737_v28, %v4753_v26  ;;  %v4824_v20 = vcombine.low %v4805_v22, %v4821_v46  ;;  %v5329_v15 = vcombine.high %v10157_v37, %v5320_v35 }
 0xe69   : > { %v4892_v7 = vcombine.low %v4873_v54, %v4889_v42  ;;  %v4823_v39 = vcombine.high %v4798_v36, %v4814_v49  ;;  %v4755_v48 = vcombine.high %v4730_v2, %v4746_v16  ;;  %v5853_v60 = vsel %vm2436_vm1, %v5780_v12, 0 }
 0xe6a   : > { %8239 = vmatprep.mubr.msk.bf16.mxu1 %vm2436_vm1, %v5770_v30  ;;  %v5774_v56 = vpack.c.bf16 %v4824_v20, %v4756_v0  ;;  %v5781_v17 = vpack.c.bf16 %v5329_v15, %v5329_v15  ;;  %v5263_v37 = vcombine.high %v10139_v55, %v10142_v41  ;;  %v5195_v35 = vcombine.high %v10119_v58, %v10125_v11 }
 0xe6b   : > { %v5775_v3 = vpack.c.bf16 %v4892_v7, %v4892_v7  ;;  %v5772_v31 = vpack.c.bf16 %v4823_v39, %v4755_v48  ;;  %v4891_v32 = vcombine.high %v4866_v59, %v4882_v50  ;;  %v4825_v34 = vcombine.high %v4805_v22, %v4821_v46 }
 0xe6c   : > { %8255 = vmatprep.mubr.msk.bf16.mxu0 %vm2436_vm1, %v5774_v56  ;;  %v5856_v62 = vsel %vm2436_vm1, %v5781_v17, 0  ;;  %v5784_v21 = vpack.c.bf16 %v5263_v37, %v5195_v35  ;;  %v5331_v10 = vcombine.high %v10173_v53, %v5327_v38  ;;  %v4757_v2 = vcombine.high %v4737_v28, %v4753_v26 }
 0xe6d   : > { %8240 = vmatmul.mubr.msk.bf16.vlgmr.msra.gmra.mrb[48].mxu1 %vm2436_vm1, %v5771_v52  ;;  %v5773_v27 = vpack.c.bf16 %v4891_v32, %v4891_v32  ;;  %v4893_v11 = vcombine.high %v4873_v54, %v4889_v42 }
 0xe6e   : > { %8244 = vmatpush3.bf16.xpose.msra.mxu1 %v5853_v60  ;;  %8247 = vmatprep.mubr.msk.bf16.mxu1 %vm2436_vm1, %v5772_v31  ;;  %v5776_v18 = vpack.c.bf16 %v4825_v34, %v4757_v2  ;;  %v5973_v55 = vsel %vm2436_vm1, %v5784_v21, 0  ;;  %v5785_v41 = vpack.c.bf16 %v5331_v10, %v5331_v10 }
 0xe6f   : > { %8256 = vmatmul.mubr.msk.bf16.vlgmr.msra.gmra.mrb[32].mxu0 %vm2436_vm1, %v5775_v3  ;;  %8334 = vmatprep.subr.msk.bf16.mxu1 %vm2436_vm1, %v5781_v17  ;;  %v5777_v59 = vpack.c.bf16 %v4893_v11, %v4893_v11 }
 0xe70   : > { %v5976_v58 = vsel %vm2436_vm1, %v5785_v41, 0 }
 0xe76   : > { %8246 = vmatpush3.bf16.xpose.msra.mxu1 %v5856_v62 }
 0xe77   : > { %8337 = vmatprep.subr.msk.bf16.mxu1 %vm2436_vm1, %v5784_v21 }
 0xe7d   : > { %8248 = vmatmul.mubr.msk.bf16.vlgmr.msra.gmra.mrb[52].mxu1 %vm2436_vm1, %v5773_v27 }
 0xe7e   : > { %8260 = vmatpush3.bf16.xpose.msra.mxu1 %v5973_v55  ;;  %8263 = vmatprep.mubr.msk.bf16.mxu1 %vm2436_vm1, %v5776_v18 }
 0xe7f   : > { %8338 = vmatprep.subr.msk.bf16.mxu1 %vm2436_vm1, %v5785_v41 }
 0xe86   : > { %8262 = vmatpush3.bf16.xpose.msra.mxu1 %v5976_v58 }
 0xe8d   : > { %8264 = vmatmul.mubr.msk.bf16.vlgmr.msra.gmra.mrb[56].mxu1 %vm2436_vm1, %v5777_v59 }
 0xf40   : > { %v8241_v53 = vpop.f32.mrb[48].mxu1 }
 0xf41   : > { %v6028_v50 = vmul.f32 0.17677669, %v8241_v53  ;;  %v5832_v38 = vpop.f32.mrb[49].mxu1 }
 0xf42   : > { %v8257_v16 = vpop.f32.mrb[32].mxu0  ;;  %v6026_v36 = vmul.f32 0.17677669, %v5832_v38  ;;  %v8242_v43 = vpop.f32.mrb[50].mxu1 }
 0xf43   : > { %v5952_v49 = vpop.f32.mrb[33].mxu0  ;;  %v5835_v29 = vpop.f32.mrb[51].mxu1  ;;  %v10236_v47 = vadd.f32 %v6028_v50, %v9332_v57  ;;  %v6034_v46 = vmul.f32 0.17677669, %v8257_v16  ;;  %v4225_v16 = vrot.slane %v9904_v25, %v874_v24 }
 0xf44   : > { %v8258_v13 = vpop.f32.mrb[34].mxu0  ;;  %v6027_v45 = vmul.f32 0.17677669, %v5835_v29  ;;  %v6032_v12 = vmul.f32 0.17677669, %v5952_v49  ;;  %v10241_v40 = vadd.f32 %v6026_v36, %v9332_v57 }
 0xf45   : > { %v5955_v23 = vpop.f32.mrb[35].mxu0  ;;  %v6056_v28 = vsel %vm2701_vm3, %v10236_v47, -inf  ;;  %v10254_v42 = vadd.f32 %v6034_v46, %v9332_v57  ;;  %v10299_v36 = vadd.f32 %v9921_v9, %v4225_v16  ;;  %v10315_v24 = vadd.f32 %v9917_v61, %v4225_v16 }
 0xf46   : > { %6057 = vmax.xlane.f32.xlu1 %v6056_v28  ;;  %v10244_v26 = vadd.f32 %v6027_v45, %v9332_v57  ;;  %v10249_v63 = vadd.f32 %v6032_v12, %v9332_v57  ;;  %v6050_v54 = vsel %vm2701_vm3, %v10241_v40, -inf  ;;  %v6033_v17 = vmul.f32 0.17677669, %v5955_v23 }
 0xf47   : > { %v6074_v7 = vsel %vm2701_vm3, %v10254_v42, -inf }
 0xf48   : > { %v6053_v22 = vsel %vm2701_vm3, %v10244_v26, -inf  ;;  %v6068_v30 = vsel %vm2701_vm3, %v10249_v63, -inf  ;;  %v10274_v62 = vadd.f32 %v6033_v17, %v9332_v57 }
 0xf49   : > { %6054 = vmax.xlane.f32.xlu0 %v6053_v22 }
 0xf4a   : > { %6051 = vmax.xlane.f32.xlu1 %v6050_v54  ;;  %v6071_v10 = vsel %vm2701_vm3, %v10274_v62, -inf }
 0xf4e   : > { %6069 = vmax.xlane.f32.xlu1 %v6068_v30 }
 0xf50   : > { %v8249_v0 = vpop.f32.mrb[52].mxu1 }
 0xf51   : > { %v6031_v20 = vmul.f32 0.17677669, %v8249_v0  ;;  %v5892_v52 = vpop.f32.mrb[53].mxu1 }
 0xf52   : > { %v6029_v15 = vmul.f32 0.17677669, %v5892_v52  ;;  %v8250_v39 = vpop.f32.mrb[54].mxu1  ;;  %6075 = vmax.xlane.f32.xlu1 %v6074_v7 }
 0xf53   : > { %v5895_v56 = vpop.f32.mrb[55].mxu1  ;;  %v10261_v48 = vadd.f32 %v6031_v20, %v9332_v57 }
 0xf54   : > { %v6030_v3 = vmul.f32 0.17677669, %v5895_v56  ;;  %v10266_v60 = vadd.f32 %v6029_v15, %v9332_v57 }
 0xf55   : > { %v6065_v31 = vsel %vm2701_vm3, %v10261_v48, -inf }
 0xf56   : > { %6066 = vmax.xlane.f32.xlu0 %v6065_v31  ;;  %v10269_v37 = vadd.f32 %v6030_v3, %v9332_v57  ;;  %v6059_v35 = vsel %vm2701_vm3, %v10266_v60, -inf }
 0xf58   : > { %v6062_v21 = vsel %vm2701_vm3, %v10269_v37, -inf }
 0xf5a   : > { %6060 = vmax.xlane.f32.xlu0 %v6059_v35 }
 0xf5e   : > { %6063 = vmax.xlane.f32.xlu0 %v6062_v21 }
 0xf60   : > { %v8265_v32 = vpop.f32.mrb[56].mxu1 }
 0xf61   : > { %v6012_v34 = vpop.f32.mrb[57].mxu1  ;;  %v6037_v55 = vmul.f32 0.17677669, %v8265_v32 }
 0xf62   : > { %v6035_v2 = vmul.f32 0.17677669, %v6012_v34  ;;  %6072 = vmax.xlane.f32.xlu0 %v6071_v10  ;;  %v8266_v27 = vpop.f32.mrb[58].mxu1 }
 0xf63   : > { %v6015_v18 = vpop.f32.mrb[59].mxu1  ;;  %v10289_v53 = vadd.f32 %v6037_v55, %v9332_v57 }
 0xf64   : > { %v10281_v41 = vadd.f32 %v6035_v2, %v9332_v57  ;;  %v6036_v58 = vmul.f32 0.17677669, %v6015_v18 }
 0xf65   : > { %v6083_v38 = vsel %vm2701_vm3, %v10289_v53, -inf }
 0xf66   : > { %v10284_v11 = vadd.f32 %v6036_v58, %v9332_v57  ;;  %v6077_v59 = vsel %vm2701_vm3, %v10281_v41, -inf  ;;  %v10306_v57 = vadd.f32 %v9924_v33, %v4225_v16 }
 0xf67   : > { %6078 = vmax.xlane.f32.xlu1 %v6077_v59 }
 0xf68   : > { %v6080_v50 = vsel %vm2701_vm3, %v10284_v11, -inf }
 0xf69   : > { %6081 = vmax.xlane.f32.xlu0 %v6080_v50 }
 0xf6d   : > { %6084 = vmax.xlane.f32.xlu0 %v6083_v38 }
 0xf78   : > { %5335 = vrot.lane.b32.xlu1 %v10299_v36, %s8721_s23 }
 0xf7c   : > { %5344 = vrot.lane.b32.xlu1 %v10299_v36, %s8722_s24 }
 0xf80   : > { %5346 = vrot.lane.b32.xlu1 %v10306_v57, %s8722_s24 }
 0xf83   : > { %5337 = vrot.lane.b32.xlu0 %v10306_v57, %s8721_s23 }
 0xf84   : > { %5353 = vrot.lane.b32.xlu1 %v10299_v36, %s10758_s2 }
 0xf87   : > { %5355 = vrot.lane.b32.xlu0 %v10306_v57, %s10758_s2 }
 0xf88   : > { %5339 = vrot.lane.b32.xlu1 %v10315_v24, %s8721_s23 }
 0xf8b   : > { %5348 = vrot.lane.b32.xlu0 %v10315_v24, %s8722_s24 }
 0xfd3   : > { %v6058_v25 = vpop.xlane.xlu1 %6057 }
 0xfd4   : > { %v6088_v9 = vsub.f32 %v10236_v47, %v6058_v25 }
 0xfd6   : > { %v6102_v33 = vmul.f32 1.442695, %v6088_v9  ;;  %v6055_v43 = vpop.xlane.xlu0 %6054 }
 0xfd7   : > { %v6087_v49 = vsub.f32 %v10244_v26, %v6055_v43  ;;  %v6052_v29 = vpop.xlane.xlu1 %6051 }
 0xfd8   : > { %8639 = vpow2.f32 %v6102_v33  ;;  %v6086_v61 = vsub.f32 %v10241_v40, %v6052_v29 }
 0xfd9   : > { %v6100_v13 = vmul.f32 1.442695, %v6087_v49 }
 0xfda   : > { %v6098_v45 = vmul.f32 1.442695, %v6086_v61 }
 0xfdb   : > { %8641 = vpow2.f32 %v6100_v13  ;;  %v6070_v12 = vpop.xlane.xlu1 %6069 }
 0xfdc   : > { %8643 = vpow2.f32 %v6098_v45  ;;  %v6092_v28 = vsub.f32 %v10249_v63, %v6070_v12 }
 0xfde   : > { %v6110_v40 = vmul.f32 1.442695, %v6092_v28 }
 0xfdf   : > { %v6076_v56 = vpop.xlane.xlu1 %6075 }
 0xfe0   : > { %v6094_v3 = vsub.f32 %v10254_v42, %v6076_v56 }
 0xfe2   : > { %v10326_v23 = vpop.eup %8639  ;;  %v6114_v21 = vmul.f32 1.442695, %v6094_v3 }
 0xfe3   : > { %v6067_v22 = vpop.xlane.xlu0 %6066  ;;  %v6128_v47 = vsel %vm2701_vm3, %v10326_v23, 0.0 }
 0xfe4   : > { %v6091_v46 = vsub.f32 %v10261_v48, %v6067_v22  ;;  %6129 = vadd.xlane.f32.xlu1 %v6128_v47 }
 0xfe5   : > { %v10332_v26 = vpop.eup %8641 }
 0xfe6   : > { %v10334_v54 = vpop.eup %8643  ;;  %v6108_v30 = vmul.f32 1.442695, %v6091_v46  ;;  %v6125_v0 = vsel %vm2701_vm3, %v10332_v26, 0.0 }
 0xfe7   : > { %v6061_v20 = vpop.xlane.xlu0 %6060  ;;  %6126 = vadd.xlane.f32.xlu0 %v6125_v0  ;;  %v6122_v63 = vsel %vm2701_vm3, %v10334_v54, 0.0 }
 0xfe8   : > { %8645 = vpow2.f32 %v6108_v30  ;;  %v6089_v52 = vsub.f32 %v10266_v60, %v6061_v20  ;;  %6123 = vadd.xlane.f32.xlu1 %v6122_v63 }
 0xfe9   : > { %8647 = vpow2.f32 %v6110_v40 }
 0xfea   : > { %v6104_v7 = vmul.f32 1.442695, %v6089_v52 }
 0xfeb   : > { %v6064_v15 = vpop.xlane.xlu0 %6063 }
 0xfec   : > { %8649 = vpow2.f32 %v6104_v7  ;;  %v6090_v39 = vsub.f32 %v10269_v37, %v6064_v15 }
 0xfee   : > { %v6106_v48 = vmul.f32 1.442695, %v6090_v39 }
 0xfef   : > { %v10345_v17 = vpop.xlane.xlu0 %6072 }
 0xff0   : > { %8651 = vpow2.f32 %v6106_v48 }
 0xff1   : > { %8653 = vpow2.f32 %v6114_v21 }
 0xff2   : > { %v10343_v31 = vpop.eup %8645 }
 0xff3   : > { %v6137_v35 = vsel %vm2701_vm3, %v10343_v31, 0.0  ;;  %v10349_v60 = vpop.eup %8647 }
 0xff4   : > { %v6079_v32 = vpop.xlane.xlu1 %6078  ;;  %6138 = vadd.xlane.f32.xlu0 %v6137_v35  ;;  %v6140_v18 = vsel %vm2701_vm3, %v10349_v60, 0.0 }
 0xff5   : > { %v6095_v34 = vsub.f32 %v10281_v41, %v6079_v32 }
 0xff6   : > { %v10352_v37 = vpop.eup %8649  ;;  %v6082_v10 = vpop.xlane.xlu0 %6081 }
 0xff7   : > { %v6116_v2 = vmul.f32 1.442695, %v6095_v34  ;;  %v6096_v42 = vsub.f32 %v10284_v11, %v6082_v10  ;;  %v6131_v27 = vsel %vm2701_vm3, %v10352_v37, 0.0 }
 0xff8   : > { %6132 = vadd.xlane.f32.xlu1 %v6131_v27  ;;  %v5336_v55 = vpop.permute.xlu1 %5335  ;;  %6141 = vadd.xlane.f32.xlu0 %v6140_v18 }
 0xff9   : > { %8655 = vpow2.f32 %v6116_v2  ;;  %v6118_v58 = vmul.f32 1.442695, %v6096_v42 }
 0xffa   : > { %v10359_v59 = vpop.eup %8651  ;;  %v10361_v41 = vpop.xlane.xlu0 %6084 }
 0xffb   : > { %8657 = vpow2.f32 %v6118_v58  ;;  %v6134_v11 = vsel %vm2701_vm3, %v10359_v59, 0.0  ;;  %v10367_v33 = vpop.eup %8653 }
 0xffc   : > { %v5345_v50 = vpop.permute.xlu1 %5344  ;;  %6135 = vadd.xlane.f32.xlu0 %v6134_v11 }
 0xffd   : > { %v5362_v43 = vcombine.low %v10299_v36, %v5345_v50  ;;  %v5363_v45 = vcombine.high %v10299_v36, %v5345_v50  ;;  %v6146_v36 = vsel %vm2701_vm3, %v10367_v33, 0.0 }
 0xffe   : > { %v5338_v38 = vpop.permute.xlu0 %5337 }
 0xfff   : > { %v5370_v20 = vrot.slane %v5362_v43, %v9062_v44  ;;  %v5377_v39 = vrot.slane %v5363_v45, %v9062_v44 }
0x1000   : > { %v5347_v16 = vpop.permute.xlu1 %5346 }
0x1001   : > { %v5430_v25 = vcombine.low %v10306_v57, %v5347_v16  ;;  %v5431_v9 = vcombine.high %v10306_v57, %v5347_v16 }
0x1002   : > { %v5356_v49 = vpop.permute.xlu0 %5355 }
0x1003   : > { %v10370_v29 = vpop.eup %8655  ;;  %v5446_v61 = vcombine.low %v5338_v38, %v5356_v49  ;;  %v5447_v13 = vcombine.high %v5338_v38, %v5356_v49  ;;  %v5438_v12 = vrot.slane %v5430_v25, %v9062_v44  ;;  %v5445_v28 = vrot.slane %v5431_v9, %v9062_v44 }
0x1004   : > { %v5354_v22 = vpop.permute.xlu1 %5353  ;;  %v6149_v47 = vsel %vm2701_vm3, %v10370_v29, 0.0 }
0x1005   : > { %v10377_v57 = vpop.eup %8657  ;;  %v5454_v46 = vrot.slane %v5446_v61, %v9062_v44  ;;  %v5461_v40 = vrot.slane %v5447_v13, %v9062_v44  ;;  %v5378_v30 = vcombine.low %v5336_v55, %v5354_v22  ;;  %v5379_v0 = vcombine.high %v5336_v55, %v5354_v22  ;;  %6150 = vadd.xlane.f32.xlu0 %v6149_v47 }
0x1006   : > { %v6152_v3 = vsel %vm2701_vm3, %v10377_v57, 0.0 }
0x1007   : > { %v5462_v63 = vcombine.low %v5438_v12, %v5454_v46  ;;  %v5463_v52 = vcombine.high %v5438_v12, %v5454_v46  ;;  %v5478_v7 = vcombine.low %v5445_v28, %v5461_v40  ;;  %v5479_v15 = vcombine.high %v5445_v28, %v5461_v40 }
0x1008   : > { %v5386_v56 = vrot.slane %v5378_v30, %v9062_v44  ;;  %v5393_v48 = vrot.slane %v5379_v0, %v9062_v44 }
0x1009   : > { %v5470_v35 = vrot.slane %v5462_v63, %v9069_v51  ;;  %v5477_v21 = vrot.slane %v5463_v52, %v9069_v51  ;;  %v5486_v32 = vrot.slane %v5478_v7, %v9069_v51  ;;  %v5493_v34 = vrot.slane %v5479_v15, %v9069_v51  ;;  %5357 = vrot.lane.b32.xlu1 %v10315_v24, %s10758_s2 }
0x100a   : > { %v5394_v10 = vcombine.low %v5370_v20, %v5386_v56  ;;  %v5395_v2 = vcombine.high %v5370_v20, %v5386_v56  ;;  %v5410_v42 = vcombine.low %v5377_v39, %v5393_v48  ;;  %v5411_v27 = vcombine.high %v5377_v39, %v5393_v48  ;;  %6153 = vadd.xlane.f32.xlu0 %v6152_v3 }
0x100b   : > { %v5634_v18 = vcombine.low %v5470_v35, %v5477_v21  ;;  %v7807_v55 = vcombine.high %v5470_v35, %v5477_v21  ;;  %v5650_v58 = vcombine.low %v5486_v32, %v5493_v34  ;;  %v7808_v11 = vcombine.high %v5486_v32, %v5493_v34 }
0x100c   : > { %v5402_v50 = vrot.slane %v5394_v10, %v9069_v51  ;;  %v5409_v38 = vrot.slane %v5395_v2, %v9069_v51  ;;  %v5418_v16 = vrot.slane %v5410_v42, %v9069_v51  ;;  %v5425_v25 = vrot.slane %v5411_v27, %v9069_v51 }
0x100d   : > { %v5641_v9 = vrot.slane %v5634_v18, %v9062_v44  ;;  %v5649_v43 = vrot.slane %v7807_v55, %v9062_v44  ;;  %v5657_v49 = vrot.slane %v5650_v58, %v9062_v44  ;;  %v5665_v61 = vrot.slane %v7808_v11, %v9062_v44 }
0x100e   : > { %v5566_v13 = vcombine.low %v5402_v50, %v5409_v38  ;;  %v7805_v45 = vcombine.high %v5402_v50, %v5409_v38  ;;  %v5582_v12 = vcombine.low %v5418_v16, %v5425_v25  ;;  %v7806_v28 = vcombine.high %v5418_v16, %v5425_v25  ;;  %6147 = vadd.xlane.f32.xlu0 %v6146_v36 }
0x100f   : > { %v5666_v22 = vcombine.low %v5641_v9, %v5649_v43  ;;  %v5682_v47 = vcombine.low %v5657_v49, %v5665_v61  ;;  %v5667_v52 = vcombine.high %v5641_v9, %v5649_v43  ;;  %v5683_v48 = vcombine.high %v5657_v49, %v5665_v61 }
0x1010   : > { %v5573_v46 = vrot.slane %v5566_v13, %v9062_v44  ;;  %v5581_v40 = vrot.slane %v7805_v45, %v9062_v44  ;;  %v5589_v30 = vrot.slane %v5582_v12, %v9062_v44  ;;  %v5597_v0 = vrot.slane %v7806_v28, %v9062_v44  ;;  %v5340_v12 = vpop.permute.xlu1 %5339  ;;  %v5349_v28 = vpop.permute.xlu0 %5348 }
0x1011   : > { %v5674_v20 = vrot.slane %v5666_v22, %v9069_v51  ;;  %v5690_v63 = vrot.slane %v5682_v47, %v9069_v51  ;;  %v5681_v36 = vrot.slane %v5667_v52, %v9069_v51  ;;  %v5697_v2 = vrot.slane %v5683_v48, %v9069_v51 }
0x1012   : > { %v5598_v7 = vcombine.low %v5573_v46, %v5581_v40  ;;  %v5614_v15 = vcombine.low %v5589_v30, %v5597_v0  ;;  %v5599_v39 = vcombine.high %v5573_v46, %v5581_v40  ;;  %v5615_v56 = vcombine.high %v5589_v30, %v5597_v0 }
0x1013   : > { %v5698_v34 = vcombine.low %v5674_v20, %v5690_v63  ;;  %v5699_v10 = vcombine.high %v5674_v20, %v5690_v63  ;;  %v6093_v58 = vsub.f32 %v10274_v62, %v10345_v17  ;;  %v5700_v11 = vcombine.low %v5681_v36, %v5697_v2 }
0x1014   : > { %v5606_v3 = vrot.slane %v5598_v7, %v9069_v51  ;;  %v5622_v35 = vrot.slane %v5614_v15, %v9069_v51  ;;  %v5613_v21 = vrot.slane %v5599_v39, %v9069_v51  ;;  %v5629_v32 = vrot.slane %v5615_v56, %v9069_v51 }
0x1015   : > { %v5701_v50 = vcombine.high %v5681_v36, %v5697_v2  ;;  %v6112_v43 = vmul.f32 1.442695, %v6093_v58  ;;  %v6097_v49 = vsub.f32 %v10289_v53, %v10361_v41  ;;  %v5498_v7 = vcombine.low %v10315_v24, %v5349_v28 }
0x1016   : > { %v5630_v42 = vcombine.low %v5606_v3, %v5622_v35  ;;  %v5631_v27 = vcombine.high %v5606_v3, %v5622_v35  ;;  %v5632_v18 = vcombine.low %v5613_v21, %v5629_v32  ;;  %v5633_v55 = vcombine.high %v5613_v21, %v5629_v32 }
0x1017   : > { %8659 = vpow2.f32 %v6112_v43  ;;  %v6120_v61 = vmul.f32 1.442695, %v6097_v49  ;;  %v5499_v15 = vcombine.high %v10315_v24, %v5349_v28 }
0x1018   : > { %v6190_v38 = vpack.c.bf16 %v5698_v34, %v5630_v42  ;;  %v6192_v16 = vpack.c.bf16 %v5699_v10, %v5631_v27  ;;  %v10417_v25 = vpack.c.bf16 %v5700_v11, %v5632_v18  ;;  %v10419_v9 = vpack.c.bf16 %v5701_v50, %v5633_v55 }
0x1019   : > { %8661 = vpow2.f32 %v6120_v61 }
0x101a   : > { %8267 = vmatprep.subr.bf16.mxu0 %v6190_v38  ;;  %8275 = vmatprep.subr.bf16.mxu1 %v6192_v16 }
0x101b   : > { %8268 = vmatpush3.bf16.msra.mxu0 %v6190_v38  ;;  %8276 = vmatpush3.bf16.msra.mxu1 %v6192_v16 }
0x1021   : > { %v10423_v62 = vpop.eup %8659 }
0x1022   : > { %v6143_v17 = vsel %vm2701_vm3, %v10423_v62, 0.0 }
0x1023   : > { %v10427_v13 = vpop.eup %8661 }
0x1024   : > { %v6155_v45 = vsel %vm2701_vm3, %v10427_v13, 0.0 }
0x102d   : > { %6144 = vadd.xlane.f32.xlu1 %v6143_v17 }
0x1031   : > { %6156 = vadd.xlane.f32.xlu1 %v6155_v45 }
0x1071   : > { %v6130_v53 = vpop.xlane.xlu1 %6129 }
0x1074   : > { %v6127_v41 = vpop.xlane.xlu0 %6126 }
0x1075   : > { %8663 = vrcp.f32 %v6127_v41  ;;  %v6124_v22 = vpop.xlane.xlu1 %6123 }
0x1076   : > { %8665 = vrcp.f32 %v6124_v22 }
0x107f   : > { %v8664_v47 = vpop.eup %8663 }
0x1080   : > { %v8666_v46 = vpop.eup %8665  ;;  %v6171_v40 = vmul.f32 %v8664_v47, %v10332_v26  ;;  %v5506_v26 = vrot.slane %v5498_v7, %v9062_v44 }
0x1081   : > { %v6139_v30 = vpop.xlane.xlu0 %6138  ;;  %v6170_v0 = vmul.f32 %v8666_v46, %v10334_v54  ;;  %v5513_v54 = vrot.slane %v5499_v15, %v9062_v44 }
0x1083   : > { %v6182_v20 = vpack.c.bf16 %v6171_v40, %v6170_v0 }
0x1085   : > { %v6133_v63 = vpop.xlane.xlu1 %6132  ;;  %v10433_v52 = vpop.xlane.xlu0 %6141  ;;  %8271 = vmatprep.mubr.msk.bf16.mxu0 %vm2701_vm3, %v6182_v20 }
0x1086   : > { %8667 = vrcp.f32 %v6133_v63 }
0x1089   : > { %v5358_v39 = vpop.permute.xlu1 %5357  ;;  %v6136_v56 = vpop.xlane.xlu0 %6135 }
0x108a   : > { %v5514_v36 = vcombine.low %v5340_v12, %v5358_v39  ;;  %v5515_v48 = vcombine.high %v5340_v12, %v5358_v39  ;;  %8669 = vrcp.f32 %v6136_v56 }
0x108b   : > { %8671 = vrcp.f32 %v6130_v53 }
0x108c   : > { %v5522_v3 = vrot.slane %v5514_v36, %v9062_v44  ;;  %v5529_v35 = vrot.slane %v5515_v48, %v9062_v44  ;;  %8673 = vrcp.f32 %v6139_v30 }
0x108e   : > { %v5530_v21 = vcombine.low %v5506_v26, %v5522_v3  ;;  %v5531_v32 = vcombine.high %v5506_v26, %v5522_v3  ;;  %v5546_v34 = vcombine.low %v5513_v54, %v5529_v35  ;;  %v5547_v10 = vcombine.high %v5513_v54, %v5529_v35 }
0x1090   : > { %v5538_v24 = vrot.slane %v5530_v21, %v9069_v51  ;;  %v5545_v2 = vrot.slane %v5531_v32, %v9069_v51  ;;  %v5554_v42 = vrot.slane %v5546_v34, %v9069_v51  ;;  %v5561_v27 = vrot.slane %v5547_v10, %v9069_v51  ;;  %v8668_v18 = vpop.eup %8667 }
0x1091   : > { %v6173_v45 = vmul.f32 %v8668_v18, %v10352_v37 }
0x1092   : > { %v5702_v55 = vcombine.low %v5538_v24, %v5545_v2  ;;  %v7809_v58 = vcombine.high %v5538_v24, %v5545_v2  ;;  %v5718_v11 = vcombine.low %v5554_v42, %v5561_v27  ;;  %v7810_v50 = vcombine.high %v5554_v42, %v5561_v27  ;;  %v6151_v38 = vpop.xlane.xlu0 %6150 }
0x1093   : > { %8675 = vrcp.f32 %v6151_v38 }
0x1094   : > { %v8670_v16 = vpop.eup %8669  ;;  %v5709_v43 = vrot.slane %v5702_v55, %v9062_v44  ;;  %v5717_v49 = vrot.slane %v7809_v58, %v9062_v44  ;;  %v5725_v61 = vrot.slane %v5718_v11, %v9062_v44  ;;  %v5733_v17 = vrot.slane %v7810_v50, %v9062_v44 }
0x1095   : > { %v6174_v12 = vmul.f32 %v8670_v16, %v10359_v59  ;;  %v8672_v47 = vpop.eup %8671 }
0x1096   : > { %v5734_v28 = vcombine.low %v5709_v43, %v5717_v49  ;;  %v5750_v53 = vcombine.low %v5725_v61, %v5733_v17  ;;  %v5735_v41 = vcombine.high %v5709_v43, %v5717_v49  ;;  %v5751_v22 = vcombine.high %v5725_v61, %v5733_v17  ;;  %v8674_v20 = vpop.eup %8673  ;;  %v8517_v61 = vld [vmem:[%s10738_s8 + $0x60] sm:$0xff]  }
0x1097   : > { %v6154_v46 = vpop.xlane.xlu0 %6153  ;;  %v6184_v40 = vpack.c.bf16 %v6174_v12, %v6173_v45  ;;  %v6172_v15 = vmul.f32 %v8672_v47, %v10326_v23  ;;  %v6175_v39 = vmul.f32 %v8674_v20, %v10343_v31 }
0x1098   : > { %8677 = vrcp.f32 %v6154_v46  ;;  %v5742_v30 = vrot.slane %v5734_v28, %v9069_v51  ;;  %v5758_v0 = vrot.slane %v5750_v53, %v9069_v51  ;;  %v5749_v37 = vrot.slane %v5735_v41, %v9069_v51 }
0x1099   : > { %8279 = vmatprep.mubr.msk.bf16.mxu1 %vm2701_vm3, %v6184_v40  ;;  %v5765_v59 = vrot.slane %v5751_v22, %v9069_v51  ;;  %v6183_v23 = vpack.c.bf16 %v6172_v15, %v6172_v15  ;;  %v6185_v31 = vpack.c.bf16 %v6175_v39, %v6175_v39 }
0x109a   : > { %v5766_v63 = vcombine.low %v5742_v30, %v5758_v0  ;;  %v5767_v7 = vcombine.high %v5742_v30, %v5758_v0 }
0x109b   : > { %v5768_v54 = vcombine.low %v5749_v37, %v5765_v59  ;;  %v5769_v3 = vcombine.high %v5749_v37, %v5765_v59 }
0x109c   : > { %v6191_v56 = vpack.c.bf16 %v5766_v63, %v5766_v63  ;;  %v6193_v36 = vpack.c.bf16 %v5767_v7, %v5767_v7 }
0x109d   : > { %v8676_v35 = vpop.eup %8675  ;;  %v6195_v32 = vpack.c.bf16 %v5768_v54, %v5768_v54  ;;  %v6197_v34 = vpack.c.bf16 %v5769_v3, %v5769_v3 }
0x109e   : > { %8339 = vmatprep.subr.msk.bf16.mxu0 %vm2856_vm4, %v6191_v56  ;;  %8340 = vmatprep.subr.msk.bf16.mxu1 %vm2856_vm4, %v6193_v36  ;;  %v6205_v48 = vsel %vm2856_vm4, %v6191_v56, 0  ;;  %v6262_v26 = vsel %vm2856_vm4, %v6193_v36, 0  ;;  %v6179_v10 = vmul.f32 %v8676_v35, %v10370_v29 }
0x109f   : > { %8270 = vmatpush3.bf16.msra.mxu0 %v6205_v48  ;;  %8278 = vmatpush3.bf16.msra.mxu1 %v6262_v26  ;;  %v6319_v42 = vsel %vm2856_vm4, %v6195_v32, 0  ;;  %v6376_v27 = vsel %vm2856_vm4, %v6197_v34, 0 }
0x10a0   : > { %8283 = vmatprep.subr.bf16.mxu0 %v10417_v25  ;;  %8291 = vmatprep.subr.bf16.mxu1 %v10419_v9 }
0x10a2   : > { %v8678_v21 = vpop.eup %8677  ;;  %8272 = vmatmul.mubr.msk.bf16.vlgmr.msra.gmra.mrb[36].mxu0 %vm2701_vm3, %v6183_v23  ;;  %8280 = vmatmul.mubr.msk.bf16.vlgmr.msra.gmra.mrb[60].mxu1 %vm2701_vm3, %v6185_v31 }
0x10a3   : > { %8284 = vmatpush3.bf16.msra.mxu0 %v10417_v25  ;;  %8292 = vmatpush3.bf16.msra.mxu1 %v10419_v9  ;;  %v6180_v24 = vmul.f32 %v8678_v21, %v10377_v57  ;;  %v6148_v25 = vpop.xlane.xlu0 %6147 }
0x10a4   : > { %8341 = vmatprep.subr.msk.bf16.mxu0 %vm2856_vm4, %v6195_v32  ;;  %8342 = vmatprep.subr.msk.bf16.mxu1 %vm2856_vm4, %v6197_v34  ;;  %8679 = vrcp.f32 %v6148_v25 }
0x10a5   : > { %v6188_v2 = vpack.c.bf16 %v6180_v24, %v6179_v10  ;;  %8681 = vrcp.f32 %v10433_v52 }
0x10a7   : > { %8295 = vmatprep.mubr.msk.bf16.mxu1 %vm2701_vm3, %v6188_v2  ;;  %8286 = vmatpush3.bf16.msra.mxu0 %v6319_v42 }
0x10a8   : > { %8294 = vmatpush3.bf16.msra.mxu1 %v6376_v27 }
0x10ae   : > { %v8680_v9 = vpop.eup %8679 }
0x10af   : > { %v8682_v18 = vpop.eup %8681  ;;  %v6178_v58 = vmul.f32 %v8680_v9, %v10367_v33  ;;  %v8514_v33 = vld [vmem:[%s10738_s8 + $0x48] sm:$0xff]  }
0x10b0   : > { %v6176_v11 = vmul.f32 %v8682_v18, %v10349_v60  ;;  %v8513_v60 = vld [vmem:[%s10738_s8 + $0x40] sm:$0xff]  }
0x10b1   : > { %v6187_v43 = vpack.c.bf16 %v6178_v58, %v6178_v58  ;;  %8299 = vmatprep.subr.bf16.mxu0 %v8513_v60 }
0x10ba   : > { %v6145_v29 = vpop.xlane.xlu1 %6144 }
0x10bb   : > { %8683 = vrcp.f32 %v6145_v29 }
0x10be   : > { %v6157_v57 = vpop.xlane.xlu1 %6156 }
0x10bf   : > { %8685 = vrcp.f32 %v6157_v57 }
0x10c5   : > { %v8684_v55 = vpop.eup %8683 }
0x10c6   : > { %v6177_v50 = vmul.f32 %v8684_v55, %v10423_v62  ;;  %v8515_v62 = vld [vmem:[%s10738_s8 + $0x50] sm:$0xff]  }
0x10c8   : > { %v6186_v38 = vpack.c.bf16 %v6177_v50, %v6176_v11 }
0x10c9   : > { %v8686_v16 = vpop.eup %8685 }
0x10ca   : > { %v6181_v49 = vmul.f32 %v8686_v16, %v10427_v13  ;;  %8287 = vmatprep.mubr.msk.bf16.mxu0 %vm2701_vm3, %v6186_v38  ;;  %v8516_v13 = vld [vmem:[%s10738_s8 + $0x58] sm:$0xff]  }
0x10cb   : > { %8288 = vmatmul.mubr.msk.bf16.vlgmr.msra.gmra.mrb[40].mxu0 %vm2701_vm3, %v6187_v43 }
0x10cc   : > { %v6189_v52 = vpack.c.bf16 %v6181_v49, %v6181_v49  ;;  %8300 = vmatpush3.bf16.msra.mxu0 %v8513_v60  ;;  %v8518_v60 = vld [vmem:[%s10738_s8 + $0x68] sm:$0xff]  }
0x10cd   : > { %8301 = vmatprep.subr.bf16.mxu0 %v8514_v33 }
0x10ce   : > { %8296 = vmatmul.mubr.msk.bf16.vlgmr.msra.gmra.mrb[64].mxu1 %vm2701_vm3, %v6189_v52 }
0x10cf   : > { %7207 = vmatprep.mubr.bf16.mxu1 %v8720_v1 }
0x10d0   : > { %8302 = vmatpush3.bf16.msra.mxu0 %v8514_v33 }
0x10d1   : > { %8303 = vmatprep.subr.bf16.mxu0 %v8515_v62 }
0x10d4   : > { %8304 = vmatpush3.bf16.msra.mxu0 %v8515_v62 }
0x10d5   : > { %8305 = vmatprep.subr.bf16.mxu0 %v8516_v13 }
0x10d8   : > { %8306 = vmatpush3.bf16.msra.mxu0 %v8516_v13 }
0x10d9   : > { %8307 = vmatprep.subr.bf16.mxu0 %v8517_v61 }
0x10dc   : > { %8308 = vmatpush3.bf16.msra.mxu0 %v8517_v61 }
0x10dd   : > { %8309 = vmatprep.subr.bf16.mxu0 %v8518_v60 }
0x10e0   : > { %8310 = vmatpush3.bf16.msra.mxu0 %v8518_v60 }
0x1175   : > { %v8273_v17 = vpop.f32.mrb[36].mxu0  ;;  %v8281_v45 = vpop.f32.mrb[60].mxu1 }
0x1176   : > { %v6241_v12 = vpop.f32.mrb[37].mxu0  ;;  %v6298_v28 = vpop.f32.mrb[61].mxu1 }
0x1177   : > { %v8274_v53 = vpop.f32.mrb[38].mxu0  ;;  %v8282_v41 = vpop.f32.mrb[62].mxu1 }
0x1178   : > { %v6244_v22 = vpop.f32.mrb[39].mxu0  ;;  %v10500_v47 = vpop.f32.mrb[63].mxu1 }
0x119e   : > { %v8289_v46 = vpop.f32.mrb[40].mxu0 }
0x119f   : > { %v6562_v40 = vcombine.low %v8273_v17, %v8289_v46  ;;  %v6563_v30 = vcombine.high %v8273_v17, %v8289_v46  ;;  %v6355_v0 = vpop.f32.mrb[41].mxu0 }
0x11a0   : > { %v6426_v20 = vcombine.low %v6241_v12, %v6355_v0  ;;  %v6427_v63 = vcombine.high %v6241_v12, %v6355_v0  ;;  %v8290_v7 = vpop.f32.mrb[42].mxu0 }
0x11a1   : > { %v6358_v37 = vpop.f32.mrb[43].mxu0  ;;  %v8297_v59 = vpop.f32.mrb[64].mxu1  ;;  %v6570_v35 = vrot.slane %v6562_v40, %v9062_v44  ;;  %v6577_v23 = vrot.slane %v6563_v30, %v9062_v44 }
0x11a2   : > { %v6494_v15 = vcombine.low %v6244_v22, %v6358_v37  ;;  %v6495_v39 = vcombine.high %v6244_v22, %v6358_v37  ;;  %v6412_v56 = vpop.f32.mrb[65].mxu1  ;;  %v6578_v36 = vcombine.low %v8281_v45, %v8297_v59  ;;  %v6579_v48 = vcombine.high %v8281_v45, %v8297_v59 }
0x11a3   : > { %v6442_v26 = vcombine.low %v6298_v28, %v6412_v56  ;;  %v6443_v54 = vcombine.high %v6298_v28, %v6412_v56  ;;  %v8298_v3 = vpop.f32.mrb[66].mxu1  ;;  %v6434_v31 = vrot.slane %v6426_v20, %v9062_v44  ;;  %v6441_v21 = vrot.slane %v6427_v63, %v9062_v44 }
0x11a4   : > { %v6415_v32 = vpop.f32.mrb[67].mxu1  ;;  %v6586_v34 = vrot.slane %v6578_v36, %v9062_v44  ;;  %v6593_v10 = vrot.slane %v6579_v48, %v9062_v44  ;;  %v6502_v42 = vrot.slane %v6494_v15, %v9062_v44  ;;  %v6509_v27 = vrot.slane %v6495_v39, %v9062_v44 }
0x11a5   : > { %v6450_v24 = vrot.slane %v6442_v26, %v9062_v44  ;;  %v6457_v2 = vrot.slane %v6443_v54, %v9062_v44  ;;  %v6510_v25 = vcombine.low %v10500_v47, %v6415_v32  ;;  %v6511_v29 = vcombine.high %v10500_v47, %v6415_v32 }
0x11a6   : > { %v6594_v57 = vcombine.low %v6570_v35, %v6586_v34  ;;  %v6595_v9 = vcombine.high %v6570_v35, %v6586_v34  ;;  %v6610_v18 = vcombine.low %v6577_v23, %v6593_v10  ;;  %v6611_v55 = vcombine.high %v6577_v23, %v6593_v10 }
0x11a7   : > { %v6458_v58 = vcombine.low %v6434_v31, %v6450_v24  ;;  %v6459_v11 = vcombine.high %v6434_v31, %v6450_v24  ;;  %v6474_v50 = vcombine.low %v6441_v21, %v6457_v2  ;;  %v6475_v38 = vcombine.high %v6441_v21, %v6457_v2 }
0x11a8   : > { %v6602_v16 = vrot.slane %v6594_v57, %v9069_v51  ;;  %v6609_v43 = vrot.slane %v6595_v9, %v9069_v51  ;;  %v6618_v49 = vrot.slane %v6610_v18, %v9069_v51  ;;  %v6625_v52 = vrot.slane %v6611_v55, %v9069_v51 }
0x11a9   : > { %v6466_v33 = vrot.slane %v6458_v58, %v9069_v51  ;;  %v6473_v62 = vrot.slane %v6459_v11, %v9069_v51  ;;  %v6482_v13 = vrot.slane %v6474_v50, %v9069_v51  ;;  %v6489_v61 = vrot.slane %v6475_v38, %v9069_v51 }
0x11aa   : > { %v6766_v17 = vcombine.low %v6602_v16, %v6609_v43  ;;  %v7831_v45 = vcombine.high %v6602_v16, %v6609_v43  ;;  %v6782_v12 = vcombine.low %v6618_v49, %v6625_v52  ;;  %v7832_v28 = vcombine.high %v6618_v49, %v6625_v52  ;;  %v8519_v49 = vld [vmem:[%s10738_s8 + $0x70] sm:$0xff]  }
0x11ab   : > { %v6630_v53 = vcombine.low %v6466_v33, %v6473_v62  ;;  %v7827_v41 = vcombine.high %v6466_v33, %v6473_v62  ;;  %v6646_v22 = vcombine.low %v6482_v13, %v6489_v61  ;;  %v7828_v47 = vcombine.high %v6482_v13, %v6489_v61  ;;  %8311 = vmatprep.subr.bf16.mxu0 %v8519_v49 }
0x11ac   : > { %v6773_v46 = vrot.slane %v6766_v17, %v9062_v44  ;;  %v6781_v40 = vrot.slane %v7831_v45, %v9062_v44  ;;  %v6789_v30 = vrot.slane %v6782_v12, %v9062_v44  ;;  %v6797_v0 = vrot.slane %v7832_v28, %v9062_v44  ;;  %v8520_v12 = vld [vmem:[%s10738_s8 + $0x78] sm:$0xff]   ;;  %8312 = vmatpush3.bf16.msra.mxu0 %v8519_v49 }
0x11ad   : > { %v6637_v20 = vrot.slane %v6630_v53, %v9062_v44  ;;  %v6645_v63 = vrot.slane %v7827_v41, %v9062_v44  ;;  %v6653_v7 = vrot.slane %v6646_v22, %v9062_v44  ;;  %v6661_v37 = vrot.slane %v7828_v47, %v9062_v44  ;;  %8313 = vmatprep.subr.bf16.mxu0 %v8520_v12 }
0x11ae   : > { %v6518_v59 = vrot.slane %v6510_v25, %v9062_v44  ;;  %v6525_v15 = vrot.slane %v6511_v29, %v9062_v44  ;;  %v6798_v39 = vcombine.low %v6773_v46, %v6781_v40  ;;  %v6814_v56 = vcombine.low %v6789_v30, %v6797_v0 }
0x11af   : > { %v6799_v36 = vcombine.high %v6773_v46, %v6781_v40  ;;  %v6815_v48 = vcombine.high %v6789_v30, %v6797_v0  ;;  %v6662_v26 = vcombine.low %v6637_v20, %v6645_v63  ;;  %v6678_v54 = vcombine.low %v6653_v7, %v6661_v37 }
0x11b0   : > { %v6526_v3 = vcombine.low %v6502_v42, %v6518_v59  ;;  %v6527_v35 = vcombine.high %v6502_v42, %v6518_v59  ;;  %v6542_v23 = vcombine.low %v6509_v27, %v6525_v15  ;;  %v6543_v31 = vcombine.high %v6509_v27, %v6525_v15  ;;  %8314 = vmatpush3.bf16.msra.mxu0 %v8520_v12 }
0x11b1   : > { %v10536_v21 = vrot.slane %v6798_v39, %v9069_v51  ;;  %v10539_v32 = vrot.slane %v6814_v56, %v9069_v51  ;;  %v6813_v34 = vrot.slane %v6799_v36, %v9069_v51  ;;  %v6829_v10 = vrot.slane %v6815_v48, %v9069_v51 }
0x11b2   : > { %v6534_v24 = vrot.slane %v6526_v3, %v9069_v51  ;;  %v6541_v2 = vrot.slane %v6527_v35, %v9069_v51  ;;  %v6550_v25 = vrot.slane %v6542_v23, %v9069_v51  ;;  %v6557_v42 = vrot.slane %v6543_v31, %v9069_v51 }
0x11b3   : > { %v6831_v27 = vcombine.high %v10536_v21, %v10539_v32  ;;  %v6832_v29 = vcombine.low %v6813_v34, %v6829_v10  ;;  %v6670_v57 = vrot.slane %v6662_v26, %v9069_v51  ;;  %v6686_v9 = vrot.slane %v6678_v54, %v9069_v51 }
0x11b4   : > { %v6698_v18 = vcombine.low %v6534_v24, %v6541_v2  ;;  %v7829_v55 = vcombine.high %v6534_v24, %v6541_v2  ;;  %v6714_v58 = vcombine.low %v6550_v25, %v6557_v42  ;;  %v7830_v11 = vcombine.high %v6550_v25, %v6557_v42 }
0x11b5   : > { %6841 = vrot.lane.b32.xlu1 %v6831_v27, %s10758_s2  ;;  %v6695_v50 = vcombine.high %v6670_v57, %v6686_v9  ;;  %v6663_v38 = vcombine.high %v6637_v20, %v6645_v63  ;;  %v6679_v16 = vcombine.high %v6653_v7, %v6661_v37  ;;  %v6833_v43 = vcombine.high %v6813_v34, %v6829_v10 }
0x11b6   : > { %v6705_v52 = vrot.slane %v6698_v18, %v9062_v44  ;;  %v6713_v60 = vrot.slane %v7829_v55, %v9062_v44  ;;  %v6721_v33 = vrot.slane %v6714_v58, %v9062_v44  ;;  %v6729_v62 = vrot.slane %v7830_v11, %v9062_v44  ;;  %v7858_v58 = vld [vmem:[%s10739_s9 + $0x1] ss:$0 sm:$0xff] }
0x11b7   : > { %v6677_v13 = vrot.slane %v6663_v38, %v9069_v51  ;;  %v6693_v61 = vrot.slane %v6679_v16, %v9069_v51  ;;  %v6830_v17 = vcombine.low %v10536_v21, %v10539_v32  ;;  %v6694_v45 = vcombine.low %v6670_v57, %v6686_v9 }
0x11b8   : > { %v6730_v28 = vcombine.low %v6705_v52, %v6713_v60  ;;  %v6746_v53 = vcombine.low %v6721_v33, %v6729_v62  ;;  %v6731_v41 = vcombine.high %v6705_v52, %v6713_v60  ;;  %v6747_v22 = vcombine.high %v6721_v33, %v6729_v62  ;;  %v8524_v62 = vld [vmem:[%s10742_s12 + $0x90] ss:$8 sps:$4 sm:$0xff]  }
0x11b9   : > { %6853 = vrot.lane.b32.xlu1 %v6832_v29, %s8722_s24  ;;  %v6696_v44 = vcombine.low %v6677_v13, %v6693_v61  ;;  %v6697_v47 = vcombine.high %v6677_v13, %v6693_v61 }
0x11ba   : > { %v6738_v46 = vrot.slane %v6730_v28, %v9069_v51  ;;  %v6754_v40 = vrot.slane %v6746_v53, %v9069_v51  ;;  %v6745_v30 = vrot.slane %v6731_v41, %v9069_v51  ;;  %v6761_v0 = vrot.slane %v6747_v22, %v9069_v51 }
0x11bc   : > { %v6763_v20 = vcombine.high %v6738_v46, %v6754_v40  ;;  %v6764_v63 = vcombine.low %v6745_v30, %v6761_v0  ;;  %v6765_v7 = vcombine.high %v6745_v30, %v6761_v0  ;;  %v6762_v37 = vcombine.low %v6738_v46, %v6754_v40  ;;  %v8527_v40 = vld [vmem:[%s10742_s12 + $0xa0] ss:$8 sps:$4 sm:$0xff]   ;;  %v8529_v30 = vld [vmem:[%s10742_s12 + $0xa4] ss:$8 sps:$4 sm:$0xff]   ;;  %v8530_v0 = vld [vmem:[%s10742_s12 + $0xb0] ss:$8 sps:$4 sm:$0xff]  }
0x11be   : > { %v8374_v59 = vpack.i.bf16 %v6763_v20, %v6695_v50  ;;  %v8379_v15 = vpack.i.bf16 %v6764_v63, %v6696_v44  ;;  %v8384_v39 = vpack.i.bf16 %v6765_v7, %v6697_v47  ;;  %v8532_v20 = vld [vmem:[%s10742_s12 + $0xb4] ss:$8 sps:$4 sm:$0xff]   ;;  %v8535_v63 = vld [vmem:[%s10742_s12 + $0xc4] ss:$8 sps:$4 sm:$0xff]   ;;  %v8533_v7 = vld [vmem:[%s10742_s12 + $0xc0] ss:$8 sps:$4 sm:$0xff]  }
0x11c0   : > { %8375 = vrot.lane.b32.xlu0 %v8374_v59, %s10758_s2  ;;  %8380 = vrot.lane.b32.xlu1 %v8379_v15, %s8722_s24  ;;  %v8536_v59 = vld [vmem:[%s10742_s12 + $0xd0] ss:$8 sps:$4 sm:$0xff]   ;;  %v8541_v15 = vld [vmem:[%s10742_s12 + $0xe4] ss:$8 sps:$4 sm:$0xff]  }
0x11c4   : > { %8385 = vrot.lane.b32.xlu0 %v8384_v39, %s8721_s23  ;;  %6865 = vrot.lane.b32.xlu1 %v6833_v43, %s8721_s23  ;;  %v8539_v39 = vld [vmem:[%s10742_s12 + $0xe0] ss:$8 sps:$4 sm:$0xff]  }
0x1227   : > { %v6842_v56 = vpop.permute.xlu1 %6841 }
0x1228   : > { %v6872_v23 = vsel %vm2436_vm1, %v6830_v17, %v6842_v56  ;;  %v8544_v56 = vld [vmem:[%s10742_s12 + $0xf4] ss:$8 sps:$4 sm:$0xff]  }
0x122b   : > { %v6854_v36 = vpop.permute.xlu1 %6853 }
0x122c   : > { %v6875_v32 = vsel %vm719_vm0, %v6872_v23, %v6854_v36  ;;  %v8542_v36 = vld [vmem:[%s10742_s12 + $0xf0] ss:$8 sps:$4 sm:$0xff]  }
0x1232   : > { %v8376_v48 = vpop.permute.xlu0 %8375  ;;  %v8381_v51 = vpop.permute.xlu1 %8380 }
0x1233   : > { %v8378_v26 = vunpack.i.h.bf16 %v8376_v48  ;;  %v8377_v54 = vunpack.i.l.bf16 %v8376_v48  ;;  %v8383_v3 = vunpack.i.h.bf16 %v8381_v51  ;;  %v8382_v35 = vunpack.i.l.bf16 %v8381_v51 }
0x1235   : > { %v6870_v31 = vsel %vm2436_vm1, %v6694_v45, %v8377_v54  ;;  %v6871_v21 = vsel %vm2436_vm1, %v6762_v37, %v8378_v26  ;;  %v8538_v37 = vld [vmem:[%s10742_s12 + $0xd4] ss:$8 sps:$4 sm:$0xff]  }
0x1236   : > { %v6873_v34 = vsel %vm719_vm0, %v6870_v31, %v8382_v35  ;;  %v6874_v10 = vsel %vm719_vm0, %v6871_v21, %v8383_v3  ;;  %v8386_v24 = vpop.permute.xlu0 %8385  ;;  %v6866_v2 = vpop.permute.xlu1 %6865 }
0x1237   : > { %v8388_v25 = vunpack.i.h.bf16 %v8386_v24  ;;  %v8387_v42 = vunpack.i.l.bf16 %v8386_v24  ;;  %v6878_v27 = vsel %vm3529_vm5, %v6875_v32, %v6866_v2 }
0x1238   : > { %v6880_v29 = vpack.c.bf16 %v6878_v27, %v6878_v27  ;;  %v7862_v27 = vld [vmem:[%s10741_s11 + $0x1] ss:$0 sm:$0xff] }
0x1239   : > { %v6876_v57 = vsel %vm3529_vm5, %v6873_v34, %v8387_v42  ;;  %v6877_v9 = vsel %vm3529_vm5, %v6874_v10, %v8388_v25  ;;  %v7861_v10 = vld [vmem:[%s10740_s10 + $0x1] ss:$0 sm:$0xff] }
0x123a   : > { %v6879_v18 = vpack.c.bf16 %v6877_v9, %v6876_v57 }
0x123c   : > { %8315 = vmatprep.mubr.bf16.mxu0 %v6879_v18 }
0x123d   : > { %8316 = vmatmul.mubr.bf16.vlgmr.msra.gmra.mrb[44].mxu0 %v6880_v29 }
0x1310   : > { %v8317_v55 = vpop.f32.mrb[44].mxu0 }
0x1311   : > { %v6980_v11 = vpop.f32.mrb[45].mxu0  ;;  %v6996_v43 = vadd.f32 %v8317_v55, %v9801_v14  ;;  %v8523_v14 = vld [vmem:[%s10742_s12 + $0x84] ss:$8 sps:$4 sm:$0xff]  }
0x1312   : > { %v6994_v50 = vadd.f32 %v6980_v11, %v9794_v19  ;;  %v8318_v38 = vpop.f32.mrb[46].mxu0  ;;  %v8521_v19 = vld [vmem:[%s10742_s12 + $0x80] ss:$8 sps:$4 sm:$0xff]   ;;  %7175 = vmatprep.subr.bf16.mxu1 %v8523_v14  ;;  %v8551_v14 = vld [vmem:[%s10744_s14 + $0xd8] sm:$0xff]  }
0x1313   : > { %v6983_v16 = vpop.f32.mrb[47].mxu0  ;;  %v10595_v33 = vadd.f32 %v7858_v58, %v6996_v43  ;;  %7176 = vmatpush1.bf16.msra.mxu1 %v8521_v19  ;;  %v8545_v38 = vld [vmem:[%s10744_s14 + $0xc0] sm:$0xff]   ;;  %v8547_v43 = vld [vmem:[%s10744_s14 + $0xc8] sm:$0xff]   ;;  %v8550_v19 = vld [vmem:[%s10744_s14 + $0x90] sm:$0xff]  }
0x1314   : > { %v10589_v49 = vadd.f32 %v7858_v58, %v6994_v50  ;;  %v6995_v52 = vadd.f32 %v6983_v16, %v9797_v4  ;;  %v8526_v4 = vld [vmem:[%s10742_s12 + $0x94] ss:$8 sps:$4 sm:$0xff]   ;;  %v8546_v16 = vld [vmem:[%s10744_s14 + $0x80] sm:$0xff]   ;;  %8083 = vmatprep.subr.bf16.mxu0 %v8545_v38 }
0x1315   : > { %7177 = vmatprep.subr.bf16.mxu1 %v8526_v4  ;;  %8084 = vmatpush3.bf16.msra.mxu0 %v8546_v16  ;;  %v8552_v4 = vld [vmem:[%s10744_s14 + $0x98] sm:$0xff]  }
0x1316   : > { %v10592_v60 = vadd.f32 %v7858_v58, %v6995_v52  ;;  %7012 = vadd.xlane.f32.xlu0 %v10589_v49  ;;  %8085 = vmatprep.subr.bf16.mxu0 %v8547_v43  ;;  %v8549_v52 = vld [vmem:[%s10744_s14 + $0xd0] sm:$0xff]  }
0x1317   : > { %7178 = vmatpush1.bf16.msra.mxu1 %v8524_v62  ;;  %v8553_v62 = vld [vmem:[%s10744_s14 + $0xe0] sm:$0xff]  }
0x1318   : > { %7014 = vadd.xlane.f32.xlu1 %v10592_v60  ;;  %7179 = vmatprep.subr.bf16.mxu1 %v8529_v30 }
0x131a   : > { %7016 = vadd.xlane.f32.xlu0 %v10595_v33 }
0x131b   : > { %7180 = vmatpush1.bf16.msra.mxu1 %v8527_v40 }
0x131c   : > { %7181 = vmatprep.subr.bf16.mxu1 %v8532_v20 }
0x131f   : > { %7182 = vmatpush1.bf16.msra.mxu1 %v8530_v0 }
0x1320   : > { %7183 = vmatprep.subr.bf16.mxu1 %v8535_v63 }
0x1323   : > { %7184 = vmatpush1.bf16.msra.mxu1 %v8533_v7 }
0x1324   : > { %7185 = vmatprep.subr.bf16.mxu1 %v8538_v37 }
0x1327   : > { %7186 = vmatpush1.bf16.msra.mxu1 %v8536_v59 }
0x1328   : > { %7187 = vmatprep.subr.bf16.mxu1 %v8541_v15 }
0x132b   : > { %7188 = vmatpush1.bf16.msra.mxu1 %v8539_v39 }
0x132c   : > { %7189 = vmatprep.subr.bf16.mxu1 %v8544_v56 }
0x132f   : > { %7190 = vmatpush1.bf16.msra.mxu1 %v8542_v36 }
0x13a3   : > { %v7013_v13 = vpop.xlane.xlu0 %7012 }
0x13a4   : > { %v7018_v61 = vmul.f32 0.0078125, %v7013_v13  ;;  %v8554_v13 = vld [vmem:[%s10744_s14 + $0xa0] sm:$0xff]  }
0x13a5   : > { %v7015_v17 = vpop.xlane.xlu1 %7014 }
0x13a6   : > { %v7021_v45 = vsub.f32 %v10589_v49, %v7018_v61  ;;  %v7019_v12 = vmul.f32 0.0078125, %v7015_v17  ;;  %v8555_v61 = vld [vmem:[%s10744_s14 + $0xe8] sm:$0xff]  }
0x13a7   : > { %v7017_v28 = vpop.xlane.xlu0 %7016  ;;  %v8556_v17 = vld [vmem:[%s10744_s14 + $0xa8] sm:$0xff]  }
0x13a8   : > { %v7022_v53 = vsub.f32 %v10592_v60, %v7019_v12  ;;  %v7020_v41 = vmul.f32 0.0078125, %v7017_v28  ;;  %v7024_v22 = vmul.f32 %v7021_v45, %v7021_v45  ;;  %v8558_v12 = vld [vmem:[%s10744_s14 + $0xb0] sm:$0xff]   ;;  %v8559_v28 = vld [vmem:[%s10744_s14 + $0xf8] sm:$0xff]  }
0x13aa   : > { %v7023_v44 = vsub.f32 %v10595_v33, %v7020_v41  ;;  %7027 = vadd.xlane.f32.xlu0 %v7024_v22  ;;  %v7025_v46 = vmul.f32 %v7022_v53, %v7022_v53  ;;  %v7879_v41 = vld [vmem:[%s10743_s13 + $0x2] sm:$0x3] }
0x13ab   : > { %v7088_v22 = vrot.slane %v7879_v41, %v8990_v6 }
0x13ac   : > { %v7026_v47 = vmul.f32 %v7023_v44, %v7023_v44 }
0x13ae   : > { %7031 = vadd.xlane.f32.xlu1 %v7026_v47  ;;  %7029 = vadd.xlane.f32.xlu0 %v7025_v46 }
0x1437   : > { %v7028_v48 = vpop.xlane.xlu0 %7027 }
0x1438   : > { %v7033_v51 = vmul.f32 0.0078125, %v7028_v48 }
0x143a   : > { %v7036_v26 = vadd.f32 1e-12, %v7033_v51 }
0x143b   : > { %v7030_v54 = vpop.xlane.xlu0 %7029  ;;  %v7032_v3 = vpop.xlane.xlu1 %7031 }
0x143c   : > { %8687 = vrsqrt.f32 %v7036_v26  ;;  %v7034_v35 = vmul.f32 0.0078125, %v7030_v54  ;;  %v7035_v23 = vmul.f32 0.0078125, %v7032_v3 }
0x143e   : > { %v7037_v31 = vadd.f32 1e-12, %v7034_v35  ;;  %v7038_v21 = vadd.f32 1e-12, %v7035_v23 }
0x1440   : > { %8689 = vrsqrt.f32 %v7037_v31 }
0x1441   : > { %8691 = vrsqrt.f32 %v7038_v21 }
0x1446   : > { %v8688_v32 = vpop.eup %8687 }
0x1447   : > { %v7042_v34 = vmul.f32 %v8688_v32, %v7021_v45  ;;  %v8557_v45 = vld [vmem:[%s10744_s14 + $0xf0] sm:$0xff]  }
0x1449   : > { %v7051_v42 = vmul.f32 %v7861_v10, %v7042_v34 }
0x144a   : > { %v8690_v24 = vpop.eup %8689 }
0x144b   : > { %v8692_v2 = vpop.eup %8691  ;;  %v7043_v25 = vmul.f32 %v8690_v24, %v7022_v53  ;;  %v7060_v9 = vadd.f32 %v7862_v27, %v7051_v42  ;;  %v8560_v53 = vld [vmem:[%s10744_s14 + $0xb8] sm:$0xff]  }
0x144c   : > { %v7044_v57 = vmul.f32 %v8692_v2, %v7023_v44  ;;  %v7092_v44 = vrot.slane %v7879_v41, %v8996_v8 }
0x144d   : > { %v7052_v29 = vmul.f32 %v7861_v10, %v7043_v25 }
0x144e   : > { %v7053_v58 = vmul.f32 %v7861_v10, %v7044_v57 }
0x144f   : > { %v7061_v18 = vadd.f32 %v7862_v27, %v7052_v29 }
0x1450   : > { %v7062_v11 = vadd.f32 %v7862_v27, %v7053_v58 }
0x1451   : > { %v7063_v55 = vpack.c.bf16 %v7061_v18, %v7060_v9 }
0x1452   : > { %v7064_v50 = vpack.c.bf16 %v7062_v11, %v7062_v11 }
0x1453   : > { %7208 = vmatmul.mubr.bf16.vlgmr.msra.gmra.mrb[68].mxu1 %v7063_v55 }
0x1454   : > { %7217 = vmatprep.mubr.bf16.mxu1 %v8720_v1  ;;  %v8548_v1 = vld [vmem:[%s10744_s14 + $0x88] sm:$0xff]  }
0x1455   : > { %8086 = vmatpush3.bf16.msra.mxu0 %v8548_v1 }
0x1456   : > { %8087 = vmatprep.subr.bf16.mxu0 %v8549_v52 }
0x1459   : > { %8088 = vmatpush3.bf16.msra.mxu0 %v8550_v19 }
0x145a   : > { %8089 = vmatprep.subr.bf16.mxu0 %v8551_v14 }
0x145b   : > { %7218 = vmatmul.mubr.bf16.gmra.mrb[72].mxu1 %v7064_v50 }
0x145d   : > { %8090 = vmatpush3.bf16.msra.mxu0 %v8552_v4 }
0x145e   : > { %8091 = vmatprep.subr.bf16.mxu0 %v8553_v62 }
0x1461   : > { %8092 = vmatpush3.bf16.msra.mxu0 %v8554_v13 }
0x1462   : > { %8093 = vmatprep.subr.bf16.mxu0 %v8555_v61 }
0x1465   : > { %8094 = vmatpush3.bf16.msra.mxu0 %v8556_v17 }
0x1466   : > { %8095 = vmatprep.subr.bf16.mxu0 %v8557_v45 }
0x1469   : > { %8096 = vmatpush3.bf16.msra.mxu0 %v8558_v12 }
0x146a   : > { %8097 = vmatprep.subr.bf16.mxu0 %v8559_v28 }
0x146d   : > { %8098 = vmatpush3.bf16.msra.mxu0 %v8560_v53 }
0x1526   : > { %v7209_v47 = vpop.f32.mrb[68].mxu1 }
0x1527   : > { %v7210_v46 = vadd.f32 %v7209_v47, %v7088_v22  ;;  %v7211_v40 = vpop.f32.mrb[69].mxu1 }
0x1528   : > { %v7212_v30 = vadd.f32 %v7211_v40, %v7092_v44  ;;  %v7213_v0 = vpop.f32.mrb[70].mxu1 }
0x1529   : > { %v7226_v20 = vmul.f32 %v7210_v46, %v7210_v46  ;;  %v7214_v63 = vadd.f32 %v7213_v0, %v7088_v22  ;;  %v7215_v7 = vpop.f32.mrb[71].mxu1 }
0x152a   : > { %v7227_v37 = vmul.f32 %v7212_v30, %v7212_v30  ;;  %v7216_v59 = vadd.f32 %v7215_v7, %v7092_v44 }
0x152b   : > { %v7232_v15 = vmul.f32 %v7226_v20, %v7210_v46  ;;  %v7228_v39 = vmul.f32 %v7214_v63, %v7214_v63 }
0x152c   : > { %v7233_v56 = vmul.f32 %v7227_v37, %v7212_v30  ;;  %v7229_v36 = vmul.f32 %v7216_v59, %v7216_v59 }
0x152d   : > { %v7238_v48 = vmul.f32 0.044715, %v7232_v15  ;;  %v7234_v51 = vmul.f32 %v7228_v39, %v7214_v63 }
0x152e   : > { %v7239_v26 = vmul.f32 0.044715, %v7233_v56  ;;  %v7235_v6 = vmul.f32 %v7229_v36, %v7216_v59  ;;  %v7219_v54 = vpop.f32.mrb[72].mxu1 }
0x152f   : > { %v7244_v8 = vadd.f32 %v7238_v48, %v7210_v46  ;;  %v7240_v3 = vmul.f32 0.044715, %v7234_v51  ;;  %v7220_v35 = vadd.f32 %v7219_v54, %v7088_v22  ;;  %v7221_v23 = vpop.f32.mrb[73].mxu1 }
0x1530   : > { %v7245_v31 = vadd.f32 %v7239_v26, %v7212_v30  ;;  %v7241_v21 = vmul.f32 0.044715, %v7235_v6  ;;  %v7222_v32 = vadd.f32 %v7221_v23, %v7092_v44  ;;  %v7223_v34 = vpop.f32.mrb[74].mxu1  ;;  %v7945_v6 = vld [vmem:[%s10745_s15 + $0x1] ss:$0 sm:$0xff] }
0x1531   : > { %v7250_v10 = vmul.f32 0.7978846, %v7244_v8  ;;  %v7246_v24 = vadd.f32 %v7240_v3, %v7214_v63  ;;  %v7230_v2 = vmul.f32 %v7220_v35, %v7220_v35  ;;  %v7224_v25 = vpop.f32.mrb[75].mxu1 }
0x1532   : > { %v7251_v42 = vmul.f32 0.7978846, %v7245_v31  ;;  %v7247_v27 = vadd.f32 %v7241_v21, %v7216_v59  ;;  %v7231_v29 = vmul.f32 %v7222_v32, %v7222_v32 }
0x1533   : > { %8693 = vtanh.f32 %v7250_v10  ;;  %v7252_v57 = vmul.f32 0.7978846, %v7246_v24  ;;  %v7236_v9 = vmul.f32 %v7230_v2, %v7220_v35 }
0x1534   : > { %8695 = vtanh.f32 %v7251_v42  ;;  %v7253_v18 = vmul.f32 0.7978846, %v7247_v27  ;;  %v7237_v55 = vmul.f32 %v7231_v29, %v7222_v32 }
0x1535   : > { %8697 = vtanh.f32 %v7252_v57  ;;  %v7242_v58 = vmul.f32 0.044715, %v7236_v9 }
0x1536   : > { %8699 = vtanh.f32 %v7253_v18  ;;  %v7243_v11 = vmul.f32 0.044715, %v7237_v55 }
0x1537   : > { %v7248_v50 = vadd.f32 %v7242_v58, %v7220_v35 }
0x1538   : > { %v7249_v38 = vadd.f32 %v7243_v11, %v7222_v32 }
0x1539   : > { %v7254_v16 = vmul.f32 0.7978846, %v7248_v50 }
0x153a   : > { %v7255_v43 = vmul.f32 0.7978846, %v7249_v38 }
0x153b   : > { %8701 = vtanh.f32 %v7254_v16 }
0x153c   : > { %8703 = vtanh.f32 %v7255_v43 }
0x153d   : > { %v8694_v1 = vpop.eup %8693 }
0x153e   : > { %v8696_v52 = vpop.eup %8695  ;;  %v7262_v19 = vadd.f32 1.0, %v8694_v1 }
0x153f   : > { %v8698_v14 = vpop.eup %8697  ;;  %v7263_v4 = vadd.f32 1.0, %v8696_v52 }
0x1540   : > { %v8700_v62 = vpop.eup %8699  ;;  %v7268_v13 = vmul.f32 0.5, %v7262_v19  ;;  %v7264_v61 = vadd.f32 1.0, %v8698_v14 }
0x1541   : > { %v7265_v17 = vadd.f32 1.0, %v8700_v62  ;;  %v7269_v45 = vmul.f32 0.5, %v7263_v4 }
0x1542   : > { %v7270_v12 = vmul.f32 0.5, %v7264_v61  ;;  %v7274_v53 = vmul.f32 %v7268_v13, %v7210_v46  ;;  %v7946_v61 = vld [vmem:[%s10746_s16] ss:$0 sm:$0xff] }
0x1543   : > { %v7271_v28 = vmul.f32 0.5, %v7265_v17  ;;  %v7275_v44 = vmul.f32 %v7269_v45, %v7212_v30 }
0x1544   : > { %v7276_v41 = vmul.f32 %v7270_v12, %v7214_v63 }
0x1545   : > { %v8702_v22 = vpop.eup %8701  ;;  %v7277_v47 = vmul.f32 %v7271_v28, %v7216_v59  ;;  %v7531_v28 = vadd.s32 16, %v8987_v5 }
0x1546   : > { %v8704_v40 = vpop.eup %8703  ;;  %v7280_v0 = vpack.c.bf16 %v7276_v41, %v7274_v53  ;;  %v7266_v20 = vadd.f32 1.0, %v8702_v22  ;;  %v7947_v53 = vld [vmem:[%s10747_s17] ss:$0 sm:$0xff] }
0x1547   : > { %v7281_v7 = vpack.c.bf16 %v7277_v47, %v7275_v44  ;;  %v7267_v37 = vadd.f32 1.0, %v8704_v40  ;;  %vm7534_vm6 = vcmp.lt.s32.totalorder %v7531_v28, 17 }
0x1548   : > { %v7272_v15 = vmul.f32 0.5, %v7266_v20  ;;  %v8727_v20 = vmov 0.0  }
0x1549   : > { %7445 = vmatprep.mubr.bf16.mxu0 %v7281_v7  ;;  %v7273_v39 = vmul.f32 0.5, %v7267_v37  ;;  %v7537_v7 = vsel %vm7534_vm6, 0.05882353, %v8727_v20 }
0x154a   : > { %7446 = vmatmul.mubr.bf16.vlgmr.msra.gmra.mrb[48].mxu0 %v7280_v0  ;;  %v7278_v36 = vmul.f32 %v7272_v15, %v7220_v35 }
0x154b   : > { %v7279_v56 = vmul.f32 %v7273_v39, %v7222_v32 }
0x154c   : > { %v7282_v51 = vpack.c.bf16 %v7278_v36, %v7278_v36 }
0x154d   : > { %v7283_v48 = vpack.c.bf16 %v7279_v56, %v7279_v56 }
0x154f   : > { %7453 = vmatprep.mubr.bf16.mxu0 %v7283_v48 }
0x1552   : > { %7454 = vmatmul.mubr.bf16.gmra.mrb[52].mxu0 %v7282_v51 }
0x161d   : > { %v8099_v46 = vpop.f32.mrb[48].mxu0 }
0x161e   : > { %v8100_v63 = vpop.f32.mrb[49].mxu0 }
0x161f   : > { %v8101_v26 = vadd.f32 %v8100_v63, %v8099_v46  ;;  %v8102_v30 = vpop.f32.mrb[50].mxu0 }
0x1620   : > { %v8103_v59 = vpop.f32.mrb[51].mxu0 }
0x1621   : > { %v7461_v54 = vadd.f32 %v8101_v26, %v10589_v49  ;;  %v8104_v8 = vadd.f32 %v8103_v59, %v8102_v30 }
0x1623   : > { %v7462_v3 = vadd.f32 %v8104_v8, %v10592_v60  ;;  %v7472_v23 = vadd.f32 %v7945_v6, %v7461_v54 }
0x1625   : > { %7477 = vadd.xlane.f32.xlu0 %v7472_v23  ;;  %v8105_v35 = vpop.f32.mrb[52].mxu0  ;;  %v7473_v31 = vadd.f32 %v7945_v6, %v7462_v3 }
0x1626   : > { %v8106_v21 = vpop.f32.mrb[53].mxu0 }
0x1627   : > { %v8107_v32 = vadd.f32 %v8106_v21, %v8105_v35  ;;  %7479 = vadd.xlane.f32.xlu1 %v7473_v31  ;;  %v8108_v34 = vpop.f32.mrb[54].mxu0 }
0x1628   : > { %v8109_v10 = vpop.f32.mrb[55].mxu0 }
0x1629   : > { %v7463_v24 = vadd.f32 %v8107_v32, %v10595_v33 }
0x162b   : > { %v7474_v2 = vadd.f32 %v7945_v6, %v7463_v24 }
0x162d   : > { %7481 = vadd.xlane.f32.xlu0 %v7474_v2 }
0x16b2   : > { %v7478_v25 = vpop.xlane.xlu0 %7477 }
0x16b3   : > { %v7483_v42 = vmul.f32 0.0078125, %v7478_v25 }
0x16b4   : > { %v7480_v27 = vpop.xlane.xlu1 %7479 }
0x16b5   : > { %v7486_v49 = vsub.f32 %v7472_v23, %v7483_v42  ;;  %v7484_v29 = vmul.f32 0.0078125, %v7480_v27 }
0x16b7   : > { %v7487_v57 = vsub.f32 %v7473_v31, %v7484_v29  ;;  %v7489_v60 = vmul.f32 %v7486_v49, %v7486_v49 }
0x16b9   : > { %7492 = vadd.xlane.f32.xlu1 %v7489_v60  ;;  %v7490_v9 = vmul.f32 %v7487_v57, %v7487_v57 }
0x16ba   : > { %v7482_v18 = vpop.xlane.xlu0 %7481 }
0x16bb   : > { %v7485_v55 = vmul.f32 0.0078125, %v7482_v18  ;;  %7494 = vadd.xlane.f32.xlu0 %v7490_v9 }
0x16bd   : > { %v7488_v58 = vsub.f32 %v7474_v2, %v7485_v55 }
0x16bf   : > { %v7491_v11 = vmul.f32 %v7488_v58, %v7488_v58 }
0x16c1   : > { %7496 = vadd.xlane.f32.xlu1 %v7491_v11 }
0x1746   : > { %v7493_v50 = vpop.xlane.xlu1 %7492 }
0x1747   : > { %v7498_v38 = vmul.f32 0.0078125, %v7493_v50 }
0x1748   : > { %v7495_v33 = vpop.xlane.xlu0 %7494 }
0x1749   : > { %v7501_v16 = vadd.f32 1e-12, %v7498_v38  ;;  %v7499_v43 = vmul.f32 0.0078125, %v7495_v33 }
0x174b   : > { %8705 = vrsqrt.f32 %v7501_v16  ;;  %v7502_v1 = vadd.f32 1e-12, %v7499_v43 }
0x174d   : > { %8707 = vrsqrt.f32 %v7502_v1 }
0x174e   : > { %v7497_v52 = vpop.xlane.xlu1 %7496 }
0x174f   : > { %v7500_v19 = vmul.f32 0.0078125, %v7497_v52 }
0x1751   : > { %v7503_v14 = vadd.f32 1e-12, %v7500_v19 }
0x1753   : > { %8709 = vrsqrt.f32 %v7503_v14 }
0x1755   : > { %v8706_v4 = vpop.eup %8705 }
0x1756   : > { %v7507_v62 = vmul.f32 %v8706_v4, %v7486_v49 }
0x1757   : > { %v8708_v13 = vpop.eup %8707 }
0x1758   : > { %v7508_v17 = vmul.f32 %v8708_v13, %v7487_v57  ;;  %v7516_v45 = vmul.f32 %v7946_v61, %v7507_v62 }
0x175a   : > { %v7517_v12 = vmul.f32 %v7946_v61, %v7508_v17  ;;  %v7525_v44 = vadd.f32 %v7947_v53, %v7516_v45 }
0x175c   : > { %v7526_v41 = vadd.f32 %v7947_v53, %v7517_v12  ;;  %v7538_v37 = vmul.f32 0.05882353, %v7525_v44 }
0x175d   : > { %v8710_v22 = vpop.eup %8709 }
0x175e   : > { %v7509_v47 = vmul.f32 %v8710_v22, %v7488_v58  ;;  %v7539_v40 = vmul.f32 0.05882353, %v7526_v41 }
0x1760   : > { %v7518_v0 = vmul.f32 %v7946_v61, %v7509_v47  ;;  %v7541_v39 = vadd.f32 %v7539_v40, %v7538_v37 }
0x1762   : > { %v7527_v15 = vadd.f32 %v7947_v53, %v7518_v0 }
0x1764   : > { %v7540_v56 = vmul.f32 %v7537_v7, %v7527_v15 }
0x1766   : > { %v7542_v36 = vadd.f32 %v7541_v39, %v7540_v56 }
0x1768   : > { %v7543_v5 = vrot.slane %v7542_v36, 4 }
0x176a   : > { %v7544_v48 = vadd.f32 %v7543_v5, %v7542_v36 }
0x176c   : > { %v7545_v51 = vrot.slane %v7544_v48, 2 }
0x176e   : > { %v7546_v46 = vadd.f32 %v7545_v51, %v7544_v48 }
0x1770   : > { %v7547_v63 = vrot.slane %v7546_v46, 1 }
0x1772   : > { %v7548_v26 = vadd.f32 %v7547_v63, %v7546_v46 }
0x1774   : > { %7549 = vst [vmem:[%s571_s19] sm:$0x1] %v7548_v26 }
0x1775 PF: > { %s28_s27 = sadd.s32 1, %s8718_s27  }
0x1776   : > { %p25_p4 = scmp.ge.s32.totalorder %s28_s27, 4  }
0x1778   :  { %27 = sbr.rel (!%p25_p4) target bundleno = 4 (0x4), region = 134 }

</bundles_post_ra>
